<compile_context>
chip_gen: v7x
topology: tpu7x:2x2x1
jax: 0.10.0
libtpu: 0.0.40
codegen_flags: <defaults>
</compile_context>

<pallas_src>
import math
import jax
import jax.numpy as jnp
from jax.experimental import pallas as pl
from jax.experimental.pallas import tpu as pltpu


# --------------------------------------------------------------------------
# Fused dense-block kernel (one batch element per grid step).
#   x_ref:     (1, H, W, CP)        input, channels zero-padded to CP
#   scale_ref: (L, CP)              folded BN scale per layer (0 beyond C_i)
#   bias_ref:  (L, CP)              folded BN bias  per layer (0 beyond C_i)
#   w_ref:     (L, 3, 3*CP, CP)     bf16 conv weights, packed per kh row:
#                                   [kh, kw*CP + c, c_off_i + g] = W[kh,kw,c,g]
#   cb_ref:    (L, CP)              conv bias placed at lanes [c_off_i, c_off_i+G)
#   o_ref:     (1, H, W, CP)        running concatenated feature map (output)
#   ypad_ref:  (H+2, W+2, CP) bf16  zero-halo scratch for SAME padding
# --------------------------------------------------------------------------
def ddb_block_kernel(x_ref, scale_ref, bias_ref, w_ref, cb_ref, o_ref, ypad_ref):
    _, H, W, CP = x_ref.shape
    L = scale_ref.shape[0]

    # Zero the padded scratch; only the interior is written below, so the
    # 1-pixel halo stays zero for every layer (SAME padding).
    ypad_ref[...] = jnp.zeros_like(ypad_ref)

    # Running (channel-concatenated) feature map lives in the output block.
    # Lanes >= C_in arrive zero-padded from the wrapper.
    o_ref[0] = x_ref[0]

    for i in range(L):                                   # static unroll over layers
        feat = o_ref[0]                                  # (H, W, CP) f32
        # Folded BatchNorm (eval) + ReLU; padded channels have scale=bias=0 -> y=0.
        y = jnp.maximum(feat * scale_ref[i][None, None, :]
                        + bias_ref[i][None, None, :], 0.0)
        # Write the interior of the zero-halo scratch (bf16 MXU operand).
        ypad_ref[pl.ds(1, H), pl.ds(1, W), :] = y.astype(ypad_ref.dtype)

        # Hoist the W-direction (sublane) shifts: three dw-shifted slabs, built once
        # per layer, concatenated along lanes -> contraction dim 3*CP.
        ycat = jnp.concatenate(
            [ypad_ref[:, pl.ds(0, W), :],
             ypad_ref[:, pl.ds(1, W), :],
             ypad_ref[:, pl.ds(2, W), :]], axis=-1)      # (H+2, W, 3*CP) bf16
        ycat2 = ycat.reshape((H + 2) * W, 3 * CP)        # rows are (row, col) major

        # 3 MXU matmuls per layer (one per kh row); dh slice is an aligned row slice.
        acc = jnp.zeros((H * W, CP), jnp.float32)
        for dh in range(3):
            tap = ycat2[dh * W:(dh + H) * W]             # (H*W, 3*CP) bf16
            acc = acc + jnp.dot(tap, w_ref[i, dh],
                                preferred_element_type=jnp.float32)
        acc = acc + cb_ref[i][None, :]

        # Weights/bias are pre-shifted to this layer's output-channel lanes and zero
        # elsewhere, and those lanes are currently zero in o_ref, so a full-width
        # lane-dense add appends the G new channels (no masked sub-128 store).
        o_ref[0] = o_ref[0] + acc.reshape(H, W, CP)


# --------------------------------------------------------------------------
# Parameter construction (deterministic, matches nn.Module shapes) + packing
# --------------------------------------------------------------------------
def make_ddb_params(key, in_channels, growth_rate, num_layers, eps=1e-5):
    params = []
    for i in range(num_layers):
        c_in = in_channels + i * growth_rate
        k = jax.random.fold_in(key, i)
        k_w, k_b, k_g, k_be, k_m, k_v = jax.random.split(k, 6)
        fan_in = c_in * 9
        w_hwio = jax.random.normal(k_w, (3, 3, c_in, growth_rate),
                                   jnp.float32) * (1.0 / math.sqrt(fan_in))
        cbias = jax.random.normal(k_b, (growth_rate,), jnp.float32) * 0.01
        gamma = 1.0 + 0.1 * jax.random.normal(k_g, (c_in,), jnp.float32)
        beta = 0.05 * jax.random.normal(k_be, (c_in,), jnp.float32)
        r_mean = 0.1 * jax.random.normal(k_m, (c_in,), jnp.float32)
        r_var = 1.0 + 0.1 * jax.random.uniform(k_v, (c_in,), jnp.float32)
        scale = gamma / jnp.sqrt(r_var + eps)
        bias = beta - r_mean * scale
        params.append(dict(scale=scale, bias=bias, w=w_hwio, cbias=cbias))
    return params


def pack_ddb_params(params, in_channels, growth_rate, c_pad):
    """Stack + lane-pad all layers' params; shift conv outputs to their channel slot."""
    L, G, CP = len(params), growth_rate, c_pad
    scale_p = jnp.zeros((L, CP), jnp.float32)
    bias_p = jnp.zeros((L, CP), jnp.float32)
    w_p = jnp.zeros((L, 3, 3 * CP, CP), jnp.float32)
    cb_p = jnp.zeros((L, CP), jnp.float32)
    for i, p in enumerate(params):
        c_in = in_channels + i * G
        c_off = c_in                                      # new features append here
        scale_p = scale_p.at[i, :c_in].set(p["scale"])
        bias_p = bias_p.at[i, :c_in].set(p["bias"])
        for kw in range(3):
            w_p = w_p.at[i, :, kw * CP:kw * CP + c_in,
                         c_off:c_off + G].set(p["w"][:, kw])
        cb_p = cb_p.at[i, c_off:c_off + G].set(p["cbias"])
    return scale_p, bias_p, w_p.astype(jnp.bfloat16), cb_p


# --------------------------------------------------------------------------
# DDB forward (NCHW in / NCHW out, like the PyTorch module)
# --------------------------------------------------------------------------
def ddb_forward(x_nchw, params, bottle=False):
    num_layers = len(params)
    in_channels = params[0]["scale"].shape[0]
    growth_rate = params[0]["cbias"].shape[0]
    N, C_in, H, W = x_nchw.shape
    assert C_in == in_channels
    c_final = in_channels + num_layers * growth_rate
    CP = 128 * pl.cdiv(c_final, 128)                      # lane-dense channel padding

    scale_p, bias_p, w_p, cb_p = pack_ddb_params(params, in_channels, growth_rate, CP)

    x = jnp.transpose(x_nchw, (0, 2, 3, 1))               # NCHW -> NHWC
    x = jnp.pad(x, ((0, 0), (0, 0), (0, 0), (0, CP - C_in)))

    out = pl.pallas_call(
        ddb_block_kernel,
        out_shape=jax.ShapeDtypeStruct((N, H, W, CP), x.dtype),
        grid=(N,),
        in_specs=[
            pl.BlockSpec((1, H, W, CP), lambda n: (n, 0, 0, 0)),
            pl.BlockSpec((num_layers, CP), lambda n: (0, 0)),
            pl.BlockSpec((num_layers, CP), lambda n: (0, 0)),
            pl.BlockSpec((num_layers, 3, 3 * CP, CP), lambda n: (0, 0, 0, 0)),
            pl.BlockSpec((num_layers, CP), lambda n: (0, 0)),
        ],
        out_specs=pl.BlockSpec((1, H, W, CP), lambda n: (n, 0, 0, 0)),
        scratch_shapes=[pltpu.VMEM((H + 2, W + 2, CP), jnp.bfloat16)],
        compiler_params=pltpu.CompilerParams(dimension_semantics=("parallel",)),
    )(x, scale_p, bias_p, w_p, cb_p)

    out = out[..., :c_final]                              # drop lane padding
    if bottle:
        out = out[..., in_channels:]                      # concat of new features only
    return jnp.transpose(out, (0, 3, 1, 2))               # NHWC -> NCHW


# Pure-JAX reference (lax.conv, same bf16 matmul operands / f32 accumulation).
def ddb_forward_ref(x_nchw, params, bottle=False):
    x = jnp.transpose(x_nchw, (0, 2, 3, 1))
    feats = []
    for p in params:
        y = jnp.maximum(x * p["scale"] + p["bias"], 0.0)
        nf = jax.lax.conv_general_dilated(
            y.astype(jnp.bfloat16), p["w"].astype(jnp.bfloat16),
            window_strides=(1, 1), padding="SAME",
            dimension_numbers=("NHWC", "HWIO", "NHWC"),
            preferred_element_type=jnp.float32) + p["cbias"]
        feats.append(nf)
        x = jnp.concatenate([x, nf], axis=-1)
    if bottle:
        x = jnp.concatenate(feats, axis=-1)
    return jnp.transpose(x, (0, 3, 1, 2))


if __name__ == "__main__":
    in_channels, growth_rate, num_layers = 4, 12, 4
    N, H, W = 2, 16, 16

    key = jax.random.PRNGKey(0)
    k_x, k_p = jax.random.split(key)
    x = jax.random.normal(k_x, (N, in_channels, H, W), jnp.float32)
    params = make_ddb_params(k_p, in_channels, growth_rate, num_layers)

    out = jax.block_until_ready(ddb_forward(x, params, bottle=False))
    expected_c = in_channels + num_layers * growth_rate
    assert out.shape == (N, expected_c, H, W), out.shape

    ref = jax.block_until_ready(ddb_forward_ref(x, params, bottle=False))
    err = float(jnp.max(jnp.abs(out - ref)))
    assert jnp.allclose(out, ref, atol=2e-3, rtol=2e-3), err

    # bottle=True path (concat of the new features only)
    out_b = jax.block_until_ready(ddb_forward(x, params, bottle=True))
    ref_b = jax.block_until_ready(ddb_forward_ref(x, params, bottle=True))
    assert out_b.shape == (N, num_layers * growth_rate, H, W), out_b.shape
    assert jnp.allclose(out_b, ref_b, atol=2e-3, rtol=2e-3), \
        float(jnp.max(jnp.abs(out_b - ref_b)))

    print("KERNEL_OK")
</pallas_src>

<mosaic_0001>
module attributes {stable_mosaic.version = 11 : i64} {
  func.func @ddb_block_kernel(%arg0: i32, %arg1: memref<1x16x16x128xf32, #tpu.memory_space<vmem>>, %arg2: memref<4x128xf32, #tpu.memory_space<vmem>>, %arg3: memref<4x128xf32, #tpu.memory_space<vmem>>, %arg4: memref<4x3x384x128xbf16, #tpu.memory_space<vmem>>, %arg5: memref<4x128xf32, #tpu.memory_space<vmem>>, %arg6: memref<1x16x16x128xf32, #tpu.memory_space<vmem>>, %arg7: memref<18x18x128xbf16, #tpu.memory_space<vmem>>) attributes {dimension_semantics = [#tpu.dimension_semantics<parallel>], iteration_bounds = array<i64: 2>, scalar_prefetch = 0 : i64, scratch_operands = 1 : i64, tpu.core_type = #tpu.core_type<tc>, window_params = [{transform_indices = @transform_0, window_bounds = array<i64: 1, 16, 16, 128>}, {pipeline_mode = #tpu.pipeline_mode<synchronous>, transform_indices = @transform_1, window_bounds = array<i64: 4, 128>}, {pipeline_mode = #tpu.pipeline_mode<synchronous>, transform_indices = @transform_2, window_bounds = array<i64: 4, 128>}, {pipeline_mode = #tpu.pipeline_mode<synchronous>, transform_indices = @transform_3, window_bounds = array<i64: 4, 3, 384, 128>}, {pipeline_mode = #tpu.pipeline_mode<synchronous>, transform_indices = @transform_4, window_bounds = array<i64: 4, 128>}, {transform_indices = @transform_5, window_bounds = array<i64: 1, 16, 16, 128>}]} {
    %cst = arith.constant 0.000000e+00 : bf16
    %0 = vector.broadcast %cst : bf16 to vector<18x18x128xbf16>
    %c0 = arith.constant 0 : index
    %c0_0 = arith.constant 0 : index
    %c0_1 = arith.constant 0 : index
    %1 = vector.load %arg7[%c0, %c0_0, %c0_1] : memref<18x18x128xbf16, #tpu.memory_space<vmem>>, vector<18x18x128xbf16>
    tpu.vector_store %arg7[%c0, %c0_0, %c0_1], %0 {strides = array<i32>} : memref<18x18x128xbf16, #tpu.memory_space<vmem>>, vector<18x18x128xbf16>,
    %c0_2 = arith.constant 0 : index
    %c0_3 = arith.constant 0 : index
    %c0_4 = arith.constant 0 : index
    %c0_5 = arith.constant 0 : index
    %2 = vector.load %arg1[%c0_2, %c0_3, %c0_4, %c0_5] : memref<1x16x16x128xf32, #tpu.memory_space<vmem>>, vector<1x16x16x128xf32>
    %3 = vector.shape_cast %2 : vector<1x16x16x128xf32> to vector<16x16x128xf32>
    %c0_6 = arith.constant 0 : index
    %c0_7 = arith.constant 0 : index
    %c0_8 = arith.constant 0 : index
    %c0_9 = arith.constant 0 : index
    %4 = vector.load %arg6[%c0_6, %c0_7, %c0_8, %c0_9] : memref<1x16x16x128xf32, #tpu.memory_space<vmem>>, vector<1x16x16x128xf32>
    %5 = vector.shape_cast %4 : vector<1x16x16x128xf32> to vector<16x16x128xf32>
    %6 = vector.shape_cast %3 : vector<16x16x128xf32> to vector<1x16x16x128xf32>
    tpu.vector_store %arg6[%c0_6, %c0_7, %c0_8, %c0_9], %6 {strides = array<i32>} : memref<1x16x16x128xf32, #tpu.memory_space<vmem>>, vector<1x16x16x128xf32>,
    %c0_10 = arith.constant 0 : index
    %c0_11 = arith.constant 0 : index
    %c0_12 = arith.constant 0 : index
    %c0_13 = arith.constant 0 : index
    %7 = vector.load %arg6[%c0_10, %c0_11, %c0_12, %c0_13] : memref<1x16x16x128xf32, #tpu.memory_space<vmem>>, vector<1x16x16x128xf32>
    %8 = vector.shape_cast %7 : vector<1x16x16x128xf32> to vector<16x16x128xf32>
    %c0_14 = arith.constant 0 : index
    %c0_15 = arith.constant 0 : index
    %9 = vector.load %arg2[%c0_14, %c0_15] : memref<4x128xf32, #tpu.memory_space<vmem>>, vector<1x128xf32>
    %10 = vector.shape_cast %9 : vector<1x128xf32> to vector<128xf32>
    %11 = vector.shape_cast %10 : vector<128xf32> to vector<1x1x128xf32>
    %12 = vector.broadcast %11 : vector<1x1x128xf32> to vector<16x16x128xf32>
    %13 = arith.mulf %8, %12 : vector<16x16x128xf32>
    %c0_16 = arith.constant 0 : index
    %c0_17 = arith.constant 0 : index
    %14 = vector.load %arg3[%c0_16, %c0_17] : memref<4x128xf32, #tpu.memory_space<vmem>>, vector<1x128xf32>
    %15 = vector.shape_cast %14 : vector<1x128xf32> to vector<128xf32>
    %16 = vector.shape_cast %15 : vector<128xf32> to vector<1x1x128xf32>
    %17 = vector.broadcast %16 : vector<1x1x128xf32> to vector<16x16x128xf32>
    %18 = arith.addf %13, %17 : vector<16x16x128xf32>
    %cst_18 = arith.constant 0.000000e+00 : f32
    %19 = vector.broadcast %cst_18 : f32 to vector<16x16x128xf32>
    %20 = arith.maximumf %18, %19 : vector<16x16x128xf32>
    %21 = arith.truncf %20 : vector<16x16x128xf32> to vector<16x16x128xbf16>
    %c1 = arith.constant 1 : index
    %c1_19 = arith.constant 1 : index
    %c0_20 = arith.constant 0 : index
    %22 = vector.load %arg7[%c1, %c1_19, %c0_20] : memref<18x18x128xbf16, #tpu.memory_space<vmem>>, vector<16x16x128xbf16>
    tpu.vector_store %arg7[%c1, %c1_19, %c0_20], %21 {strides = array<i32>} : memref<18x18x128xbf16, #tpu.memory_space<vmem>>, vector<16x16x128xbf16>,
    %c0_21 = arith.constant 0 : index
    %c0_22 = arith.constant 0 : index
    %c0_23 = arith.constant 0 : index
    %23 = vector.load %arg7[%c0_21, %c0_22, %c0_23] : memref<18x18x128xbf16, #tpu.memory_space<vmem>>, vector<18x16x128xbf16>
    %c0_24 = arith.constant 0 : index
    %c1_25 = arith.constant 1 : index
    %c0_26 = arith.constant 0 : index
    %24 = vector.load %arg7[%c0_24, %c1_25, %c0_26] : memref<18x18x128xbf16, #tpu.memory_space<vmem>>, vector<18x16x128xbf16>
    %c0_27 = arith.constant 0 : index
    %c2 = arith.constant 2 : index
    %c0_28 = arith.constant 0 : index
    %25 = vector.load %arg7[%c0_27, %c2, %c0_28] : memref<18x18x128xbf16, #tpu.memory_space<vmem>>, vector<18x16x128xbf16>
    %26 = tpu.concatenate %23, %24, %25 in 2 : vector<18x16x128xbf16>, vector<18x16x128xbf16>, vector<18x16x128xbf16> -> vector<18x16x384xbf16>
    %27 = vector.shape_cast %26 : vector<18x16x384xbf16> to vector<288x384xbf16>
    %cst_29 = arith.constant 0.000000e+00 : f32
    %28 = vector.broadcast %cst_29 : f32 to vector<256x128xf32>
    %29 = vector.extract_strided_slice %27 {offsets = [0, 0], sizes = [256, 384], strides = [1, 1]} : vector<288x384xbf16> to vector<256x384xbf16>
    %c0_30 = arith.constant 0 : index
    %c0_31 = arith.constant 0 : index
    %c0_32 = arith.constant 0 : index
    %c0_33 = arith.constant 0 : index
    %30 = vector.load %arg4[%c0_30, %c0_31, %c0_32, %c0_33] : memref<4x3x384x128xbf16, #tpu.memory_space<vmem>>, vector<1x1x384x128xbf16>
    %31 = vector.shape_cast %30 : vector<1x1x384x128xbf16> to vector<384x128xbf16>
    %cst_34 = arith.constant dense<0.000000e+00> : vector<256x128xf32>
    %32 = tpu.matmul %29, %31, %cst_34 {dimension_numbers = #tpu.dot_dimension_numbers<[1], [0], [0], [1], [0, 0, 1, 1], [], []>} : vector<256x384xbf16>, vector<384x128xbf16>, vector<256x128xf32> -> vector<256x128xf32>
    %33 = arith.addf %28, %32 : vector<256x128xf32>
    %34 = vector.extract_strided_slice %27 {offsets = [16, 0], sizes = [256, 384], strides = [1, 1]} : vector<288x384xbf16> to vector<256x384xbf16>
    %c0_35 = arith.constant 0 : index
    %c1_36 = arith.constant 1 : index
    %c0_37 = arith.constant 0 : index
    %c0_38 = arith.constant 0 : index
    %35 = vector.load %arg4[%c0_35, %c1_36, %c0_37, %c0_38] : memref<4x3x384x128xbf16, #tpu.memory_space<vmem>>, vector<1x1x384x128xbf16>
    %36 = vector.shape_cast %35 : vector<1x1x384x128xbf16> to vector<384x128xbf16>
    %cst_39 = arith.constant dense<0.000000e+00> : vector<256x128xf32>
    %37 = tpu.matmul %34, %36, %cst_39 {dimension_numbers = #tpu.dot_dimension_numbers<[1], [0], [0], [1], [0, 0, 1, 1], [], []>} : vector<256x384xbf16>, vector<384x128xbf16>, vector<256x128xf32> -> vector<256x128xf32>
    %38 = arith.addf %33, %37 : vector<256x128xf32>
    %39 = vector.extract_strided_slice %27 {offsets = [32, 0], sizes = [256, 384], strides = [1, 1]} : vector<288x384xbf16> to vector<256x384xbf16>
    %c0_40 = arith.constant 0 : index
    %c2_41 = arith.constant 2 : index
    %c0_42 = arith.constant 0 : index
    %c0_43 = arith.constant 0 : index
    %40 = vector.load %arg4[%c0_40, %c2_41, %c0_42, %c0_43] : memref<4x3x384x128xbf16, #tpu.memory_space<vmem>>, vector<1x1x384x128xbf16>
    %41 = vector.shape_cast %40 : vector<1x1x384x128xbf16> to vector<384x128xbf16>
    %cst_44 = arith.constant dense<0.000000e+00> : vector<256x128xf32>
    %42 = tpu.matmul %39, %41, %cst_44 {dimension_numbers = #tpu.dot_dimension_numbers<[1], [0], [0], [1], [0, 0, 1, 1], [], []>} : vector<256x384xbf16>, vector<384x128xbf16>, vector<256x128xf32> -> vector<256x128xf32>
    %43 = arith.addf %38, %42 : vector<256x128xf32>
    %c0_45 = arith.constant 0 : index
    %c0_46 = arith.constant 0 : index
    %44 = vector.load %arg5[%c0_45, %c0_46] : memref<4x128xf32, #tpu.memory_space<vmem>>, vector<1x128xf32>
    %45 = vector.shape_cast %44 : vector<1x128xf32> to vector<128xf32>
    %46 = vector.shape_cast %45 : vector<128xf32> to vector<1x128xf32>
    %47 = vector.broadcast %46 : vector<1x128xf32> to vector<256x128xf32>
    %48 = arith.addf %43, %47 : vector<256x128xf32>
    %c0_47 = arith.constant 0 : index
    %c0_48 = arith.constant 0 : index
    %c0_49 = arith.constant 0 : index
    %c0_50 = arith.constant 0 : index
    %49 = vector.load %arg6[%c0_47, %c0_48, %c0_49, %c0_50] : memref<1x16x16x128xf32, #tpu.memory_space<vmem>>, vector<1x16x16x128xf32>
    %50 = vector.shape_cast %49 : vector<1x16x16x128xf32> to vector<16x16x128xf32>
    %51 = vector.shape_cast %48 : vector<256x128xf32> to vector<16x16x128xf32>
    %52 = arith.addf %50, %51 : vector<16x16x128xf32>
    %c0_51 = arith.constant 0 : index
    %c0_52 = arith.constant 0 : index
    %c0_53 = arith.constant 0 : index
    %c0_54 = arith.constant 0 : index
    %53 = vector.load %arg6[%c0_51, %c0_52, %c0_53, %c0_54] : memref<1x16x16x128xf32, #tpu.memory_space<vmem>>, vector<1x16x16x128xf32>
    %54 = vector.shape_cast %53 : vector<1x16x16x128xf32> to vector<16x16x128xf32>
    %55 = vector.shape_cast %52 : vector<16x16x128xf32> to vector<1x16x16x128xf32>
    tpu.vector_store %arg6[%c0_51, %c0_52, %c0_53, %c0_54], %55 {strides = array<i32>} : memref<1x16x16x128xf32, #tpu.memory_space<vmem>>, vector<1x16x16x128xf32>,
    %c0_55 = arith.constant 0 : index
    %c0_56 = arith.constant 0 : index
    %c0_57 = arith.constant 0 : index
    %c0_58 = arith.constant 0 : index
    %56 = vector.load %arg6[%c0_55, %c0_56, %c0_57, %c0_58] : memref<1x16x16x128xf32, #tpu.memory_space<vmem>>, vector<1x16x16x128xf32>
    %57 = vector.shape_cast %56 : vector<1x16x16x128xf32> to vector<16x16x128xf32>
    %c1_59 = arith.constant 1 : index
    %c0_60 = arith.constant 0 : index
    %58 = vector.load %arg2[%c1_59, %c0_60] : memref<4x128xf32, #tpu.memory_space<vmem>>, vector<1x128xf32>
    %59 = vector.shape_cast %58 : vector<1x128xf32> to vector<128xf32>
    %60 = vector.shape_cast %59 : vector<128xf32> to vector<1x1x128xf32>
    %61 = vector.broadcast %60 : vector<1x1x128xf32> to vector<16x16x128xf32>
    %62 = arith.mulf %57, %61 : vector<16x16x128xf32>
    %c1_61 = arith.constant 1 : index
    %c0_62 = arith.constant 0 : index
    %63 = vector.load %arg3[%c1_61, %c0_62] : memref<4x128xf32, #tpu.memory_space<vmem>>, vector<1x128xf32>
    %64 = vector.shape_cast %63 : vector<1x128xf32> to vector<128xf32>
    %65 = vector.shape_cast %64 : vector<128xf32> to vector<1x1x128xf32>
    %66 = vector.broadcast %65 : vector<1x1x128xf32> to vector<16x16x128xf32>
    %67 = arith.addf %62, %66 : vector<16x16x128xf32>
    %cst_63 = arith.constant 0.000000e+00 : f32
    %68 = vector.broadcast %cst_63 : f32 to vector<16x16x128xf32>
    %69 = arith.maximumf %67, %68 : vector<16x16x128xf32>
    %70 = arith.truncf %69 : vector<16x16x128xf32> to vector<16x16x128xbf16>
    %c1_64 = arith.constant 1 : index
    %c1_65 = arith.constant 1 : index
    %c0_66 = arith.constant 0 : index
    %71 = vector.load %arg7[%c1_64, %c1_65, %c0_66] : memref<18x18x128xbf16, #tpu.memory_space<vmem>>, vector<16x16x128xbf16>
    tpu.vector_store %arg7[%c1_64, %c1_65, %c0_66], %70 {strides = array<i32>} : memref<18x18x128xbf16, #tpu.memory_space<vmem>>, vector<16x16x128xbf16>,
    %c0_67 = arith.constant 0 : index
    %c0_68 = arith.constant 0 : index
    %c0_69 = arith.constant 0 : index
    %72 = vector.load %arg7[%c0_67, %c0_68, %c0_69] : memref<18x18x128xbf16, #tpu.memory_space<vmem>>, vector<18x16x128xbf16>
    %c0_70 = arith.constant 0 : index
    %c1_71 = arith.constant 1 : index
    %c0_72 = arith.constant 0 : index
    %73 = vector.load %arg7[%c0_70, %c1_71, %c0_72] : memref<18x18x128xbf16, #tpu.memory_space<vmem>>, vector<18x16x128xbf16>
    %c0_73 = arith.constant 0 : index
    %c2_74 = arith.constant 2 : index
    %c0_75 = arith.constant 0 : index
    %74 = vector.load %arg7[%c0_73, %c2_74, %c0_75] : memref<18x18x128xbf16, #tpu.memory_space<vmem>>, vector<18x16x128xbf16>
    %75 = tpu.concatenate %72, %73, %74 in 2 : vector<18x16x128xbf16>, vector<18x16x128xbf16>, vector<18x16x128xbf16> -> vector<18x16x384xbf16>
    %76 = vector.shape_cast %75 : vector<18x16x384xbf16> to vector<288x384xbf16>
    %cst_76 = arith.constant 0.000000e+00 : f32
    %77 = vector.broadcast %cst_76 : f32 to vector<256x128xf32>
    %78 = vector.extract_strided_slice %76 {offsets = [0, 0], sizes = [256, 384], strides = [1, 1]} : vector<288x384xbf16> to vector<256x384xbf16>
    %c1_77 = arith.constant 1 : index
    %c0_78 = arith.constant 0 : index
    %c0_79 = arith.constant 0 : index
    %c0_80 = arith.constant 0 : index
    %79 = vector.load %arg4[%c1_77, %c0_78, %c0_79, %c0_80] : memref<4x3x384x128xbf16, #tpu.memory_space<vmem>>, vector<1x1x384x128xbf16>
    %80 = vector.shape_cast %79 : vector<1x1x384x128xbf16> to vector<384x128xbf16>
    %cst_81 = arith.constant dense<0.000000e+00> : vector<256x128xf32>
    %81 = tpu.matmul %78, %80, %cst_81 {dimension_numbers = #tpu.dot_dimension_numbers<[1], [0], [0], [1], [0, 0, 1, 1], [], []>} : vector<256x384xbf16>, vector<384x128xbf16>, vector<256x128xf32> -> vector<256x128xf32>
    %82 = arith.addf %77, %81 : vector<256x128xf32>
    %83 = vector.extract_strided_slice %76 {offsets = [16, 0], sizes = [256, 384], strides = [1, 1]} : vector<288x384xbf16> to vector<256x384xbf16>
    %c1_82 = arith.constant 1 : index
    %c1_83 = arith.constant 1 : index
    %c0_84 = arith.constant 0 : index
    %c0_85 = arith.constant 0 : index
    %84 = vector.load %arg4[%c1_82, %c1_83, %c0_84, %c0_85] : memref<4x3x384x128xbf16, #tpu.memory_space<vmem>>, vector<1x1x384x128xbf16>
    %85 = vector.shape_cast %84 : vector<1x1x384x128xbf16> to vector<384x128xbf16>
    %cst_86 = arith.constant dense<0.000000e+00> : vector<256x128xf32>
    %86 = tpu.matmul %83, %85, %cst_86 {dimension_numbers = #tpu.dot_dimension_numbers<[1], [0], [0], [1], [0, 0, 1, 1], [], []>} : vector<256x384xbf16>, vector<384x128xbf16>, vector<256x128xf32> -> vector<256x128xf32>
    %87 = arith.addf %82, %86 : vector<256x128xf32>
    %88 = vector.extract_strided_slice %76 {offsets = [32, 0], sizes = [256, 384], strides = [1, 1]} : vector<288x384xbf16> to vector<256x384xbf16>
    %c1_87 = arith.constant 1 : index
    %c2_88 = arith.constant 2 : index
    %c0_89 = arith.constant 0 : index
    %c0_90 = arith.constant 0 : index
    %89 = vector.load %arg4[%c1_87, %c2_88, %c0_89, %c0_90] : memref<4x3x384x128xbf16, #tpu.memory_space<vmem>>, vector<1x1x384x128xbf16>
    %90 = vector.shape_cast %89 : vector<1x1x384x128xbf16> to vector<384x128xbf16>
    %cst_91 = arith.constant dense<0.000000e+00> : vector<256x128xf32>
    %91 = tpu.matmul %88, %90, %cst_91 {dimension_numbers = #tpu.dot_dimension_numbers<[1], [0], [0], [1], [0, 0, 1, 1], [], []>} : vector<256x384xbf16>, vector<384x128xbf16>, vector<256x128xf32> -> vector<256x128xf32>
    %92 = arith.addf %87, %91 : vector<256x128xf32>
    %c1_92 = arith.constant 1 : index
    %c0_93 = arith.constant 0 : index
    %93 = vector.load %arg5[%c1_92, %c0_93] : memref<4x128xf32, #tpu.memory_space<vmem>>, vector<1x128xf32>
    %94 = vector.shape_cast %93 : vector<1x128xf32> to vector<128xf32>
    %95 = vector.shape_cast %94 : vector<128xf32> to vector<1x128xf32>
    %96 = vector.broadcast %95 : vector<1x128xf32> to vector<256x128xf32>
    %97 = arith.addf %92, %96 : vector<256x128xf32>
    %c0_94 = arith.constant 0 : index
    %c0_95 = arith.constant 0 : index
    %c0_96 = arith.constant 0 : index
    %c0_97 = arith.constant 0 : index
    %98 = vector.load %arg6[%c0_94, %c0_95, %c0_96, %c0_97] : memref<1x16x16x128xf32, #tpu.memory_space<vmem>>, vector<1x16x16x128xf32>
    %99 = vector.shape_cast %98 : vector<1x16x16x128xf32> to vector<16x16x128xf32>
    %100 = vector.shape_cast %97 : vector<256x128xf32> to vector<16x16x128xf32>
    %101 = arith.addf %99, %100 : vector<16x16x128xf32>
    %c0_98 = arith.constant 0 : index
    %c0_99 = arith.constant 0 : index
    %c0_100 = arith.constant 0 : index
    %c0_101 = arith.constant 0 : index
    %102 = vector.load %arg6[%c0_98, %c0_99, %c0_100, %c0_101] : memref<1x16x16x128xf32, #tpu.memory_space<vmem>>, vector<1x16x16x128xf32>
    %103 = vector.shape_cast %102 : vector<1x16x16x128xf32> to vector<16x16x128xf32>
    %104 = vector.shape_cast %101 : vector<16x16x128xf32> to vector<1x16x16x128xf32>
    tpu.vector_store %arg6[%c0_98, %c0_99, %c0_100, %c0_101], %104 {strides = array<i32>} : memref<1x16x16x128xf32, #tpu.memory_space<vmem>>, vector<1x16x16x128xf32>,
    %c0_102 = arith.constant 0 : index
    %c0_103 = arith.constant 0 : index
    %c0_104 = arith.constant 0 : index
    %c0_105 = arith.constant 0 : index
    %105 = vector.load %arg6[%c0_102, %c0_103, %c0_104, %c0_105] : memref<1x16x16x128xf32, #tpu.memory_space<vmem>>, vector<1x16x16x128xf32>
    %106 = vector.shape_cast %105 : vector<1x16x16x128xf32> to vector<16x16x128xf32>
    %c2_106 = arith.constant 2 : index
    %c0_107 = arith.constant 0 : index
    %107 = vector.load %arg2[%c2_106, %c0_107] : memref<4x128xf32, #tpu.memory_space<vmem>>, vector<1x128xf32>
    %108 = vector.shape_cast %107 : vector<1x128xf32> to vector<128xf32>
    %109 = vector.shape_cast %108 : vector<128xf32> to vector<1x1x128xf32>
    %110 = vector.broadcast %109 : vector<1x1x128xf32> to vector<16x16x128xf32>
    %111 = arith.mulf %106, %110 : vector<16x16x128xf32>
    %c2_108 = arith.constant 2 : index
    %c0_109 = arith.constant 0 : index
    %112 = vector.load %arg3[%c2_108, %c0_109] : memref<4x128xf32, #tpu.memory_space<vmem>>, vector<1x128xf32>
    %113 = vector.shape_cast %112 : vector<1x128xf32> to vector<128xf32>
    %114 = vector.shape_cast %113 : vector<128xf32> to vector<1x1x128xf32>
    %115 = vector.broadcast %114 : vector<1x1x128xf32> to vector<16x16x128xf32>
    %116 = arith.addf %111, %115 : vector<16x16x128xf32>
    %cst_110 = arith.constant 0.000000e+00 : f32
    %117 = vector.broadcast %cst_110 : f32 to vector<16x16x128xf32>
    %118 = arith.maximumf %116, %117 : vector<16x16x128xf32>
    %119 = arith.truncf %118 : vector<16x16x128xf32> to vector<16x16x128xbf16>
    %c1_111 = arith.constant 1 : index
    %c1_112 = arith.constant 1 : index
    %c0_113 = arith.constant 0 : index
    %120 = vector.load %arg7[%c1_111, %c1_112, %c0_113] : memref<18x18x128xbf16, #tpu.memory_space<vmem>>, vector<16x16x128xbf16>
    tpu.vector_store %arg7[%c1_111, %c1_112, %c0_113], %119 {strides = array<i32>} : memref<18x18x128xbf16, #tpu.memory_space<vmem>>, vector<16x16x128xbf16>,
    %c0_114 = arith.constant 0 : index
    %c0_115 = arith.constant 0 : index
    %c0_116 = arith.constant 0 : index
    %121 = vector.load %arg7[%c0_114, %c0_115, %c0_116] : memref<18x18x128xbf16, #tpu.memory_space<vmem>>, vector<18x16x128xbf16>
    %c0_117 = arith.constant 0 : index
    %c1_118 = arith.constant 1 : index
    %c0_119 = arith.constant 0 : index
    %122 = vector.load %arg7[%c0_117, %c1_118, %c0_119] : memref<18x18x128xbf16, #tpu.memory_space<vmem>>, vector<18x16x128xbf16>
    %c0_120 = arith.constant 0 : index
    %c2_121 = arith.constant 2 : index
    %c0_122 = arith.constant 0 : index
    %123 = vector.load %arg7[%c0_120, %c2_121, %c0_122] : memref<18x18x128xbf16, #tpu.memory_space<vmem>>, vector<18x16x128xbf16>
    %124 = tpu.concatenate %121, %122, %123 in 2 : vector<18x16x128xbf16>, vector<18x16x128xbf16>, vector<18x16x128xbf16> -> vector<18x16x384xbf16>
    %125 = vector.shape_cast %124 : vector<18x16x384xbf16> to vector<288x384xbf16>
    %cst_123 = arith.constant 0.000000e+00 : f32
    %126 = vector.broadcast %cst_123 : f32 to vector<256x128xf32>
    %127 = vector.extract_strided_slice %125 {offsets = [0, 0], sizes = [256, 384], strides = [1, 1]} : vector<288x384xbf16> to vector<256x384xbf16>
    %c2_124 = arith.constant 2 : index
    %c0_125 = arith.constant 0 : index
    %c0_126 = arith.constant 0 : index
    %c0_127 = arith.constant 0 : index
    %128 = vector.load %arg4[%c2_124, %c0_125, %c0_126, %c0_127] : memref<4x3x384x128xbf16, #tpu.memory_space<vmem>>, vector<1x1x384x128xbf16>
    %129 = vector.shape_cast %128 : vector<1x1x384x128xbf16> to vector<384x128xbf16>
    %cst_128 = arith.constant dense<0.000000e+00> : vector<256x128xf32>
    %130 = tpu.matmul %127, %129, %cst_128 {dimension_numbers = #tpu.dot_dimension_numbers<[1], [0], [0], [1], [0, 0, 1, 1], [], []>} : vector<256x384xbf16>, vector<384x128xbf16>, vector<256x128xf32> -> vector<256x128xf32>
    %131 = arith.addf %126, %130 : vector<256x128xf32>
    %132 = vector.extract_strided_slice %125 {offsets = [16, 0], sizes = [256, 384], strides = [1, 1]} : vector<288x384xbf16> to vector<256x384xbf16>
    %c2_129 = arith.constant 2 : index
    %c1_130 = arith.constant 1 : index
    %c0_131 = arith.constant 0 : index
    %c0_132 = arith.constant 0 : index
    %133 = vector.load %arg4[%c2_129, %c1_130, %c0_131, %c0_132] : memref<4x3x384x128xbf16, #tpu.memory_space<vmem>>, vector<1x1x384x128xbf16>
    %134 = vector.shape_cast %133 : vector<1x1x384x128xbf16> to vector<384x128xbf16>
    %cst_133 = arith.constant dense<0.000000e+00> : vector<256x128xf32>
    %135 = tpu.matmul %132, %134, %cst_133 {dimension_numbers = #tpu.dot_dimension_numbers<[1], [0], [0], [1], [0, 0, 1, 1], [], []>} : vector<256x384xbf16>, vector<384x128xbf16>, vector<256x128xf32> -> vector<256x128xf32>
    %136 = arith.addf %131, %135 : vector<256x128xf32>
    %137 = vector.extract_strided_slice %125 {offsets = [32, 0], sizes = [256, 384], strides = [1, 1]} : vector<288x384xbf16> to vector<256x384xbf16>
    %c2_134 = arith.constant 2 : index
    %c2_135 = arith.constant 2 : index
    %c0_136 = arith.constant 0 : index
    %c0_137 = arith.constant 0 : index
    %138 = vector.load %arg4[%c2_134, %c2_135, %c0_136, %c0_137] : memref<4x3x384x128xbf16, #tpu.memory_space<vmem>>, vector<1x1x384x128xbf16>
    %139 = vector.shape_cast %138 : vector<1x1x384x128xbf16> to vector<384x128xbf16>
    %cst_138 = arith.constant dense<0.000000e+00> : vector<256x128xf32>
    %140 = tpu.matmul %137, %139, %cst_138 {dimension_numbers = #tpu.dot_dimension_numbers<[1], [0], [0], [1], [0, 0, 1, 1], [], []>} : vector<256x384xbf16>, vector<384x128xbf16>, vector<256x128xf32> -> vector<256x128xf32>
    %141 = arith.addf %136, %140 : vector<256x128xf32>
    %c2_139 = arith.constant 2 : index
    %c0_140 = arith.constant 0 : index
    %142 = vector.load %arg5[%c2_139, %c0_140] : memref<4x128xf32, #tpu.memory_space<vmem>>, vector<1x128xf32>
    %143 = vector.shape_cast %142 : vector<1x128xf32> to vector<128xf32>
    %144 = vector.shape_cast %143 : vector<128xf32> to vector<1x128xf32>
    %145 = vector.broadcast %144 : vector<1x128xf32> to vector<256x128xf32>
    %146 = arith.addf %141, %145 : vector<256x128xf32>
    %c0_141 = arith.constant 0 : index
    %c0_142 = arith.constant 0 : index
    %c0_143 = arith.constant 0 : index
    %c0_144 = arith.constant 0 : index
    %147 = vector.load %arg6[%c0_141, %c0_142, %c0_143, %c0_144] : memref<1x16x16x128xf32, #tpu.memory_space<vmem>>, vector<1x16x16x128xf32>
    %148 = vector.shape_cast %147 : vector<1x16x16x128xf32> to vector<16x16x128xf32>
    %149 = vector.shape_cast %146 : vector<256x128xf32> to vector<16x16x128xf32>
    %150 = arith.addf %148, %149 : vector<16x16x128xf32>
    %c0_145 = arith.constant 0 : index
    %c0_146 = arith.constant 0 : index
    %c0_147 = arith.constant 0 : index
    %c0_148 = arith.constant 0 : index
    %151 = vector.load %arg6[%c0_145, %c0_146, %c0_147, %c0_148] : memref<1x16x16x128xf32, #tpu.memory_space<vmem>>, vector<1x16x16x128xf32>
    %152 = vector.shape_cast %151 : vector<1x16x16x128xf32> to vector<16x16x128xf32>
    %153 = vector.shape_cast %150 : vector<16x16x128xf32> to vector<1x16x16x128xf32>
    tpu.vector_store %arg6[%c0_145, %c0_146, %c0_147, %c0_148], %153 {strides = array<i32>} : memref<1x16x16x128xf32, #tpu.memory_space<vmem>>, vector<1x16x16x128xf32>,
    %c0_149 = arith.constant 0 : index
    %c0_150 = arith.constant 0 : index
    %c0_151 = arith.constant 0 : index
    %c0_152 = arith.constant 0 : index
    %154 = vector.load %arg6[%c0_149, %c0_150, %c0_151, %c0_152] : memref<1x16x16x128xf32, #tpu.memory_space<vmem>>, vector<1x16x16x128xf32>
    %155 = vector.shape_cast %154 : vector<1x16x16x128xf32> to vector<16x16x128xf32>
    %c3 = arith.constant 3 : index
    %c0_153 = arith.constant 0 : index
    %156 = vector.load %arg2[%c3, %c0_153] : memref<4x128xf32, #tpu.memory_space<vmem>>, vector<1x128xf32>
    %157 = vector.shape_cast %156 : vector<1x128xf32> to vector<128xf32>
    %158 = vector.shape_cast %157 : vector<128xf32> to vector<1x1x128xf32>
    %159 = vector.broadcast %158 : vector<1x1x128xf32> to vector<16x16x128xf32>
    %160 = arith.mulf %155, %159 : vector<16x16x128xf32>
    %c3_154 = arith.constant 3 : index
    %c0_155 = arith.constant 0 : index
    %161 = vector.load %arg3[%c3_154, %c0_155] : memref<4x128xf32, #tpu.memory_space<vmem>>, vector<1x128xf32>
    %162 = vector.shape_cast %161 : vector<1x128xf32> to vector<128xf32>
    %163 = vector.shape_cast %162 : vector<128xf32> to vector<1x1x128xf32>
    %164 = vector.broadcast %163 : vector<1x1x128xf32> to vector<16x16x128xf32>
    %165 = arith.addf %160, %164 : vector<16x16x128xf32>
    %cst_156 = arith.constant 0.000000e+00 : f32
    %166 = vector.broadcast %cst_156 : f32 to vector<16x16x128xf32>
    %167 = arith.maximumf %165, %166 : vector<16x16x128xf32>
    %168 = arith.truncf %167 : vector<16x16x128xf32> to vector<16x16x128xbf16>
    %c1_157 = arith.constant 1 : index
    %c1_158 = arith.constant 1 : index
    %c0_159 = arith.constant 0 : index
    %169 = vector.load %arg7[%c1_157, %c1_158, %c0_159] : memref<18x18x128xbf16, #tpu.memory_space<vmem>>, vector<16x16x128xbf16>
    tpu.vector_store %arg7[%c1_157, %c1_158, %c0_159], %168 {strides = array<i32>} : memref<18x18x128xbf16, #tpu.memory_space<vmem>>, vector<16x16x128xbf16>,
    %c0_160 = arith.constant 0 : index
    %c0_161 = arith.constant 0 : index
    %c0_162 = arith.constant 0 : index
    %170 = vector.load %arg7[%c0_160, %c0_161, %c0_162] : memref<18x18x128xbf16, #tpu.memory_space<vmem>>, vector<18x16x128xbf16>
    %c0_163 = arith.constant 0 : index
    %c1_164 = arith.constant 1 : index
    %c0_165 = arith.constant 0 : index
    %171 = vector.load %arg7[%c0_163, %c1_164, %c0_165] : memref<18x18x128xbf16, #tpu.memory_space<vmem>>, vector<18x16x128xbf16>
    %c0_166 = arith.constant 0 : index
    %c2_167 = arith.constant 2 : index
    %c0_168 = arith.constant 0 : index
    %172 = vector.load %arg7[%c0_166, %c2_167, %c0_168] : memref<18x18x128xbf16, #tpu.memory_space<vmem>>, vector<18x16x128xbf16>
    %173 = tpu.concatenate %170, %171, %172 in 2 : vector<18x16x128xbf16>, vector<18x16x128xbf16>, vector<18x16x128xbf16> -> vector<18x16x384xbf16>
    %174 = vector.shape_cast %173 : vector<18x16x384xbf16> to vector<288x384xbf16>
    %cst_169 = arith.constant 0.000000e+00 : f32
    %175 = vector.broadcast %cst_169 : f32 to vector<256x128xf32>
    %176 = vector.extract_strided_slice %174 {offsets = [0, 0], sizes = [256, 384], strides = [1, 1]} : vector<288x384xbf16> to vector<256x384xbf16>
    %c3_170 = arith.constant 3 : index
    %c0_171 = arith.constant 0 : index
    %c0_172 = arith.constant 0 : index
    %c0_173 = arith.constant 0 : index
    %177 = vector.load %arg4[%c3_170, %c0_171, %c0_172, %c0_173] : memref<4x3x384x128xbf16, #tpu.memory_space<vmem>>, vector<1x1x384x128xbf16>
    %178 = vector.shape_cast %177 : vector<1x1x384x128xbf16> to vector<384x128xbf16>
    %cst_174 = arith.constant dense<0.000000e+00> : vector<256x128xf32>
    %179 = tpu.matmul %176, %178, %cst_174 {dimension_numbers = #tpu.dot_dimension_numbers<[1], [0], [0], [1], [0, 0, 1, 1], [], []>} : vector<256x384xbf16>, vector<384x128xbf16>, vector<256x128xf32> -> vector<256x128xf32>
    %180 = arith.addf %175, %179 : vector<256x128xf32>
    %181 = vector.extract_strided_slice %174 {offsets = [16, 0], sizes = [256, 384], strides = [1, 1]} : vector<288x384xbf16> to vector<256x384xbf16>
    %c3_175 = arith.constant 3 : index
    %c1_176 = arith.constant 1 : index
    %c0_177 = arith.constant 0 : index
    %c0_178 = arith.constant 0 : index
    %182 = vector.load %arg4[%c3_175, %c1_176, %c0_177, %c0_178] : memref<4x3x384x128xbf16, #tpu.memory_space<vmem>>, vector<1x1x384x128xbf16>
    %183 = vector.shape_cast %182 : vector<1x1x384x128xbf16> to vector<384x128xbf16>
    %cst_179 = arith.constant dense<0.000000e+00> : vector<256x128xf32>
    %184 = tpu.matmul %181, %183, %cst_179 {dimension_numbers = #tpu.dot_dimension_numbers<[1], [0], [0], [1], [0, 0, 1, 1], [], []>} : vector<256x384xbf16>, vector<384x128xbf16>, vector<256x128xf32> -> vector<256x128xf32>
    %185 = arith.addf %180, %184 : vector<256x128xf32>
    %186 = vector.extract_strided_slice %174 {offsets = [32, 0], sizes = [256, 384], strides = [1, 1]} : vector<288x384xbf16> to vector<256x384xbf16>
    %c3_180 = arith.constant 3 : index
    %c2_181 = arith.constant 2 : index
    %c0_182 = arith.constant 0 : index
    %c0_183 = arith.constant 0 : index
    %187 = vector.load %arg4[%c3_180, %c2_181, %c0_182, %c0_183] : memref<4x3x384x128xbf16, #tpu.memory_space<vmem>>, vector<1x1x384x128xbf16>
    %188 = vector.shape_cast %187 : vector<1x1x384x128xbf16> to vector<384x128xbf16>
    %cst_184 = arith.constant dense<0.000000e+00> : vector<256x128xf32>
    %189 = tpu.matmul %186, %188, %cst_184 {dimension_numbers = #tpu.dot_dimension_numbers<[1], [0], [0], [1], [0, 0, 1, 1], [], []>} : vector<256x384xbf16>, vector<384x128xbf16>, vector<256x128xf32> -> vector<256x128xf32>
    %190 = arith.addf %185, %189 : vector<256x128xf32>
    %c3_185 = arith.constant 3 : index
    %c0_186 = arith.constant 0 : index
    %191 = vector.load %arg5[%c3_185, %c0_186] : memref<4x128xf32, #tpu.memory_space<vmem>>, vector<1x128xf32>
    %192 = vector.shape_cast %191 : vector<1x128xf32> to vector<128xf32>
    %193 = vector.shape_cast %192 : vector<128xf32> to vector<1x128xf32>
    %194 = vector.broadcast %193 : vector<1x128xf32> to vector<256x128xf32>
    %195 = arith.addf %190, %194 : vector<256x128xf32>
    %c0_187 = arith.constant 0 : index
    %c0_188 = arith.constant 0 : index
    %c0_189 = arith.constant 0 : index
    %c0_190 = arith.constant 0 : index
    %196 = vector.load %arg6[%c0_187, %c0_188, %c0_189, %c0_190] : memref<1x16x16x128xf32, #tpu.memory_space<vmem>>, vector<1x16x16x128xf32>
    %197 = vector.shape_cast %196 : vector<1x16x16x128xf32> to vector<16x16x128xf32>
    %198 = vector.shape_cast %195 : vector<256x128xf32> to vector<16x16x128xf32>
    %199 = arith.addf %197, %198 : vector<16x16x128xf32>
    %c0_191 = arith.constant 0 : index
    %c0_192 = arith.constant 0 : index
    %c0_193 = arith.constant 0 : index
    %c0_194 = arith.constant 0 : index
    %200 = vector.load %arg6[%c0_191, %c0_192, %c0_193, %c0_194] : memref<1x16x16x128xf32, #tpu.memory_space<vmem>>, vector<1x16x16x128xf32>
    %201 = vector.shape_cast %200 : vector<1x16x16x128xf32> to vector<16x16x128xf32>
    %202 = vector.shape_cast %199 : vector<16x16x128xf32> to vector<1x16x16x128xf32>
    tpu.vector_store %arg6[%c0_191, %c0_192, %c0_193, %c0_194], %202 {strides = array<i32>} : memref<1x16x16x128xf32, #tpu.memory_space<vmem>>, vector<1x16x16x128xf32>,
    return
  }
  func.func @transform_0(%arg0: i32) -> (i32, i32, i32, i32) {
    %c0_i32 = arith.constant 0 : i32
    %c0_i32_0 = arith.constant 0 : i32
    %c0_i32_1 = arith.constant 0 : i32
    %c0_i32_2 = arith.constant 0 : i32
    return %arg0, %c0_i32, %c0_i32_0, %c0_i32_1 : i32, i32, i32, i32
  }
  func.func @transform_1(%arg0: i32) -> (i32, i32) {
    %c0_i32 = arith.constant 0 : i32
    %c0_i32_0 = arith.constant 0 : i32
    %c0_i32_1 = arith.constant 0 : i32
    return %c0_i32, %c0_i32_0 : i32, i32
  }
  func.func @transform_2(%arg0: i32) -> (i32, i32) {
    %c0_i32 = arith.constant 0 : i32
    %c0_i32_0 = arith.constant 0 : i32
    %c0_i32_1 = arith.constant 0 : i32
    return %c0_i32, %c0_i32_0 : i32, i32
  }
  func.func @transform_3(%arg0: i32) -> (i32, i32, i32, i32) {
    %c0_i32 = arith.constant 0 : i32
    %c0_i32_0 = arith.constant 0 : i32
    %c0_i32_1 = arith.constant 0 : i32
    %c0_i32_2 = arith.constant 0 : i32
    %c0_i32_3 = arith.constant 0 : i32
    return %c0_i32, %c0_i32_0, %c0_i32_1, %c0_i32_2 : i32, i32, i32, i32
  }
  func.func @transform_4(%arg0: i32) -> (i32, i32) {
    %c0_i32 = arith.constant 0 : i32
    %c0_i32_0 = arith.constant 0 : i32
    %c0_i32_1 = arith.constant 0 : i32
    return %c0_i32, %c0_i32_0 : i32, i32
  }
  func.func @transform_5(%arg0: i32) -> (i32, i32, i32, i32) {
    %c0_i32 = arith.constant 0 : i32
    %c0_i32_0 = arith.constant 0 : i32
    %c0_i32_1 = arith.constant 0 : i32
    %c0_i32_2 = arith.constant 0 : i32
    return %arg0, %c0_i32, %c0_i32_0, %c0_i32_1 : i32, i32, i32, i32
  }
}

</mosaic_0001>

<bundles_post_ra>
// kernel: tpu_custom_call.1
= control target key start
LH: loop header
LB: loop body
LE: loop exit
PB: predicated region body
PF: predicated region fallthrough
CT: control target
= control target key end

     0   :  { %10 = vsyncpa [#allocation4], 0  ;;  %s21639_s0 = inlined_call_operand.hbm [shape: f32[2,16,16,128], index: 0, kind: input, shape index: {}]   ;;  %s21640_s1 = inlined_call_operand.hbm [shape: f32[4,128], index: 1, kind: input, shape index: {}]   ;;  %s21641_s2 = inlined_call_operand.hbm [shape: f32[4,128], index: 2, kind: input, shape index: {}]   ;;  %s21642_s3 = inlined_call_operand.hbm [shape: bf16[4,3,384,128], index: 3, kind: input, shape index: {}]   ;;  %s21643_s4 = inlined_call_operand.hbm [shape: f32[4,128], index: 4, kind: input, shape index: {}]   ;;  %s21644_s5 = inlined_call_operand.hbm [shape: f32[2,16,16,128], index: 5, kind: output, shape index: {}]  }
   0x1   :  { %12 = vsyncpa [#allocation4 + $0x1], 0 }
   0x2   :  { %13 = vsyncpa [#allocation7], 0 }
   0x3   :  { %14 = vsyncpa [#allocation10], 0 }
   0x4   :  { %15 = vsyncpa [#allocation5], 0 }
   0x5   :  { %17 = vsyncpa [#allocation5 + $0x1], 0  ;;  %s16960_s18 = smov 0   ;;  %s16962_s19 = smov 0  }
   0x6   :  { %s16964_s20 = smov 0   ;;  %s16966_s21 = smov 0  }
   0x7 LB: > { %s16981_s22 = sadd.s32 4294967295, %s16915_s21   ;;  %s12429_s23 = sadd.s32 4294967294, %s16915_s21   ;;  %s16915_s21 = sphi %s16966_s21, %s21916_s21   ;;  %s16911_s20 = sphi %s16964_s20, %s21915_s20   ;;  %s16907_s19 = sphi %s16962_s19, %s21914_s19   ;;  %s16903_s18 = sphi %s16960_s18, %s21913_s18  }
   0x8   : > { %p43_p0 = scmp.ne.s32.totalorder %s16907_s19, %s16903_s18  ;;  %p21645_p1 = scmp.eq.s32.totalorder %s16981_s22, 0 }
   0x9   : > { %p157_p3 = scmp.eq.s32.totalorder %s12429_s23, 1  ;;  %p12430_p5 = scmp.ge.s32.totalorder %s16915_s21, 1 }
   0xa   : > { %p16990_p4 = por %p21645_p1, %p43_p0  ;;  %p164_p7 = scmp.lt.s32.totalorder %s16915_s21, 3 }
   0xb   : > { %p16995_p6 = por %p157_p3, %p43_p0  ;;  %s16917_s27 = smov [#allocation6]  }
   0xc   : > { %s21701_s24 = scalar_select %p16990_p4, 1, 0 }
   0xd   : > { %s21702_s25 = scalar_select %p16995_p6, 1, 0 }
   0xe   : > { %p17000_p8 = pnand %p12430_p5, %p164_p7  ;;  %s177_s28 = sshll.u32 %s16917_s27, 4  ;;  %s178_s28 = int_to_ptr.vmem [resolvable:$true] %s177_s28 }
   0xf   : > { %s16918_s29 = smov [#allocation9]   ;;  %s16919_s7 = smov [#allocation8]  }
  0x10   : > { %s21703_s26 = scalar_select %p17000_p8, 1, 0 }
  0x11   : > { %p16093_p10 = pneg %p17000_p8  ;;  %s198_s30 = sshll.u32 %s16918_s29, 4  ;;  %s17013_s30 = int_to_ptr.vmem [resolvable:$true] %s198_s30 }
  0x12   : > { %s17015_s8 = sshll.u32 %s16919_s7, 4  ;;  %s16699_s11 = scalar_lea.hbm %s21640_s1, 64  ;;  %s189_s8 = int_to_ptr.vmem [resolvable:$true] %s17015_s8 }
  0x13   : > { %p17009_p11 = pnand %p16093_p10, %p21645_p1  ;;  %p16700_p12 = scmp.ne.s32.totalorder %s21640_s1, %s16699_s11 }
  0x14   : > { %p16706_p5 = scmp.lt.u32.totalorder %s16699_s11, %s21640_s1 }
  0x15   : > { %p17025_p13 = pneg %p17009_p11 }
  0x17   : > { %p16702_p0 = pnand %p17025_p13, %p16700_p12 }
  0x19   : > { %p16703_p3 = pneg %p16702_p0 }
  0x1b   : > { %p16708_p7 = pnand %p16706_p5, %p16703_p3 }
  0x1d   : > { %16711 = shalt.err (!%p16708_p7)
}
  0x1e   : > { %s16712_s17 = scalar_lea.vmem %s178_s28, 64  ;;  %p16720_p2 = scmp.lt.s32.totalorder %s178_s28, %s178_s28 }
  0x1f   : > { %p16713_p10 = scmp.ne.s32.totalorder %s178_s28, %s16712_s17  ;;  %p16721_p6 = scmp.lt.s32.totalorder %s16712_s17, %s16712_s17 }
  0x21   : > { %p16715_p9 = pnand %p16713_p10, %p17025_p13  ;;  %p16722_p4 = por %p16721_p6, %p16720_p2 }
  0x23   : > { %p16716_p1 = pneg %p16715_p9 }
  0x25   : > { %p16723_p8 = pnand %p16722_p4, %p16716_p1 }
  0x27   : > { %16726 = shalt.err (!%p16723_p8)
}
  0x28   : > { %16096 = dma.hbm_to_vmem [thread:$0]  (!%p17009_p11), %s21640_s1, 64, %s178_s28, [#allocation7]  }
  0x29   : > { %s16727_s9 = scalar_lea.hbm %s21642_s3, 36864 }
  0x2a   : > { %p16728_p9 = scmp.ne.s32.totalorder %s21642_s3, %s16727_s9  ;;  %p16734_p1 = scmp.lt.u32.totalorder %s16727_s9, %s21642_s3 }
  0x2c   : > { %p16730_p12 = pnand %p16728_p9, %p17025_p13 }
  0x2e   : > { %p16731_p2 = pneg %p16730_p12 }
  0x30   : > { %p16736_p4 = pnand %p16734_p1, %p16731_p2 }
  0x32   : > { %16739 = shalt.err (!%p16736_p4)
}
  0x33   : > { %s16740_s28 = scalar_lea.vmem %s17013_s30, 36864  ;;  %p16748_p3 = scmp.lt.s32.totalorder %s17013_s30, %s17013_s30 }
  0x34   : > { %p16741_p6 = scmp.ne.s32.totalorder %s17013_s30, %s16740_s28  ;;  %p16749_p5 = scmp.lt.s32.totalorder %s16740_s28, %s16740_s28 }
  0x36   : > { %p16743_p8 = pnand %p16741_p6, %p17025_p13  ;;  %p16750_p7 = por %p16749_p5, %p16748_p3 }
  0x38   : > { %p16744_p0 = pneg %p16743_p8 }
  0x3a   : > { %p16751_p10 = pnand %p16750_p7, %p16744_p0 }
  0x3c   : > { %16754 = shalt.err (!%p16751_p10)
}
  0x3d   : > { %s16920_s15 = smov 64   ;;  %s16921_s16 = smov 4  }
  0x3e   : > { %16102 = dma.hbm_to_vmem [thread:$0]  (!%p17009_p11), %s21642_s3, 36864, %s17013_s30, [#allocation10], %s16920_s15, %s16920_s15, %s16921_s16  }
  0x3f   : > { %s16755_s7 = scalar_lea.hbm %s21641_s2, 64 }
  0x40   : > { %p16756_p9 = scmp.ne.s32.totalorder %s21641_s2, %s16755_s7  ;;  %p16762_p1 = scmp.lt.u32.totalorder %s16755_s7, %s21641_s2 }
  0x42   : > { %p16758_p12 = pnand %p16756_p9, %p17025_p13 }
  0x44   : > { %p16759_p2 = pneg %p16758_p12 }
  0x46   : > { %p16764_p4 = pnand %p16762_p1, %p16759_p2 }
  0x48   : > { %16767 = shalt.err (!%p16764_p4)
}
  0x49   : > { %s16768_s13 = scalar_lea.vmem %s189_s8, 64  ;;  %p16776_p3 = scmp.lt.s32.totalorder %s189_s8, %s189_s8 }
  0x4a   : > { %p16769_p6 = scmp.ne.s32.totalorder %s189_s8, %s16768_s13  ;;  %p16777_p5 = scmp.lt.s32.totalorder %s16768_s13, %s16768_s13 }
  0x4c   : > { %p16771_p8 = pnand %p16769_p6, %p17025_p13  ;;  %p16778_p7 = por %p16777_p5, %p16776_p3 }
  0x4e   : > { %p16772_p0 = pneg %p16771_p8 }
  0x50   : > { %p16779_p10 = pnand %p16778_p7, %p16772_p0 }
  0x52   : > { %16782 = shalt.err (!%p16779_p10)
}
  0x53   : > { %16099 = dma.hbm_to_vmem [thread:$0]  (!%p17009_p11), %s21641_s2, 64, %s189_s8, [#allocation7]  }
  0x54   : > { %s16922_s15 = smov [#allocation11]   ;;  %s16783_s27 = scalar_lea.hbm %s21643_s4, 64 }
  0x55   : > { %s212_s16 = sshll.u32 %s16922_s15, 4  ;;  %p16784_p9 = scmp.ne.s32.totalorder %s21643_s4, %s16783_s27  ;;  %s213_s16 = int_to_ptr.vmem [resolvable:$true] %s212_s16 }
  0x56   : > { %p16790_p1 = scmp.lt.u32.totalorder %s16783_s27, %s21643_s4 }
  0x57   : > { %p16786_p12 = pnand %p16784_p9, %p17025_p13 }
  0x59   : > { %p16787_p2 = pneg %p16786_p12 }
  0x5b   : > { %p16792_p4 = pnand %p16790_p1, %p16787_p2 }
  0x5d   : > { %16795 = shalt.err (!%p16792_p4)
}
  0x5e   : > { %s16796_s8 = scalar_lea.vmem %s213_s16, 64  ;;  %p16804_p3 = scmp.lt.s32.totalorder %s213_s16, %s213_s16 }
  0x5f   : > { %p16797_p6 = scmp.ne.s32.totalorder %s213_s16, %s16796_s8  ;;  %p16805_p5 = scmp.lt.s32.totalorder %s16796_s8, %s16796_s8 }
  0x61   : > { %p16799_p8 = pnand %p16797_p6, %p17025_p13  ;;  %p16806_p7 = por %p16805_p5, %p16804_p3 }
  0x63   : > { %p16800_p0 = pneg %p16799_p8 }
  0x65   : > { %p16807_p10 = pnand %p16806_p7, %p16800_p0 }
  0x67   : > { %16810 = shalt.err (!%p16807_p10)
}
  0x68   : > { %16105 = dma.hbm_to_vmem [thread:$0]  (!%p17009_p11), %s21643_s4, 64, %s213_s16, [#allocation10]  }
  0x69   : > { %s17102_s14 = sadd.s32 1, %s16915_s21   ;;  %s30_s13 = sadd.s32 1, %s16911_s20 }
  0x6a   : > { %s27_s6 = ssub.s32 %s16915_s21, %s17102_s14  ;;  %p37_p13 = scmp.ne.s32.totalorder %s16911_s20, %s16907_s19 }
  0x6b   : > { %p28_p9 = scmp.eq.s32.totalorder %s27_s6, 0  ;;  %p38_p12 = scmp.eq.s32.totalorder %s16915_s21, 0 }
  0x6c   : > { %p21706_p2 = scmp.eq.s32.totalorder %s16981_s22, 1  ;;  %p16118_p4 = scmp.lt.s32.totalorder %s16915_s21, 2 }
  0x6d   : > { %s17118_s28 = scalar_select %p28_p9, %s16911_s20, %s30_s13  }
  0x6e   : > { %p17112_p1 = por %p21706_p2, %p37_p13  ;;  %p39_p6 = por %p38_p12, %p37_p13 }
  0x6f   : > { %s223_s15 = sand.u32 1, %s16911_s20   ;;  %s13095_s16 = sshll.u32 %s16915_s21, 12 }
  0x70   : > { %s12436_s17 = sshll.u32 %s223_s15, 8  ;;  %s17125_s29 = scalar_lea.hbm %s21639_s0, %s13095_s16 }
  0x71   : > { %s227_s7 = scalar_lea.vmem [#allocation3], %s12436_s17  ;;  %p17129_p11 = pnand %p16118_p4, %p39_p6 }
  0x72   : > { %s234_s9 = sshll.u32 %s227_s7, 4  ;;  %s17133_s8 = scalar_lea.sflag [#allocation4], %s223_s15  ;;  %s17127_s9 = int_to_ptr.vmem [resolvable:$true] %s234_s9 }
  0x73   : > { %s16811_s11 = scalar_lea.hbm %s17125_s29, 4096  ;;  %p16813_p0 = pneg %p17129_p11 }
  0x74   : > { %p16812_p8 = scmp.ne.s32.totalorder %s17125_s29, %s16811_s11  ;;  %s16816_s6 = scalar_lea.hbm %s21639_s0, 8192 }
  0x75   : > { %p16817_p7 = scmp.lt.u32.totalorder %s17125_s29, %s21639_s0  ;;  %p16818_p10 = scmp.lt.u32.totalorder %s16816_s6, %s16811_s11 }
  0x76   : > { %p16814_p3 = pnand %p16813_p0, %p16812_p8  ;;  %p16820_p9 = scmp.lt.u32.totalorder %s16811_s11, %s17125_s29 }
  0x77   : > { %p16819_p13 = por %p16818_p10, %p16817_p7 }
  0x78   : > { %p16815_p5 = pneg %p16814_p3 }
  0x79   : > { %p16821_p12 = por %p16820_p9, %p16819_p13 }
  0x7b   : > { %p16822_p2 = pnand %p16821_p12, %p16815_p5 }
  0x7d   : > { %16825 = shalt.err (!%p16822_p2)
}
  0x7e   : > { %s16826_s15 = scalar_lea.vmem %s17127_s9, 4096  ;;  %s16923_s23 = smov [#allocation3]  }
  0x7f   : > { %p16827_p4 = scmp.ne.s32.totalorder %s17127_s9, %s16826_s15  ;;  %s16831_s27 = sshll.u32 %s16923_s23, 4  ;;  %s16832_s27 = int_to_ptr.vmem [resolvable:$false] %s16831_s27 }
  0x80   : > { %s16833_s7 = scalar_lea.vmem %s16832_s27, 8192  ;;  %p16834_p3 = scmp.lt.s32.totalorder %s17127_s9, %s16832_s27 }
  0x81   : > { %p16829_p6 = pnand %p16827_p4, %p16813_p0  ;;  %p16835_p7 = scmp.lt.s32.totalorder %s16833_s7, %s16826_s15 }
  0x83   : > { %p16830_p8 = pneg %p16829_p6  ;;  %p16836_p10 = por %p16835_p7, %p16834_p3 }
  0x85   : > { %p16837_p13 = pnand %p16836_p10, %p16830_p8 }
  0x87   : > { %16840 = shalt.err (!%p16837_p13)
}
  0x88   : > { %s16924_s11 = smov 128   ;;  %s16925_s12 = smov 8  }
  0x89   : > { %16109 = dma.hbm_to_vmem [thread:$0]  (!%p17129_p11), %s17125_s29, 4096, %s17127_s9, %s17133_s8, %s16924_s11, %s16924_s11, %s16925_s12  }
  0x8a   : > { %p21709_p0 = scmp.ne.s32.totalorder %s21703_s26, 0 }
  0x8c   : > { %246 = sbr.rel (%p21709_p0) target bundleno = 2707 (0xa93), region = 40 }
  0x93   : > { %s17164_s13 = sand.u32 1, %s16907_s19   ;;  %p21710_p5 = scmp.ne.s32.totalorder %s21701_s24, 0 }
  0x94   : > { %s12440_s6 = sshll.u32 %s17164_s13, 8  ;;  %s249_s17 = scalar_lea.sflag [#allocation4], %s17164_s13 }
  0x95   : > { %s17170_s16 = scalar_lea.vmem [#allocation3], %s12440_s6 }
  0x96   : > { %16886 = dma.done.wait (%p21710_p5), %s249_s17, 4096  }
  0x97   : > { %16888 = vsyncadd (%p21710_p5), %s249_s17, 4294963200  ;;  %p21711_p11 = scmp.eq.s32.totalorder %s16981_s22, 0 }
  0x99   : > { %16890 = dma.done.wait (%p21711_p11), [#allocation7], 128   ;;  %p21712_p9 = pmov %p21711_p11 }
  0x9b   : > { %16892 = vsyncadd (%p21712_p9), [#allocation7], 4294967168  ;;  %p21713_p12 = pmov %p21712_p9 }
  0x9c   : > { %p21714_p2 = pmov %p21712_p9 }
  0x9d   : > { %16894 = dma.done.wait (%p21713_p12), [#allocation10], 36928  }
  0x9e   : > { %16896 = vsyncadd (%p21714_p2), [#allocation10], 4294930368  ;;  %v16926_v0 = vmov 0   ;;  %v16167_v1 = vld [vmem:[#allocation9 + $0x100] sm:$0xff]   ;;  %v16171_v5 = vld [vmem:[#allocation9 + $0x108] sm:$0xff]   ;;  %s17190_s24 = scalar_lea.vmem [#allocation12], %s12440_s6 }
  0x9f   : > { %299 = vst [vmem:[#allocation2 + $0xc] sm:$0xf] %v16926_v0  ;;  %300 = vst [vmem:[#allocation2 + $0x10] sm:$0xf] %v16926_v0  ;;  %v16168_v2 = vld [vmem:[#allocation9 + $0xc0] sm:$0xff]   ;;  %13225 = vmatprep.subr.bf16.mxu0 %v16167_v1  ;;  %v16172_v6 = vld [vmem:[#allocation9 + $0xc8] sm:$0xff]  }
  0xa0   : > { %301 = vst [vmem:[#allocation2 + $0x14] sm:$0x1] %v16926_v0  ;;  %296 = vst [vmem:[#allocation2] sm:$0xf] %v16926_v0  ;;  %v16169_v3 = vld [vmem:[#allocation9 + $0x40] sm:$0xff]   ;;  %13226 = vmatpush3.bf16.msra.mxu0 %v16168_v2  ;;  %v16173_v7 = vld [vmem:[#allocation9 + $0x48] sm:$0xff]  }
  0xa1   : > { %297 = vst [vmem:[#allocation2 + $0x4] sm:$0xf] %v16926_v0  ;;  %298 = vst [vmem:[#allocation2 + $0x8] sm:$0x1] %v16926_v0  ;;  %v16170_v4 = vld [vmem:[#allocation9] sm:$0xff]   ;;  %13361 = vmatprep.subr.bf16.mxu1 %v16169_v3  ;;  %13227 = vmatprep.subr.bf16.mxu0 %v16171_v5  ;;  %v16174_v8 = vld [vmem:[#allocation9 + $0x8] sm:$0xff]  }
  0xa2   : > { %302 = vst [vmem:[#allocation2 + $0x18] sm:$0xf] %v16926_v0  ;;  %303 = vst [vmem:[#allocation2 + $0x1c] sm:$0xf] %v16926_v0  ;;  %13362 = vmatpush3.bf16.msra.mxu1 %v16170_v4  ;;  %v16175_v9 = vld [vmem:[#allocation9 + $0x110] sm:$0xff]   ;;  %v16179_v13 = vld [vmem:[#allocation9 + $0x118] sm:$0xff]  }
  0xa3   : > { %304 = vst [vmem:[#allocation2 + $0x20] sm:$0x1] %v16926_v0  ;;  %305 = vst [vmem:[#allocation2 + $0x24] sm:$0xf] %v16926_v0  ;;  %13363 = vmatprep.subr.bf16.mxu1 %v16173_v7  ;;  %v16176_v10 = vld [vmem:[#allocation9 + $0xd0] sm:$0xff]   ;;  %v16180_v14 = vld [vmem:[#allocation9 + $0xd8] sm:$0xff]  }
  0xa4   : > { %306 = vst [vmem:[#allocation2 + $0x28] sm:$0xf] %v16926_v0  ;;  %307 = vst [vmem:[#allocation2 + $0x2c] sm:$0x1] %v16926_v0  ;;  %13228 = vmatpush3.bf16.msra.mxu0 %v16172_v6  ;;  %v16177_v11 = vld [vmem:[#allocation9 + $0x50] sm:$0xff]   ;;  %v16181_v15 = vld [vmem:[#allocation9 + $0x58] sm:$0xff]  }
  0xa5   : > { %308 = vst [vmem:[#allocation2 + $0x30] sm:$0xf] %v16926_v0  ;;  %309 = vst [vmem:[#allocation2 + $0x34] sm:$0xf] %v16926_v0  ;;  %13229 = vmatprep.subr.bf16.mxu0 %v16175_v9  ;;  %v16178_v12 = vld [vmem:[#allocation9 + $0x10] sm:$0xff]   ;;  %v16182_v16 = vld [vmem:[#allocation9 + $0x18] sm:$0xff]  }
  0xa6   : > { %310 = vst [vmem:[#allocation2 + $0x38] sm:$0x1] %v16926_v0  ;;  %311 = vst [vmem:[#allocation2 + $0x3c] sm:$0xf] %v16926_v0  ;;  %13364 = vmatpush3.bf16.msra.mxu1 %v16174_v8  ;;  %v16183_v17 = vld [vmem:[#allocation9 + $0x120] sm:$0xff]   ;;  %v16187_v21 = vld [vmem:[#allocation9 + $0x128] sm:$0xff]  }
  0xa7   : > { %312 = vst [vmem:[#allocation2 + $0x40] sm:$0xf] %v16926_v0  ;;  %313 = vst [vmem:[#allocation2 + $0x44] sm:$0x1] %v16926_v0  ;;  %13365 = vmatprep.subr.bf16.mxu1 %v16177_v11  ;;  %v16184_v18 = vld [vmem:[#allocation9 + $0xe0] sm:$0xff]   ;;  %v16188_v22 = vld [vmem:[#allocation9 + $0xe8] sm:$0xff]  }
  0xa8   : > { %314 = vst [vmem:[#allocation2 + $0x48] sm:$0xf] %v16926_v0  ;;  %315 = vst [vmem:[#allocation2 + $0x4c] sm:$0xf] %v16926_v0  ;;  %13230 = vmatpush3.bf16.msra.mxu0 %v16176_v10  ;;  %v16185_v19 = vld [vmem:[#allocation9 + $0x60] sm:$0xff]   ;;  %v16189_v23 = vld [vmem:[#allocation9 + $0x68] sm:$0xff]  }
  0xa9   : > { %316 = vst [vmem:[#allocation2 + $0x50] sm:$0x1] %v16926_v0  ;;  %317 = vst [vmem:[#allocation2 + $0x54] sm:$0xf] %v16926_v0  ;;  %13231 = vmatprep.subr.bf16.mxu0 %v16179_v13  ;;  %v16186_v20 = vld [vmem:[#allocation9 + $0x20] sm:$0xff]   ;;  %v16190_v24 = vld [vmem:[#allocation9 + $0x28] sm:$0xff]  }
  0xaa   : > { %318 = vst [vmem:[#allocation2 + $0x58] sm:$0xf] %v16926_v0  ;;  %319 = vst [vmem:[#allocation2 + $0x5c] sm:$0x1] %v16926_v0  ;;  %13366 = vmatpush3.bf16.msra.mxu1 %v16178_v12  ;;  %v16191_v25 = vld [vmem:[#allocation9 + $0x130] sm:$0xff]   ;;  %v16195_v29 = vld [vmem:[#allocation9 + $0x138] sm:$0xff]  }
  0xab   : > { %320 = vst [vmem:[#allocation2 + $0x60] sm:$0xf] %v16926_v0  ;;  %321 = vst [vmem:[#allocation2 + $0x64] sm:$0xf] %v16926_v0  ;;  %13367 = vmatprep.subr.bf16.mxu1 %v16181_v15  ;;  %v16192_v26 = vld [vmem:[#allocation9 + $0xf0] sm:$0xff]   ;;  %v16196_v30 = vld [vmem:[#allocation9 + $0xf8] sm:$0xff]  }
  0xac   : > { %322 = vst [vmem:[#allocation2 + $0x68] sm:$0x1] %v16926_v0  ;;  %323 = vst [vmem:[#allocation2 + $0x6c] sm:$0xf] %v16926_v0  ;;  %13232 = vmatpush3.bf16.msra.mxu0 %v16180_v14  ;;  %v16193_v27 = vld [vmem:[#allocation9 + $0x70] sm:$0xff]   ;;  %v16197_v31 = vld [vmem:[#allocation9 + $0x78] sm:$0xff]  }
  0xad   : > { %324 = vst [vmem:[#allocation2 + $0x70] sm:$0xf] %v16926_v0  ;;  %325 = vst [vmem:[#allocation2 + $0x74] sm:$0x1] %v16926_v0  ;;  %13233 = vmatprep.subr.bf16.mxu0 %v16183_v17  ;;  %v16194_v28 = vld [vmem:[#allocation9 + $0x30] sm:$0xff]   ;;  %v16198_v32 = vld [vmem:[#allocation9 + $0x38] sm:$0xff]  }
  0xae   : > { %326 = vst [vmem:[#allocation2 + $0x78] sm:$0xf] %v16926_v0  ;;  %327 = vst [vmem:[#allocation2 + $0x7c] sm:$0xf] %v16926_v0  ;;  %13368 = vmatpush3.bf16.msra.mxu1 %v16182_v16  ;;  %vm648_vm0 = vsmask.f32 256 }
  0xaf   : > { %328 = vst [vmem:[#allocation2 + $0x80] sm:$0x1] %v16926_v0  ;;  %329 = vst [vmem:[#allocation2 + $0x84] sm:$0xf] %v16926_v0  ;;  %13369 = vmatprep.subr.bf16.mxu1 %v16185_v19  ;;  %v350_v33 = vld [vmem:[%s17170_s16] sm:$0xff]  ;;  %v351_v34 = vld [vmem:[%s17170_s16 + $0x8] sm:$0xff] }
  0xb0   : > { %330 = vst [vmem:[#allocation2 + $0x88] sm:$0xf] %v16926_v0  ;;  %331 = vst [vmem:[#allocation2 + $0x8c] sm:$0x1] %v16926_v0  ;;  %13234 = vmatpush3.bf16.msra.mxu0 %v16184_v18  ;;  %v17186_v35 = vld [vmem:[#allocation6] ss:$0 sm:$0xff] }
  0xb1   : > { %332 = vst [vmem:[#allocation2 + $0x90] sm:$0xf] %v16926_v0  ;;  %333 = vst [vmem:[#allocation2 + $0x94] sm:$0xf] %v16926_v0  ;;  %13235 = vmatprep.subr.bf16.mxu0 %v16187_v21  ;;  %vm649_vm1 = vsmask.f32 4368  ;;  %v451_v36 = vmul.f32 %v17186_v35, %v350_v33  ;;  %v452_v37 = vmul.f32 %v17186_v35, %v351_v34 }
  0xb2   : > { %334 = vst [vmem:[#allocation2 + $0x98] sm:$0x1] %v16926_v0  ;;  %335 = vst [vmem:[#allocation2 + $0x9c] sm:$0xf] %v16926_v0  ;;  %13370 = vmatpush3.bf16.msra.mxu1 %v16186_v20  ;;  %v17196_v38 = vld [vmem:[#allocation8] ss:$0 sm:$0xff] }
  0xb3   : > { %336 = vst [vmem:[#allocation2 + $0xa0] sm:$0xf] %v16926_v0  ;;  %337 = vst [vmem:[#allocation2 + $0xa4] sm:$0x1] %v16926_v0  ;;  %13371 = vmatprep.subr.bf16.mxu1 %v16189_v23  ;;  %vm973_vm2 = vsmask.f32 7938  ;;  %v488_v40 = vadd.f32 %v17196_v38, %v451_v36  ;;  %v489_v41 = vadd.f32 %v17196_v38, %v452_v37 }
  0xb4   : > { %338 = vst [vmem:[#allocation2 + $0xa8] sm:$0xf] %v16926_v0  ;;  %339 = vst [vmem:[#allocation2 + $0xac] sm:$0xf] %v16926_v0  ;;  %13236 = vmatpush3.bf16.msra.mxu0 %v16188_v22  ;;  %vm1323_vm3 = vsmask.f32 7424 }
  0xb5   : > { %340 = vst [vmem:[#allocation2 + $0xb0] sm:$0x1] %v16926_v0  ;;  %341 = vst [vmem:[#allocation2 + $0xb4] sm:$0xf] %v16926_v0  ;;  %13237 = vmatprep.subr.bf16.mxu0 %v16191_v25  ;;  %v17198_v39 = vld [vmem:[#allocation9 + $0x140] sm:$0xff]   ;;  %vm972_vm4 = vcmask 1043456  }
  0xb6   : > { %342 = vst [vmem:[#allocation2 + $0xb8] sm:$0xf] %v16926_v0  ;;  %343 = vst [vmem:[#allocation2 + $0xbc] sm:$0x1] %v16926_v0  ;;  %13372 = vmatpush3.bf16.msra.mxu1 %v16190_v24  ;;  %v1089_v42 = vld [vmem:[#allocation2] sm:$0xf] }
  0xb7   : > { %344 = vst [vmem:[#allocation2 + $0xc0] sm:$0xf] %v16926_v0  ;;  %345 = vst [vmem:[#allocation2 + $0xc4] sm:$0xf] %v16926_v0  ;;  %13373 = vmatprep.subr.bf16.mxu1 %v16193_v27  ;;  %v1090_v43 = vld [vmem:[#allocation2 + $0x4] sm:$0xf] }
  0xb8   : > { %346 = vst [vmem:[#allocation2 + $0xc8] sm:$0x1] %v16926_v0  ;;  %347 = vst [vmem:[#allocation2 + $0xcc] sm:$0xf] %v16926_v0  ;;  %13238 = vmatpush3.bf16.msra.mxu0 %v16192_v26  ;;  %v12480_v44 = vcombine.low %v1089_v42, %v1090_v43  ;;  %v352_v46 = vld [vmem:[%s17170_s16 + $0x10] sm:$0xff]  ;;  %v353_v47 = vld [vmem:[%s17170_s16 + $0x18] sm:$0xff] }
  0xb9   : > { %348 = vst [vmem:[#allocation2 + $0xd0] sm:$0xf] %v16926_v0  ;;  %349 = vst [vmem:[#allocation2 + $0xd4] sm:$0x1] %v16926_v0  ;;  %13239 = vmatprep.subr.bf16.mxu0 %v16195_v29  ;;  %v520_v48 = vmax.f32 %v488_v40, 0.0  ;;  %v521_v49 = vmax.f32 %v489_v41, 0.0  ;;  %v453_v50 = vmul.f32 %v17186_v35, %v352_v46  ;;  %v454_v51 = vmul.f32 %v17186_v35, %v353_v47 }
  0xba   : > { %13374 = vmatpush3.bf16.msra.mxu1 %v16194_v28  ;;  %382 = vst [vmem:[%s17190_s24] sm:$0xff] %v350_v33  ;;  %383 = vst [vmem:[%s17190_s24 + $0x8] sm:$0xff] %v351_v34  ;;  %v16203_v45 = vld [vmem:[#allocation2 + $0x8] ss:$0 sps:$4 sm:$0x11]   ;;  %vm979_vm5 = vcmask 1040384   ;;  %v1325_v52 = vshrl.u32 %v12480_v44, 16 }
  0xbb   : > { %13375 = vmatprep.subr.bf16.mxu1 %v16197_v31  ;;  %384 = vst [vmem:[%s17190_s24 + $0x10] sm:$0xff] %v352_v46  ;;  %385 = vst [vmem:[%s17190_s24 + $0x18] sm:$0xff] %v353_v47  ;;  %v1327_v53 = vshll.u32 %v12480_v44, 16  ;;  %v1332_v54 = vshll.u32 %v16203_v45, 16  ;;  %v354_v55 = vld [vmem:[%s17170_s16 + $0x20] sm:$0xff]  ;;  %v355_v56 = vld [vmem:[%s17170_s16 + $0x28] sm:$0xff]  ;;  %v13096_v57 = vpack.c.bf16 %v520_v48, %v520_v48  ;;  %v13097_v58 = vpack.c.bf16 %v521_v49, %v521_v49 }
  0xbc   : > { %13240 = vmatpush3.bf16.msra.mxu0 %v16196_v30  ;;  %v490_v59 = vadd.f32 %v17196_v38, %v453_v50  ;;  %v491_v60 = vadd.f32 %v17196_v38, %v454_v51  ;;  %386 = vst [vmem:[%s17190_s24 + $0x20] sm:$0xff] %v354_v55  ;;  %387 = vst [vmem:[%s17190_s24 + $0x28] sm:$0xff] %v355_v56  ;;  %v455_v63 = vmul.f32 %v17186_v35, %v354_v55  ;;  %v356_v1 = vld [vmem:[%s17170_s16 + $0x30] sm:$0xff]  ;;  %v357_v2 = vld [vmem:[%s17170_s16 + $0x38] sm:$0xff]  ;;  %v21715_v7 = vmov 0  ;;  %s13224_s26 = sshll.u32 %s16981_s22, 12 }
  0xbd   : > { %14857 = vmatprep.subr.bf16.mxu0 %v17198_v39  ;;  %v1329_v61 = vrot.slane %v1327_v53, 1  ;;  %v1334_v62 = vrot.slane %v1332_v54, 1  ;;  %v456_v0 = vmul.f32 %v17186_v35, %v355_v56  ;;  %v652_v3 = vshrl.u32 %v13096_v57, 16  ;;  %388 = vst [vmem:[%s17190_s24 + $0x30] sm:$0xff] %v356_v1  ;;  %389 = vst [vmem:[%s17190_s24 + $0x38] sm:$0xff] %v357_v2  ;;  %v358_v12 = vld [vmem:[%s17170_s16 + $0x40] sm:$0xff]  ;;  %s21590_s8 = scalar_lea.hbm %s21644_s5, %s13224_s26 }
  0xbe   : > { %13376 = vmatpush3.bf16.msra.mxu1 %v16198_v32  ;;  %v655_v4 = vshll.u32 %v13096_v57, 16  ;;  %v660_v5 = vshrl.u32 %v13097_v58, 16  ;;  %v663_v6 = vshll.u32 %v13097_v58, 16  ;;  %vm17223_vm6 = vmor %vm648_vm0, %vm649_vm1  ;;  %v522_v9 = vmax.f32 %v490_v59, 0.0  ;;  %v359_v13 = vld [vmem:[%s17170_s16 + $0x48] sm:$0xff]  ;;  %390 = vst [vmem:[%s17190_s24 + $0x40] sm:$0xff] %v358_v12 }
  0xbf   : > { %v21716_v7 = vsel %vm17223_vm6, 4294967295, %v21715_v7  ;;  %v1330_v8 = vor.u32 %v1329_v61, %v1325_v52  ;;  %v523_v10 = vmax.f32 %v491_v60, 0.0  ;;  %v492_v11 = vadd.f32 %v17196_v38, %v455_v63  ;;  %vm17232_vm7 = vmand %vm972_vm4, %vm973_vm2  ;;  %v975_v17 = vld [vmem:[#allocation2 + $0xc] sm:$0xf]  ;;  %v981_v18 = vld [vmem:[#allocation2 + $0x14] sm:$0x1] }
  0xc0   : > { %21717 = vst [vmem:[#allocation17_spill] sm:$0xff] %v21716_v7  ;;  %v654_v14 = vrot.slane %v652_v3, 7  ;;  %v662_v15 = vrot.slane %v660_v5, 7  ;;  %v21718_v16 = vmov 0  ;;  %v493_v19 = vadd.f32 %v17196_v38, %v456_v0  ;;  %391 = vst [vmem:[%s17190_s24 + $0x48] sm:$0xff] %v359_v13  ;;  %v360_v30 = vld [vmem:[%s17170_s16 + $0x50] sm:$0xff] }
  0xc1   : > { %v21719_v16 = vsel %vm17232_vm7, 4294967295, %v21718_v16  ;;  %v457_v20 = vmul.f32 %v17186_v35, %v356_v1  ;;  %vm17242_vm8 = vmand %vm979_vm5, %vm648_vm0  ;;  %v21721_v21 = vmov 0  ;;  %v1335_v22 = vsel %vm1323_vm3, %v1330_v8, %v1334_v62  ;;  %v361_v31 = vld [vmem:[%s17170_s16 + $0x58] sm:$0xff]  ;;  %392 = vst [vmem:[%s17190_s24 + $0x50] sm:$0xff] %v360_v30  ;;  %v362_v43 = vld [vmem:[%s17170_s16 + $0x60] sm:$0xff]  ;;  %s12318_s29 = sshll.u32 %s17190_s24, 4  ;;  %s21592_s29 = int_to_ptr.vmem [resolvable:$true] %s12318_s29 }
  0xc2   : > { %21720 = vst [vmem:[#allocation18_spill] sm:$0xff] %v21719_v16  ;;  %v21722_v21 = vsel %vm17242_vm8, 4294967295, %v21721_v21  ;;  %v13098_v23 = vpack.c.bf16 %v522_v9, %v522_v9  ;;  %v13099_v24 = vpack.c.bf16 %v523_v10, %v523_v10  ;;  %v524_v25 = vmax.f32 %v492_v11, 0.0  ;;  %2424 = vmatprep.mubr.bf16.mxu1 %v1335_v22  ;;  %393 = vst [vmem:[%s17190_s24 + $0x58] sm:$0xff] %v361_v31  ;;  %v984_v47 = vld [vmem:[#allocation2 + $0x18] sm:$0xf] }
  0xc3   : > { %21723 = vst [vmem:[#allocation19_spill] sm:$0xff] %v21722_v21  ;;  %v657_v26 = vor.u32 %v655_v4, %v654_v14  ;;  %v658_v27 = vrot.slane %v654_v14, 4  ;;  %v665_v28 = vor.u32 %v663_v6, %v662_v15  ;;  %v667_v29 = vrot.slane %v662_v15, 4  ;;  %2425 = vmatmul.mubr.bf16.vlgmr.msra.gmra.mrb[0].mxu1 %v12480_v44  ;;  %v17259_v44 = vld [vmem:[%s17170_s16 + $0x68] sm:$0xff]  ;;  %394 = vst [vmem:[%s17190_s24 + $0x60] sm:$0xff] %v362_v43  ;;  %v17269_v55 = vld [vmem:[%s17170_s16 + $0x70] sm:$0xff] }
  0xc4   : > { %v669_v32 = vshrl.u32 %v13098_v23, 16  ;;  %v672_v33 = vshll.u32 %v13098_v23, 16  ;;  %v677_v34 = vshrl.u32 %v13099_v24, 16  ;;  %v680_v36 = vshll.u32 %v13099_v24, 16  ;;  %395 = vst [vmem:[%s17190_s24 + $0x68] sm:$0xff] %v17259_v44  ;;  %v17272_v60 = vld [vmem:[%s17170_s16 + $0x78] sm:$0xff] }
  0xc5   : > { %v666_v37 = vsel %vm17223_vm6, %v658_v27, %v665_v28  ;;  %v976_v40 = vsel %vm17232_vm7, %v657_v26, %v975_v17  ;;  %v982_v41 = vsel %vm17242_vm8, %v667_v29, %v981_v18  ;;  %v525_v42 = vmax.f32 %v493_v19, 0.0  ;;  %v988_v50 = vld [vmem:[#allocation2 + $0x20] sm:$0x1]  ;;  %396 = vst [vmem:[%s17190_s24 + $0x70] sm:$0xff] %v17269_v55  ;;  %v17277_v61 = vld [vmem:[%s17170_s16 + $0x80] sm:$0xff]  ;;  %397 = vst [vmem:[%s17190_s24 + $0x78] sm:$0xff] %v17272_v60 }
  0xc6   : > { %977 = vst [vmem:[#allocation2 + $0xc] sm:$0xf] %v976_v40  ;;  %978 = vst [vmem:[#allocation2 + $0x10] sm:$0xf] %v666_v37  ;;  %v671_v45 = vrot.slane %v669_v32, 7  ;;  %v679_v46 = vrot.slane %v677_v34, 7  ;;  %v13100_v48 = vpack.c.bf16 %v524_v25, %v524_v25  ;;  %v458_v49 = vmul.f32 %v17186_v35, %v357_v2 }
  0xc7   : > { %983 = vst [vmem:[#allocation2 + $0x14] sm:$0x1] %v982_v41  ;;  %v13101_v51 = vpack.c.bf16 %v525_v42, %v525_v42  ;;  %v494_v52 = vadd.f32 %v17196_v38, %v457_v20  ;;  %v459_v53 = vmul.f32 %v17186_v35, %v358_v12  ;;  %v460_v54 = vmul.f32 %v17186_v35, %v359_v13  ;;  %v991_v5 = vld [vmem:[#allocation2 + $0x24] sm:$0xf]  ;;  %v995_v13 = vld [vmem:[#allocation2 + $0x2c] sm:$0x1] }
  0xc8   : > { %v674_v56 = vor.u32 %v672_v33, %v671_v45  ;;  %v675_v57 = vrot.slane %v671_v45, 4  ;;  %v682_v58 = vor.u32 %v680_v36, %v679_v46  ;;  %v684_v59 = vrot.slane %v679_v46, 4  ;;  %398 = vst [vmem:[%s17190_s24 + $0x80] sm:$0xff] %v17277_v61  ;;  %v17291_v8 = vld [vmem:[%s17170_s16 + $0x88] sm:$0xff]  ;;  %v17312_v40 = vld [vmem:[%s17170_s16 + $0x98] sm:$0xff]  ;;  %v17323_v46 = vld [vmem:[%s17170_s16 + $0xa0] sm:$0xff] }
  0xc9   : > { %v686_v62 = vshrl.u32 %v13100_v48, 16  ;;  %v689_v63 = vshll.u32 %v13100_v48, 16  ;;  %v694_v0 = vshrl.u32 %v13101_v51, 16  ;;  %v697_v1 = vshll.u32 %v13101_v51, 16  ;;  %399 = vst [vmem:[%s17190_s24 + $0x88] sm:$0xff] %v17291_v8  ;;  %v16224_v19 = vld [vmem:[#allocation9 + $0x80] sm:$0xff]  }
  0xca   : > { %v683_v2 = vsel %vm17223_vm6, %v675_v57, %v682_v58  ;;  %v985_v3 = vsel %vm17232_vm7, %v674_v56, %v984_v47  ;;  %v989_v4 = vsel %vm17242_vm8, %v684_v59, %v988_v50  ;;  %v495_v6 = vadd.f32 %v17196_v38, %v458_v49  ;;  %14905 = vmatprep.subr.bf16.mxu1 %v16224_v19  ;;  %v998_v51 = vld [vmem:[#allocation2 + $0x30] sm:$0xf]  ;;  %s12305_s22 = scalar_lea.sflag [#allocation5], %s17164_s13  ;;  %s16841_s15 = scalar_lea.vmem %s21592_s29, 4096 }
  0xcb   : > { %986 = vst [vmem:[#allocation2 + $0x18] sm:$0xf] %v985_v3  ;;  %987 = vst [vmem:[#allocation2 + $0x1c] sm:$0xf] %v683_v2  ;;  %v688_v9 = vrot.slane %v686_v62, 7  ;;  %v696_v10 = vrot.slane %v694_v0, 7  ;;  %v496_v12 = vadd.f32 %v17196_v38, %v459_v53  ;;  %v17297_v15 = vadd.f32 %v17196_v38, %v460_v54  ;;  %14906 = vmatpush3.bf16.msra.mxu1 %v16224_v19  ;;  %p16842_p4 = scmp.ne.s32.totalorder %s21592_s29, %s16841_s15 }
  0xcc   : > { %990 = vst [vmem:[#allocation2 + $0x20] sm:$0x1] %v989_v4  ;;  %v526_v11 = vmax.f32 %v494_v52, 0.0  ;;  %v527_v14 = vmax.f32 %v495_v6, 0.0  ;;  %v461_v17 = vmul.f32 %v17186_v35, %v360_v30  ;;  %v462_v18 = vmul.f32 %v17186_v35, %v361_v31  ;;  %v17307_v31 = vld [vmem:[%s17170_s16 + $0x90] sm:$0xff]  ;;  %401 = vst [vmem:[%s17190_s24 + $0x98] sm:$0xff] %v17312_v40 }
  0xcd   : > { %v1091_v20 = vld [vmem:[#allocation2 + $0xc] sm:$0xf]  ;;  %v1092_v22 = vld [vmem:[#allocation2 + $0x10] sm:$0xf]  ;;  %v691_v23 = vor.u32 %v689_v63, %v688_v9  ;;  %v699_v24 = vor.u32 %v697_v1, %v696_v10  ;;  %v17302_v26 = vmul.f32 %v17186_v35, %v362_v43  ;;  %v692_v29 = vrot.slane %v688_v9, 4  ;;  %400 = vst [vmem:[%s17190_s24 + $0x90] sm:$0xff] %v17307_v31  ;;  %p16843_p6 = pnand %p16842_p4, %p17112_p1 }
  0xce   : > { %v13102_v25 = vpack.c.bf16 %v526_v11, %v526_v11  ;;  %v17304_v27 = vcombine.low %v1091_v20, %v1092_v22  ;;  %v16200_v28 = vld [vmem:[#allocation2 + $0x14] ss:$0 sps:$4 sm:$0x11]   ;;  %v701_v32 = vrot.slane %v696_v10, 4  ;;  %v13103_v30 = vpack.c.bf16 %v527_v14, %v527_v14  ;;  %v17328_v52 = vld [vmem:[%s17170_s16 + $0xa8] sm:$0xff]  ;;  %402 = vst [vmem:[%s17190_s24 + $0xa0] sm:$0xff] %v17323_v46 }
  0xcf   : > { %v992_v33 = vsel %vm17232_vm7, %v691_v23, %v991_v5  ;;  %v528_v37 = vmax.f32 %v496_v12, 0.0  ;;  %v1344_v43 = vshll.u32 %v16200_v28, 16  ;;  %v700_v45 = vsel %vm17223_vm6, %v692_v29, %v699_v24  ;;  %403 = vst [vmem:[%s17190_s24 + $0xa8] sm:$0xff] %v17328_v52  ;;  %v17342_v4 = vld [vmem:[#allocation9 + $0x148] sm:$0xff]   ;;  %v1002_v14 = vld [vmem:[#allocation2 + $0x38] sm:$0x1]  ;;  %p16844_p8 = pneg %p16843_p6 }
  0xd0   : > { %v703_v34 = vshrl.u32 %v13102_v25, 16  ;;  %v706_v36 = vshll.u32 %v13102_v25, 16  ;;  %v1337_v41 = vshrl.u32 %v17304_v27, 16  ;;  %v1339_v42 = vshll.u32 %v17304_v27, 16  ;;  %993 = vst [vmem:[#allocation2 + $0x24] sm:$0xf] %v992_v33 }
  0xd1   : > { %994 = vst [vmem:[#allocation2 + $0x28] sm:$0xf] %v700_v45  ;;  %v996_v47 = vsel %vm17242_vm8, %v701_v32, %v995_v13  ;;  %v711_v49 = vshrl.u32 %v13103_v30, 16  ;;  %v714_v50 = vshll.u32 %v13103_v30, 16  ;;  %v1346_v54 = vrot.slane %v1344_v43, 1  ;;  %v17351_v23 = vld [vmem:[%s17170_s16 + $0xb0] sm:$0xff] }
  0xd2   : > { %v705_v48 = vrot.slane %v703_v34, 7  ;;  %v1341_v53 = vrot.slane %v1339_v42, 1  ;;  %v1093_v56 = vld [vmem:[#allocation2 + $0x18] sm:$0xf]  ;;  %v1094_v57 = vld [vmem:[#allocation2 + $0x1c] sm:$0xf]  ;;  %v13104_v58 = vpack.c.bf16 %v528_v37, %v528_v37  ;;  %v17333_v59 = vadd.f32 %v17196_v38, %v461_v17 }
  0xd3   : > { %997 = vst [vmem:[#allocation2 + $0x2c] sm:$0x1] %v996_v47  ;;  %v17337_v62 = vcombine.low %v1093_v56, %v1094_v57  ;;  %v16205_v63 = vld [vmem:[#allocation2 + $0x20] ss:$0 sps:$4 sm:$0x11]   ;;  %v17340_v2 = vadd.f32 %v17196_v38, %v462_v18  ;;  %v713_v5 = vrot.slane %v711_v49, 7 }
  0xd4   : > { %v708_v0 = vor.u32 %v706_v36, %v705_v48  ;;  %v709_v1 = vrot.slane %v705_v48, 4  ;;  %v1342_v3 = vor.u32 %v1341_v53, %v1337_v41  ;;  %v529_v6 = vmax.f32 %v17297_v15, 0.0  ;;  %v16230_v17 = vld [vmem:[#allocation9 + $0x88] sm:$0xff]   ;;  %v1005_v32 = vld [vmem:[#allocation2 + $0x3c] sm:$0xf]  ;;  %404 = vst [vmem:[%s17190_s24 + $0xb0] sm:$0xff] %v17351_v23 }
  0xd5   : > { %v720_v9 = vshrl.u32 %v13104_v58, 16  ;;  %v1349_v10 = vshrl.u32 %v17337_v62, 16  ;;  %v1351_v11 = vshll.u32 %v17337_v62, 16  ;;  %v1356_v12 = vshll.u32 %v16205_v63, 16  ;;  %v17361_v41 = vld [vmem:[#allocation9 + $0x150] sm:$0xff]   ;;  %14907 = vmatprep.subr.bf16.mxu1 %v16230_v17  ;;  %s16927_s23 = smov [#allocation12]  }
  0xd6   : > { %v999_v13 = vsel %vm17232_vm7, %v708_v0, %v998_v51  ;;  %v1347_v18 = vsel %vm1323_vm3, %v1342_v3, %v1346_v54  ;;  %v716_v19 = vor.u32 %v714_v50, %v713_v5  ;;  %v718_v20 = vrot.slane %v713_v5, 4  ;;  %14908 = vmatpush3.bf16.msra.mxu1 %v16230_v17  ;;  %v17372_v51 = vld [vmem:[%s17170_s16 + $0xb8] sm:$0xff]  ;;  %s16845_s27 = sshll.u32 %s16927_s23, 4  ;;  %s16846_s27 = int_to_ptr.vmem [resolvable:$false] %s16845_s27 }
  0xd7   : > { %1000 = vst [vmem:[#allocation2 + $0x30] sm:$0xf] %v999_v13  ;;  %v13105_v22 = vpack.c.bf16 %v529_v6, %v529_v6  ;;  %1958 = vmatprep.mubr.bf16.mxu0 %v1347_v18  ;;  %v1353_v15 = vrot.slane %v1351_v11, 1  ;;  %v1358_v24 = vrot.slane %v1356_v12, 1  ;;  %2432 = vmatprep.mubr.bf16.mxu1 %v1347_v18  ;;  %v1095_v25 = vld [vmem:[#allocation2 + $0x24] sm:$0xf]  ;;  %p16848_p3 = scmp.lt.s32.totalorder %s21592_s29, %s16846_s27 }
  0xd8   : > { %v722_v28 = vrot.slane %v720_v9, 7  ;;  %v723_v29 = vshll.u32 %v13104_v58, 16  ;;  %1959 = vmatmul.mubr.bf16.vlgmr.msra.gmra.mrb[0].mxu0 %v17304_v27  ;;  %2433 = vmatmul.mubr.bf16.gmra.mrb[4].mxu1 %v17304_v27  ;;  %v1096_v30 = vld [vmem:[#allocation2 + $0x28] sm:$0xf]  ;;  %v717_v33 = vsel %vm17223_vm6, %v709_v1, %v716_v19  ;;  %v1003_v34 = vsel %vm17242_vm8, %v718_v20, %v1002_v14  ;;  %v1009_v58 = vld [vmem:[#allocation2 + $0x44] sm:$0x1] }
  0xd9   : > { %v728_v36 = vshrl.u32 %v13105_v22, 16  ;;  %v731_v37 = vshll.u32 %v13105_v22, 16  ;;  %14858 = vmatpush3.bf16.msra.mxu0 %v17198_v39  ;;  %v1354_v42 = vor.u32 %v1353_v15, %v1349_v10  ;;  %v17364_v43 = vcombine.low %v1095_v25, %v1096_v30  ;;  %1001 = vst [vmem:[#allocation2 + $0x34] sm:$0xf] %v717_v33  ;;  %1004 = vst [vmem:[#allocation2 + $0x38] sm:$0x1] %v1003_v34 }
  0xda   : > { %v16207_v45 = vld [vmem:[#allocation2 + $0x2c] ss:$0 sps:$4 sm:$0x11]   ;;  %v725_v27 = vor.u32 %v723_v29, %v722_v28  ;;  %v726_v47 = vrot.slane %v722_v28, 4  ;;  %14859 = vmatprep.subr.bf16.mxu0 %v17342_v4  ;;  %v530_v49 = vmax.f32 %v17333_v59, 0.0  ;;  %v531_v50 = vmax.f32 %v17340_v2, 0.0 }
  0xdb   : > { %v730_v48 = vrot.slane %v728_v36, 7  ;;  %v464_v39 = vmul.f32 %v17186_v35, %v17259_v44  ;;  %v17375_v53 = vsel %vm1323_vm3, %v1354_v42, %v1358_v24  ;;  %v1361_v54 = vshrl.u32 %v17364_v43, 16  ;;  %405 = vst [vmem:[%s17190_s24 + $0xb8] sm:$0xff] %v17372_v51  ;;  %v17382_v59 = vld [vmem:[%s17170_s16 + $0xc0] sm:$0xff]  ;;  %v17389_v2 = vld [vmem:[%s17170_s16 + $0xc8] sm:$0xff]  ;;  %v16236_v22 = vld [vmem:[#allocation9 + $0x90] sm:$0xff]  }
  0xdc   : > { %v1363_v56 = vshll.u32 %v17364_v43, 16  ;;  %v1368_v57 = vshll.u32 %v16207_v45, 16  ;;  %1966 = vmatprep.mubr.bf16.mxu0 %v17375_v53  ;;  %2440 = vmatprep.mubr.bf16.mxu1 %v17375_v53  ;;  %v1006_v0 = vsel %vm17232_vm7, %v725_v27, %v1005_v32  ;;  %v13106_v1 = vpack.c.bf16 %v530_v49, %v530_v49  ;;  %406 = vst [vmem:[%s17190_s24 + $0xc0] sm:$0xff] %v17382_v59  ;;  %v1012_v19 = vld [vmem:[#allocation2 + $0x48] sm:$0xf]  ;;  %v16218_v20 = vld [vmem:[#allocation9 + $0x158] sm:$0xff]  }
  0xdd   : > { %v733_v44 = vor.u32 %v731_v37, %v730_v48  ;;  %v735_v63 = vrot.slane %v730_v48, 4  ;;  %14860 = vmatpush3.bf16.msra.mxu0 %v17342_v4  ;;  %1007 = vst [vmem:[#allocation2 + $0x3c] sm:$0xf] %v1006_v0  ;;  %v13107_v9 = vpack.c.bf16 %v531_v50, %v531_v50  ;;  %v500_v10 = vadd.f32 %v17196_v38, %v17302_v26  ;;  %v17417_v37 = vld [vmem:[%s17170_s16 + $0xd0] sm:$0xff]  ;;  %v16223_v27 = vld [vmem:[#allocation9 + $0x160] sm:$0xff]   ;;  %s16847_s7 = scalar_lea.vmem %s16846_s27, 8192 }
  0xde   : > { %v1365_v3 = vrot.slane %v1363_v56, 1  ;;  %v1370_v5 = vrot.slane %v1368_v57, 1  ;;  %v1097_v6 = vld [vmem:[#allocation2 + $0x30] sm:$0xf]  ;;  %407 = vst [vmem:[%s17190_s24 + $0xc8] sm:$0xff] %v17389_v2  ;;  %14861 = vmatprep.subr.bf16.mxu0 %v17361_v41  ;;  %v737_v13 = vshrl.u32 %v13106_v1, 16  ;;  %v501_v26 = vadd.f32 %v17196_v38, %v464_v39  ;;  %14909 = vmatprep.subr.bf16.mxu1 %v16236_v22  ;;  %p16849_p7 = scmp.lt.s32.totalorder %s16847_s7, %s16841_s15 }
  0xdf   : > { %v734_v11 = vsel %vm17223_vm6, %v726_v47, %v733_v44  ;;  %v1010_v12 = vsel %vm17242_vm8, %v735_v63, %v1009_v58  ;;  %v740_v14 = vshll.u32 %v13106_v1, 16  ;;  %v745_v4 = vshrl.u32 %v13107_v9, 16  ;;  %v17425_v47 = vld [vmem:[%s17170_s16 + $0xd8] sm:$0xff]  ;;  %408 = vst [vmem:[%s17190_s24 + $0xd0] sm:$0xff] %v17417_v37  ;;  %14910 = vmatpush3.bf16.msra.mxu1 %v16236_v22  ;;  %v17449_v22 = vld [vmem:[%s17170_s16 + $0xe8] sm:$0xff] }
  0xe0   : > { %v1366_v17 = vor.u32 %v1365_v3, %v1361_v54  ;;  %1008 = vst [vmem:[#allocation2 + $0x40] sm:$0xf] %v734_v11  ;;  %1011 = vst [vmem:[#allocation2 + $0x44] sm:$0x1] %v1010_v12  ;;  %v748_v18 = vshll.u32 %v13107_v9, 16  ;;  %1967 = vmatmul.mubr.bf16.gmra.mrb[4].mxu0 %v17337_v62  ;;  %2441 = vmatmul.mubr.bf16.gmra.mrb[8].mxu1 %v17337_v62  ;;  %v739_v24 = vrot.slane %v737_v13, 7  ;;  %p16850_p10 = por %p16849_p7, %p16848_p3 }
  0xe1   : > { %v1098_v15 = vld [vmem:[#allocation2 + $0x34] sm:$0xf]  ;;  %v532_v25 = vmax.f32 %v500_v10, 0.0  ;;  %v465_v28 = vmul.f32 %v17186_v35, %v17269_v55  ;;  %v466_v29 = vmul.f32 %v17186_v35, %v17272_v60  ;;  %v16210_v33 = vld [vmem:[#allocation2 + $0x38] ss:$0 sps:$4 sm:$0x11]   ;;  %14862 = vmatpush3.bf16.msra.mxu0 %v17361_v41 }
  0xe2   : > { %v17411_v32 = vsel %vm1323_vm3, %v1366_v17, %v1370_v5  ;;  %v17413_v30 = vcombine.low %v1097_v6, %v1098_v15  ;;  %v747_v34 = vrot.slane %v745_v4, 7  ;;  %v533_v36 = vmax.f32 %v501_v26, 0.0  ;;  %v1016_v39 = vld [vmem:[#allocation2 + $0x50] sm:$0x1]  ;;  %14863 = vmatprep.subr.bf16.mxu0 %v16218_v20  ;;  %409 = vst [vmem:[%s17190_s24 + $0xd8] sm:$0xff] %v17425_v47  ;;  %v16239_v54 = vld [vmem:[#allocation9 + $0x98] sm:$0xff]   ;;  %p16851_p13 = pnand %p16850_p10, %p16844_p8 }
  0xe3   : > { %1974 = vmatprep.mubr.bf16.mxu0 %v17411_v32  ;;  %2448 = vmatprep.mubr.bf16.mxu1 %v17411_v32  ;;  %v742_v55 = vor.u32 %v740_v14, %v739_v24  ;;  %v743_v60 = vrot.slane %v739_v24, 4  ;;  %v13108_v42 = vpack.c.bf16 %v532_v25, %v532_v25  ;;  %v17422_v45 = vadd.f32 %v17196_v38, %v465_v28  ;;  %v1019_v6 = vld [vmem:[#allocation2 + $0x54] sm:$0xf]  ;;  %v16229_v9 = vld [vmem:[#allocation9 + $0x168] sm:$0xff]   ;;  %v17438_v10 = vld [vmem:[%s17170_s16 + $0xe0] sm:$0xff] }
  0xe4   : > { %v1373_v41 = vshrl.u32 %v17413_v30, 16  ;;  %v1375_v48 = vshll.u32 %v17413_v30, 16  ;;  %v1380_v49 = vshll.u32 %v16210_v33, 16  ;;  %v750_v50 = vor.u32 %v748_v18, %v747_v34  ;;  %v1099_v56 = vld [vmem:[#allocation2 + $0x3c] sm:$0xf]  ;;  %14911 = vmatprep.subr.bf16.mxu1 %v16239_v54  ;;  %410 = vst [vmem:[%s17190_s24 + $0xe0] sm:$0xff] %v17438_v10 }
  0xe5   : > { %v752_v57 = vrot.slane %v747_v34, 4  ;;  %v1013_v58 = vsel %vm17232_vm7, %v742_v55, %v1012_v19  ;;  %v13109_v44 = vpack.c.bf16 %v533_v36, %v533_v36  ;;  %v754_v63 = vshrl.u32 %v13108_v42, 16  ;;  %14864 = vmatpush3.bf16.msra.mxu0 %v16218_v20  ;;  %14912 = vmatpush3.bf16.msra.mxu1 %v16239_v54  ;;  %v1023_v28 = vld [vmem:[#allocation2 + $0x5c] sm:$0x1]  ;;  %411 = vst [vmem:[%s17190_s24 + $0xe8] sm:$0xff] %v17449_v22 }
  0xe6   : > { %v1377_v0 = vrot.slane %v1375_v48, 1  ;;  %v1382_v1 = vrot.slane %v1380_v49, 1  ;;  %v751_v3 = vsel %vm17223_vm6, %v743_v60, %v750_v50  ;;  %1014 = vst [vmem:[#allocation2 + $0x48] sm:$0xf] %v1013_v58  ;;  %v757_v5 = vshll.u32 %v13108_v42, 16  ;;  %14865 = vmatprep.subr.bf16.mxu0 %v16223_v27  ;;  %v17460_v60 = vld [vmem:[#allocation9 + $0x170] sm:$0xff]  }
  0xe7   : > { %v1100_v11 = vld [vmem:[#allocation2 + $0x40] sm:$0xf]  ;;  %1015 = vst [vmem:[#allocation2 + $0x4c] sm:$0xf] %v751_v3  ;;  %v1017_v12 = vsel %vm17242_vm8, %v752_v57, %v1016_v39  ;;  %v756_v13 = vrot.slane %v754_v63, 7  ;;  %v762_v14 = vshrl.u32 %v13109_v44, 16  ;;  %v503_v17 = vadd.f32 %v17196_v38, %v466_v29 }
  0xe8   : > { %v1378_v4 = vor.u32 %v1377_v0, %v1373_v41  ;;  %v17445_v18 = vcombine.low %v1099_v56, %v1100_v11  ;;  %v16212_v19 = vld [vmem:[#allocation2 + $0x44] ss:$0 sps:$4 sm:$0x11]   ;;  %1018 = vst [vmem:[#allocation2 + $0x50] sm:$0x1] %v1017_v12  ;;  %v765_v26 = vshll.u32 %v13109_v44, 16  ;;  %1975 = vmatmul.mubr.bf16.gmra.mrb[8].mxu0 %v17364_v43  ;;  %2449 = vmatmul.mubr.bf16.gmra.mrb[12].mxu1 %v17364_v43 }
  0xe9   : > { %v534_v20 = vmax.f32 %v17422_v45, 0.0  ;;  %v759_v15 = vor.u32 %v757_v5, %v756_v13  ;;  %v760_v24 = vrot.slane %v756_v13, 4  ;;  %v764_v25 = vrot.slane %v762_v14, 7  ;;  %14866 = vmatpush3.bf16.msra.mxu0 %v16223_v27  ;;  %v16243_v42 = vld [vmem:[#allocation9 + $0xa0] sm:$0xff]   ;;  %v16244_v50 = vld [vmem:[#allocation9 + $0xa8] sm:$0xff]  }
  0xea   : > { %v535_v29 = vmax.f32 %v503_v17, 0.0  ;;  %v17456_v33 = vsel %vm1323_vm3, %v1378_v4, %v1382_v1  ;;  %v1385_v34 = vshrl.u32 %v17445_v18, 16  ;;  %v1387_v36 = vshll.u32 %v17445_v18, 16  ;;  %14867 = vmatprep.subr.bf16.mxu0 %v16229_v9  ;;  %14913 = vmatprep.subr.bf16.mxu1 %v16243_v42  ;;  %v17755_v7 = vld [vmem:[#allocation2 + $0x14] ss:$0 sps:$4 sm:$0x11]  }
  0xeb   : > { %v1392_v55 = vshll.u32 %v16212_v19, 16  ;;  %1982 = vmatprep.mubr.bf16.mxu0 %v17456_v33  ;;  %2456 = vmatprep.mubr.bf16.mxu1 %v17456_v33  ;;  %v767_v45 = vor.u32 %v765_v26, %v764_v25  ;;  %v769_v41 = vrot.slane %v764_v25, 4  ;;  %v1020_v48 = vsel %vm17232_vm7, %v759_v15, %v1019_v6  ;;  %v17492_v15 = vld [vmem:[%s17170_s16 + $0xf0] sm:$0xff] }
  0xec   : > { %v13110_v49 = vpack.c.bf16 %v534_v20, %v534_v20  ;;  %v1389_v39 = vrot.slane %v1387_v36, 1  ;;  %1021 = vst [vmem:[#allocation2 + $0x54] sm:$0xf] %v1020_v48  ;;  %v13111_v56 = vpack.c.bf16 %v535_v29, %v535_v29  ;;  %v467_v27 = vmul.f32 %v17186_v35, %v17277_v61  ;;  %14914 = vmatpush3.bf16.msra.mxu1 %v16243_v42  ;;  %v1026_v61 = vld [vmem:[#allocation2 + $0x60] sm:$0xf]  ;;  %v16242_v20 = vld [vmem:[#allocation9 + $0x178] sm:$0xff]  }
  0xed   : > { %v1394_v54 = vrot.slane %v1392_v55, 1  ;;  %v1101_v57 = vld [vmem:[#allocation2 + $0x48] sm:$0xf]  ;;  %v768_v58 = vsel %vm17223_vm6, %v760_v24, %v767_v45  ;;  %v1024_v44 = vsel %vm17242_vm8, %v769_v41, %v1023_v28  ;;  %v468_v11 = vmul.f32 %v17186_v35, %v17291_v8  ;;  %14868 = vmatpush3.bf16.msra.mxu0 %v16229_v9  ;;  %14915 = vmatprep.subr.bf16.mxu1 %v16244_v50  ;;  %v17495_v24 = vld [vmem:[%s17170_s16 + $0xf8] sm:$0xff]  ;;  %v16248_v41 = vld [vmem:[#allocation9 + $0xb8] sm:$0xff]  }
  0xee   : > { %v771_v63 = vshrl.u32 %v13110_v49, 16  ;;  %v774_v0 = vshll.u32 %v13110_v49, 16  ;;  %v1390_v1 = vor.u32 %v1389_v39, %v1385_v34  ;;  %v17472_v3 = vld [vmem:[#allocation2 + $0x4c] sm:$0xf]  ;;  %1022 = vst [vmem:[#allocation2 + $0x58] sm:$0xf] %v768_v58  ;;  %v504_v17 = vadd.f32 %v17196_v38, %v467_v27  ;;  %14869 = vmatprep.subr.bf16.mxu0 %v17460_v60 }
  0xef   : > { %1025 = vst [vmem:[#allocation2 + $0x5c] sm:$0x1] %v1024_v44  ;;  %v779_v5 = vshrl.u32 %v13111_v56, 16  ;;  %v782_v6 = vshll.u32 %v13111_v56, 16  ;;  %v17477_v12 = vcombine.low %v1101_v57, %v17472_v3  ;;  %v469_v4 = vmul.f32 %v17186_v35, %v17307_v31  ;;  %v1030_v34 = vld [vmem:[#allocation2 + $0x68] sm:$0x1] }
  0xf0   : > { %v17479_v13 = vld [vmem:[#allocation2 + $0x50] ss:$0 sps:$4 sm:$0x11]   ;;  %v773_v14 = vrot.slane %v771_v63, 7  ;;  %v17486_v19 = vsel %vm1323_vm3, %v1390_v1, %v1394_v54  ;;  %v505_v9 = vadd.f32 %v17196_v38, %v468_v11  ;;  %v470_v26 = vmul.f32 %v17186_v35, %v17312_v40  ;;  %1983 = vmatmul.mubr.bf16.gmra.mrb[12].mxu0 %v17413_v30  ;;  %2457 = vmatmul.mubr.bf16.gmra.mrb[16].mxu1 %v17413_v30  ;;  %v16250_v27 = vld [vmem:[#allocation9 + $0x1c0] sm:$0xff]  }
  0xf1   : > { %v781_v8 = vrot.slane %v779_v5, 7  ;;  %v1397_v31 = vshrl.u32 %v17477_v12, 16  ;;  %v1399_v25 = vshll.u32 %v17477_v12, 16  ;;  %v1404_v28 = vshll.u32 %v17479_v13, 16  ;;  %412 = vst [vmem:[%s17190_s24 + $0xf0] sm:$0xff] %v17492_v15  ;;  %413 = vst [vmem:[%s17190_s24 + $0xf8] sm:$0xff] %v17495_v24  ;;  %1990 = vmatprep.mubr.bf16.mxu0 %v17486_v19  ;;  %2464 = vmatprep.mubr.bf16.mxu1 %v17486_v19 }
  0xf2   : > { %v776_v29 = vor.u32 %v774_v0, %v773_v14  ;;  %v16247_v40 = vld [vmem:[#allocation9 + $0xb0] sm:$0xff]   ;;  %v777_v36 = vrot.slane %v773_v14, 4  ;;  %v536_v45 = vmax.f32 %v504_v17, 0.0  ;;  %v537_v56 = vmax.f32 %v505_v9, 0.0  ;;  %14870 = vmatpush3.bf16.msra.mxu0 %v17460_v60  ;;  %14916 = vmatpush3.bf16.msra.mxu1 %v16244_v50 }
  0xf3   : > { %v784_v55 = vor.u32 %v782_v6, %v781_v8  ;;  %v786_v42 = vrot.slane %v781_v8, 4  ;;  %v1401_v48 = vrot.slane %v1399_v25, 1  ;;  %v1406_v49 = vrot.slane %v1404_v28, 1  ;;  %v1103_v39 = vld [vmem:[#allocation2 + $0x54] sm:$0xf]  ;;  %14871 = vmatprep.subr.bf16.mxu0 %v16242_v20  ;;  %14917 = vmatprep.subr.bf16.mxu1 %v16247_v40 }
  0xf4   : > { %v1027_v54 = vsel %vm17232_vm7, %v776_v29, %v1026_v61  ;;  %v13112_v44 = vpack.c.bf16 %v536_v45, %v536_v45  ;;  %v506_v63 = vadd.f32 %v17196_v38, %v469_v4  ;;  %v13113_v5 = vpack.c.bf16 %v537_v56, %v537_v56  ;;  %v1150_v21 = vld [vmem:[#allocation2 + $0x54] sm:$0xe] }
  0xf5   : > { %v785_v57 = vsel %vm17223_vm6, %v777_v36, %v784_v55  ;;  %1028 = vst [vmem:[#allocation2 + $0x60] sm:$0xf] %v1027_v54  ;;  %v1031_v58 = vsel %vm17242_vm8, %v786_v42, %v1030_v34  ;;  %v1402_v0 = vor.u32 %v1401_v48, %v1397_v31  ;;  %v17516_v1 = vld [vmem:[#allocation2 + $0x58] sm:$0xf]  ;;  %v507_v60 = vadd.f32 %v17196_v38, %v470_v26  ;;  %v1033_v31 = vld [vmem:[#allocation2 + $0x6c] sm:$0xf] }
  0xf6   : > { %1029 = vst [vmem:[#allocation2 + $0x64] sm:$0xf] %v785_v57  ;;  %1032 = vst [vmem:[#allocation2 + $0x68] sm:$0x1] %v1031_v58  ;;  %v471_v50 = vmul.f32 %v17186_v35, %v17323_v46  ;;  %v17522_v6 = vcombine.low %v1103_v39, %v17516_v1  ;;  %v788_v11 = vshrl.u32 %v13112_v44, 16  ;;  %v791_v14 = vshll.u32 %v13112_v44, 16  ;;  %14872 = vmatpush3.bf16.msra.mxu0 %v16242_v20 }
  0xf7   : > { %v17524_v61 = vld [vmem:[#allocation2 + $0x5c] ss:$0 sps:$4 sm:$0x11]   ;;  %v538_v17 = vmax.f32 %v506_v63, 0.0  ;;  %v17527_v4 = vsel %vm1323_vm3, %v1402_v0, %v1406_v49  ;;  %v796_v8 = vshrl.u32 %v13113_v5, 16  ;;  %v799_v9 = vshll.u32 %v13113_v5, 16  ;;  %14918 = vmatpush3.bf16.msra.mxu1 %v16247_v40  ;;  %13497 = vmatprep.subr.bf16.mxu0 %v16250_v27 }
  0xf8   : > { %21724 = vst [vmem:[#allocation20_spill] sm:$0xff] %v17522_v6  ;;  %v539_v25 = vmax.f32 %v507_v60, 0.0  ;;  %v1409_v38 = vshrl.u32 %v17522_v6, 16  ;;  %v1411_v46 = vshll.u32 %v17522_v6, 16  ;;  %v1416_v26 = vshll.u32 %v17524_v61, 16  ;;  %14919 = vmatprep.subr.bf16.mxu1 %v16248_v41  ;;  %1991 = vmatmul.mubr.bf16.gmra.mrb[16].mxu0 %v17445_v18 }
  0xf9   : > { %v790_v28 = vrot.slane %v788_v11, 7  ;;  %2465 = vmatmul.mubr.bf16.gmra.mrb[20].mxu1 %v17445_v18  ;;  %v798_v29 = vrot.slane %v796_v8, 7  ;;  %v1037_v34 = vld [vmem:[#allocation2 + $0x74] sm:$0x1]  ;;  %v13114_v36 = vpack.c.bf16 %v538_v17, %v538_v17  ;;  %v472_v20 = vmul.f32 %v17186_v35, %v17328_v52  ;;  %1998 = vmatprep.mubr.bf16.mxu0 %v17527_v4  ;;  %v1040_v63 = vld [vmem:[#allocation2 + $0x78] sm:$0xf] }
  0xfa   : > { %v13115_v55 = vpack.c.bf16 %v539_v25, %v539_v25  ;;  %v1413_v40 = vrot.slane %v1411_v46, 1  ;;  %v1418_v42 = vrot.slane %v1416_v26, 1  ;;  %2472 = vmatprep.mubr.bf16.mxu1 %v17527_v4  ;;  %v1044_v8 = vld [vmem:[#allocation2 + $0x80] sm:$0x1]  ;;  %vm1612_vm9 = vcmask 1046528  }
  0xfb   : > { %v793_v45 = vor.u32 %v791_v14, %v790_v28  ;;  %v794_v48 = vrot.slane %v790_v28, 4  ;;  %v801_v39 = vor.u32 %v799_v9, %v798_v29  ;;  %v803_v54 = vrot.slane %v798_v29, 4  ;;  %14920 = vmatpush3.bf16.msra.mxu1 %v16248_v41  ;;  %v17554_v9 = vld [vmem:[#allocation8] ss:$0 sm:$0xff] }
  0xfc   : > { %v1105_v49 = vld [vmem:[#allocation2 + $0x60] sm:$0xf]  ;;  %v805_v56 = vshrl.u32 %v13114_v36, 16  ;;  %v808_v27 = vshll.u32 %v13114_v36, 16  ;;  %v1414_v57 = vor.u32 %v1413_v40, %v1409_v38  ;;  %v813_v52 = vshrl.u32 %v13115_v55, 16 }
  0xfd   : > { %v17538_v58 = vld [vmem:[#allocation2 + $0x64] sm:$0xf]  ;;  %v1034_v35 = vsel %vm17232_vm7, %v793_v45, %v1033_v31  ;;  %v816_v44 = vshll.u32 %v13115_v55, 16  ;;  %v17545_v5 = vld [vmem:[#allocation2 + $0x68] ss:$0 sps:$4 sm:$0x11]   ;;  %v802_v60 = vsel %vm17223_vm6, %v794_v48, %v801_v39  ;;  %v1038_v41 = vsel %vm17242_vm8, %v803_v54, %v1037_v34 }
  0xfe   : > { %v17543_v0 = vcombine.low %v1105_v49, %v17538_v58  ;;  %1035 = vst [vmem:[#allocation2 + $0x6c] sm:$0xf] %v1034_v35  ;;  %v807_v11 = vrot.slane %v805_v56, 7  ;;  %v17552_v14 = vsel %vm1323_vm3, %v1414_v57, %v1418_v42  ;;  %1036 = vst [vmem:[#allocation2 + $0x70] sm:$0xf] %v802_v60  ;;  %v815_v17 = vrot.slane %v813_v52, 7 }
  0xff   : > { %21726 = vst [vmem:[#allocation22_spill] sm:$0xff] %v17552_v14  ;;  %1039 = vst [vmem:[#allocation2 + $0x74] sm:$0x1] %v1038_v41  ;;  %v508_v31 = vadd.f32 %v17554_v9, %v471_v50  ;;  %v509_v25 = vadd.f32 %v17554_v9, %v472_v20  ;;  %v1428_v26 = vshll.u32 %v17545_v5, 16  ;;  %v17571_v56 = vld [vmem:[#allocation6] ss:$0 sm:$0xff] }
 0x100   : > { %21725 = vst [vmem:[#allocation21_spill] sm:$0xff] %v17543_v0  ;;  %v1421_v38 = vshrl.u32 %v17543_v0, 16  ;;  %v1423_v46 = vshll.u32 %v17543_v0, 16  ;;  %v810_v28 = vor.u32 %v808_v27, %v807_v11  ;;  %v811_v29 = vrot.slane %v807_v11, 4  ;;  %1999 = vmatmul.mubr.bf16.gmra.mrb[20].mxu0 %v17477_v12 }
 0x101   : > { %v818_v34 = vor.u32 %v816_v44, %v815_v17  ;;  %v820_v36 = vrot.slane %v815_v17, 4  ;;  %v540_v55 = vmax.f32 %v508_v31, 0.0  ;;  %2473 = vmatmul.mubr.bf16.gmra.mrb[24].mxu1 %v17477_v12  ;;  %v1430_v42 = vrot.slane %v1428_v26, 1  ;;  %2006 = vmatprep.mubr.bf16.mxu0 %v17552_v14  ;;  %v1051_v26 = vld [vmem:[#allocation2 + $0x8c] sm:$0x1] }
 0x102   : > { %v1425_v40 = vrot.slane %v1423_v46, 1  ;;  %v1041_v50 = vsel %vm17232_vm7, %v810_v28, %v1040_v63  ;;  %v541_v20 = vmax.f32 %v509_v25, 0.0  ;;  %2480 = vmatprep.mubr.bf16.mxu1 %v17552_v14  ;;  %v473_v27 = vmul.f32 %v17571_v56, %v17351_v23  ;;  %v1047_v23 = vld [vmem:[#allocation2 + $0x84] sm:$0xf] }
 0x103   : > { %v819_v45 = vsel %vm17223_vm6, %v811_v29, %v818_v34  ;;  %1042 = vst [vmem:[#allocation2 + $0x78] sm:$0xf] %v1041_v50  ;;  %v1045_v48 = vsel %vm17242_vm8, %v820_v36, %v1044_v8  ;;  %v13116_v49 = vpack.c.bf16 %v540_v55, %v540_v55  ;;  %v474_v57 = vmul.f32 %v17571_v56, %v17372_v51  ;;  %v17602_v50 = vld [vmem:[#allocation9 + $0x200] sm:$0xff]  }
 0x104   : > { %v1426_v39 = vor.u32 %v1425_v40, %v1421_v38  ;;  %1043 = vst [vmem:[#allocation2 + $0x7c] sm:$0xf] %v819_v45  ;;  %1046 = vst [vmem:[#allocation2 + $0x80] sm:$0x1] %v1045_v48  ;;  %v13117_v54 = vpack.c.bf16 %v541_v20, %v541_v20  ;;  %v475_v63 = vmul.f32 %v17571_v56, %v17382_v59  ;;  %14953 = vmatprep.subr.bf16.mxu1 %v17602_v50 }
 0x105   : > { %v1107_v35 = vld [vmem:[#allocation2 + $0x6c] sm:$0xf]  ;;  %v822_v52 = vshrl.u32 %v13116_v49, 16  ;;  %v825_v44 = vshll.u32 %v13116_v49, 16  ;;  %v476_v60 = vmul.f32 %v17571_v56, %v17389_v2  ;;  %v17584_v11 = vld [vmem:[#allocation2 + $0x70] sm:$0xf]  ;;  %v510_v31 = vadd.f32 %v17554_v9, %v473_v27 }
 0x106   : > { %v17582_v41 = vsel %vm1323_vm3, %v1426_v39, %v1430_v42  ;;  %v830_v17 = vshrl.u32 %v13117_v54, 16  ;;  %v833_v8 = vshll.u32 %v13117_v54, 16  ;;  %v17588_v51 = vcombine.low %v1107_v35, %v17584_v11  ;;  %v17590_v25 = vld [vmem:[#allocation2 + $0x74] ss:$0 sps:$4 sm:$0x11]  }
 0x107   : > { %21727 = vst [vmem:[#allocation23_spill] sm:$0xff] %v17582_v41  ;;  %v824_v38 = vrot.slane %v822_v52, 7  ;;  %v511_v59 = vadd.f32 %v17554_v9, %v474_v57  ;;  %v512_v2 = vadd.f32 %v17554_v9, %v475_v63  ;;  %v542_v28 = vmax.f32 %v510_v31, 0.0 }
 0x108   : > { %21728 = vst [vmem:[#allocation24_spill] sm:$0xff] %v17588_v51  ;;  %v832_v46 = vrot.slane %v830_v17, 7  ;;  %v513_v29 = vadd.f32 %v17554_v9, %v476_v60  ;;  %v17597_v34 = vmul.f32 %v17571_v56, %v17417_v37  ;;  %v1433_v36 = vshrl.u32 %v17588_v51, 16  ;;  %2007 = vmatmul.mubr.bf16.gmra.mrb[24].mxu0 %v17522_v6 }
 0x109   : > { %v1435_v55 = vshll.u32 %v17588_v51, 16  ;;  %v1440_v40 = vshll.u32 %v17590_v25, 16  ;;  %v827_v42 = vor.u32 %v825_v44, %v824_v38  ;;  %2481 = vmatmul.mubr.bf16.gmra.mrb[28].mxu1 %v17522_v6  ;;  %v828_v45 = vrot.slane %v824_v38, 4  ;;  %2014 = vmatprep.mubr.bf16.mxu0 %v17582_v41 }
 0x10a   : > { %v1109_v20 = vld [vmem:[#allocation2 + $0x78] sm:$0xf]  ;;  %v835_v48 = vor.u32 %v833_v8, %v832_v46  ;;  %v837_v49 = vrot.slane %v832_v46, 4  ;;  %v543_v39 = vmax.f32 %v511_v59, 0.0  ;;  %2488 = vmatprep.mubr.bf16.mxu1 %v17582_v41  ;;  %v13118_v35 = vpack.c.bf16 %v542_v28, %v542_v28 }
 0x10b   : > { %v1437_v37 = vrot.slane %v1435_v55, 1  ;;  %v1442_v54 = vrot.slane %v1440_v40, 1  ;;  %v17608_v27 = vld [vmem:[#allocation2 + $0x7c] sm:$0xf]  ;;  %v1048_v57 = vsel %vm17232_vm7, %v827_v42, %v1047_v23  ;;  %v544_v38 = vmax.f32 %v512_v2, 0.0 }
 0x10c   : > { %v17613_v52 = vcombine.low %v1109_v20, %v17608_v27  ;;  %v17615_v44 = vld [vmem:[#allocation2 + $0x80] ss:$0 sps:$4 sm:$0x11]   ;;  %v836_v63 = vsel %vm17223_vm6, %v828_v45, %v835_v48  ;;  %1049 = vst [vmem:[#allocation2 + $0x84] sm:$0xf] %v1048_v57  ;;  %v1052_v60 = vsel %vm17242_vm8, %v837_v49, %v1051_v26  ;;  %v13119_v17 = vpack.c.bf16 %v543_v39, %v543_v39 }
 0x10d   : > { %v1438_v8 = vor.u32 %v1437_v37, %v1433_v36  ;;  %1050 = vst [vmem:[#allocation2 + $0x88] sm:$0xf] %v836_v63  ;;  %1053 = vst [vmem:[#allocation2 + $0x8c] sm:$0x1] %v1052_v60  ;;  %v839_v23 = vshrl.u32 %v13118_v35, 16  ;;  %v842_v31 = vshll.u32 %v13118_v35, 16  ;;  %v13120_v39 = vpack.c.bf16 %v544_v38, %v544_v38 }
 0x10e   : > { %21729 = vst [vmem:[#allocation25_spill] sm:$0xff] %v17613_v52  ;;  %v1445_v59 = vshrl.u32 %v17613_v52, 16  ;;  %v1447_v46 = vshll.u32 %v17613_v52, 16  ;;  %v1452_v28 = vshll.u32 %v17615_v44, 16  ;;  %v847_v55 = vshrl.u32 %v13119_v17, 16 }
 0x10f   : > { %v17626_v40 = vsel %vm1323_vm3, %v1438_v8, %v1442_v54  ;;  %v841_v26 = vrot.slane %v839_v23, 7  ;;  %v850_v42 = vshll.u32 %v13119_v17, 16  ;;  %v1054_v20 = vld [vmem:[#allocation2 + $0x90] sm:$0xf]  ;;  %v545_v45 = vmax.f32 %v513_v29, 0.0 }
 0x110   : > { %21730 = vst [vmem:[#allocation26_spill] sm:$0xff] %v17626_v40  ;;  %v1449_v36 = vrot.slane %v1447_v46, 1  ;;  %v1454_v48 = vrot.slane %v1452_v28, 1  ;;  %v849_v49 = vrot.slane %v847_v55, 7  ;;  %v1058_v57 = vld [vmem:[#allocation2 + $0x98] sm:$0x1]  ;;  %v478_v63 = vmul.f32 %v17571_v56, %v17425_v47  ;;  %2015 = vmatmul.mubr.bf16.gmra.mrb[28].mxu0 %v17543_v0 }
 0x111   : > { %v844_v37 = vor.u32 %v842_v31, %v841_v26  ;;  %v845_v2 = vrot.slane %v841_v26, 4  ;;  %v13121_v35 = vpack.c.bf16 %v545_v45, %v545_v45  ;;  %2489 = vmatmul.mubr.bf16.gmra.mrb[32].mxu1 %v17543_v0  ;;  %v856_v8 = vshrl.u32 %v13120_v39, 16  ;;  %2022 = vmatprep.mubr.bf16.mxu0 %v17626_v40  ;;  %v1061_v47 = vld [vmem:[#allocation2 + $0x9c] sm:$0xf]  ;;  %v16678_v0 = vld [vmem:[#allocation2 + $0x34] sm:$0xf] }
 0x112   : > { %v1450_v54 = vor.u32 %v1449_v36, %v1445_v59  ;;  %v852_v60 = vor.u32 %v850_v42, %v849_v49  ;;  %v854_v17 = vrot.slane %v849_v49, 4  ;;  %2496 = vmatprep.mubr.bf16.mxu1 %v17626_v40  ;;  %v859_v31 = vshll.u32 %v13120_v39, 16  ;;  %v16677_v40 = vld [vmem:[#allocation2 + $0x8] ss:$0 sps:$4 sm:$0x11]  }
 0x113   : > { %v1111_v29 = vld [vmem:[#allocation2 + $0x84] sm:$0xf]  ;;  %v1055_v23 = vsel %vm17232_vm7, %v844_v37, %v1054_v20  ;;  %v864_v38 = vshrl.u32 %v13121_v35, 16  ;;  %v867_v46 = vshll.u32 %v13121_v35, 16  ;;  %v858_v42 = vrot.slane %v856_v8, 7 }
 0x114   : > { %v17637_v28 = vsel %vm1323_vm3, %v1450_v54, %v1454_v48  ;;  %v17639_v55 = vld [vmem:[#allocation2 + $0x88] sm:$0xf]  ;;  %v853_v59 = vsel %vm17223_vm6, %v845_v2, %v852_v60  ;;  %1056 = vst [vmem:[#allocation2 + $0x90] sm:$0xf] %v1055_v23  ;;  %v1059_v26 = vsel %vm17242_vm8, %v854_v17, %v1058_v57  ;;  %v1065_v48 = vld [vmem:[#allocation2 + $0xa4] sm:$0x1]  ;;  %v514_v49 = vadd.f32 %v17554_v9, %v17597_v34 }
 0x115   : > { %21731 = vst [vmem:[#allocation27_spill] sm:$0xff] %v17637_v28  ;;  %v17646_v45 = vcombine.low %v1111_v29, %v17639_v55  ;;  %v17648_v20 = vld [vmem:[#allocation2 + $0x8c] ss:$0 sps:$4 sm:$0x11]   ;;  %1057 = vst [vmem:[#allocation2 + $0x94] sm:$0xf] %v853_v59  ;;  %v515_v39 = vadd.f32 %v17554_v9, %v478_v63  ;;  %v861_v37 = vor.u32 %v859_v31, %v858_v42 }
 0x116   : > { %1060 = vst [vmem:[#allocation2 + $0x98] sm:$0x1] %v1059_v26  ;;  %v866_v36 = vrot.slane %v864_v38, 7  ;;  %v862_v2 = vrot.slane %v858_v42, 4  ;;  %v479_v57 = vmul.f32 %v17571_v56, %v17438_v10  ;;  %v480_v35 = vmul.f32 %v17571_v56, %v17449_v22 }
 0x117   : > { %21732 = vst [vmem:[#allocation28_spill] sm:$0xff] %v17646_v45  ;;  %v1457_v54 = vshrl.u32 %v17646_v45, 16  ;;  %v1459_v60 = vshll.u32 %v17646_v45, 16  ;;  %v1464_v17 = vshll.u32 %v17648_v20, 16  ;;  %v1062_v34 = vsel %vm17232_vm7, %v861_v37, %v1061_v47 }
 0x118   : > { %v869_v8 = vor.u32 %v867_v46, %v866_v36  ;;  %v871_v29 = vrot.slane %v866_v36, 4  ;;  %v546_v63 = vmax.f32 %v514_v49, 0.0  ;;  %v547_v23 = vmax.f32 %v515_v39, 0.0  ;;  %1063 = vst [vmem:[#allocation2 + $0x9c] sm:$0xf] %v1062_v34  ;;  %2023 = vmatmul.mubr.bf16.gmra.mrb[32].mxu0 %v17588_v51 }
 0x119   : > { %v1461_v31 = vrot.slane %v1459_v60, 1  ;;  %v516_v22 = vadd.f32 %v17554_v9, %v479_v57  ;;  %2497 = vmatmul.mubr.bf16.gmra.mrb[36].mxu1 %v17588_v51  ;;  %v1466_v38 = vrot.slane %v1464_v17, 1  ;;  %2030 = vmatprep.mubr.bf16.mxu0 %v17637_v28  ;;  %v517_v36 = vadd.f32 %v17554_v9, %v480_v35 }
 0x11a   : > { %v870_v10 = vsel %vm17223_vm6, %v862_v2, %v869_v8  ;;  %v1066_v46 = vsel %vm17242_vm8, %v871_v29, %v1065_v48  ;;  %v13122_v59 = vpack.c.bf16 %v546_v63, %v546_v63  ;;  %v13123_v47 = vpack.c.bf16 %v547_v23, %v547_v23  ;;  %2504 = vmatprep.mubr.bf16.mxu1 %v17637_v28  ;;  %v1068_v8 = vld [vmem:[#allocation2 + $0xa8] sm:$0xf]  ;;  %v1072_v63 = vld [vmem:[#allocation2 + $0xb0] sm:$0x1] }
 0x11b   : > { %1064 = vst [vmem:[#allocation2 + $0xa0] sm:$0xf] %v870_v10  ;;  %v1462_v26 = vor.u32 %v1461_v31, %v1457_v54  ;;  %v1113_v42 = vld [vmem:[#allocation2 + $0x90] sm:$0xf]  ;;  %1067 = vst [vmem:[#allocation2 + $0xa4] sm:$0x1] %v1066_v46  ;;  %v481_v57 = vmul.f32 %v17571_v56, %v17492_v15  ;;  %v482_v29 = vmul.f32 %v17571_v56, %v17495_v24 }
 0x11c   : > { %v548_v49 = vmax.f32 %v516_v22, 0.0  ;;  %v17672_v39 = vld [vmem:[#allocation2 + $0x94] sm:$0xf]  ;;  %v873_v37 = vshrl.u32 %v13122_v59, 16  ;;  %v876_v2 = vshll.u32 %v13122_v59, 16  ;;  %v881_v54 = vshrl.u32 %v13123_v47, 16 }
 0x11d   : > { %v17677_v48 = vcombine.low %v1113_v42, %v17672_v39  ;;  %v17679_v60 = vld [vmem:[#allocation2 + $0x98] ss:$0 sps:$4 sm:$0x11]   ;;  %v884_v17 = vshll.u32 %v13123_v47, 16  ;;  %v17684_v35 = vsel %vm1323_vm3, %v1462_v26, %v1466_v38  ;;  %v549_v23 = vmax.f32 %v517_v36, 0.0 }
 0x11e   : > { %21734 = vst [vmem:[#allocation30_spill] sm:$0xff] %v17684_v35  ;;  %v875_v34 = vrot.slane %v873_v37, 7  ;;  %v13124_v31 = vpack.c.bf16 %v548_v49, %v548_v49  ;;  %v1476_v22 = vshll.u32 %v17679_v60, 16  ;;  %v883_v46 = vrot.slane %v881_v54, 7 }
 0x11f   : > { %21733 = vst [vmem:[#allocation29_spill] sm:$0xff] %v17677_v48  ;;  %v1469_v15 = vshrl.u32 %v17677_v48, 16  ;;  %v1471_v10 = vshll.u32 %v17677_v48, 16  ;;  %v1115_v59 = vld [vmem:[#allocation2 + $0x9c] sm:$0xf]  ;;  %v518_v24 = vadd.f32 %v17554_v9, %v481_v57  ;;  %v13125_v36 = vpack.c.bf16 %v549_v23, %v549_v23 }
 0x120   : > { %v878_v47 = vor.u32 %v876_v2, %v875_v34  ;;  %v879_v42 = vrot.slane %v875_v34, 4  ;;  %v890_v28 = vshrl.u32 %v13124_v31, 16  ;;  %v886_v26 = vor.u32 %v884_v17, %v883_v46  ;;  %2031 = vmatmul.mubr.bf16.gmra.mrb[36].mxu0 %v17613_v52 }
 0x121   : > { %v1473_v56 = vrot.slane %v1471_v10, 1  ;;  %v888_v37 = vrot.slane %v883_v46, 4  ;;  %2505 = vmatmul.mubr.bf16.gmra.mrb[40].mxu1 %v17613_v52  ;;  %v519_v57 = vadd.f32 %v17554_v9, %v482_v29  ;;  %2038 = vmatprep.mubr.bf16.mxu0 %v17684_v35  ;;  %v893_v10 = vshll.u32 %v13124_v31, 16  ;;  %v1075_v46 = vld [vmem:[#allocation2 + $0xb4] sm:$0xf] }
 0x122   : > { %v17690_v38 = vld [vmem:[#allocation2 + $0xa0] sm:$0xf]  ;;  %v17697_v54 = vld [vmem:[#allocation2 + $0xa4] ss:$0 sps:$4 sm:$0x11]   ;;  %v1069_v2 = vsel %vm17232_vm7, %v878_v47, %v1068_v8  ;;  %v892_v34 = vrot.slane %v890_v28, 7  ;;  %2512 = vmatprep.mubr.bf16.mxu1 %v17684_v35  ;;  %v887_v17 = vsel %vm17223_vm6, %v879_v42, %v886_v26 }
 0x123   : > { %v17695_v49 = vcombine.low %v1115_v59, %v17690_v38  ;;  %1070 = vst [vmem:[#allocation2 + $0xa8] sm:$0xf] %v1069_v2  ;;  %v1073_v23 = vsel %vm17242_vm8, %v888_v37, %v1072_v63  ;;  %v1474_v59 = vor.u32 %v1473_v56, %v1469_v15  ;;  %v1478_v52 = vrot.slane %v1476_v22, 1  ;;  %1071 = vst [vmem:[#allocation2 + $0xac] sm:$0xf] %v887_v17 }
 0x124   : > { %1074 = vst [vmem:[#allocation2 + $0xb0] sm:$0x1] %v1073_v23  ;;  %v895_v9 = vor.u32 %v893_v10, %v892_v34  ;;  %v898_v29 = vshrl.u32 %v13125_v36, 16  ;;  %v901_v47 = vshll.u32 %v13125_v36, 16  ;;  %v1488_v35 = vshll.u32 %v17697_v54, 16 }
 0x125   : > { %21735 = vst [vmem:[#allocation31_spill] sm:$0xff] %v17695_v49  ;;  %v1481_v8 = vshrl.u32 %v17695_v49, 16  ;;  %v1483_v28 = vshll.u32 %v17695_v49, 16  ;;  %v896_v42 = vrot.slane %v892_v34, 4  ;;  %v550_v26 = vmax.f32 %v518_v24, 0.0 }
 0x126   : > { %v551_v2 = vmax.f32 %v519_v57, 0.0  ;;  %v900_v63 = vrot.slane %v898_v29, 7  ;;  %v1076_v31 = vsel %vm17232_vm7, %v895_v9, %v1075_v46  ;;  %v17714_v15 = vsel %vm1323_vm3, %v1474_v59, %v1478_v52  ;;  %v1079_v22 = vld [vmem:[#allocation2 + $0xbc] sm:$0x1] }
 0x127   : > { %v1485_v51 = vrot.slane %v1483_v28, 1  ;;  %21736 = vst [vmem:[#allocation32_spill] sm:$0xff] %v17714_v15  ;;  %1077 = vst [vmem:[#allocation2 + $0xb4] sm:$0xf] %v1076_v31  ;;  %v13126_v56 = vpack.c.bf16 %v550_v26, %v550_v26  ;;  %v1490_v24 = vrot.slane %v1488_v35, 1 }
 0x128   : > { %v13127_v37 = vpack.c.bf16 %v551_v2, %v551_v2  ;;  %v903_v17 = vor.u32 %v901_v47, %v900_v63  ;;  %v905_v23 = vrot.slane %v900_v63, 4  ;;  %2039 = vmatmul.mubr.bf16.gmra.mrb[40].mxu0 %v17646_v45  ;;  %v1086_v63 = vld [vmem:[#allocation2 + $0xc8] sm:$0x1] }
 0x129   : > { %2513 = vmatmul.mubr.bf16.gmra.mrb[44].mxu1 %v17646_v45  ;;  %v907_v34 = vshrl.u32 %v13126_v56, 16  ;;  %v910_v57 = vshll.u32 %v13126_v56, 16  ;;  %2046 = vmatprep.mubr.bf16.mxu0 %v17714_v15  ;;  %v1486_v46 = vor.u32 %v1485_v51, %v1481_v8  ;;  %v1082_v8 = vld [vmem:[#allocation2 + $0xc0] sm:$0xf] }
 0x12a   : > { %v1117_v36 = vld [vmem:[#allocation2 + $0xa8] sm:$0xf]  ;;  %v915_v10 = vshrl.u32 %v13127_v37, 16  ;;  %2520 = vmatprep.mubr.bf16.mxu1 %v17714_v15  ;;  %v17720_v52 = vld [vmem:[#allocation2 + $0xac] sm:$0xf]  ;;  %v904_v59 = vsel %vm17223_vm6, %v896_v42, %v903_v17  ;;  %v1080_v28 = vsel %vm17242_vm8, %v905_v23, %v1079_v22  ;;  %v918_v9 = vshll.u32 %v13127_v37, 16 }
 0x12b   : > { %v17727_v35 = vcombine.low %v1117_v36, %v17720_v52  ;;  %v17729_v29 = vld [vmem:[#allocation2 + $0xb0] ss:$0 sps:$4 sm:$0x11]   ;;  %1078 = vst [vmem:[#allocation2 + $0xb8] sm:$0xf] %v904_v59  ;;  %v909_v47 = vrot.slane %v907_v34, 7  ;;  %v17733_v42 = vsel %vm1323_vm3, %v1486_v46, %v1490_v24 }
 0x12c   : > { %1081 = vst [vmem:[#allocation2 + $0xbc] sm:$0x1] %v1080_v28  ;;  %v917_v51 = vrot.slane %v915_v10, 7  ;;  %21738 = vst [vmem:[#allocation34_spill] sm:$0xff] %v17733_v42  ;;  %v1500_v23 = vshll.u32 %v17729_v29, 16 }
 0x12d   : > { %21737 = vst [vmem:[#allocation33_spill] sm:$0xff] %v17727_v35  ;;  %v1495_v26 = vshll.u32 %v17727_v35, 16  ;;  %v912_v2 = vor.u32 %v910_v57, %v909_v47  ;;  %v913_v31 = vrot.slane %v909_v47, 4  ;;  %v1493_v37 = vshrl.u32 %v17727_v35, 16  ;;  %v1144_v34 = vld [vmem:[#allocation2 + $0xc] sm:$0xe] }
 0x12e   : > { %v920_v22 = vor.u32 %v918_v9, %v917_v51  ;;  %v922_v56 = vrot.slane %v917_v51, 4  ;;  %v1119_v10 = vld [vmem:[#allocation2 + $0xb4] sm:$0xf]  ;;  %v1143_v46 = vld [vmem:[#allocation2] sm:$0xe]  ;;  %v1502_v51 = vrot.slane %v1500_v23, 1 }
 0x12f   : > { %v1497_v17 = vrot.slane %v1495_v26, 1  ;;  %v1083_v36 = vsel %vm17232_vm7, %v912_v2, %v1082_v8  ;;  %v1145_v59 = vld [vmem:[#allocation2 + $0x18] sm:$0xe]  ;;  %v1146_v9 = vld [vmem:[#allocation2 + $0x24] sm:$0xe] }
 0x130   : > { %v921_v57 = vsel %vm17223_vm6, %v913_v31, %v920_v22  ;;  %1084 = vst [vmem:[#allocation2 + $0xc0] sm:$0xf] %v1083_v36  ;;  %v1087_v24 = vsel %vm17242_vm8, %v922_v56, %v1086_v63  ;;  %2047 = vmatmul.mubr.bf16.gmra.mrb[44].mxu0 %v17677_v48  ;;  %v16672_v2 = vld [vmem:[#allocation2 + $0x10] sm:$0xf]  ;;  %v1148_v22 = vld [vmem:[#allocation2 + $0x3c] sm:$0xe] }
 0x131   : > { %2521 = vmatmul.mubr.bf16.gmra.mrb[48].mxu1 %v17677_v48  ;;  %1085 = vst [vmem:[#allocation2 + $0xc4] sm:$0xf] %v921_v57  ;;  %1088 = vst [vmem:[#allocation2 + $0xc8] sm:$0x1] %v1087_v24  ;;  %2054 = vmatprep.mubr.bf16.mxu0 %v17733_v42  ;;  %v1498_v47 = vor.u32 %v1497_v17, %v1493_v37  ;;  %v12517_v63 = vcombine.low %v1144_v34, %v16672_v2  ;;  %v1147_v31 = vld [vmem:[#allocation2 + $0x30] sm:$0xe] }
 0x132   : > { %2528 = vmatprep.mubr.bf16.mxu1 %v17733_v42  ;;  %v17747_v28 = vld [vmem:[#allocation2 + $0xb8] sm:$0xf]  ;;  %v16673_v36 = vld [vmem:[#allocation2 + $0x4] sm:$0xf]  ;;  %v1149_v24 = vld [vmem:[#allocation2 + $0x48] sm:$0xe] }
 0x133   : > { %v17750_v8 = vcombine.low %v1119_v10, %v17747_v28  ;;  %v17752_v26 = vld [vmem:[#allocation2 + $0xbc] ss:$0 sps:$4 sm:$0x11]   ;;  %v12516_v57 = vcombine.low %v1143_v46, %v16673_v36  ;;  %v16676_v10 = vld [vmem:[#allocation2 + $0x28] sm:$0xf]  ;;  %v17759_v42 = vsel %vm1323_vm3, %v1498_v47, %v1502_v51  ;;  %v17765_v45 = vrot.slane %v12517_v63, 1 }
 0x134   : > { %v16675_v17 = vld [vmem:[#allocation2 + $0x1c] sm:$0xf]  ;;  %v12519_v16 = vcombine.low %v1146_v9, %v16676_v10  ;;  %21739 = vst [vmem:[#allocation35_spill] sm:$0xff] %v17759_v42  ;;  %v1512_v48 = vshll.u32 %v17752_v26, 16  ;;  %v1151_v46 = vld [vmem:[#allocation2 + $0x60] sm:$0xe] }
 0x135   : > { %v1507_v56 = vshll.u32 %v17750_v8, 16  ;;  %v12518_v23 = vcombine.low %v1145_v59, %v16675_v17  ;;  %v1505_v34 = vshrl.u32 %v17750_v8, 16  ;;  %v1614_v37 = vrot.slane %v16677_v40, 1  ;;  %v16680_v63 = vld [vmem:[#allocation2 + $0x40] sm:$0xf] }
 0x136   : > { %v12520_v59 = vcombine.low %v1147_v31, %v16678_v0  ;;  %v1613_v51 = vrot.slane %v12516_v57, 1  ;;  %v12521_v10 = vcombine.low %v1148_v22, %v16680_v63  ;;  %v17781_v40 = vld [vmem:[#allocation2 + $0x2c] ss:$0 sps:$4 sm:$0x11]   ;;  %v12522_v31 = vcombine.low %v1149_v24, %v17472_v3  ;;  %v1158_v14 = vld [vmem:[#allocation2 + $0xb4] sm:$0xe] }
 0x137   : > { %v1509_v2 = vrot.slane %v1507_v56, 1  ;;  %v1121_v15 = vld [vmem:[#allocation2 + $0xc0] sm:$0xf]  ;;  %v17779_v0 = vrot.slane %v12518_v23, 1  ;;  %v12523_v57 = vcombine.low %v1150_v21, %v17516_v1  ;;  %v1514_v41 = vrot.slane %v1512_v48, 1 }
 0x138   : > { %v17763_v36 = vld [vmem:[#allocation2 + $0xc4] sm:$0xf]  ;;  %2055 = vmatmul.mubr.bf16.gmra.mrb[48].mxu0 %v17695_v49  ;;  %v17772_v47 = vld [vmem:[#allocation2 + $0xc8] ss:$0 sps:$4 sm:$0x11]   ;;  %v17787_v22 = vrot.slane %v12519_v16, 1  ;;  %v12524_v6 = vcombine.low %v1151_v46, %v17538_v58 }
 0x139   : > { %2529 = vmatmul.mubr.bf16.gmra.mrb[52].mxu1 %v17695_v49  ;;  %v17770_v9 = vcombine.low %v1121_v15, %v17763_v36  ;;  %v17774_v56 = vld [vmem:[#allocation2 + $0x20] ss:$0 sps:$4 sm:$0x11]   ;;  %2062 = vmatprep.mubr.bf16.mxu0 %v17759_v42  ;;  %v1510_v49 = vor.u32 %v1509_v2, %v1505_v34  ;;  %v17789_v63 = vrot.slane %v12520_v59, 1  ;;  %v1524_v15 = vshll.u32 %v17772_v47, 16 }
 0x13a   : > { %2536 = vmatprep.mubr.bf16.mxu1 %v17759_v42  ;;  %v17791_v42 = vld [vmem:[#allocation2 + $0x38] ss:$0 sps:$4 sm:$0x11]   ;;  %v17796_v3 = vrot.slane %v12521_v10, 1  ;;  %v17802_v16 = vrot.slane %v12522_v31, 1  ;;  %v17804_v24 = vrot.slane %v12523_v57, 1  ;;  %v1615_v10 = vsel %vm1612_vm9, %v1613_v51, %v1614_v37 }
 0x13b   : > { %v1519_v17 = vshll.u32 %v17770_v9, 16  ;;  %v17798_v21 = vld [vmem:[#allocation2 + $0x44] ss:$0 sps:$4 sm:$0x11]   ;;  %v17807_v34 = vsel %vm1323_vm3, %v1510_v49, %v1514_v41  ;;  %v1517_v2 = vshrl.u32 %v17770_v9, 16  ;;  %v17811_v59 = vrot.slane %v12524_v6, 1 }
 0x13c   : > { %21740 = vst [vmem:[#allocation36_spill] sm:$0xff] %v17807_v34  ;;  %v1526_v31 = vrot.slane %v1524_v15, 1  ;;  %v1152_v41 = vld [vmem:[#allocation2 + $0x6c] sm:$0xe]  ;;  %v1153_v49 = vld [vmem:[#allocation2 + $0x78] sm:$0xe] }
 0x13d   : > { %v1521_v58 = vrot.slane %v1519_v17, 1  ;;  %v1154_v17 = vld [vmem:[#allocation2 + $0x84] sm:$0xe]  ;;  %v1155_v46 = vld [vmem:[#allocation2 + $0x90] sm:$0xe]  ;;  %v12525_v23 = vcombine.low %v1152_v41, %v17584_v11  ;;  %v12526_v15 = vcombine.low %v1153_v49, %v17608_v27  ;;  %v21742_v41 = vrot.slane %v17774_v56, 1 }
 0x13e   : > { %v1156_v48 = vld [vmem:[#allocation2 + $0x9c] sm:$0xe]  ;;  %v12527_v57 = vcombine.low %v1154_v17, %v17639_v55  ;;  %v1647_v55 = vrot.slane %v17648_v20, 1  ;;  %v21743_v56 = vrot.slane %v17781_v40, 1  ;;  %v16256_v17 = vld [vmem:[#allocation9 + $0x188] sm:$0xff]  }
 0x13f   : > { %v1522_v6 = vor.u32 %v1521_v58, %v1517_v2  ;;  %v12529_v37 = vcombine.low %v1156_v48, %v17690_v38  ;;  %v17832_v51 = vrot.slane %v12525_v23, 1  ;;  %v17834_v11 = vrot.slane %v12526_v15, 1  ;;  %v16262_v15 = vld [vmem:[#allocation9 + $0x1d8] sm:$0xff]  }
 0x140   : > { %2063 = vmatmul.mubr.bf16.gmra.mrb[52].mxu0 %v17727_v35  ;;  %v17836_v27 = vrot.slane %v12527_v57, 1  ;;  %v1650_v2 = vrot.slane %v17679_v60, 1  ;;  %v1653_v58 = vrot.slane %v17697_v54, 1  ;;  %v12531_v38 = vcombine.low %v1158_v14, %v17747_v28  ;;  %v16254_v28 = vld [vmem:[#allocation9 + $0x1c8] sm:$0xff]  }
 0x141   : > { %2537 = vmatmul.mubr.bf16.gmra.mrb[56].mxu1 %v17727_v35  ;;  %2070 = vmatprep.mubr.bf16.mxu0 %v17807_v34  ;;  %v17822_v1 = vsel %vm1323_vm3, %v1522_v6, %v1526_v31  ;;  %v12528_v35 = vcombine.low %v1155_v46, %v17672_v39  ;;  %v1656_v46 = vrot.slane %v17729_v29, 1  ;;  %v21741_v23 = vrot.slane %v17755_v7, 1  ;;  %v16270_v31 = vld [vmem:[#allocation9 + $0x208] sm:$0xff]   ;;  %v16258_v6 = vld [vmem:[#allocation9 + $0x1d0] sm:$0xff]  }
 0x142   : > { %2544 = vmatprep.mubr.bf16.mxu1 %v17807_v34  ;;  %v1157_v34 = vld [vmem:[#allocation2 + $0xa8] sm:$0xe]  ;;  %v17850_v57 = vrot.slane %v12529_v37, 1  ;;  %v17858_v49 = vsel %vm1612_vm9, %v17779_v0, %v21742_v41  ;;  %v17862_v7 = vrot.slane %v12531_v38, 1  ;;  %v17870_v0 = vsel %vm1612_vm9, %v17787_v22, %v21743_v56  ;;  %v16260_v22 = vld [vmem:[#allocation9 + $0x190] sm:$0xff]   ;;  %v16281_v38 = vld [vmem:[#allocation9 + $0x220] sm:$0xff]  }
 0x143   : > { %v17839_v39 = vrot.slane %v12528_v35, 1  ;;  %v1618_v48 = vsel %vm1612_vm9, %v17765_v45, %v21741_v23  ;;  %v1659_v35 = vrot.slane %v17752_v26, 1  ;;  %v16275_v45 = vld [vmem:[#allocation9 + $0x210] sm:$0xff]   ;;  %v21745_v37 = vrot.slane %v17798_v21, 1  ;;  %v16266_v23 = vld [vmem:[#allocation9 + $0x1e0] sm:$0xff]  }
 0x144   : > { %v16280_v56 = vld [vmem:[#allocation9 + $0x1b0] sm:$0xff]   ;;  %v17939_v20 = vsel %vm1612_vm9, %v17850_v57, %v1653_v58 }
 0x145   : > { %v17967_v26 = vld [vmem:[#allocation2 + $0xd0] sm:$0xf] }
 0x148   : > { %2071 = vmatmul.mubr.bf16.gmra.mrb[56].mxu0 %v17750_v8 }
 0x149   : > { %2545 = vmatmul.mubr.bf16.gmra.mrb[60].mxu1 %v17750_v8  ;;  %2078 = vmatprep.mubr.bf16.mxu0 %v17822_v1 }
 0x14a   : > { %14921 = vmatprep.mubr.bf16.mxu1 %v1615_v10  ;;  %v12530_v10 = vcombine.low %v1157_v34, %v17720_v52  ;;  %v16252_v52 = vld [vmem:[#allocation9 + $0x180] sm:$0xff]   ;;  %v16276_v34 = vld [vmem:[#allocation9 + $0x218] sm:$0xff]  }
 0x14c   : > { %v17860_v14 = vrot.slane %v12530_v10, 1  ;;  %v17886_v10 = vsel %vm1612_vm9, %v17796_v3, %v21745_v37  ;;  %v16268_v3 = vld [vmem:[#allocation9 + $0x1a0] sm:$0xff]  }
 0x14e   : > { %v17945_v60 = vsel %vm1612_vm9, %v17860_v14, %v1656_v46 }
 0x150   : > { %2079 = vmatmul.mubr.bf16.gmra.mrb[60].mxu0 %v17770_v9 }
 0x151   : > { %14922 = vmatmul.mubr.bf16.vlgmr.msra.gmra.mrb[64].mxu1 %v1618_v48  ;;  %14873 = vmatprep.mubr.bf16.mxu0 %v1618_v48  ;;  %v21746_v48 = vrot.slane %v17479_v13, 1  ;;  %v16287_v13 = vld [vmem:[#allocation9 + $0x230] sm:$0xff]  }
 0x152   : > { %14925 = vmatprep.mubr.bf16.mxu1 %v17858_v49  ;;  %14954 = vmatpush3.bf16.msra.mxu1 %v17602_v50  ;;  %v21744_v50 = vrot.slane %v17791_v42, 1  ;;  %v16264_v42 = vld [vmem:[#allocation9 + $0x198] sm:$0xff]  }
 0x153   : > { %14955 = vmatprep.subr.bf16.mxu1 %v16270_v31  ;;  %v17895_v21 = vsel %vm1612_vm9, %v17802_v16, %v21746_v48  ;;  %v21748_v16 = vrot.slane %v17545_v5, 1  ;;  %v21749_v5 = vrot.slane %v17590_v25, 1  ;;  %v17927_v25 = vsel %vm1612_vm9, %v17836_v27, %v1647_v55 }
 0x154   : > { %v17879_v40 = vsel %vm1612_vm9, %v17789_v63, %v21744_v50  ;;  %v16282_v63 = vld [vmem:[#allocation9 + $0x228] sm:$0xff]   ;;  %v16286_v50 = vld [vmem:[#allocation9 + $0x1b8] sm:$0xff]   ;;  %v1662_v27 = vrot.slane %v17772_v47, 1  ;;  %v17971_v47 = vld [vmem:[#allocation2 + $0xd4] ss:$0 sps:$4 sm:$0x11]  }
 0x156   : > { %14956 = vmatpush3.bf16.msra.mxu1 %v16270_v31  ;;  %v21747_v31 = vrot.slane %v17524_v61, 1  ;;  %v16274_v61 = vld [vmem:[#allocation9 + $0x1a8] sm:$0xff]  }
 0x157   : > { %14957 = vmatprep.subr.bf16.mxu1 %v16275_v45 }
 0x158   : > { %14874 = vmatmul.mubr.bf16.vlgmr.msra.gmra.mrb[64].mxu0 %v17858_v49  ;;  %v17902_v41 = vsel %vm1612_vm9, %v17804_v24, %v21747_v31  ;;  %v16278_v24 = vld [vmem:[#allocation9 + $0x1f0] sm:$0xff]  }
 0x159   : > { %14926 = vmatmul.mubr.bf16.gmra.mrb[68].mxu1 %v17870_v0  ;;  %13498 = vmatpush3.bf16.msra.mxu0 %v16252_v52  ;;  %v17909_v52 = vsel %vm1612_vm9, %v17811_v59, %v21748_v16  ;;  %v1642_v59 = vsel %vm1612_vm9, %v17832_v51, %v21749_v5  ;;  %v1159_v51 = vld [vmem:[#allocation2 + $0xc0] sm:$0xe] }
 0x15a   : > { %14877 = vmatprep.mubr.bf16.mxu0 %v17870_v0  ;;  %13499 = vmatprep.subr.bf16.mxu0 %v16254_v28  ;;  %v16288_v28 = vld [vmem:[#allocation9 + $0x238] sm:$0xff]   ;;  %v12532_v54 = vcombine.low %v1159_v51, %v17763_v36  ;;  %v1160_v36 = vld [vmem:[#allocation2 + $0xcc] sm:$0xe] }
 0x15b   : > { %14929 = vmatprep.mubr.bf16.mxu1 %v17879_v40  ;;  %14958 = vmatpush3.bf16.msra.mxu1 %v16275_v45  ;;  %v16272_v45 = vld [vmem:[#allocation9 + $0x1e8] sm:$0xff]  }
 0x15c   : > { %14959 = vmatprep.subr.bf16.mxu1 %v16276_v34  ;;  %v1661_v29 = vrot.slane %v12532_v54, 1 }
 0x15d   : > { %13500 = vmatpush3.bf16.msra.mxu0 %v16256_v17  ;;  %v21750_v17 = vrot.slane %v17615_v44, 1  ;;  %v1651_v44 = vsel %vm1612_vm9, %v17839_v39, %v1650_v2  ;;  %v12533_v39 = vcombine.low %v1160_v36, %v17967_v26 }
 0x15e   : > { %13501 = vmatprep.subr.bf16.mxu0 %v16258_v6  ;;  %v17963_v55 = vsel %vm1612_vm9, %v1661_v29, %v1662_v27 }
 0x15f   : > { %14960 = vmatpush3.bf16.msra.mxu1 %v16276_v34  ;;  %v16284_v34 = vld [vmem:[#allocation9 + $0x1f8] sm:$0xff]   ;;  %v1645_v6 = vsel %vm1612_vm9, %v17834_v11, %v21750_v17  ;;  %v17955_v11 = vsel %vm1612_vm9, %v17862_v7, %v1659_v35  ;;  %v17978_v46 = vrot.slane %v12533_v39, 1  ;;  %v1665_v35 = vrot.slane %v17971_v47, 1 }
 0x160   : > { %14878 = vmatmul.mubr.bf16.gmra.mrb[68].mxu0 %v17879_v40  ;;  %14961 = vmatprep.subr.bf16.mxu1 %v16281_v38 }
 0x161   : > { %14930 = vmatmul.mubr.bf16.gmra.mrb[72].mxu1 %v17886_v10  ;;  %14881 = vmatprep.mubr.bf16.mxu0 %v17886_v10  ;;  %v1666_v29 = vsel %vm1612_vm9, %v17978_v46, %v1665_v35 }
 0x162   : > { %13502 = vmatpush3.bf16.msra.mxu0 %v16260_v22  ;;  %14933 = vmatprep.mubr.bf16.mxu1 %v17895_v21 }
 0x163   : > { %13503 = vmatprep.subr.bf16.mxu0 %v16262_v15  ;;  %14962 = vmatpush3.bf16.msra.mxu1 %v16281_v38 }
 0x164   : > { %14963 = vmatprep.subr.bf16.mxu1 %v16282_v63 }
 0x166   : > { %13504 = vmatpush3.bf16.msra.mxu0 %v16264_v42 }
 0x167   : > { %13505 = vmatprep.subr.bf16.mxu0 %v16266_v23  ;;  %14964 = vmatpush3.bf16.msra.mxu1 %v16282_v63 }
 0x168   : > { %14882 = vmatmul.mubr.bf16.gmra.mrb[72].mxu0 %v17895_v21  ;;  %14965 = vmatprep.subr.bf16.mxu1 %v16287_v13 }
 0x169   : > { %14934 = vmatmul.mubr.bf16.gmra.mrb[76].mxu1 %v17902_v41  ;;  %14885 = vmatprep.mubr.bf16.mxu0 %v17902_v41 }
 0x16a   : > { %14937 = vmatprep.mubr.bf16.mxu1 %v17909_v52  ;;  %13506 = vmatpush3.bf16.msra.mxu0 %v16268_v3 }
 0x16b   : > { %13507 = vmatprep.subr.bf16.mxu0 %v16272_v45  ;;  %14966 = vmatpush3.bf16.msra.mxu1 %v16287_v13 }
 0x16c   : > { %14967 = vmatprep.subr.bf16.mxu1 %v16288_v28 }
 0x16e   : > { %13508 = vmatpush3.bf16.msra.mxu0 %v16274_v61 }
 0x16f   : > { %13509 = vmatprep.subr.bf16.mxu0 %v16278_v24  ;;  %14968 = vmatpush3.bf16.msra.mxu1 %v16288_v28 }
 0x170   : > { %14886 = vmatmul.mubr.bf16.gmra.mrb[76].mxu0 %v17909_v52 }
 0x171   : > { %14938 = vmatmul.mubr.bf16.gmra.mrb[80].mxu1 %v1642_v59  ;;  %14889 = vmatprep.mubr.bf16.mxu0 %v1642_v59 }
 0x172   : > { %14941 = vmatprep.mubr.bf16.mxu1 %v1645_v6  ;;  %13510 = vmatpush3.bf16.msra.mxu0 %v16280_v56 }
 0x173   : > { %13511 = vmatprep.subr.bf16.mxu0 %v16284_v34 }
 0x176   : > { %13512 = vmatpush3.bf16.msra.mxu0 %v16286_v50  ;;  %v21753_v50 = vld [vmem:[#allocation23_spill] sm:$0xff] }
 0x178   : > { %14890 = vmatmul.mubr.bf16.gmra.mrb[80].mxu0 %v1645_v6 }
 0x179   : > { %14942 = vmatmul.mubr.bf16.gmra.mrb[84].mxu1 %v17927_v25  ;;  %14893 = vmatprep.mubr.bf16.mxu0 %v17927_v25 }
 0x17a   : > { %14945 = vmatprep.mubr.bf16.mxu1 %v1651_v44 }
 0x180   : > { %14894 = vmatmul.mubr.bf16.gmra.mrb[84].mxu0 %v1651_v44 }
 0x181   : > { %14946 = vmatmul.mubr.bf16.gmra.mrb[88].mxu1 %v17939_v20  ;;  %14897 = vmatprep.mubr.bf16.mxu0 %v17939_v20 }
 0x182   : > { %14949 = vmatprep.mubr.bf16.mxu1 %v17945_v60 }
 0x188   : > { %14898 = vmatmul.mubr.bf16.gmra.mrb[88].mxu0 %v17945_v60 }
 0x189   : > { %14950 = vmatmul.mubr.bf16.gmra.mrb[92].mxu1 %v17955_v11  ;;  %14901 = vmatprep.mubr.bf16.mxu0 %v17955_v11 }
 0x18a   : > { %14969 = vmatprep.mubr.bf16.mxu1 %v17858_v49 }
 0x190   : > { %14902 = vmatmul.mubr.bf16.gmra.mrb[92].mxu0 %v17963_v55 }
 0x191   : > { %14970 = vmatmul.mubr.bf16.vlgmr.msra.gmra.mrb[64].mxu1 %v17870_v0  ;;  %2939 = vmatprep.mubr.bf16.mxu0 %v17375_v53 }
 0x192   : > { %14973 = vmatprep.mubr.bf16.mxu1 %v17879_v40 }
 0x196   : > { %v13377_v2 = vpop.f32.mrb[0].mxu1 }
 0x197   : > { %v13378_v58 = vpop.f32.mrb[1].mxu1 }
 0x198   : > { %2940 = vmatmul.mubr.bf16.vlgmr.msra.gmra.mrb[96].mxu0 %v17337_v62  ;;  %v17980_v57 = vadd.f32 %v13378_v58, %v13377_v2  ;;  %v13380_v53 = vpop.f32.mrb[2].mxu1  ;;  %v21754_v58 = vld [vmem:[#allocation21_spill] sm:$0xff] }
 0x199   : > { %14974 = vmatmul.mubr.bf16.gmra.mrb[68].mxu1 %v17886_v10  ;;  %2947 = vmatprep.mubr.bf16.mxu0 %v17411_v32  ;;  %v13381_v49 = vpop.f32.mrb[3].mxu1 }
 0x19a   : > { %14977 = vmatprep.mubr.bf16.mxu1 %v17895_v21  ;;  %v17983_v14 = vadd.f32 %v13381_v49, %v13380_v53  ;;  %v21755_v53 = vld [vmem:[#allocation26_spill] sm:$0xff] }
 0x1a0   : > { %2948 = vmatmul.mubr.bf16.gmra.mrb[100].mxu0 %v17364_v43 }
 0x1a1   : > { %14978 = vmatmul.mubr.bf16.gmra.mrb[72].mxu1 %v17902_v41  ;;  %2955 = vmatprep.mubr.bf16.mxu0 %v17456_v33 }
 0x1a2   : > { %14981 = vmatprep.mubr.bf16.mxu1 %v17909_v52 }
 0x1a8   : > { %2956 = vmatmul.mubr.bf16.gmra.mrb[104].mxu0 %v17413_v30 }
 0x1a9   : > { %14982 = vmatmul.mubr.bf16.gmra.mrb[76].mxu1 %v1642_v59  ;;  %2963 = vmatprep.mubr.bf16.mxu0 %v17486_v19 }
 0x1aa   : > { %14985 = vmatprep.mubr.bf16.mxu1 %v1645_v6  ;;  %v21752_v6 = vld [vmem:[#allocation20_spill] sm:$0xff] }
 0x1ab   : > { %v13241_v62 = vpop.f32.mrb[0].mxu0  ;;  %v13383_v32 = vpop.f32.mrb[4].mxu1 }
 0x1ac   : > { %v13242_v7 = vpop.f32.mrb[1].mxu0  ;;  %v13384_v0 = vpop.f32.mrb[5].mxu1 }
 0x1ad   : > { %v17991_v40 = vadd.f32 %v13242_v7, %v13241_v62  ;;  %v13244_v22 = vpop.f32.mrb[2].mxu0  ;;  %v17993_v43 = vadd.f32 %v13384_v0, %v13383_v32  ;;  %v13386_v15 = vpop.f32.mrb[6].mxu1 }
 0x1ae   : > { %v13245_v37 = vpop.f32.mrb[3].mxu0  ;;  %v13387_v33 = vpop.f32.mrb[7].mxu1 }
 0x1af   : > { %v17995_v10 = vadd.f32 %v13245_v37, %v13244_v22  ;;  %v17997_v38 = vadd.f32 %v13387_v33, %v13386_v15 }
 0x1b0   : > { %2964 = vmatmul.mubr.bf16.gmra.mrb[108].mxu0 %v17445_v18 }
 0x1b1   : > { %14986 = vmatmul.mubr.bf16.gmra.mrb[80].mxu1 %v17927_v25  ;;  %2971 = vmatprep.mubr.bf16.mxu0 %v17527_v4  ;;  %v21751_v4 = vld [vmem:[#allocation22_spill] sm:$0xff] }
 0x1b2   : > { %14989 = vmatprep.mubr.bf16.mxu1 %v1651_v44 }
 0x1b3   : > { %v13247_v30 = vpop.f32.mrb[4].mxu0  ;;  %v13389_v19 = vpop.f32.mrb[8].mxu1 }
 0x1b4   : > { %v13248_v42 = vpop.f32.mrb[5].mxu0  ;;  %v13390_v63 = vpop.f32.mrb[9].mxu1 }
 0x1b5   : > { %v18002_v23 = vadd.f32 %v13248_v42, %v13247_v30  ;;  %v13250_v48 = vpop.f32.mrb[6].mxu0  ;;  %v18004_v21 = vadd.f32 %v13390_v63, %v13389_v19  ;;  %v13392_v3 = vpop.f32.mrb[10].mxu1  ;;  %v21756_v19 = vld [vmem:[#allocation24_spill] sm:$0xff]  ;;  %v21757_v42 = vld [vmem:[#allocation27_spill] sm:$0xff] }
 0x1b6   : > { %v13251_v31 = vpop.f32.mrb[7].mxu0  ;;  %v13393_v41 = vpop.f32.mrb[11].mxu1 }
 0x1b7   : > { %v18006_v45 = vadd.f32 %v13251_v31, %v13250_v48  ;;  %v18008_v18 = vadd.f32 %v13393_v41, %v13392_v3 }
 0x1b8   : > { %2972 = vmatmul.mubr.bf16.gmra.mrb[112].mxu0 %v17477_v12 }
 0x1b9   : > { %14990 = vmatmul.mubr.bf16.gmra.mrb[84].mxu1 %v17939_v20  ;;  %2979 = vmatprep.mubr.bf16.mxu0 %v21751_v4 }
 0x1ba   : > { %14993 = vmatprep.mubr.bf16.mxu1 %v17945_v60 }
 0x1bb   : > { %v13253_v13 = vpop.f32.mrb[8].mxu0  ;;  %v13395_v16 = vpop.f32.mrb[12].mxu1 }
 0x1bc   : > { %v13254_v52 = vpop.f32.mrb[9].mxu0  ;;  %v13396_v61 = vpop.f32.mrb[13].mxu1 }
 0x1bd   : > { %v18014_v24 = vadd.f32 %v13254_v52, %v13253_v13  ;;  %v13256_v28 = vpop.f32.mrb[10].mxu0  ;;  %v18016_v56 = vadd.f32 %v13396_v61, %v13395_v16  ;;  %v13398_v5 = vpop.f32.mrb[14].mxu1 }
 0x1be   : > { %v13257_v59 = vpop.f32.mrb[11].mxu0  ;;  %v13399_v34 = vpop.f32.mrb[15].mxu1 }
 0x1bf   : > { %v18018_v17 = vadd.f32 %v13257_v59, %v13256_v28  ;;  %v18020_v12 = vadd.f32 %v13399_v34, %v13398_v5  ;;  %v21758_v59 = vld [vmem:[#allocation25_spill] sm:$0xff]  ;;  %v21759_v34 = vld [vmem:[#allocation30_spill] sm:$0xff] }
 0x1c0   : > { %2980 = vmatmul.mubr.bf16.gmra.mrb[116].mxu0 %v21752_v6 }
 0x1c1   : > { %14994 = vmatmul.mubr.bf16.gmra.mrb[88].mxu1 %v17955_v11  ;;  %2987 = vmatprep.mubr.bf16.mxu0 %v21753_v50 }
 0x1c2   : > { %14997 = vmatprep.mubr.bf16.mxu1 %v17963_v55 }
 0x1c3   : > { %v13259_v25 = vpop.f32.mrb[12].mxu0  ;;  %v13401_v44 = vpop.f32.mrb[16].mxu1 }
 0x1c4   : > { %v13260_v20 = vpop.f32.mrb[13].mxu0  ;;  %v13402_v51 = vpop.f32.mrb[17].mxu1 }
 0x1c5   : > { %v18026_v60 = vadd.f32 %v13260_v20, %v13259_v25  ;;  %v13262_v54 = vpop.f32.mrb[14].mxu0  ;;  %v18032_v27 = vadd.f32 %v13402_v51, %v13401_v44  ;;  %v13404_v36 = vpop.f32.mrb[18].mxu1 }
 0x1c6   : > { %v13263_v11 = vpop.f32.mrb[15].mxu0  ;;  %v13405_v39 = vpop.f32.mrb[19].mxu1 }
 0x1c7   : > { %v18034_v2 = vadd.f32 %v13263_v11, %v13262_v54  ;;  %v18036_v55 = vadd.f32 %v13405_v39, %v13404_v36 }
 0x1c8   : > { %2988 = vmatmul.mubr.bf16.gmra.mrb[120].mxu0 %v21754_v58 }
 0x1c9   : > { %14998 = vmatmul.mubr.bf16.gmra.mrb[92].mxu1 %v1666_v29  ;;  %2995 = vmatprep.mubr.bf16.mxu0 %v21755_v53  ;;  %v21760_v53 = vld [vmem:[#allocation28_spill] sm:$0xff] }
 0x1cb   : > { %v13265_v49 = vpop.f32.mrb[16].mxu0 }
 0x1cc   : > { %v13407_v62 = vpop.f32.mrb[20].mxu1  ;;  %v13266_v32 = vpop.f32.mrb[17].mxu0 }
 0x1cd   : > { %v13408_v7 = vpop.f32.mrb[21].mxu1  ;;  %v18040_v0 = vadd.f32 %v13266_v32, %v13265_v49  ;;  %v13268_v46 = vpop.f32.mrb[18].mxu0  ;;  %v21761_v49 = vld [vmem:[#allocation32_spill] sm:$0xff] }
 0x1ce   : > { %v18042_v35 = vadd.f32 %v13408_v7, %v13407_v62  ;;  %v13410_v22 = vpop.f32.mrb[22].mxu1  ;;  %v13269_v15 = vpop.f32.mrb[19].mxu0 }
 0x1cf   : > { %v13411_v37 = vpop.f32.mrb[23].mxu1  ;;  %v18044_v33 = vadd.f32 %v13269_v15, %v13268_v46 }
 0x1d0   : > { %v18046_v30 = vadd.f32 %v13411_v37, %v13410_v22  ;;  %2996 = vmatmul.mubr.bf16.gmra.mrb[124].mxu0 %v21756_v19 }
 0x1d1   : > { %3003 = vmatprep.mubr.bf16.mxu0 %v21757_v42 }
 0x1d3   : > { %v13271_v63 = vpop.f32.mrb[20].mxu0 }
 0x1d4   : > { %v13413_v48 = vpop.f32.mrb[24].mxu1  ;;  %v13272_v3 = vpop.f32.mrb[21].mxu0 }
 0x1d5   : > { %v13414_v31 = vpop.f32.mrb[25].mxu1  ;;  %v18050_v41 = vadd.f32 %v13272_v3, %v13271_v63  ;;  %v13274_v4 = vpop.f32.mrb[22].mxu0 }
 0x1d6   : > { %v18052_v13 = vadd.f32 %v13414_v31, %v13413_v48  ;;  %v13416_v16 = vpop.f32.mrb[26].mxu1  ;;  %v13275_v52 = vpop.f32.mrb[23].mxu0  ;;  %v21762_v31 = vld [vmem:[#allocation29_spill] sm:$0xff] }
 0x1d7   : > { %v13417_v61 = vpop.f32.mrb[27].mxu1  ;;  %v18054_v28 = vadd.f32 %v13275_v52, %v13274_v4  ;;  %v21763_v4 = vld [vmem:[#allocation34_spill] sm:$0xff] }
 0x1d8   : > { %v18056_v5 = vadd.f32 %v13417_v61, %v13416_v16  ;;  %3004 = vmatmul.mubr.bf16.gmra.mrb[128].mxu0 %v21758_v59 }
 0x1d9   : > { %3011 = vmatprep.mubr.bf16.mxu0 %v21759_v34 }
 0x1db   : > { %v13277_v6 = vpop.f32.mrb[24].mxu0 }
 0x1dc   : > { %v13419_v50 = vpop.f32.mrb[28].mxu1  ;;  %v13278_v25 = vpop.f32.mrb[25].mxu0 }
 0x1dd   : > { %v13420_v44 = vpop.f32.mrb[29].mxu1  ;;  %v18060_v20 = vadd.f32 %v13278_v25, %v13277_v6  ;;  %v13280_v51 = vpop.f32.mrb[26].mxu0 }
 0x1de   : > { %v18062_v54 = vadd.f32 %v13420_v44, %v13419_v50  ;;  %v13422_v29 = vpop.f32.mrb[30].mxu1  ;;  %v13281_v36 = vpop.f32.mrb[27].mxu0 }
 0x1df   : > { %v13423_v11 = vpop.f32.mrb[31].mxu1  ;;  %v18064_v39 = vadd.f32 %v13281_v36, %v13280_v51 }
 0x1e0   : > { %v18066_v58 = vadd.f32 %v13423_v11, %v13422_v29  ;;  %3012 = vmatmul.mubr.bf16.gmra.mrb[132].mxu0 %v21760_v53  ;;  %v21764_v11 = vld [vmem:[#allocation31_spill] sm:$0xff] }
 0x1e1   : > { %3019 = vmatprep.mubr.bf16.mxu0 %v21761_v49  ;;  %v21765_v53 = vld [vmem:[#allocation35_spill] sm:$0xff]  ;;  %v1123_v49 = vld [vmem:[#allocation2 + $0xcc] sm:$0xf] }
 0x1e3   : > { %v13283_v62 = vpop.f32.mrb[28].mxu0 }
 0x1e4   : > { %v13425_v32 = vpop.f32.mrb[32].mxu1  ;;  %v13284_v7 = vpop.f32.mrb[29].mxu0 }
 0x1e5   : > { %v13426_v46 = vpop.f32.mrb[33].mxu1  ;;  %v18070_v22 = vadd.f32 %v13284_v7, %v13283_v62  ;;  %v13286_v15 = vpop.f32.mrb[30].mxu0 }
 0x1e6   : > { %v18072_v37 = vadd.f32 %v13426_v46, %v13425_v32  ;;  %v13428_v19 = vpop.f32.mrb[34].mxu1  ;;  %v13287_v42 = vpop.f32.mrb[31].mxu0 }
 0x1e7   : > { %v13429_v63 = vpop.f32.mrb[35].mxu1  ;;  %v18074_v48 = vadd.f32 %v13287_v42, %v13286_v15 }
 0x1e8   : > { %v18076_v3 = vadd.f32 %v13429_v63, %v13428_v19  ;;  %3020 = vmatmul.mubr.bf16.gmra.mrb[136].mxu0 %v21762_v31  ;;  %v18095_v31 = vcombine.low %v1123_v49, %v17967_v26  ;;  %v16294_v26 = vld [vmem:[#allocation9 + $0x380] sm:$0xff]  }
 0x1e9   : > { %3027 = vmatprep.mubr.bf16.mxu0 %v21763_v4  ;;  %15001 = vmatprep.subr.bf16.mxu1 %v16294_v26 }
 0x1ea   : > { %15002 = vmatpush3.bf16.msra.mxu1 %v16294_v26  ;;  %v16300_v26 = vld [vmem:[#allocation9 + $0x390] sm:$0xff]  }
 0x1eb   : > { %v13289_v16 = vpop.f32.mrb[32].mxu0 }
 0x1ec   : > { %v13431_v52 = vpop.f32.mrb[36].mxu1  ;;  %v13290_v61 = vpop.f32.mrb[33].mxu0 }
 0x1ed   : > { %v13432_v59 = vpop.f32.mrb[37].mxu1  ;;  %v18080_v34 = vadd.f32 %v13290_v61, %v13289_v16  ;;  %v13292_v6 = vpop.f32.mrb[34].mxu0 }
 0x1ee   : > { %v18082_v50 = vadd.f32 %v13432_v59, %v13431_v52  ;;  %v13434_v25 = vpop.f32.mrb[38].mxu1  ;;  %v13293_v44 = vpop.f32.mrb[35].mxu0  ;;  %v21768_v59 = vld [vmem:[#allocation33_spill] sm:$0xff] }
 0x1ef   : > { %v13435_v51 = vpop.f32.mrb[39].mxu1  ;;  %v18084_v29 = vadd.f32 %v13293_v44, %v13292_v6  ;;  %v16292_v6 = vld [vmem:[#allocation9 + $0x340] sm:$0xff]  }
 0x1f0   : > { %v18086_v36 = vadd.f32 %v13435_v51, %v13434_v25  ;;  %3028 = vmatmul.mubr.bf16.gmra.mrb[140].mxu0 %v21764_v11  ;;  %v21769_v25 = vld [vmem:[#allocation36_spill] sm:$0xff]  ;;  %v1531_v51 = vshll.u32 %v18095_v31, 16  ;;  %13633 = vmatprep.subr.bf16.mxu0 %v16292_v6  ;;  %v1536_v6 = vshll.u32 %v17971_v47, 16 }
 0x1f1   : > { %3035 = vmatprep.mubr.bf16.mxu0 %v21765_v53  ;;  %v16293_v44 = vld [vmem:[#allocation9 + $0x300] sm:$0xff]  }
 0x1f2   : > { %13634 = vmatpush3.bf16.msra.mxu0 %v16293_v44 }
 0x1f3   : > { %v13295_v62 = vpop.f32.mrb[36].mxu0 }
 0x1f4   : > { %v13437_v32 = vpop.f32.mrb[40].mxu1  ;;  %v13296_v7 = vpop.f32.mrb[37].mxu0 }
 0x1f5   : > { %v13438_v46 = vpop.f32.mrb[41].mxu1  ;;  %v18090_v15 = vadd.f32 %v13296_v7, %v13295_v62  ;;  %v13298_v19 = vpop.f32.mrb[38].mxu0 }
 0x1f6   : > { %v18092_v42 = vadd.f32 %v13438_v46, %v13437_v32  ;;  %v13440_v63 = vpop.f32.mrb[42].mxu1  ;;  %v13299_v4 = vpop.f32.mrb[39].mxu0  ;;  %v16295_v32 = vld [vmem:[#allocation9 + $0x348] sm:$0xff]  }
 0x1f7   : > { %v13441_v16 = vpop.f32.mrb[43].mxu1  ;;  %v18097_v52 = vadd.f32 %v13299_v4, %v13298_v19  ;;  %v16296_v4 = vld [vmem:[#allocation9 + $0x308] sm:$0xff]   ;;  %13635 = vmatprep.subr.bf16.mxu0 %v16295_v32 }
 0x1f8   : > { %21766 = vst [vmem:[#allocation22_spill] sm:$0xff] %v18092_v42  ;;  %v18099_v61 = vadd.f32 %v13441_v16, %v13440_v63  ;;  %3036 = vmatmul.mubr.bf16.gmra.mrb[144].mxu0 %v21768_v59  ;;  %v1529_v59 = vshrl.u32 %v18095_v31, 16 }
 0x1f9   : > { %3043 = vmatprep.mubr.bf16.mxu0 %v21769_v25  ;;  %v1533_v25 = vrot.slane %v1531_v51, 1  ;;  %13636 = vmatpush3.bf16.msra.mxu0 %v16296_v4  ;;  %v1538_v51 = vrot.slane %v1536_v6, 1 }
 0x1fa   : > { %21767 = vst [vmem:[#allocation20_spill] sm:$0xff] %v18099_v61 }
 0x1fb   : > { %v13301_v11 = vpop.f32.mrb[40].mxu0 }
 0x1fc   : > { %v13443_v53 = vpop.f32.mrb[44].mxu1  ;;  %v13302_v49 = vpop.f32.mrb[41].mxu0 }
 0x1fd   : > { %v13444_v62 = vpop.f32.mrb[45].mxu1  ;;  %v18104_v7 = vadd.f32 %v13302_v49, %v13301_v11  ;;  %v13304_v46 = vpop.f32.mrb[42].mxu0  ;;  %v16297_v11 = vld [vmem:[#allocation9 + $0x388] sm:$0xff]   ;;  %v16299_v49 = vld [vmem:[#allocation9 + $0x310] sm:$0xff]  }
 0x1fe   : > { %v18106_v19 = vadd.f32 %v13444_v62, %v13443_v53  ;;  %v13446_v63 = vpop.f32.mrb[46].mxu1  ;;  %v13305_v16 = vpop.f32.mrb[43].mxu0  ;;  %v16298_v53 = vld [vmem:[#allocation9 + $0x350] sm:$0xff]   ;;  %15003 = vmatprep.subr.bf16.mxu1 %v16297_v11  ;;  %v1534_v62 = vor.u32 %v1533_v25, %v1529_v59 }
 0x1ff   : > { %v13447_v61 = vpop.f32.mrb[47].mxu1  ;;  %v18110_v44 = vadd.f32 %v13305_v16, %v13304_v46  ;;  %13637 = vmatprep.subr.bf16.mxu0 %v16298_v53  ;;  %15004 = vmatpush3.bf16.msra.mxu1 %v16297_v11  ;;  %v16303_v53 = vld [vmem:[#allocation9 + $0x398] sm:$0xff]  }
 0x200   : > { %v18112_v42 = vadd.f32 %v13447_v61, %v13446_v63  ;;  %3044 = vmatmul.mubr.bf16.gmra.mrb[148].mxu0 %v17750_v8  ;;  %v16301_v63 = vld [vmem:[#allocation9 + $0x358] sm:$0xff]   ;;  %15005 = vmatprep.subr.bf16.mxu1 %v16300_v26  ;;  %v1539_v59 = vsel %vm1323_vm3, %v1534_v62, %v1538_v51  ;;  %v16306_v62 = vld [vmem:[#allocation9 + $0x3a0] sm:$0xff]  }
 0x201   : > { %21770 = vst [vmem:[#allocation23_spill] sm:$0xff] %v18110_v44  ;;  %3051 = vmatprep.mubr.bf16.mxu0 %v17822_v1  ;;  %13638 = vmatpush3.bf16.msra.mxu0 %v16299_v49  ;;  %v16302_v1 = vld [vmem:[#allocation9 + $0x318] sm:$0xff]   ;;  %v16304_v49 = vld [vmem:[#allocation9 + $0x360] sm:$0xff]  }
 0x202   : > { %21771 = vst [vmem:[#allocation21_spill] sm:$0xff] %v18112_v42  ;;  %13639 = vmatprep.subr.bf16.mxu0 %v16301_v63 }
 0x203   : > { %v13307_v47 = vpop.f32.mrb[44].mxu0  ;;  %15006 = vmatpush3.bf16.msra.mxu1 %v16300_v26 }
 0x204   : > { %v13449_v32 = vpop.f32.mrb[48].mxu1  ;;  %v13308_v46 = vpop.f32.mrb[45].mxu0  ;;  %15007 = vmatprep.subr.bf16.mxu1 %v16303_v53 }
 0x205   : > { %v13450_v61 = vpop.f32.mrb[49].mxu1  ;;  %v18116_v4 = vadd.f32 %v13308_v46, %v13307_v47  ;;  %v13310_v16 = vpop.f32.mrb[46].mxu0  ;;  %13640 = vmatpush3.bf16.msra.mxu0 %v16302_v1  ;;  %v16305_v47 = vld [vmem:[#allocation9 + $0x320] sm:$0xff]  }
 0x206   : > { %v18118_v8 = vadd.f32 %v13450_v61, %v13449_v32  ;;  %v13452_v42 = vpop.f32.mrb[50].mxu1  ;;  %v13311_v44 = vpop.f32.mrb[47].mxu0  ;;  %13641 = vmatprep.subr.bf16.mxu0 %v16304_v49  ;;  %v16309_v49 = vld [vmem:[#allocation9 + $0x3a8] sm:$0xff]  }
 0x207   : > { %v13453_v25 = vpop.f32.mrb[51].mxu1  ;;  %v18121_v6 = vadd.f32 %v13311_v44, %v13310_v16  ;;  %15008 = vmatpush3.bf16.msra.mxu1 %v16303_v53  ;;  %v16307_v44 = vld [vmem:[#allocation9 + $0x368] sm:$0xff]  }
 0x208   : > { %21772 = vst [vmem:[#allocation26_spill] sm:$0xff] %v18118_v8  ;;  %v18123_v11 = vadd.f32 %v13453_v25, %v13452_v42  ;;  %3052 = vmatmul.mubr.bf16.gmra.mrb[152].mxu0 %v17770_v9  ;;  %15009 = vmatprep.subr.bf16.mxu1 %v16306_v62  ;;  %v16308_v9 = vld [vmem:[#allocation9 + $0x328] sm:$0xff]  }
 0x209   : > { %3059 = vmatprep.mubr.bf16.mxu0 %v1539_v59  ;;  %13642 = vmatpush3.bf16.msra.mxu0 %v16305_v47  ;;  %v16310_v47 = vld [vmem:[#allocation9 + $0x370] sm:$0xff]  }
 0x20a   : > { %21773 = vst [vmem:[#allocation24_spill] sm:$0xff] %v18123_v11  ;;  %13643 = vmatprep.subr.bf16.mxu0 %v16307_v44 }
 0x20b   : > { %v13313_v32 = vpop.f32.mrb[48].mxu0  ;;  %15010 = vmatpush3.bf16.msra.mxu1 %v16306_v62 }
 0x20c   : > { %v13455_v46 = vpop.f32.mrb[52].mxu1  ;;  %v13314_v51 = vpop.f32.mrb[49].mxu0  ;;  %15011 = vmatprep.subr.bf16.mxu1 %v16309_v49 }
 0x20d   : > { %v13456_v26 = vpop.f32.mrb[53].mxu1  ;;  %v18126_v61 = vadd.f32 %v13314_v51, %v13313_v32  ;;  %v13316_v42 = vpop.f32.mrb[50].mxu0  ;;  %13644 = vmatpush3.bf16.msra.mxu0 %v16308_v9  ;;  %v16311_v32 = vld [vmem:[#allocation9 + $0x330] sm:$0xff]  }
 0x20e   : > { %v18128_v63 = vadd.f32 %v13456_v26, %v13455_v46  ;;  %v13458_v16 = vpop.f32.mrb[54].mxu1  ;;  %v13317_v1 = vpop.f32.mrb[51].mxu0  ;;  %13645 = vmatprep.subr.bf16.mxu0 %v16310_v47  ;;  %v16312_v26 = vld [vmem:[#allocation9 + $0x3b0] sm:$0xff]   ;;  %v16317_v47 = vld [vmem:[#allocation9 + $0x338] sm:$0xff]  }
 0x20f   : > { %21774 = vst [vmem:[#allocation27_spill] sm:$0xff] %v18126_v61  ;;  %v13459_v59 = vpop.f32.mrb[55].mxu1  ;;  %v18130_v25 = vadd.f32 %v13317_v1, %v13316_v42  ;;  %15012 = vmatpush3.bf16.msra.mxu1 %v16309_v49 }
 0x210   : > { %21775 = vst [vmem:[#allocation25_spill] sm:$0xff] %v18128_v63  ;;  %v18132_v53 = vadd.f32 %v13459_v59, %v13458_v16  ;;  %3060 = vmatmul.mubr.bf16.gmra.mrb[156].mxu0 %v18095_v31  ;;  %15013 = vmatprep.subr.bf16.mxu1 %v16312_v26  ;;  %v16316_v59 = vld [vmem:[#allocation9 + $0x378] sm:$0xff]  }
 0x211   : > { %21776 = vst [vmem:[#allocation30_spill] sm:$0xff] %v18130_v25  ;;  %13646 = vmatpush3.bf16.msra.mxu0 %v16311_v32  ;;  %v16318_v32 = vld [vmem:[#allocation9 + $0x3b8] sm:$0xff]  }
 0x212   : > { %21777 = vst [vmem:[#allocation28_spill] sm:$0xff] %v18132_v53  ;;  %13647 = vmatprep.subr.bf16.mxu0 %v16316_v59 }
 0x213   : > { %v13319_v46 = vpop.f32.mrb[52].mxu0  ;;  %15014 = vmatpush3.bf16.msra.mxu1 %v16312_v26 }
 0x214   : > { %v13461_v51 = vpop.f32.mrb[56].mxu1  ;;  %v13320_v11 = vpop.f32.mrb[53].mxu0  ;;  %15015 = vmatprep.subr.bf16.mxu1 %v16318_v32 }
 0x215   : > { %v13462_v44 = vpop.f32.mrb[57].mxu1  ;;  %v18135_v62 = vadd.f32 %v13320_v11, %v13319_v46  ;;  %v13322_v42 = vpop.f32.mrb[54].mxu0  ;;  %13648 = vmatpush3.bf16.msra.mxu0 %v16317_v47 }
 0x216   : > { %v18137_v16 = vadd.f32 %v13462_v44, %v13461_v51  ;;  %v13464_v9 = vpop.f32.mrb[58].mxu1  ;;  %v13323_v1 = vpop.f32.mrb[55].mxu0 }
 0x217   : > { %v13465_v31 = vpop.f32.mrb[59].mxu1  ;;  %v18139_v53 = vadd.f32 %v13323_v1, %v13322_v42  ;;  %15016 = vmatpush3.bf16.msra.mxu1 %v16318_v32 }
 0x218   : > { %21778 = vst [vmem:[#allocation32_spill] sm:$0xff] %v18137_v16  ;;  %v18141_v49 = vadd.f32 %v13465_v31, %v13464_v9 }
 0x219   : > { %21779 = vst [vmem:[#allocation29_spill] sm:$0xff] %v18139_v53 }
 0x21a   : > { %21780 = vst [vmem:[#allocation34_spill] sm:$0xff] %v18141_v49 }
 0x21b   : > { %v13325_v25 = vpop.f32.mrb[56].mxu0 }
 0x21c   : > { %v13467_v11 = vpop.f32.mrb[60].mxu1  ;;  %v13326_v46 = vpop.f32.mrb[57].mxu0 }
 0x21d   : > { %v13468_v8 = vpop.f32.mrb[61].mxu1  ;;  %v18143_v51 = vadd.f32 %v13326_v46, %v13325_v25  ;;  %v13328_v44 = vpop.f32.mrb[58].mxu0 }
 0x21e   : > { %v18145_v16 = vadd.f32 %v13468_v8, %v13467_v11  ;;  %v13470_v63 = vpop.f32.mrb[62].mxu1  ;;  %v13329_v26 = vpop.f32.mrb[59].mxu0 }
 0x21f   : > { %v13471_v42 = vpop.f32.mrb[63].mxu1  ;;  %v18147_v9 = vadd.f32 %v13329_v26, %v13328_v44 }
 0x220   : > { %v18149_v1 = vadd.f32 %v13471_v42, %v13470_v63 }
 0x223   : > { %v13331_v31 = vpop.f32.mrb[60].mxu0 }
 0x224   : > { %v13332_v59 = vpop.f32.mrb[61].mxu0 }
 0x225   : > { %v18151_v47 = vadd.f32 %v13332_v59, %v13331_v31  ;;  %v13334_v49 = vpop.f32.mrb[62].mxu0 }
 0x226   : > { %v13335_v53 = vpop.f32.mrb[63].mxu0 }
 0x227   : > { %v18153_v61 = vadd.f32 %v13335_v53, %v13334_v49 }
 0x22b   : > { %v14875_v25 = vpop.f32.mrb[64].mxu0 }
 0x22c   : > { %v2130_v8 = vadd.f32 %v14875_v25, %v18002_v23  ;;  %v2121_v11 = vpop.f32.mrb[65].mxu0 }
 0x22d   : > { %v2122_v32 = vadd.f32 %v17991_v40, %v2121_v11  ;;  %v14876_v46 = vpop.f32.mrb[66].mxu0 }
 0x22e   : > { %v18158_v44 = vadd.f32 %v17993_v43, %v2130_v8  ;;  %v2133_v63 = vadd.f32 %v14876_v46, %v18006_v45  ;;  %v2124_v26 = vpop.f32.mrb[67].mxu0 }
 0x22f   : > { %v18162_v42 = vadd.f32 %v17980_v57, %v2122_v32  ;;  %v2125_v31 = vadd.f32 %v17995_v10, %v2124_v26 }
 0x230   : > { %v18166_v53 = vadd.f32 %v17997_v38, %v2133_v63 }
 0x231   : > { %v18169_v23 = vadd.f32 %v17983_v14, %v2125_v31 }
 0x233   : > { %v14879_v49 = vpop.f32.mrb[68].mxu0 }
 0x234   : > { %v2146_v40 = vadd.f32 %v14879_v49, %v18026_v60  ;;  %v2137_v59 = vpop.f32.mrb[69].mxu0 }
 0x235   : > { %v2138_v43 = vadd.f32 %v18014_v24, %v2137_v59  ;;  %v14880_v25 = vpop.f32.mrb[70].mxu0 }
 0x236   : > { %v18174_v45 = vadd.f32 %v18016_v56, %v2146_v40  ;;  %v2149_v57 = vadd.f32 %v14880_v25, %v18034_v2  ;;  %v2140_v8 = vpop.f32.mrb[71].mxu0 }
 0x237   : > { %v18178_v10 = vadd.f32 %v18004_v21, %v2138_v43  ;;  %v2141_v38 = vadd.f32 %v18018_v17, %v2140_v8 }
 0x238   : > { %v18182_v14 = vadd.f32 %v18020_v12, %v2149_v57 }
 0x239   : > { %v18185_v60 = vadd.f32 %v18008_v18, %v2141_v38 }
 0x23b   : > { %v14883_v11 = vpop.f32.mrb[72].mxu0 }
 0x23c   : > { %v2162_v24 = vadd.f32 %v14883_v11, %v18050_v41  ;;  %v2153_v32 = vpop.f32.mrb[73].mxu0 }
 0x23d   : > { %v2154_v56 = vadd.f32 %v18040_v0, %v2153_v32  ;;  %v14884_v46 = vpop.f32.mrb[74].mxu0 }
 0x23e   : > { %v18190_v2 = vadd.f32 %v18042_v35, %v2162_v24  ;;  %v2165_v21 = vadd.f32 %v14884_v46, %v18054_v28  ;;  %v2156_v63 = vpop.f32.mrb[75].mxu0 }
 0x23f   : > { %v18194_v17 = vadd.f32 %v18032_v27, %v2154_v56  ;;  %v2157_v12 = vadd.f32 %v18044_v33, %v2156_v63 }
 0x240   : > { %v18198_v18 = vadd.f32 %v18046_v30, %v2165_v21  ;;  %v21784_v21 = vld [vmem:[#allocation20_spill] sm:$0xff] }
 0x241   : > { %v18201_v41 = vadd.f32 %v18036_v55, %v2157_v12 }
 0x243   : > { %v14887_v26 = vpop.f32.mrb[76].mxu0 }
 0x244   : > { %v2178_v0 = vadd.f32 %v14887_v26, %v18070_v22  ;;  %v2169_v31 = vpop.f32.mrb[77].mxu0 }
 0x245   : > { %v2170_v35 = vadd.f32 %v18060_v20, %v2169_v31  ;;  %v14888_v49 = vpop.f32.mrb[78].mxu0 }
 0x246   : > { %v18206_v28 = vadd.f32 %v18062_v54, %v2178_v0  ;;  %v2181_v27 = vadd.f32 %v14888_v49, %v18074_v48  ;;  %v2172_v40 = vpop.f32.mrb[79].mxu0 }
 0x247   : > { %v18210_v33 = vadd.f32 %v18052_v13, %v2170_v35  ;;  %v2173_v30 = vadd.f32 %v18064_v39, %v2172_v40  ;;  %v21788_v35 = vld [vmem:[#allocation29_spill] sm:$0xff]  ;;  %v21789_v40 = vld [vmem:[#allocation26_spill] sm:$0xff] }
 0x248   : > { %v18214_v55 = vadd.f32 %v18066_v58, %v2181_v27 }
 0x249   : > { %v18217_v22 = vadd.f32 %v18056_v5, %v2173_v30 }
 0x24b   : > { %v14891_v59 = vpop.f32.mrb[80].mxu0 }
 0x24c   : > { %v2194_v20 = vadd.f32 %v14891_v59, %v18090_v15  ;;  %v2185_v43 = vpop.f32.mrb[81].mxu0  ;;  %v21791_v59 = vld [vmem:[#allocation30_spill] sm:$0xff] }
 0x24d   : > { %v2186_v54 = vadd.f32 %v18080_v34, %v2185_v43  ;;  %v14892_v25 = vpop.f32.mrb[82].mxu0  ;;  %v21792_v43 = vld [vmem:[#allocation28_spill] sm:$0xff] }
 0x24e   : > { %v18222_v48 = vadd.f32 %v18082_v50, %v2194_v20  ;;  %v2197_v13 = vadd.f32 %v14892_v25, %v18097_v52  ;;  %v2188_v57 = vpop.f32.mrb[83].mxu0  ;;  %v21794_v25 = vld [vmem:[#allocation24_spill] sm:$0xff] }
 0x24f   : > { %v18226_v39 = vadd.f32 %v18072_v37, %v2186_v54  ;;  %v2189_v58 = vadd.f32 %v18084_v29, %v2188_v57  ;;  %v21781_v29 = vld [vmem:[#allocation22_spill] sm:$0xff] }
 0x250   : > { %v18230_v5 = vadd.f32 %v18086_v36, %v2197_v13  ;;  %v21782_v36 = vld [vmem:[#allocation23_spill] sm:$0xff] }
 0x251   : > { %v18233_v15 = vadd.f32 %v18076_v3, %v2189_v58  ;;  %v21783_v3 = vld [vmem:[#allocation21_spill] sm:$0xff] }
 0x253   : > { %v14895_v8 = vpop.f32.mrb[84].mxu0 }
 0x254   : > { %v2210_v34 = vadd.f32 %v14895_v8, %v18116_v4  ;;  %v2201_v38 = vpop.f32.mrb[85].mxu0 }
 0x255   : > { %v2202_v50 = vadd.f32 %v18104_v7, %v2201_v38  ;;  %v14896_v11 = vpop.f32.mrb[86].mxu0 }
 0x256   : > { %v18238_v52 = vadd.f32 %v18106_v19, %v2210_v34  ;;  %v2213_v37 = vadd.f32 %v14896_v11, %v18121_v6  ;;  %v2204_v24 = vpop.f32.mrb[87].mxu0  ;;  %v21785_v19 = vld [vmem:[#allocation27_spill] sm:$0xff]  ;;  %v21786_v6 = vld [vmem:[#allocation25_spill] sm:$0xff] }
 0x257   : > { %v18242_v32 = vadd.f32 %v21781_v29, %v2202_v50  ;;  %v2205_v56 = vadd.f32 %v21782_v36, %v2204_v24 }
 0x258   : > { %v18246_v46 = vadd.f32 %v21783_v3, %v2213_v37 }
 0x259   : > { %v18249_v4 = vadd.f32 %v21784_v21, %v2205_v56  ;;  %v21797_v56 = vld [vmem:[#allocation32_spill] sm:$0xff] }
 0x25b   : > { %v14899_v63 = vpop.f32.mrb[88].mxu0 }
 0x25c   : > { %v2226_v7 = vadd.f32 %v14899_v63, %v18135_v62  ;;  %v2217_v12 = vpop.f32.mrb[89].mxu0  ;;  %v21800_v63 = vld [vmem:[#allocation34_spill] sm:$0xff] }
 0x25d   : > { %v2218_v26 = vadd.f32 %v21785_v19, %v2217_v12  ;;  %v14900_v0 = vpop.f32.mrb[90].mxu0 }
 0x25e   : > { %v18254_v31 = vadd.f32 %v21786_v6, %v2226_v7  ;;  %v2229_v49 = vadd.f32 %v14900_v0, %v21788_v35  ;;  %v2220_v27 = vpop.f32.mrb[91].mxu0 }
 0x25f   : > { %v18258_v30 = vadd.f32 %v21789_v40, %v2218_v26  ;;  %v2221_v20 = vadd.f32 %v21791_v59, %v2220_v27  ;;  %v18295_v59 = vld [vmem:[#allocation9 + $0x2c0] sm:$0xff]  }
 0x260   : > { %21787 = vst [vmem:[#allocation31_spill] sm:$0xff] %v18254_v31  ;;  %v18262_v54 = vadd.f32 %v21792_v43, %v2229_v49  ;;  %v18292_v49 = vld [vmem:[#allocation11] ss:$0 sm:$0xff]  ;;  %15049 = vmatprep.subr.bf16.mxu1 %v18295_v59 }
 0x261   : > { %21790 = vst [vmem:[#allocation35_spill] sm:$0xff] %v18258_v30  ;;  %v18265_v62 = vadd.f32 %v21794_v25, %v2221_v20  ;;  %v3298_v20 = vld [vmem:[%s17190_s24] sm:$0xff] }
 0x262   : > { %21793 = vst [vmem:[#allocation33_spill] sm:$0xff] %v18262_v54  ;;  %v16344_v30 = vld [vmem:[#allocation9 + $0x2c8] sm:$0xff]  }
 0x263   : > { %21795 = vst [vmem:[#allocation36_spill] sm:$0xff] %v18265_v62  ;;  %v14903_v13 = vpop.f32.mrb[92].mxu0 }
 0x264   : > { %v14971_v57 = vpop.f32.mrb[64].mxu1  ;;  %v2242_v58 = vadd.f32 %v14903_v13, %v18151_v47  ;;  %v2233_v8 = vpop.f32.mrb[93].mxu0 }
 0x265   : > { %v3102_v34 = vpop.f32.mrb[65].mxu1  ;;  %v2234_v38 = vadd.f32 %v18143_v51, %v2233_v8  ;;  %v14904_v50 = vpop.f32.mrb[94].mxu0  ;;  %v18302_v8 = vld [vmem:[#allocation6 + $0x1] ss:$0 sm:$0xff] }
 0x266   : > { %v14972_v11 = vpop.f32.mrb[66].mxu1  ;;  %v18270_v37 = vadd.f32 %v18145_v16, %v2242_v58  ;;  %v2245_v24 = vadd.f32 %v14904_v50, %v18153_v61  ;;  %v2236_v29 = vpop.f32.mrb[95].mxu0 }
 0x267   : > { %v3105_v36 = vpop.f32.mrb[67].mxu1  ;;  %v18274_v3 = vadd.f32 %v21797_v56, %v2234_v38  ;;  %v2237_v21 = vadd.f32 %v18147_v9, %v2236_v29 }
 0x268   : > { %21796 = vst [vmem:[#allocation22_spill] sm:$0xff] %v18270_v37  ;;  %v18278_v47 = vadd.f32 %v18149_v1, %v2245_v24 }
 0x269   : > { %21798 = vst [vmem:[#allocation23_spill] sm:$0xff] %v18274_v3  ;;  %v18281_v7 = vadd.f32 %v21800_v63, %v2237_v21  ;;  %v18312_v63 = vld [vmem:[#allocation8 + $0x1] ss:$0 sm:$0xff] }
 0x26a   : > { %21799 = vst [vmem:[#allocation21_spill] sm:$0xff] %v18278_v47 }
 0x26b   : > { %21801 = vst [vmem:[#allocation20_spill] sm:$0xff] %v18281_v7  ;;  %v13513_v51 = vpop.f32.mrb[96].mxu0  ;;  %v3952_v7 = vld [vmem:[#allocation2 + $0x14] sm:$0x1] }
 0x26c   : > { %v18283_v12 = vpop.f32.mrb[68].mxu1  ;;  %v13514_v16 = vpop.f32.mrb[97].mxu0 }
 0x26d   : > { %v18285_v19 = vpop.f32.mrb[69].mxu1  ;;  %v13515_v61 = vadd.f32 %v13514_v16, %v13513_v51  ;;  %v13516_v26 = vpop.f32.mrb[98].mxu0 }
 0x26e   : > { %v18287_v0 = vpop.f32.mrb[70].mxu1  ;;  %v13517_v6 = vpop.f32.mrb[99].mxu0 }
 0x26f   : > { %v18289_v9 = vpop.f32.mrb[71].mxu1  ;;  %v15439_v1 = vadd.f32 %v13515_v61, %v18162_v42  ;;  %v13518_v35 = vadd.f32 %v13517_v6, %v13516_v26  ;;  %v3299_v42 = vld [vmem:[%s17190_s24 + $0x8] sm:$0xff] }
 0x271   : > { %v15440_v27 = vadd.f32 %v15439_v1, %v3102_v34  ;;  %v15447_v40 = vadd.f32 %v13518_v35, %v18169_v23 }
 0x273   : > { %v3266_v43 = vadd.f32 %v15440_v27, %v18292_v49  ;;  %v15448_v25 = vadd.f32 %v15447_v40, %v3105_v36  ;;  %v13519_v13 = vpop.f32.mrb[100].mxu0  ;;  %v3300_v40 = vld [vmem:[%s17190_s24 + $0x10] sm:$0xff] }
 0x274   : > { %v18299_v58 = vpop.f32.mrb[72].mxu1  ;;  %v13520_v38 = vpop.f32.mrb[101].mxu0 }
 0x275   : > { %v18305_v34 = vpop.f32.mrb[73].mxu1  ;;  %v3330_v23 = vadd.f32 %v3298_v20, %v3266_v43  ;;  %v3267_v50 = vadd.f32 %v15448_v25, %v18292_v49  ;;  %v13521_v24 = vadd.f32 %v13520_v38, %v13519_v13  ;;  %v13522_v29 = vpop.f32.mrb[102].mxu0  ;;  %v3301_v38 = vld [vmem:[%s17190_s24 + $0x18] sm:$0xff] }
 0x276   : > { %v18308_v36 = vpop.f32.mrb[74].mxu1  ;;  %v13523_v56 = vpop.f32.mrb[103].mxu0 }
 0x277   : > { %v18310_v21 = vpop.f32.mrb[75].mxu1  ;;  %3362 = vst [vmem:[%s17190_s24] sm:$0xff] %v3330_v23  ;;  %v3431_v51 = vmul.f32 %v18302_v8, %v3330_v23  ;;  %v3331_v16 = vadd.f32 %v3299_v42, %v3267_v50  ;;  %v15435_v61 = vadd.f32 %v13521_v24, %v18158_v44  ;;  %v13524_v26 = vadd.f32 %v13523_v56, %v13522_v29 }
 0x279   : > { %3363 = vst [vmem:[%s17190_s24 + $0x8] sm:$0xff] %v3331_v16  ;;  %v3432_v6 = vmul.f32 %v18302_v8, %v3331_v16  ;;  %v15436_v1 = vadd.f32 %v15435_v61, %v14971_v57  ;;  %v15443_v35 = vadd.f32 %v13524_v26, %v18166_v53  ;;  %v3468_v27 = vadd.f32 %v18312_v63, %v3431_v51 }
 0x27b   : > { %v3268_v20 = vadd.f32 %v15436_v1, %v18292_v49  ;;  %v15444_v43 = vadd.f32 %v15443_v35, %v14972_v11  ;;  %v13525_v25 = vpop.f32.mrb[104].mxu0  ;;  %v3469_v42 = vadd.f32 %v18312_v63, %v3432_v6  ;;  %v3500_v44 = vmax.f32 %v3468_v27, 0.0 }
 0x27c   : > { %v18323_v13 = vpop.f32.mrb[76].mxu1  ;;  %v13526_v23 = vpop.f32.mrb[105].mxu0 }
 0x27d   : > { %v18327_v50 = vpop.f32.mrb[77].mxu1  ;;  %v3332_v57 = vadd.f32 %v3300_v40, %v3268_v20  ;;  %v3269_v53 = vadd.f32 %v15444_v43, %v18292_v49  ;;  %v13527_v24 = vadd.f32 %v13526_v23, %v13525_v25  ;;  %v13528_v29 = vpop.f32.mrb[106].mxu0  ;;  %v3501_v11 = vmax.f32 %v3469_v42, 0.0 }
 0x27e   : > { %v18330_v56 = vpop.f32.mrb[78].mxu1  ;;  %v13529_v51 = vpop.f32.mrb[107].mxu0  ;;  %v13128_v61 = vpack.c.bf16 %v3500_v44, %v3500_v44  ;;  %v3302_v44 = vld [vmem:[%s17190_s24 + $0x20] sm:$0xff] }
 0x27f   : > { %v18332_v16 = vpop.f32.mrb[79].mxu1  ;;  %3364 = vst [vmem:[%s17190_s24 + $0x10] sm:$0xff] %v3332_v57  ;;  %v3433_v26 = vmul.f32 %v18302_v8, %v3332_v57  ;;  %v3333_v6 = vadd.f32 %v3301_v38, %v3269_v53  ;;  %v15455_v1 = vadd.f32 %v13527_v24, %v18178_v10  ;;  %v13530_v35 = vadd.f32 %v13529_v51, %v13528_v29  ;;  %v3948_v29 = vld [vmem:[#allocation2 + $0xc] sm:$0xf] }
 0x280   : > { %v13129_v27 = vpack.c.bf16 %v3501_v11, %v3501_v11  ;;  %v3629_v40 = vshrl.u32 %v13128_v61, 16  ;;  %v3632_v47 = vshll.u32 %v13128_v61, 16 }
 0x281   : > { %3365 = vst [vmem:[%s17190_s24 + $0x18] sm:$0xff] %v3333_v6  ;;  %v3434_v20 = vmul.f32 %v18302_v8, %v3333_v6  ;;  %v15456_v43 = vadd.f32 %v15455_v1, %v18285_v19  ;;  %v15463_v25 = vadd.f32 %v13530_v35, %v18185_v60  ;;  %v3470_v42 = vadd.f32 %v18312_v63, %v3433_v26  ;;  %v3303_v19 = vld [vmem:[%s17190_s24 + $0x28] sm:$0xff] }
 0x282   : > { %v3631_v23 = vrot.slane %v3629_v40, 7  ;;  %v3637_v57 = vshrl.u32 %v13129_v27, 16  ;;  %v3640_v35 = vshll.u32 %v13129_v27, 16 }
 0x283   : > { %v3270_v38 = vadd.f32 %v15456_v43, %v18292_v49  ;;  %v15464_v10 = vadd.f32 %v15463_v25, %v18289_v9  ;;  %v13531_v53 = vpop.f32.mrb[108].mxu0  ;;  %v3471_v11 = vadd.f32 %v18312_v63, %v3434_v20  ;;  %v3502_v51 = vmax.f32 %v3470_v42, 0.0 }
 0x284   : > { %v18345_v24 = vpop.f32.mrb[80].mxu1  ;;  %v13532_v6 = vpop.f32.mrb[109].mxu0  ;;  %v3634_v26 = vor.u32 %v3632_v47, %v3631_v23  ;;  %v3635_v1 = vrot.slane %v3631_v23, 4  ;;  %v3639_v61 = vrot.slane %v3637_v57, 7 }
 0x285   : > { %v18349_v60 = vpop.f32.mrb[81].mxu1  ;;  %v3334_v40 = vadd.f32 %v3302_v44, %v3270_v38  ;;  %v3271_v43 = vadd.f32 %v15464_v10, %v18292_v49  ;;  %v13533_v9 = vadd.f32 %v13532_v6, %v13531_v53  ;;  %v13534_v25 = vpop.f32.mrb[110].mxu0  ;;  %v3503_v3 = vmax.f32 %v3471_v11, 0.0 }
 0x286   : > { %v18352_v37 = vpop.f32.mrb[82].mxu1  ;;  %v13535_v20 = vpop.f32.mrb[111].mxu0  ;;  %v3642_v54 = vor.u32 %v3640_v35, %v3639_v61  ;;  %v3644_v31 = vrot.slane %v3639_v61, 4  ;;  %v3949_v23 = vsel %vm17232_vm7, %v3634_v26, %v3948_v29  ;;  %v13130_v57 = vpack.c.bf16 %v3502_v51, %v3502_v51 }
 0x287   : > { %v18354_v42 = vpop.f32.mrb[83].mxu1  ;;  %3366 = vst [vmem:[%s17190_s24 + $0x20] sm:$0xff] %v3334_v40  ;;  %v3335_v27 = vadd.f32 %v3303_v19, %v3271_v43  ;;  %v15451_v44 = vadd.f32 %v13533_v9, %v18174_v45  ;;  %v13536_v38 = vadd.f32 %v13535_v20, %v13534_v25  ;;  %3950 = vst [vmem:[#allocation2 + $0xc] sm:$0xf] %v3949_v23  ;;  %v3304_v45 = vld [vmem:[%s17190_s24 + $0x30] sm:$0xff]  ;;  %v3305_v25 = vld [vmem:[%s17190_s24 + $0x38] sm:$0xff] }
 0x288   : > { %v13131_v10 = vpack.c.bf16 %v3503_v3, %v3503_v3  ;;  %v3643_v11 = vsel %vm17223_vm6, %v3635_v1, %v3642_v54  ;;  %v3953_v62 = vsel %vm17242_vm8, %v3644_v31, %v3952_v7  ;;  %v3646_v35 = vshrl.u32 %v13130_v57, 16  ;;  %v3955_v9 = vld [vmem:[#allocation2 + $0x18] sm:$0xf] }
 0x289   : > { %3367 = vst [vmem:[%s17190_s24 + $0x28] sm:$0xff] %v3335_v27  ;;  %v15452_v61 = vadd.f32 %v15451_v44, %v18283_v12  ;;  %v15459_v29 = vadd.f32 %v13536_v38, %v18182_v14  ;;  %3951 = vst [vmem:[#allocation2 + $0x10] sm:$0xf] %v3643_v11  ;;  %v3649_v26 = vshll.u32 %v13130_v57, 16  ;;  %v3435_v3 = vmul.f32 %v18302_v8, %v3334_v40 }
 0x28a   : > { %3954 = vst [vmem:[#allocation2 + $0x14] sm:$0x1] %v3953_v62  ;;  %v3654_v51 = vshrl.u32 %v13131_v10, 16  ;;  %v3648_v19 = vrot.slane %v3646_v35, 7  ;;  %v3436_v54 = vmul.f32 %v18302_v8, %v3335_v27  ;;  %v3657_v14 = vshll.u32 %v13131_v10, 16 }
 0x28b   : > { %v3272_v1 = vadd.f32 %v15452_v61, %v18292_v49  ;;  %v15460_v31 = vadd.f32 %v15459_v29, %v18287_v0  ;;  %v13537_v7 = vpop.f32.mrb[112].mxu0  ;;  %v3472_v40 = vadd.f32 %v18312_v63, %v3435_v3 }
 0x28c   : > { %v18372_v43 = vpop.f32.mrb[84].mxu1  ;;  %v3656_v12 = vrot.slane %v3654_v51, 7  ;;  %v13538_v62 = vpop.f32.mrb[113].mxu0  ;;  %v3651_v23 = vor.u32 %v3649_v26, %v3648_v19  ;;  %v3652_v57 = vrot.slane %v3648_v19, 4  ;;  %v3473_v51 = vadd.f32 %v18312_v63, %v3436_v54 }
 0x28d   : > { %v18375_v20 = vpop.f32.mrb[85].mxu1  ;;  %v3336_v27 = vadd.f32 %v3304_v45, %v3272_v1  ;;  %v3273_v44 = vadd.f32 %v15460_v31, %v18292_v49  ;;  %v13539_v38 = vadd.f32 %v13538_v62, %v13537_v7  ;;  %v13540_v0 = vpop.f32.mrb[114].mxu0  ;;  %v3959_v7 = vld [vmem:[#allocation2 + $0x20] sm:$0x1] }
 0x28e   : > { %v18379_v11 = vpop.f32.mrb[86].mxu1  ;;  %v3659_v35 = vor.u32 %v3657_v14, %v3656_v12  ;;  %v13541_v61 = vpop.f32.mrb[115].mxu0  ;;  %v3956_v29 = vsel %vm17232_vm7, %v3651_v23, %v3955_v9  ;;  %v4062_v3 = vld [vmem:[#allocation2 + $0xc] sm:$0xf]  ;;  %v3661_v62 = vrot.slane %v3656_v12, 4  ;;  %v3504_v9 = vmax.f32 %v3472_v40, 0.0 }
 0x28f   : > { %21805 = vst [vmem:[#allocation27_spill] sm:$0xff] %v18379_v11  ;;  %v18381_v10 = vpop.f32.mrb[87].mxu1  ;;  %3368 = vst [vmem:[%s17190_s24 + $0x30] sm:$0xff] %v3336_v27  ;;  %v3337_v19 = vadd.f32 %v3305_v25, %v3273_v44  ;;  %v15471_v45 = vadd.f32 %v13539_v38, %v18194_v17  ;;  %v13542_v26 = vadd.f32 %v13541_v61, %v13540_v0  ;;  %v4115_v1 = vld [vmem:[#allocation2 + $0xc] sm:$0xe]  ;;  %v3306_v0 = vld [vmem:[%s17190_s24 + $0x40] sm:$0xff] }
 0x290   : > { %v3660_v31 = vsel %vm17223_vm6, %v3652_v57, %v3659_v35  ;;  %3957 = vst [vmem:[#allocation2 + $0x18] sm:$0xf] %v3956_v29  ;;  %v4063_v14 = vld [vmem:[#allocation2 + $0x10] sm:$0xf]  ;;  %v3437_v23 = vmul.f32 %v18302_v8, %v3336_v27  ;;  %v3960_v57 = vsel %vm17242_vm8, %v3661_v62, %v3959_v7  ;;  %v3505_v35 = vmax.f32 %v3473_v51, 0.0 }
 0x291   : > { %3958 = vst [vmem:[#allocation2 + $0x1c] sm:$0xf] %v3660_v31  ;;  %3369 = vst [vmem:[%s17190_s24 + $0x38] sm:$0xff] %v3337_v19  ;;  %v15472_v54 = vadd.f32 %v15471_v45, %v18305_v34  ;;  %v15479_v17 = vadd.f32 %v13542_v26, %v18201_v41  ;;  %v18394_v25 = vcombine.low %v4062_v3, %v4063_v14  ;;  %v16314_v44 = vld [vmem:[#allocation2 + $0x14] ss:$0 sps:$4 sm:$0x11]  }
 0x292   : > { %v12678_v38 = vcombine.low %v4115_v1, %v4063_v14  ;;  %v18399_v12 = vpack.c.bf16 %v3504_v9, %v3504_v9  ;;  %v3438_v40 = vmul.f32 %v18302_v8, %v3337_v19  ;;  %v4586_v45 = vrot.slane %v16314_v44, 1  ;;  %3961 = vst [vmem:[#allocation2 + $0x20] sm:$0x1] %v3960_v57  ;;  %v3307_v26 = vld [vmem:[%s17190_s24 + $0x48] sm:$0xff] }
 0x293   : > { %21806 = vst [vmem:[#allocation25_spill] sm:$0xff] %v18394_v25  ;;  %v3274_v27 = vadd.f32 %v15472_v54, %v18292_v49  ;;  %v15480_v34 = vadd.f32 %v15479_v17, %v18310_v21  ;;  %v13543_v61 = vpop.f32.mrb[116].mxu0  ;;  %v4307_v51 = vshrl.u32 %v18394_v25, 16  ;;  %v4309_v31 = vshll.u32 %v18394_v25, 16 }
 0x294   : > { %v18404_v41 = vpop.f32.mrb[88].mxu1  ;;  %v4585_v29 = vrot.slane %v12678_v38, 1  ;;  %v13544_v3 = vpop.f32.mrb[117].mxu0  ;;  %v4314_v7 = vshll.u32 %v16314_v44, 16  ;;  %v18411_v19 = vpack.c.bf16 %v3505_v35, %v3505_v35 }
 0x295   : > { %21807 = vst [vmem:[#allocation29_spill] sm:$0xff] %v18404_v41  ;;  %v18407_v1 = vpop.f32.mrb[89].mxu1  ;;  %v3338_v14 = vadd.f32 %v3306_v0, %v3274_v27  ;;  %v3275_v21 = vadd.f32 %v15480_v34, %v18292_v49  ;;  %v13545_v62 = vadd.f32 %v13544_v3, %v13543_v61  ;;  %v13546_v9 = vpop.f32.mrb[118].mxu0  ;;  %v4311_v41 = vrot.slane %v4309_v31, 1 }
 0x296   : > { %21808 = vst [vmem:[#allocation26_spill] sm:$0xff] %v18407_v1  ;;  %v18414_v54 = vpop.f32.mrb[90].mxu1  ;;  %v18417_v17 = vsel %vm1612_vm9, %v4585_v29, %v4586_v45  ;;  %v13547_v38 = vpop.f32.mrb[119].mxu0  ;;  %v4316_v44 = vrot.slane %v4314_v7, 1  ;;  %v18423_v0 = vadd.f32 %v18312_v63, %v3437_v23  ;;  %v18426_v27 = vadd.f32 %v18312_v63, %v3438_v40  ;;  %v3308_v40 = vld [vmem:[%s17190_s24 + $0x50] sm:$0xff] }
 0x297   : > { %21809 = vst [vmem:[#allocation30_spill] sm:$0xff] %v18414_v54  ;;  %21810 = vst [vmem:[#allocation28_spill] sm:$0xff] %v18417_v17  ;;  %15017 = vmatprep.mubr.bf16.mxu1 %v18417_v17  ;;  %v18420_v57 = vpop.f32.mrb[91].mxu1  ;;  %v4064_v35 = vld [vmem:[#allocation2 + $0x18] sm:$0xf]  ;;  %v3339_v34 = vadd.f32 %v3307_v26, %v3275_v21  ;;  %v15467_v61 = vadd.f32 %v13545_v62, %v18190_v2  ;;  %v13548_v29 = vadd.f32 %v13547_v38, %v13546_v9 }
 0x298   : > { %21811 = vst [vmem:[#allocation24_spill] sm:$0xff] %v18420_v57  ;;  %3370 = vst [vmem:[%s17190_s24 + $0x40] sm:$0xff] %v3338_v14  ;;  %v4065_v45 = vld [vmem:[#allocation2 + $0x1c] sm:$0xf]  ;;  %v4116_v3 = vld [vmem:[#allocation2 + $0x18] sm:$0xe]  ;;  %v4312_v31 = vor.u32 %v4311_v41, %v4307_v51  ;;  %v3439_v51 = vmul.f32 %v18302_v8, %v3338_v14 }
 0x299   : > { %v3663_v17 = vshrl.u32 %v18399_v12, 16  ;;  %v18431_v54 = vcombine.low %v4064_v35, %v4065_v45  ;;  %v12679_v7 = vcombine.low %v4116_v3, %v4065_v45  ;;  %v3666_v57 = vshll.u32 %v18399_v12, 16  ;;  %3371 = vst [vmem:[%s17190_s24 + $0x48] sm:$0xff] %v3339_v34  ;;  %v16320_v9 = vld [vmem:[#allocation2 + $0x20] ss:$0 sps:$4 sm:$0x11]  }
 0x29a   : > { %v15468_v23 = vadd.f32 %v15467_v61, %v18299_v58  ;;  %v15475_v26 = vadd.f32 %v13548_v29, %v18198_v18  ;;  %v3671_v2 = vshrl.u32 %v18411_v19, 16  ;;  %v18440_v62 = vsel %vm1323_vm3, %v4312_v31, %v4316_v44  ;;  %v3309_v61 = vld [vmem:[%s17190_s24 + $0x58] sm:$0xff]  ;;  %v3962_v1 = vld [vmem:[#allocation2 + $0x24] sm:$0xf] }
 0x29b   : > { %v3665_v21 = vrot.slane %v3663_v17, 7  ;;  %21812 = vst [vmem:[#allocation32_spill] sm:$0xff] %v18440_v62  ;;  %v4588_v41 = vrot.slane %v12679_v7, 1  ;;  %v18444_v38 = vmul.f32 %v18302_v8, %v3339_v34  ;;  %v13549_v35 = vpop.f32.mrb[120].mxu0  ;;  %4928 = vmatprep.mubr.bf16.mxu0 %v18440_v62  ;;  %v4319_v17 = vshrl.u32 %v18431_v54, 16 }
 0x29c   : > { %v3276_v12 = vadd.f32 %v15468_v23, %v18292_v49  ;;  %v15476_v58 = vadd.f32 %v15475_v26, %v18308_v36  ;;  %v18449_v18 = vpop.f32.mrb[92].mxu1  ;;  %v4321_v44 = vshll.u32 %v18431_v54, 16  ;;  %v13550_v29 = vpop.f32.mrb[121].mxu0  ;;  %4929 = vmatmul.mubr.bf16.vlgmr.msra.gmra.mrb[160].mxu0 %v18394_v25  ;;  %v4589_v34 = vrot.slane %v16320_v9, 1 }
 0x29d   : > { %21813 = vst [vmem:[#allocation34_spill] sm:$0xff] %v18449_v18  ;;  %v18455_v14 = vpop.f32.mrb[93].mxu1  ;;  %v4326_v45 = vshll.u32 %v16320_v9, 16  ;;  %v3668_v3 = vor.u32 %v3666_v57, %v3665_v21  ;;  %v3669_v36 = vrot.slane %v3665_v21, 4  ;;  %v13551_v23 = vadd.f32 %v13550_v29, %v13549_v35  ;;  %v13552_v26 = vpop.f32.mrb[122].mxu0 }
 0x29e   : > { %21814 = vst [vmem:[#allocation37_spill] sm:$0xff] %v18455_v14  ;;  %v18457_v31 = vadd.f32 %v3308_v40, %v3276_v12  ;;  %v3277_v7 = vadd.f32 %v15476_v58, %v18292_v49  ;;  %v18460_v62 = vpop.f32.mrb[94].mxu1  ;;  %v4323_v18 = vrot.slane %v4321_v44, 1  ;;  %v13553_v11 = vpop.f32.mrb[123].mxu0  ;;  %v18463_v25 = vsel %vm1612_vm9, %v4588_v41, %v4589_v34  ;;  %v3966_v44 = vld [vmem:[#allocation2 + $0x2c] sm:$0x1] }
 0x29f   : > { %v18465_v14 = vpop.f32.mrb[95].mxu1  ;;  %v4328_v57 = vrot.slane %v4326_v45, 1  ;;  %v3673_v21 = vrot.slane %v3671_v2, 7  ;;  %v3674_v40 = vshll.u32 %v18411_v19, 16  ;;  %v15487_v12 = vadd.f32 %v13551_v23, %v18210_v33  ;;  %15018 = vmatmul.mubr.bf16.vlgmr.msra.gmra.mrb[96].mxu1 %v18463_v25  ;;  %v16360_v19 = vld [vmem:[#allocation9 + $0x280] sm:$0xff]  }
 0x2a0   : > { %3372 = vst [vmem:[%s17190_s24 + $0x50] sm:$0xff] %v18457_v31  ;;  %v18470_v9 = vadd.f32 %v3309_v61, %v3277_v7  ;;  %v13554_v58 = vadd.f32 %v13553_v11, %v13552_v26  ;;  %v4324_v35 = vor.u32 %v4323_v18, %v4319_v17  ;;  %v3963_v34 = vsel %vm17232_vm7, %v3668_v3, %v3962_v1  ;;  %v16348_v61 = vld [vmem:[#allocation9 + $0x2d0] sm:$0xff]   ;;  %v16361_v1 = vld [vmem:[#allocation9 + $0x240] sm:$0xff]  }
 0x2a1   : > { %v3676_v41 = vor.u32 %v3674_v40, %v3673_v21  ;;  %v3678_v29 = vrot.slane %v3673_v21, 4  ;;  %v3506_v2 = vmax.f32 %v18423_v0, 0.0  ;;  %15050 = vmatpush3.bf16.msra.mxu1 %v18295_v59  ;;  %v15488_v33 = vadd.f32 %v15487_v12, %v18327_v50  ;;  %3964 = vst [vmem:[#allocation2 + $0x24] sm:$0xf] %v3963_v34  ;;  %v3310_v0 = vld [vmem:[%s17190_s24 + $0x60] sm:$0xff]  ;;  %13769 = vmatprep.subr.bf16.mxu0 %v16360_v19 }
 0x2a2   : > { %3373 = vst [vmem:[%s17190_s24 + $0x58] sm:$0xff] %v18470_v9  ;;  %v15495_v11 = vadd.f32 %v13554_v58, %v18217_v22  ;;  %v18483_v18 = vsel %vm1323_vm3, %v4324_v35, %v4328_v57  ;;  %v3507_v17 = vmax.f32 %v18426_v27, 0.0  ;;  %15051 = vmatprep.subr.bf16.mxu1 %v16344_v30  ;;  %v3476_v45 = vadd.f32 %v18312_v63, %v3439_v51  ;;  %v16366_v57 = vld [vmem:[#allocation9 + $0x288] sm:$0xff]  }
 0x2a3   : > { %4936 = vmatprep.mubr.bf16.mxu0 %v18483_v18  ;;  %v3677_v59 = vsel %vm17223_vm6, %v3669_v36, %v3676_v41  ;;  %v3967_v50 = vsel %vm17242_vm8, %v3678_v29, %v3966_v44  ;;  %v13134_v22 = vpack.c.bf16 %v3506_v2, %v3506_v2  ;;  %v3278_v3 = vadd.f32 %v15488_v33, %v18292_v49  ;;  %v13555_v7 = vpop.f32.mrb[124].mxu0  ;;  %v3311_v36 = vld [vmem:[%s17190_s24 + $0x68] sm:$0xff] }
 0x2a4   : > { %v15496_v27 = vadd.f32 %v15495_v11, %v18332_v16  ;;  %3965 = vst [vmem:[#allocation2 + $0x28] sm:$0xf] %v3677_v59  ;;  %3968 = vst [vmem:[#allocation2 + $0x2c] sm:$0x1] %v3967_v50  ;;  %v13135_v23 = vpack.c.bf16 %v3507_v17, %v3507_v17  ;;  %v3477_v26 = vadd.f32 %v18312_v63, %v18444_v38  ;;  %v13556_v21 = vpop.f32.mrb[125].mxu0  ;;  %4937 = vmatmul.mubr.bf16.gmra.mrb[164].mxu0 %v18431_v54  ;;  %v16352_v38 = vld [vmem:[#allocation9 + $0x2d8] sm:$0xff]  }
 0x2a5   : > { %v3680_v40 = vshrl.u32 %v13134_v22, 16  ;;  %v3683_v12 = vshll.u32 %v13134_v22, 16  ;;  %v3508_v51 = vmax.f32 %v3476_v45, 0.0  ;;  %15052 = vmatpush3.bf16.msra.mxu1 %v16344_v30  ;;  %v18499_v58 = vadd.f32 %v3310_v0, %v3278_v3  ;;  %v13558_v44 = vpop.f32.mrb[126].mxu0  ;;  %13770 = vmatpush3.bf16.msra.mxu0 %v16361_v1  ;;  %v16367_v29 = vld [vmem:[#allocation9 + $0x248] sm:$0xff]   ;;  %v3312_v45 = vld [vmem:[%s17190_s24 + $0x70] sm:$0xff] }
 0x2a6   : > { %v3279_v16 = vadd.f32 %v15496_v27, %v18292_v49  ;;  %v13557_v35 = vadd.f32 %v13556_v21, %v13555_v7  ;;  %v3688_v41 = vshrl.u32 %v13135_v23, 16  ;;  %15053 = vmatprep.subr.bf16.mxu1 %v16348_v61  ;;  %v13559_v34 = vpop.f32.mrb[127].mxu0  ;;  %v3691_v19 = vshll.u32 %v13135_v23, 16  ;;  %13771 = vmatprep.subr.bf16.mxu0 %v16366_v57  ;;  %v3969_v50 = vld [vmem:[#allocation2 + $0x30] sm:$0xf] }
 0x2a7   : > { %v3682_v2 = vrot.slane %v3680_v40, 7  ;;  %v3509_v33 = vmax.f32 %v3477_v26, 0.0  ;;  %v13136_v11 = vpack.c.bf16 %v3508_v51, %v3508_v51  ;;  %3374 = vst [vmem:[%s17190_s24 + $0x60] sm:$0xff] %v18499_v58  ;;  %v13560_v0 = vadd.f32 %v13559_v34, %v13558_v44  ;;  %v3973_v22 = vld [vmem:[#allocation2 + $0x38] sm:$0x1]  ;;  %v16356_v26 = vld [vmem:[#allocation9 + $0x2e0] sm:$0xff]  }
 0x2a8   : > { %v18504_v30 = vadd.f32 %v3311_v36, %v3279_v16  ;;  %v15483_v17 = vadd.f32 %v13557_v35, %v18206_v28  ;;  %v3690_v59 = vrot.slane %v3688_v41, 7  ;;  %v4066_v1 = vld [vmem:[#allocation2 + $0x24] sm:$0xf]  ;;  %v18510_v23 = vmul.f32 %v18302_v8, %v18457_v31  ;;  %v16369_v51 = vld [vmem:[#allocation9 + $0x250] sm:$0xff]  }
 0x2a9   : > { %v3685_v3 = vor.u32 %v3683_v12, %v3682_v2  ;;  %v3686_v27 = vrot.slane %v3682_v2, 4  ;;  %v3697_v7 = vshrl.u32 %v13136_v11, 16  ;;  %15054 = vmatpush3.bf16.msra.mxu1 %v16348_v61  ;;  %v15491_v28 = vadd.f32 %v13560_v0, %v18214_v55  ;;  %v4117_v36 = vld [vmem:[#allocation2 + $0x24] sm:$0xe]  ;;  %13772 = vmatpush3.bf16.msra.mxu0 %v16367_v29  ;;  %v16368_v12 = vld [vmem:[#allocation9 + $0x290] sm:$0xff]  }
 0x2aa   : > { %3375 = vst [vmem:[%s17190_s24 + $0x68] sm:$0xff] %v18504_v30  ;;  %v15484_v57 = vadd.f32 %v15483_v17, %v18323_v13  ;;  %v3693_v21 = vor.u32 %v3691_v19, %v3690_v59  ;;  %v3695_v40 = vrot.slane %v3690_v59, 4  ;;  %15055 = vmatprep.subr.bf16.mxu1 %v16352_v38  ;;  %v18518_v61 = vpack.c.bf16 %v3509_v33, %v3509_v33  ;;  %v16374_v19 = vld [vmem:[#allocation9 + $0x298] sm:$0xff]  }
 0x2ab   : > { %v4067_v16 = vld [vmem:[#allocation2 + $0x28] sm:$0xf]  ;;  %v3970_v31 = vsel %vm17232_vm7, %v3685_v3, %v3969_v50  ;;  %v18520_v35 = vrot.slane %v3697_v7, 7  ;;  %v3700_v44 = vshll.u32 %v13136_v11, 16  ;;  %v15492_v55 = vadd.f32 %v15491_v28, %v18330_v56  ;;  %v13561_v41 = vpop.f32.mrb[128].mxu0  ;;  %13773 = vmatprep.subr.bf16.mxu0 %v16368_v12  ;;  %v3313_v17 = vld [vmem:[%s17190_s24 + $0x78] sm:$0xff] }
 0x2ac   : > { %v3280_v13 = vadd.f32 %v15484_v57, %v18292_v49  ;;  %v18524_v34 = vcombine.low %v4066_v1, %v4067_v16  ;;  %v16323_v29 = vld [vmem:[#allocation2 + $0x2c] ss:$0 sps:$4 sm:$0x11]   ;;  %v12680_v2 = vcombine.low %v4117_v36, %v4067_v16  ;;  %3971 = vst [vmem:[#allocation2 + $0x30] sm:$0xf] %v3970_v31  ;;  %v13562_v0 = vpop.f32.mrb[129].mxu0  ;;  %v3694_v33 = vsel %vm17223_vm6, %v3686_v27, %v3693_v21 }
 0x2ad   : > { %v3974_v11 = vsel %vm17242_vm8, %v3695_v40, %v3973_v22  ;;  %v3702_v59 = vor.u32 %v3700_v44, %v18520_v35  ;;  %v3442_v56 = vmul.f32 %v18302_v8, %v18470_v9  ;;  %15056 = vmatpush3.bf16.msra.mxu1 %v16352_v38  ;;  %v3281_v1 = vadd.f32 %v15492_v55, %v18292_v49  ;;  %v13564_v7 = vpop.f32.mrb[130].mxu0  ;;  %v3976_v27 = vld [vmem:[#allocation2 + $0x3c] sm:$0xf]  ;;  %v16362_v28 = vld [vmem:[#allocation9 + $0x2e8] sm:$0xff]   ;;  %v16376_v55 = vld [vmem:[#allocation9 + $0x2a0] sm:$0xff]  }
 0x2ae   : > { %v18534_v50 = vadd.f32 %v3312_v45, %v3280_v13  ;;  %v13563_v3 = vadd.f32 %v13562_v0, %v13561_v41  ;;  %v4591_v57 = vrot.slane %v12680_v2, 1  ;;  %3972 = vst [vmem:[#allocation2 + $0x34] sm:$0xf] %v3694_v33  ;;  %3975 = vst [vmem:[#allocation2 + $0x38] sm:$0x1] %v3974_v11  ;;  %15057 = vmatprep.subr.bf16.mxu1 %v16356_v26  ;;  %13774 = vmatpush3.bf16.msra.mxu0 %v16369_v51  ;;  %v13565_v36 = vpop.f32.mrb[131].mxu0 }
 0x2af   : > { %v4592_v22 = vrot.slane %v16323_v29, 1  ;;  %v4333_v21 = vshll.u32 %v18524_v34, 16  ;;  %v4338_v9 = vshll.u32 %v16323_v29, 16  ;;  %v3703_v38 = vrot.slane %v18520_v35, 4  ;;  %13775 = vmatprep.subr.bf16.mxu0 %v16374_v19  ;;  %v16375_v45 = vld [vmem:[#allocation9 + $0x258] sm:$0xff]   ;;  %v3314_v29 = vld [vmem:[%s17190_s24 + $0x80] sm:$0xff] }
 0x2b0   : > { %3376 = vst [vmem:[%s17190_s24 + $0x70] sm:$0xff] %v18534_v50  ;;  %v18541_v40 = vadd.f32 %v3313_v17, %v3281_v1  ;;  %v15503_v12 = vadd.f32 %v13563_v3, %v18226_v39  ;;  %v13566_v16 = vadd.f32 %v13565_v36, %v13564_v7  ;;  %v3705_v51 = vshrl.u32 %v18518_v61, 16  ;;  %v3980_v17 = vld [vmem:[#allocation2 + $0x44] sm:$0x1]  ;;  %v3315_v0 = vld [vmem:[%s17190_s24 + $0x88] sm:$0xff] }
 0x2b1   : > { %v18546_v31 = vsel %vm1612_vm9, %v4591_v57, %v4592_v22  ;;  %v4331_v44 = vshrl.u32 %v18524_v34, 16  ;;  %v4335_v13 = vrot.slane %v4333_v21, 1  ;;  %v3708_v35 = vshll.u32 %v18518_v61, 16  ;;  %15058 = vmatpush3.bf16.msra.mxu1 %v16356_v26  ;;  %v16370_v11 = vld [vmem:[#allocation9 + $0x2f0] sm:$0xff]   ;;  %v18568_v22 = vld [vmem:[#allocation9 + $0x2f8] sm:$0xff]   ;;  %v16382_v36 = vld [vmem:[#allocation9 + $0x2a8] sm:$0xff]  }
 0x2b2   : > { %3377 = vst [vmem:[%s17190_s24 + $0x78] sm:$0xff] %v18541_v40  ;;  %v15504_v41 = vadd.f32 %v15503_v12, %v18349_v60  ;;  %15021 = vmatprep.mubr.bf16.mxu1 %v18546_v31  ;;  %v15511_v39 = vadd.f32 %v13566_v16, %v18233_v15  ;;  %v3707_v2 = vrot.slane %v3705_v51, 7  ;;  %v3977_v19 = vsel %vm17232_vm7, %v3702_v59, %v3976_v27  ;;  %v16377_v15 = vld [vmem:[#allocation9 + $0x260] sm:$0xff]  }
 0x2b3   : > { %15059 = vmatprep.subr.bf16.mxu1 %v16362_v28  ;;  %v4336_v33 = vor.u32 %v4335_v13, %v4331_v44  ;;  %v4340_v61 = vrot.slane %v4338_v9, 1  ;;  %3978 = vst [vmem:[#allocation2 + $0x3c] sm:$0xf] %v3977_v19  ;;  %v18561_v26 = vadd.f32 %v18312_v63, %v18510_v23  ;;  %v18564_v60 = vadd.f32 %v18312_v63, %v3442_v56  ;;  %v13567_v3 = vpop.f32.mrb[132].mxu0  ;;  %v4068_v7 = vld [vmem:[#allocation2 + $0x30] sm:$0xf] }
 0x2b4   : > { %13776 = vmatpush3.bf16.msra.mxu0 %v16375_v45  ;;  %v3282_v1 = vadd.f32 %v15504_v41, %v18292_v49  ;;  %v15512_v59 = vadd.f32 %v15511_v39, %v18354_v42  ;;  %v3710_v57 = vor.u32 %v3708_v35, %v3707_v2  ;;  %v3712_v27 = vrot.slane %v3707_v2, 4  ;;  %v13568_v56 = vpop.f32.mrb[133].mxu0  ;;  %v4118_v13 = vld [vmem:[#allocation2 + $0x30] sm:$0xe] }
 0x2b5   : > { %13777 = vmatprep.subr.bf16.mxu0 %v16376_v55  ;;  %v18571_v23 = vsel %vm1323_vm3, %v4336_v33, %v4340_v61  ;;  %v4069_v21 = vld [vmem:[#allocation2 + $0x34] sm:$0xf]  ;;  %v3510_v9 = vmax.f32 %v18561_v26, 0.0  ;;  %v3443_v45 = vmul.f32 %v18302_v8, %v18499_v58  ;;  %v18578_v42 = vmul.f32 %v18302_v8, %v18504_v30  ;;  %15060 = vmatpush3.bf16.msra.mxu1 %v16362_v28  ;;  %v13570_v44 = vpop.f32.mrb[134].mxu0  ;;  %v16383_v61 = vld [vmem:[#allocation9 + $0x268] sm:$0xff]  }
 0x2b6   : > { %v3346_v12 = vadd.f32 %v3314_v29, %v3282_v1  ;;  %v3283_v16 = vadd.f32 %v15512_v59, %v18292_v49  ;;  %4944 = vmatprep.mubr.bf16.mxu0 %v18571_v23  ;;  %v13569_v51 = vadd.f32 %v13568_v56, %v13567_v3  ;;  %v18582_v35 = vcombine.low %v4068_v7, %v4069_v21  ;;  %v16326_v55 = vld [vmem:[#allocation2 + $0x38] ss:$0 sps:$4 sm:$0x11]   ;;  %v13571_v41 = vpop.f32.mrb[135].mxu0  ;;  %v16384_v1 = vld [vmem:[#allocation9 + $0x2b0] sm:$0xff]   ;;  %v16389_v3 = vld [vmem:[#allocation9 + $0x400] sm:$0xff]  }
 0x2b7   : > { %4945 = vmatmul.mubr.bf16.gmra.mrb[168].mxu0 %v18524_v34  ;;  %v12681_v58 = vcombine.low %v4118_v13, %v4069_v21  ;;  %v3711_v30 = vsel %vm17223_vm6, %v3703_v38, %v3710_v57  ;;  %v3981_v28 = vsel %vm17242_vm8, %v3712_v27, %v3980_v17  ;;  %v3511_v29 = vmax.f32 %v18564_v60, 0.0  ;;  %15061 = vmatprep.subr.bf16.mxu1 %v16370_v11  ;;  %v3316_v7 = vld [vmem:[%s17190_s24 + $0x90] sm:$0xff] }
 0x2b8   : > { %3378 = vst [vmem:[%s17190_s24 + $0x80] sm:$0xff] %v3346_v12  ;;  %v3447_v39 = vmul.f32 %v18302_v8, %v3346_v12  ;;  %v3347_v2 = vadd.f32 %v3315_v0, %v3283_v16  ;;  %v15499_v19 = vadd.f32 %v13569_v51, %v18222_v48  ;;  %v4595_v33 = vrot.slane %v16326_v55, 1  ;;  %3979 = vst [vmem:[#allocation2 + $0x40] sm:$0xf] %v3711_v30 }
 0x2b9   : > { %3982 = vst [vmem:[#allocation2 + $0x44] sm:$0x1] %v3981_v28  ;;  %13778 = vmatpush3.bf16.msra.mxu0 %v16377_v15  ;;  %v4594_v38 = vrot.slane %v12681_v58, 1  ;;  %v13572_v26 = vadd.f32 %v13571_v41, %v13570_v44  ;;  %v4345_v17 = vshll.u32 %v18582_v35, 16  ;;  %v18595_v60 = vadd.f32 %v18312_v63, %v3443_v45  ;;  %15062 = vmatpush3.bf16.msra.mxu1 %v16370_v11 }
 0x2ba   : > { %13779 = vmatprep.subr.bf16.mxu0 %v16382_v36  ;;  %v18598_v0 = vadd.f32 %v18312_v63, %v3447_v39  ;;  %3379 = vst [vmem:[%s17190_s24 + $0x88] sm:$0xff] %v3347_v2  ;;  %v15500_v48 = vadd.f32 %v15499_v19, %v18345_v24  ;;  %v4343_v15 = vshrl.u32 %v18582_v35, 16  ;;  %v4350_v59 = vshll.u32 %v16326_v55, 16  ;;  %15063 = vmatprep.subr.bf16.mxu1 %v18568_v22  ;;  %v3317_v24 = vld [vmem:[%s17190_s24 + $0x98] sm:$0xff] }
 0x2bb   : > { %v18606_v57 = vsel %vm1612_vm9, %v4594_v38, %v4595_v33  ;;  %v15507_v11 = vadd.f32 %v13572_v26, %v18230_v5  ;;  %v4347_v27 = vrot.slane %v4345_v17, 1  ;;  %v13138_v36 = vpack.c.bf16 %v3510_v9, %v3510_v9  ;;  %v13573_v45 = vpop.f32.mrb[136].mxu0  ;;  %v4070_v5 = vld [vmem:[#allocation2 + $0x3c] sm:$0xf]  ;;  %v16385_v9 = vld [vmem:[#allocation9 + $0x270] sm:$0xff]  }
 0x2bc   : > { %v18610_v56 = vmul.f32 %v18302_v8, %v3347_v2  ;;  %v3284_v21 = vadd.f32 %v15500_v48, %v18292_v49  ;;  %15022 = vmatmul.mubr.bf16.gmra.mrb[100].mxu1 %v18606_v57  ;;  %v18615_v12 = vpack.c.bf16 %v3511_v29, %v3511_v29  ;;  %v4352_v44 = vrot.slane %v4350_v59, 1  ;;  %v13574_v13 = vpop.f32.mrb[137].mxu0  ;;  %v4119_v28 = vld [vmem:[#allocation2 + $0x3c] sm:$0xe] }
 0x2bd   : > { %13780 = vmatpush3.bf16.msra.mxu0 %v16383_v61  ;;  %v15508_v16 = vadd.f32 %v15507_v11, %v18352_v37  ;;  %v4348_v51 = vor.u32 %v4347_v27, %v4343_v15  ;;  %v3714_v55 = vshrl.u32 %v13138_v36, 16  ;;  %15064 = vmatpush3.bf16.msra.mxu1 %v18568_v22  ;;  %v13575_v41 = vadd.f32 %v13574_v13, %v13573_v45  ;;  %v13576_v30 = vpop.f32.mrb[138].mxu0  ;;  %v16391_v2 = vld [vmem:[#allocation9 + $0x2b8] sm:$0xff]   ;;  %v3983_v27 = vld [vmem:[#allocation2 + $0x48] sm:$0xf] }
 0x2be   : > { %13781 = vmatprep.subr.bf16.mxu0 %v16384_v1  ;;  %v3348_v58 = vadd.f32 %v3316_v7, %v3284_v21  ;;  %v3717_v39 = vshll.u32 %v13138_v36, 16  ;;  %v3722_v29 = vshrl.u32 %v18615_v12, 16  ;;  %13905 = vmatprep.subr.bf16.mxu1 %v16389_v3  ;;  %v13577_v61 = vpop.f32.mrb[139].mxu0  ;;  %v18626_v38 = vadd.f32 %v18312_v63, %v18578_v42  ;;  %v16392_v36 = vld [vmem:[#allocation9 + $0x278] sm:$0xff]   ;;  %v3318_v21 = vld [vmem:[%s17190_s24 + $0xa0] sm:$0xff] }
 0x2bf   : > { %v3285_v37 = vadd.f32 %v15508_v16, %v18292_v49  ;;  %v18622_v19 = vsel %vm1323_vm3, %v4348_v51, %v4352_v44  ;;  %v4071_v33 = vld [vmem:[#allocation2 + $0x40] sm:$0xf]  ;;  %v3716_v22 = vrot.slane %v3714_v55, 7  ;;  %v15519_v26 = vadd.f32 %v13575_v41, %v18242_v32 }
 0x2c0   : > { %3380 = vst [vmem:[%s17190_s24 + $0x90] sm:$0xff] %v3348_v58  ;;  %4952 = vmatprep.mubr.bf16.mxu0 %v18622_v19  ;;  %v18631_v17 = vcombine.low %v4070_v5, %v4071_v33  ;;  %v16329_v1 = vld [vmem:[#allocation2 + $0x44] ss:$0 sps:$4 sm:$0x11]   ;;  %v12682_v49 = vcombine.low %v4119_v28, %v4071_v33  ;;  %v3725_v48 = vshll.u32 %v18615_v12, 16  ;;  %v13578_v59 = vadd.f32 %v13577_v61, %v13576_v30  ;;  %v3319_v30 = vld [vmem:[%s17190_s24 + $0xa8] sm:$0xff] }
 0x2c1   : > { %v18634_v15 = vadd.f32 %v3317_v24, %v3285_v37  ;;  %4953 = vmatmul.mubr.bf16.gmra.mrb[172].mxu0 %v18582_v35  ;;  %v3719_v63 = vor.u32 %v3717_v39, %v3716_v22  ;;  %v18639_v42 = vmul.f32 %v18302_v8, %v18534_v50  ;;  %v3449_v32 = vmul.f32 %v18302_v8, %v3348_v58  ;;  %v18649_v8 = vld [vmem:[#allocation11] ss:$0 sm:$0xff] }
 0x2c2   : > { %v15520_v3 = vadd.f32 %v15519_v26, %v18375_v20  ;;  %v4597_v7 = vrot.slane %v12682_v49, 1  ;;  %v4598_v11 = vrot.slane %v16329_v1, 1  ;;  %13782 = vmatpush3.bf16.msra.mxu0 %v16385_v9  ;;  %v15527_v24 = vadd.f32 %v13578_v59, %v18249_v4 }
 0x2c3   : > { %3381 = vst [vmem:[%s17190_s24 + $0x98] sm:$0xff] %v18634_v15  ;;  %v4355_v45 = vshrl.u32 %v18631_v17, 16  ;;  %v4357_v12 = vshll.u32 %v18631_v17, 16  ;;  %v3720_v50 = vrot.slane %v3716_v22, 4  ;;  %13783 = vmatprep.subr.bf16.mxu0 %v16391_v2  ;;  %v4362_v51 = vshll.u32 %v16329_v1, 16  ;;  %v13579_v44 = vpop.f32.mrb[140].mxu0 }
 0x2c4   : > { %v3286_v20 = vadd.f32 %v18649_v8, %v15520_v3  ;;  %v18653_v16 = vsel %vm1612_vm9, %v4597_v7, %v4598_v11  ;;  %v3724_v13 = vrot.slane %v3722_v29, 7  ;;  %v15528_v4 = vadd.f32 %v15527_v24, %v18381_v10  ;;  %v13580_v55 = vpop.f32.mrb[141].mxu0  ;;  %v3987_v29 = vld [vmem:[#allocation2 + $0x50] sm:$0x1]  ;;  %v18664_v1 = vld [vmem:[#allocation6 + $0x1] ss:$0 sm:$0xff] }
 0x2c5   : > { %15025 = vmatprep.mubr.bf16.mxu1 %v18653_v16  ;;  %v4359_v5 = vrot.slane %v4357_v12, 1  ;;  %v3984_v9 = vsel %vm17232_vm7, %v3719_v63, %v3983_v27  ;;  %v3512_v58 = vmax.f32 %v18595_v60, 0.0  ;;  %v4364_v28 = vrot.slane %v4362_v51, 1  ;;  %v13582_v2 = vpop.f32.mrb[142].mxu0  ;;  %v18675_v11 = vld [vmem:[#allocation8 + $0x1] ss:$0 sm:$0xff] }
 0x2c6   : > { %v3350_v41 = vadd.f32 %v3318_v21, %v3286_v20  ;;  %v13581_v39 = vadd.f32 %v13580_v55, %v13579_v44  ;;  %v3727_v37 = vor.u32 %v3725_v48, %v3724_v13  ;;  %3985 = vst [vmem:[#allocation2 + $0x48] sm:$0xf] %v3984_v9  ;;  %13784 = vmatpush3.bf16.msra.mxu0 %v16392_v36  ;;  %v3729_v61 = vrot.slane %v3724_v13, 4  ;;  %v13583_v22 = vpop.f32.mrb[143].mxu0  ;;  %v21815_v20 = vld [vmem:[#allocation27_spill] sm:$0xff] }
 0x2c7   : > { %v3287_v33 = vadd.f32 %v18649_v8, %v15528_v4  ;;  %v4360_v10 = vor.u32 %v4359_v5, %v4355_v45  ;;  %v3513_v26 = vmax.f32 %v18626_v38, 0.0  ;;  %v13584_v59 = vadd.f32 %v13583_v22, %v13582_v2  ;;  %v3990_v2 = vld [vmem:[#allocation2 + $0x54] sm:$0xf] }
 0x2c8   : > { %3382 = vst [vmem:[%s17190_s24 + $0xa0] sm:$0xff] %v3350_v41  ;;  %v3451_v60 = vmul.f32 %v18664_v1, %v3350_v41  ;;  %v15515_v49 = vadd.f32 %v13581_v39, %v18238_v52  ;;  %v3728_v48 = vsel %vm17223_vm6, %v3720_v50, %v3727_v37  ;;  %v3988_v38 = vsel %vm17242_vm8, %v3729_v61, %v3987_v29  ;;  %v3994_v61 = vld [vmem:[#allocation2 + $0x5c] sm:$0x1] }
 0x2c9   : > { %v3351_v63 = vadd.f32 %v3319_v30, %v3287_v33  ;;  %v18671_v3 = vsel %vm1323_vm3, %v4360_v10, %v4364_v28  ;;  %3986 = vst [vmem:[#allocation2 + $0x4c] sm:$0xf] %v3728_v48  ;;  %v13140_v7 = vpack.c.bf16 %v3512_v58, %v3512_v58  ;;  %v18678_v27 = vadd.f32 %v18675_v11, %v3449_v32  ;;  %v3320_v32 = vld [vmem:[%s17190_s24 + $0xb0] sm:$0xff] }
 0x2ca   : > { %4960 = vmatprep.mubr.bf16.mxu0 %v18671_v3  ;;  %v15516_v52 = vadd.f32 %v15515_v49, %v18372_v43  ;;  %3989 = vst [vmem:[#allocation2 + $0x50] sm:$0x1] %v3988_v38  ;;  %v15523_v36 = vadd.f32 %v13584_v59, %v18246_v46  ;;  %v13141_v21 = vpack.c.bf16 %v3513_v26, %v3513_v26  ;;  %v21816_v48 = vld [vmem:[#allocation35_spill] sm:$0xff] }
 0x2cb   : > { %v18685_v24 = vmul.f32 %v18664_v1, %v18634_v15  ;;  %v18688_v45 = vadd.f32 %v18675_v11, %v3451_v60  ;;  %3383 = vst [vmem:[%s17190_s24 + $0xa8] sm:$0xff] %v3351_v63  ;;  %4961 = vmatmul.mubr.bf16.gmra.mrb[176].mxu0 %v18631_v17  ;;  %v3731_v12 = vshrl.u32 %v13140_v7, 16  ;;  %v3446_v43 = vmul.f32 %v18664_v1, %v18541_v40  ;;  %v13585_v51 = vpop.f32.mrb[144].mxu0  ;;  %v3321_v15 = vld [vmem:[%s17190_s24 + $0xb8] sm:$0xff] }
 0x2cc   : > { %v3288_v50 = vadd.f32 %v18649_v8, %v15516_v52  ;;  %v15524_v46 = vadd.f32 %v15523_v36, %v21815_v20  ;;  %v3734_v44 = vshll.u32 %v13140_v7, 16  ;;  %v3739_v13 = vshrl.u32 %v13141_v21, 16  ;;  %v13586_v4 = vpop.f32.mrb[145].mxu0 }
 0x2cd   : > { %v3733_v5 = vrot.slane %v3731_v12, 7  ;;  %v3742_v55 = vshll.u32 %v13141_v21, 16  ;;  %v3482_v9 = vadd.f32 %v18675_v11, %v18639_v42  ;;  %v3483_v58 = vadd.f32 %v18675_v11, %v3446_v43  ;;  %v13588_v28 = vpop.f32.mrb[146].mxu0  ;;  %v4072_v29 = vld [vmem:[#allocation2 + $0x48] sm:$0xf]  ;;  %v21817_v43 = vld [vmem:[#allocation26_spill] sm:$0xff] }
 0x2ce   : > { %v3352_v41 = vadd.f32 %v3320_v32, %v3288_v50  ;;  %v3289_v40 = vadd.f32 %v18649_v8, %v15524_v46  ;;  %v13587_v30 = vadd.f32 %v13586_v4, %v13585_v51  ;;  %v3741_v39 = vrot.slane %v3739_v13, 7  ;;  %v13589_v22 = vpop.f32.mrb[147].mxu0  ;;  %v4120_v60 = vld [vmem:[#allocation2 + $0x48] sm:$0xe] }
 0x2cf   : > { %v18703_v37 = vmul.f32 %v18664_v1, %v3351_v63  ;;  %v3736_v33 = vor.u32 %v3734_v44, %v3733_v5  ;;  %v3737_v10 = vrot.slane %v3733_v5, 4  ;;  %v3514_v26 = vmax.f32 %v3482_v9, 0.0  ;;  %v3322_v4 = vld [vmem:[%s17190_s24 + $0xc0] sm:$0xff] }
 0x2d0   : > { %3384 = vst [vmem:[%s17190_s24 + $0xb0] sm:$0xff] %v3352_v41  ;;  %v4073_v42 = vld [vmem:[#allocation2 + $0x4c] sm:$0xf]  ;;  %v3353_v49 = vadd.f32 %v3321_v15, %v3289_v40  ;;  %v15535_v59 = vadd.f32 %v13587_v30, %v21816_v48  ;;  %v3744_v38 = vor.u32 %v3742_v55, %v3741_v39  ;;  %v3515_v7 = vmax.f32 %v3483_v58, 0.0 }
 0x2d1   : > { %v18707_v52 = vcombine.low %v4072_v29, %v4073_v42  ;;  %v16332_v63 = vld [vmem:[#allocation2 + $0x50] ss:$0 sps:$4 sm:$0x11]   ;;  %v12683_v36 = vcombine.low %v4120_v60, %v4073_v42  ;;  %v3746_v21 = vrot.slane %v3741_v39, 4  ;;  %v3991_v32 = vsel %vm17232_vm7, %v3736_v33, %v3990_v2 }
 0x2d2   : > { %v3453_v12 = vmul.f32 %v18664_v1, %v3352_v41  ;;  %3385 = vst [vmem:[%s17190_s24 + $0xb8] sm:$0xff] %v3353_v49  ;;  %v15536_v50 = vadd.f32 %v15535_v59, %v21817_v43  ;;  %v3745_v20 = vsel %vm17223_vm6, %v3737_v10, %v3744_v38  ;;  %3992 = vst [vmem:[#allocation2 + $0x54] sm:$0xf] %v3991_v32  ;;  %v4601_v44 = vrot.slane %v16332_v63, 1  ;;  %v21818_v10 = vld [vmem:[#allocation36_spill] sm:$0xff]  ;;  %v3323_v43 = vld [vmem:[%s17190_s24 + $0xc8] sm:$0xff] }
 0x2d3   : > { %v18718_v46 = vadd.f32 %v18675_v11, %v18610_v56  ;;  %v4600_v51 = vrot.slane %v12683_v36, 1  ;;  %v4367_v13 = vshrl.u32 %v18707_v52, 16  ;;  %v4369_v15 = vshll.u32 %v18707_v52, 16  ;;  %3993 = vst [vmem:[#allocation2 + $0x58] sm:$0xf] %v3745_v20  ;;  %v13591_v41 = vpop.f32.mrb[148].mxu0 }
 0x2d4   : > { %v4374_v5 = vshll.u32 %v16332_v63, 16  ;;  %v3290_v55 = vadd.f32 %v18649_v8, %v15536_v50  ;;  %v3995_v9 = vsel %vm17242_vm8, %v3746_v21, %v3994_v61  ;;  %v13590_v58 = vadd.f32 %v13589_v22, %v13588_v28  ;;  %v13592_v30 = vpop.f32.mrb[149].mxu0  ;;  %v21819_v63 = vld [vmem:[#allocation24_spill] sm:$0xff] }
 0x2d5   : > { %v18727_v40 = vsel %vm1612_vm9, %v4600_v51, %v4601_v44  ;;  %v4371_v56 = vrot.slane %v4369_v15, 1  ;;  %3996 = vst [vmem:[#allocation2 + $0x5c] sm:$0x1] %v3995_v9  ;;  %v13142_v39 = vpack.c.bf16 %v3514_v26, %v3514_v26  ;;  %v13143_v2 = vpack.c.bf16 %v3515_v7, %v3515_v7  ;;  %v13594_v22 = vpop.f32.mrb[150].mxu0  ;;  %v21820_v7 = vld [vmem:[#allocation31_spill] sm:$0xff] }
 0x2d6   : > { %v18730_v29 = vadd.f32 %v18675_v11, %v3453_v12  ;;  %15026 = vmatmul.mubr.bf16.gmra.mrb[104].mxu1 %v18727_v40  ;;  %v3354_v33 = vadd.f32 %v3322_v4, %v3290_v55  ;;  %v15543_v61 = vadd.f32 %v13590_v58, %v21818_v10  ;;  %v13593_v28 = vadd.f32 %v13592_v30, %v13591_v41  ;;  %v13595_v38 = vpop.f32.mrb[151].mxu0  ;;  %v3997_v51 = vld [vmem:[#allocation2 + $0x60] sm:$0xf]  ;;  %v21821_v58 = vld [vmem:[#allocation29_spill] sm:$0xff] }
 0x2d7   : > { %v4372_v42 = vor.u32 %v4371_v56, %v4367_v13  ;;  %v4376_v60 = vrot.slane %v4374_v5, 1  ;;  %v3748_v48 = vshrl.u32 %v13142_v39, 16  ;;  %v3756_v59 = vshrl.u32 %v13143_v2, 16 }
 0x2d8   : > { %3386 = vst [vmem:[%s17190_s24 + $0xc0] sm:$0xff] %v3354_v33  ;;  %v15544_v26 = vadd.f32 %v15543_v61, %v21819_v63  ;;  %v15531_v36 = vadd.f32 %v13593_v28, %v21820_v7  ;;  %v3751_v21 = vshll.u32 %v13142_v39, 16  ;;  %v3759_v32 = vshll.u32 %v13143_v2, 16  ;;  %v3324_v39 = vld [vmem:[%s17190_s24 + $0xd0] sm:$0xff]  ;;  %v4001_v2 = vld [vmem:[#allocation2 + $0x68] sm:$0x1] }
 0x2d9   : > { %v18738_v12 = vsel %vm1323_vm3, %v4372_v42, %v4376_v60  ;;  %v3750_v50 = vrot.slane %v3748_v48, 7  ;;  %v3758_v20 = vrot.slane %v3756_v59, 7  ;;  %v13596_v44 = vadd.f32 %v13595_v38, %v13594_v22  ;;  %v4074_v4 = vld [vmem:[#allocation2 + $0x54] sm:$0xf] }
 0x2da   : > { %v18742_v13 = vmul.f32 %v18664_v1, %v3353_v49  ;;  %4968 = vmatprep.mubr.bf16.mxu0 %v18738_v12  ;;  %v3455_v15 = vmul.f32 %v18664_v1, %v3354_v33  ;;  %v4075_v5 = vld [vmem:[#allocation2 + $0x58] sm:$0xf]  ;;  %v4121_v55 = vld [vmem:[#allocation2 + $0x54] sm:$0xe]  ;;  %v3291_v9 = vadd.f32 %v18649_v8, %v15544_v26  ;;  %v15532_v41 = vadd.f32 %v15531_v36, %v21821_v58 }
 0x2db   : > { %4969 = vmatmul.mubr.bf16.gmra.mrb[180].mxu0 %v18707_v52  ;;  %v18749_v56 = vcombine.low %v4074_v4, %v4075_v5  ;;  %v12684_v30 = vcombine.low %v4121_v55, %v4075_v5  ;;  %v3753_v49 = vor.u32 %v3751_v21, %v3750_v50  ;;  %v3516_v10 = vmax.f32 %v18598_v0, 0.0  ;;  %v13597_v63 = vpop.f32.mrb[152].mxu0 }
 0x2dc   : > { %v16335_v61 = vld [vmem:[#allocation2 + $0x5c] ss:$0 sps:$4 sm:$0x11]   ;;  %v3355_v33 = vadd.f32 %v3323_v43, %v3291_v9  ;;  %v3292_v28 = vadd.f32 %v18649_v8, %v15532_v41  ;;  %v3761_v22 = vor.u32 %v3759_v32, %v3758_v20  ;;  %v3763_v42 = vrot.slane %v3758_v20, 4  ;;  %v13598_v21 = vpop.f32.mrb[153].mxu0  ;;  %v21822_v20 = vld [vmem:[#allocation33_spill] sm:$0xff] }
 0x2dd   : > { %v4603_v60 = vrot.slane %v12684_v30, 1  ;;  %v4381_v48 = vshll.u32 %v18749_v56, 16  ;;  %v3754_v59 = vrot.slane %v3750_v50, 4  ;;  %v3998_v38 = vsel %vm17232_vm7, %v3753_v49, %v3997_v51  ;;  %v13600_v51 = vpop.f32.mrb[154].mxu0 }
 0x2de   : > { %v4604_v26 = vrot.slane %v16335_v61, 1  ;;  %3387 = vst [vmem:[%s17190_s24 + $0xc8] sm:$0xff] %v3355_v33  ;;  %v4379_v7 = vshrl.u32 %v18749_v56, 16  ;;  %v4386_v0 = vshll.u32 %v16335_v61, 16  ;;  %v3356_v36 = vadd.f32 %v3324_v39, %v3292_v28  ;;  %3999 = vst [vmem:[#allocation2 + $0x60] sm:$0xf] %v3998_v38 }
 0x2df   : > { %v4383_v43 = vrot.slane %v4381_v48, 1  ;;  %v3762_v32 = vsel %vm17223_vm6, %v3754_v59, %v3761_v22  ;;  %v4002_v50 = vsel %vm17242_vm8, %v3763_v42, %v4001_v2  ;;  %v15539_v4 = vadd.f32 %v13596_v44, %v21822_v20  ;;  %v13601_v41 = vpop.f32.mrb[155].mxu0  ;;  %v21823_v39 = vld [vmem:[#allocation30_spill] sm:$0xff]  ;;  %v3325_v61 = vld [vmem:[%s17190_s24 + $0xd8] sm:$0xff]  ;;  %v21824_v28 = vld [vmem:[#allocation23_spill] sm:$0xff] }
 0x2e0   : > { %v18765_v5 = vadd.f32 %v18675_v11, %v3455_v15  ;;  %v18768_v55 = vsel %vm1612_vm9, %v4603_v60, %v4604_v26  ;;  %v4388_v9 = vrot.slane %v4386_v0, 1  ;;  %3388 = vst [vmem:[%s17190_s24 + $0xd0] sm:$0xff] %v3356_v36  ;;  %4000 = vst [vmem:[#allocation2 + $0x64] sm:$0xf] %v3762_v32  ;;  %v13599_v58 = vadd.f32 %v13598_v21, %v13597_v63  ;;  %v4004_v0 = vld [vmem:[#allocation2 + $0x6c] sm:$0xf] }
 0x2e1   : > { %4003 = vst [vmem:[#allocation2 + $0x68] sm:$0x1] %v4002_v50  ;;  %15029 = vmatprep.mubr.bf16.mxu1 %v18768_v55  ;;  %v4384_v30 = vor.u32 %v4383_v43, %v4379_v7  ;;  %v15540_v49 = vadd.f32 %v15539_v4, %v21823_v39  ;;  %v3517_v44 = vmax.f32 %v18718_v46, 0.0  ;;  %v13144_v2 = vpack.c.bf16 %v3516_v10, %v3516_v10  ;;  %v21825_v10 = vld [vmem:[#allocation37_spill] sm:$0xff] }
 0x2e2   : > { %v3457_v15 = vmul.f32 %v18664_v1, %v3356_v36  ;;  %v15551_v22 = vadd.f32 %v13599_v58, %v21824_v28  ;;  %v13602_v42 = vadd.f32 %v13601_v41, %v13600_v51  ;;  %v18779_v60 = vadd.f32 %v18675_v11, %v18685_v24  ;;  %v21826_v36 = vld [vmem:[#allocation20_spill] sm:$0xff]  ;;  %v3326_v50 = vld [vmem:[%s17190_s24 + $0xe0] sm:$0xff] }
 0x2e3   : > { %v18782_v48 = vsel %vm1323_vm3, %v4384_v30, %v4388_v9  ;;  %v3293_v59 = vadd.f32 %v18649_v8, %v15540_v49  ;;  %v13145_v38 = vpack.c.bf16 %v3517_v44, %v3517_v44  ;;  %v3765_v63 = vshrl.u32 %v13144_v2, 16  ;;  %v13603_v24 = vpop.f32.mrb[156].mxu0 }
 0x2e4   : > { %v18786_v46 = vmul.f32 %v18664_v1, %v3355_v33  ;;  %4976 = vmatprep.mubr.bf16.mxu0 %v18782_v48  ;;  %v15552_v26 = vadd.f32 %v15551_v22, %v21825_v10  ;;  %v3768_v7 = vshll.u32 %v13144_v2, 16  ;;  %v15559_v21 = vadd.f32 %v13602_v42, %v21826_v36  ;;  %v13604_v30 = vpop.f32.mrb[157].mxu0 }
 0x2e5   : > { %4977 = vmatmul.mubr.bf16.gmra.mrb[184].mxu0 %v18749_v56  ;;  %v4076_v43 = vld [vmem:[#allocation2 + $0x60] sm:$0xf]  ;;  %v3357_v32 = vadd.f32 %v3325_v61, %v3293_v59  ;;  %v3767_v20 = vrot.slane %v3765_v63, 7  ;;  %v3773_v4 = vshrl.u32 %v13145_v38, 16  ;;  %v3518_v33 = vmax.f32 %v18678_v27, 0.0  ;;  %v13606_v63 = vpop.f32.mrb[158].mxu0 }
 0x2e6   : > { %v4122_v51 = vld [vmem:[#allocation2 + $0x60] sm:$0xe]  ;;  %v3294_v9 = vadd.f32 %v18649_v8, %v15552_v26  ;;  %v3776_v58 = vshll.u32 %v13145_v38, 16  ;;  %v15560_v41 = vadd.f32 %v15559_v21, %v18465_v14  ;;  %v3519_v39 = vmax.f32 %v18779_v60, 0.0  ;;  %v4008_v38 = vld [vmem:[#allocation2 + $0x74] sm:$0x1] }
 0x2e7   : > { %v18798_v49 = vadd.f32 %v18675_v11, %v3457_v15  ;;  %v4077_v44 = vld [vmem:[#allocation2 + $0x64] sm:$0xf]  ;;  %3389 = vst [vmem:[%s17190_s24 + $0xd8] sm:$0xff] %v3357_v32  ;;  %v3770_v2 = vor.u32 %v3768_v7, %v3767_v20  ;;  %v3771_v61 = vrot.slane %v3767_v20, 4  ;;  %v3775_v28 = vrot.slane %v3773_v4, 7  ;;  %v3327_v26 = vld [vmem:[%s17190_s24 + $0xe8] sm:$0xff] }
 0x2e8   : > { %v18801_v22 = vcombine.low %v4076_v43, %v4077_v44  ;;  %v16338_v27 = vld [vmem:[#allocation2 + $0x68] ss:$0 sps:$4 sm:$0x11]   ;;  %v12685_v42 = vcombine.low %v4122_v51, %v4077_v44  ;;  %v3358_v59 = vadd.f32 %v3326_v50, %v3294_v9  ;;  %v3295_v14 = vadd.f32 %v18649_v8, %v15560_v41  ;;  %v13607_v7 = vpop.f32.mrb[159].mxu0 }
 0x2e9   : > { %v3778_v60 = vor.u32 %v3776_v58, %v3775_v28  ;;  %v3780_v10 = vrot.slane %v3775_v28, 4  ;;  %v4005_v15 = vsel %vm17232_vm7, %v3770_v2, %v4004_v0  ;;  %v13605_v36 = vadd.f32 %v13604_v30, %v13603_v24  ;;  %v21827_v30 = vld [vmem:[#allocation22_spill] sm:$0xff] }
 0x2ea   : > { %v4606_v21 = vrot.slane %v12685_v42, 1  ;;  %v4607_v20 = vrot.slane %v16338_v27, 1  ;;  %v4391_v43 = vshrl.u32 %v18801_v22, 16  ;;  %v4393_v4 = vshll.u32 %v18801_v22, 16  ;;  %3390 = vst [vmem:[%s17190_s24 + $0xe0] sm:$0xff] %v3358_v59 }
 0x2eb   : > { %4006 = vst [vmem:[#allocation2 + $0x6c] sm:$0xf] %v4005_v15  ;;  %v4398_v50 = vshll.u32 %v16338_v27, 16  ;;  %v3459_v51 = vmul.f32 %v18664_v1, %v3358_v59  ;;  %v3779_v9 = vsel %vm17223_vm6, %v3771_v61, %v3778_v60  ;;  %v4009_v0 = vsel %vm17242_vm8, %v3780_v10, %v4008_v38  ;;  %v21828_v38 = vld [vmem:[#allocation34_spill] sm:$0xff] }
 0x2ec   : > { %v18816_v24 = vsel %vm1612_vm9, %v4606_v21, %v4607_v20  ;;  %v4395_v58 = vrot.slane %v4393_v4, 1  ;;  %4007 = vst [vmem:[#allocation2 + $0x70] sm:$0xf] %v3779_v9  ;;  %4010 = vst [vmem:[#allocation2 + $0x74] sm:$0x1] %v4009_v0  ;;  %v3359_v41 = vadd.f32 %v3327_v26, %v3295_v14  ;;  %v15547_v44 = vadd.f32 %v13605_v36, %v21827_v30  ;;  %v3328_v26 = vld [vmem:[%s17190_s24 + $0xf0] sm:$0xff] }
 0x2ed   : > { %15030 = vmatmul.mubr.bf16.gmra.mrb[108].mxu1 %v18816_v24  ;;  %v18821_v2 = vmul.f32 %v18664_v1, %v3357_v32  ;;  %v13146_v28 = vpack.c.bf16 %v3518_v33, %v3518_v33  ;;  %v13147_v61 = vpack.c.bf16 %v3519_v39, %v3519_v39  ;;  %v3489_v27 = vadd.f32 %v18675_v11, %v18703_v37  ;;  %v4011_v39 = vld [vmem:[#allocation2 + $0x78] sm:$0xf]  ;;  %v21829_v21 = vld [vmem:[#allocation21_spill] sm:$0xff] }
 0x2ee   : > { %v4396_v42 = vor.u32 %v4395_v58, %v4391_v43  ;;  %v4400_v59 = vrot.slane %v4398_v50, 1  ;;  %3391 = vst [vmem:[%s17190_s24 + $0xe8] sm:$0xff] %v3359_v41  ;;  %v15548_v60 = vadd.f32 %v15547_v44, %v21828_v38  ;;  %v13608_v10 = vadd.f32 %v13607_v7, %v13606_v63 }
 0x2ef   : > { %v18828_v14 = vadd.f32 %v18675_v11, %v3459_v51  ;;  %v18831_v15 = vmul.f32 %v18664_v1, %v3359_v41  ;;  %v3782_v32 = vshrl.u32 %v13146_v28, 16  ;;  %v3790_v36 = vshrl.u32 %v13147_v61, 16  ;;  %v4015_v51 = vld [vmem:[#allocation2 + $0x80] sm:$0x1] }
 0x2f0   : > { %v18835_v33 = vsel %vm1323_vm3, %v4396_v42, %v4400_v59  ;;  %v3296_v37 = vadd.f32 %v18649_v8, %v15548_v60  ;;  %v15555_v20 = vadd.f32 %v13608_v10, %v21829_v21  ;;  %v3520_v43 = vmax.f32 %v18688_v45, 0.0 }
 0x2f1   : > { %4984 = vmatprep.mubr.bf16.mxu0 %v18835_v33  ;;  %v3784_v63 = vrot.slane %v3782_v32, 7  ;;  %v3785_v7 = vshll.u32 %v13146_v28, 16  ;;  %v3792_v4 = vrot.slane %v3790_v36, 7  ;;  %v3793_v50 = vshll.u32 %v13147_v61, 16  ;;  %v3329_v36 = vld [vmem:[%s17190_s24 + $0xf8] sm:$0xff] }
 0x2f2   : > { %4985 = vmatmul.mubr.bf16.gmra.mrb[188].mxu0 %v18801_v22  ;;  %v4078_v9 = vld [vmem:[#allocation2 + $0x6c] sm:$0xf]  ;;  %v3360_v58 = vadd.f32 %v3328_v26, %v3296_v37  ;;  %v15556_v41 = vadd.f32 %v15555_v20, %v18460_v62  ;;  %v3521_v30 = vmax.f32 %v3489_v27, 0.0  ;;  %v13148_v44 = vpack.c.bf16 %v3520_v43, %v3520_v43 }
 0x2f3   : > { %v4123_v0 = vld [vmem:[#allocation2 + $0x6c] sm:$0xe]  ;;  %v4079_v42 = vld [vmem:[#allocation2 + $0x70] sm:$0xf]  ;;  %v3787_v45 = vor.u32 %v3785_v7, %v3784_v63  ;;  %v3788_v59 = vrot.slane %v3784_v63, 4  ;;  %v3795_v38 = vor.u32 %v3793_v50, %v3792_v4  ;;  %v3797_v60 = vrot.slane %v3792_v4, 4 }
 0x2f4   : > { %v18843_v28 = vcombine.low %v4078_v9, %v4079_v42  ;;  %v16342_v61 = vld [vmem:[#allocation2 + $0x74] ss:$0 sps:$4 sm:$0x11]   ;;  %v12686_v10 = vcombine.low %v4123_v0, %v4079_v42  ;;  %3392 = vst [vmem:[%s17190_s24 + $0xf0] sm:$0xff] %v3360_v58  ;;  %v3297_v32 = vadd.f32 %v18649_v8, %v15556_v41  ;;  %v3491_v26 = vadd.f32 %v18675_v11, %v18742_v13 }
 0x2f5   : > { %v3796_v62 = vsel %vm17223_vm6, %v3788_v59, %v3795_v38  ;;  %v4012_v27 = vsel %vm17232_vm7, %v3787_v45, %v4011_v39  ;;  %v4016_v37 = vsel %vm17242_vm8, %v3797_v60, %v4015_v51  ;;  %v13149_v21 = vpack.c.bf16 %v3521_v30, %v3521_v30  ;;  %v4018_v59 = vld [vmem:[#allocation2 + $0x84] sm:$0xf] }
 0x2f6   : > { %v4609_v20 = vrot.slane %v12686_v10, 1  ;;  %v4610_v43 = vrot.slane %v16342_v61, 1  ;;  %v4405_v63 = vshll.u32 %v18843_v28, 16  ;;  %4013 = vst [vmem:[#allocation2 + $0x78] sm:$0xf] %v4012_v27  ;;  %v3493_v8 = vadd.f32 %v18675_v11, %v18786_v46 }
 0x2f7   : > { %4014 = vst [vmem:[#allocation2 + $0x7c] sm:$0xf] %v3796_v62  ;;  %4017 = vst [vmem:[#allocation2 + $0x80] sm:$0x1] %v4016_v37  ;;  %v4410_v13 = vshll.u32 %v16342_v61, 16  ;;  %v18860_v7 = vmul.f32 %v18664_v1, %v3360_v58  ;;  %v18862_v39 = vadd.f32 %v3329_v36, %v3297_v32  ;;  %v3799_v4 = vshrl.u32 %v13148_v44, 16 }
 0x2f8   : > { %v18865_v50 = vsel %vm1612_vm9, %v4609_v20, %v4610_v43  ;;  %v4403_v51 = vshrl.u32 %v18843_v28, 16  ;;  %v4407_v9 = vrot.slane %v4405_v63, 1  ;;  %v3807_v0 = vshrl.u32 %v13149_v21, 16  ;;  %v4022_v32 = vld [vmem:[#allocation2 + $0x8c] sm:$0x1] }
 0x2f9   : > { %15033 = vmatprep.mubr.bf16.mxu1 %v18865_v50  ;;  %v4412_v41 = vrot.slane %v4410_v13, 1  ;;  %3393 = vst [vmem:[%s17190_s24 + $0xf8] sm:$0xff] %v18862_v39  ;;  %v3801_v46 = vrot.slane %v3799_v4, 7  ;;  %v3802_v30 = vshll.u32 %v13148_v44, 16  ;;  %v3810_v42 = vshll.u32 %v13149_v21, 16 }
 0x2fa   : > { %v4408_v58 = vor.u32 %v4407_v9, %v4403_v51  ;;  %v3809_v45 = vrot.slane %v3807_v0, 7  ;;  %v3522_v38 = vmax.f32 %v18730_v29, 0.0  ;;  %v3523_v60 = vmax.f32 %v3491_v26, 0.0 }
 0x2fb   : > { %v3804_v61 = vor.u32 %v3802_v30, %v3801_v46  ;;  %v3805_v10 = vrot.slane %v3801_v46, 4  ;;  %v3524_v36 = vmax.f32 %v18765_v5, 0.0  ;;  %v3525_v62 = vmax.f32 %v3493_v8, 0.0 }
 0x2fc   : > { %v18874_v27 = vsel %vm1323_vm3, %v4408_v58, %v4412_v41  ;;  %v3812_v37 = vor.u32 %v3810_v42, %v3809_v45  ;;  %v3814_v20 = vrot.slane %v3809_v45, 4  ;;  %v13150_v43 = vpack.c.bf16 %v3522_v38, %v3522_v38 }
 0x2fd   : > { %4992 = vmatprep.mubr.bf16.mxu0 %v18874_v27  ;;  %v4080_v44 = vld [vmem:[#allocation2 + $0x78] sm:$0xf]  ;;  %v4019_v29 = vsel %vm17232_vm7, %v3804_v61, %v4018_v59  ;;  %v13151_v26 = vpack.c.bf16 %v3523_v60, %v3523_v60  ;;  %v13152_v63 = vpack.c.bf16 %v3524_v36, %v3524_v36  ;;  %v13153_v13 = vpack.c.bf16 %v3525_v62, %v3525_v62 }
 0x2fe   : > { %v4081_v21 = vld [vmem:[#allocation2 + $0x7c] sm:$0xf]  ;;  %4993 = vmatmul.mubr.bf16.gmra.mrb[192].mxu0 %v18843_v28  ;;  %v4124_v5 = vld [vmem:[#allocation2 + $0x78] sm:$0xe]  ;;  %v3813_v51 = vsel %vm17223_vm6, %v3805_v10, %v3812_v37  ;;  %4020 = vst [vmem:[#allocation2 + $0x84] sm:$0xf] %v4019_v29  ;;  %v4023_v9 = vsel %vm17242_vm8, %v3814_v20, %v4022_v32 }
 0x2ff   : > { %v18880_v8 = vcombine.low %v4080_v44, %v4081_v21  ;;  %v16346_v4 = vld [vmem:[#allocation2 + $0x80] ss:$0 sps:$4 sm:$0x11]   ;;  %v3816_v0 = vshrl.u32 %v13150_v43, 16  ;;  %v12687_v41 = vcombine.low %v4124_v5, %v4081_v21  ;;  %4021 = vst [vmem:[#allocation2 + $0x88] sm:$0xf] %v3813_v51 }
 0x300   : > { %4024 = vst [vmem:[#allocation2 + $0x8c] sm:$0x1] %v4023_v9  ;;  %v3819_v46 = vshll.u32 %v13150_v43, 16  ;;  %v3824_v30 = vshrl.u32 %v13151_v26, 16  ;;  %v3827_v42 = vshll.u32 %v13151_v26, 16  ;;  %v4613_v58 = vrot.slane %v16346_v4, 1 }
 0x301   : > { %21830 = vst [vmem:[#allocation27_spill] sm:$0xff] %v18880_v8  ;;  %v4415_v45 = vshrl.u32 %v18880_v8, 16  ;;  %v4417_v59 = vshll.u32 %v18880_v8, 16  ;;  %v4422_v38 = vshll.u32 %v16346_v4, 16  ;;  %v4612_v60 = vrot.slane %v12687_v41, 1 }
 0x302   : > { %v3818_v61 = vrot.slane %v3816_v0, 7  ;;  %v3826_v10 = vrot.slane %v3824_v30, 7  ;;  %v3833_v36 = vshrl.u32 %v13152_v63, 16  ;;  %v4025_v32 = vld [vmem:[#allocation2 + $0x90] sm:$0xf]  ;;  %v3836_v20 = vshll.u32 %v13152_v63, 16 }
 0x303   : > { %v4419_v62 = vrot.slane %v4417_v59, 1  ;;  %v4424_v37 = vrot.slane %v4422_v38, 1  ;;  %v3841_v44 = vshrl.u32 %v13153_v13, 16  ;;  %v18889_v21 = vsel %vm1612_vm9, %v4612_v60, %v4613_v58  ;;  %v4029_v5 = vld [vmem:[#allocation2 + $0x98] sm:$0x1] }
 0x304   : > { %v3821_v43 = vor.u32 %v3819_v46, %v3818_v61  ;;  %v3822_v29 = vrot.slane %v3818_v61, 4  ;;  %v3829_v26 = vor.u32 %v3827_v42, %v3826_v10  ;;  %15034 = vmatmul.mubr.bf16.gmra.mrb[112].mxu1 %v18889_v21  ;;  %v3831_v4 = vrot.slane %v3826_v10, 4  ;;  %v4032_v41 = vld [vmem:[#allocation2 + $0x9c] sm:$0xf] }
 0x305   : > { %v4420_v51 = vor.u32 %v4419_v62, %v4415_v45  ;;  %v3835_v9 = vrot.slane %v3833_v36, 7  ;;  %v3843_v0 = vrot.slane %v3841_v44, 7  ;;  %v4082_v30 = vld [vmem:[#allocation2 + $0x84] sm:$0xf]  ;;  %v3844_v38 = vshll.u32 %v13153_v13, 16 }
 0x306   : > { %v4125_v59 = vld [vmem:[#allocation2 + $0x84] sm:$0xe]  ;;  %v3830_v63 = vsel %vm17223_vm6, %v3822_v29, %v3829_v26  ;;  %v4026_v58 = vsel %vm17232_vm7, %v3821_v43, %v4025_v32  ;;  %v3495_v46 = vadd.f32 %v18675_v11, %v18821_v2  ;;  %v4083_v45 = vld [vmem:[#allocation2 + $0x88] sm:$0xf]  ;;  %v4030_v60 = vsel %vm17242_vm8, %v3831_v4, %v4029_v5  ;;  %v4036_v44 = vld [vmem:[#allocation2 + $0xa4] sm:$0x1] }
 0x307   : > { %v18899_v42 = vsel %vm1323_vm3, %v4420_v51, %v4424_v37  ;;  %4027 = vst [vmem:[#allocation2 + $0x90] sm:$0xf] %v4026_v58  ;;  %4028 = vst [vmem:[#allocation2 + $0x94] sm:$0xf] %v3830_v63  ;;  %v3838_v61 = vor.u32 %v3836_v20, %v3835_v9  ;;  %v3839_v10 = vrot.slane %v3835_v9, 4  ;;  %v18904_v36 = vcombine.low %v4082_v30, %v4083_v45 }
 0x308   : > { %5000 = vmatprep.mubr.bf16.mxu0 %v18899_v42  ;;  %v16350_v62 = vld [vmem:[#allocation2 + $0x8c] ss:$0 sps:$4 sm:$0x11]   ;;  %v12688_v13 = vcombine.low %v4125_v59, %v4083_v45  ;;  %4031 = vst [vmem:[#allocation2 + $0x98] sm:$0x1] %v4030_v60  ;;  %v3846_v32 = vor.u32 %v3844_v38, %v3843_v0  ;;  %v3848_v2 = vrot.slane %v3843_v0, 4  ;;  %v3497_v20 = vadd.f32 %v18675_v11, %v18831_v15 }
 0x309   : > { %21831 = vst [vmem:[#allocation35_spill] sm:$0xff] %v18904_v36  ;;  %5001 = vmatmul.mubr.bf16.gmra.mrb[196].mxu0 %v18880_v8  ;;  %v4033_v37 = vsel %vm17232_vm7, %v3838_v61, %v4032_v41  ;;  %v3526_v43 = vmax.f32 %v18798_v49, 0.0  ;;  %v3527_v29 = vmax.f32 %v3495_v46, 0.0  ;;  %v4616_v5 = vrot.slane %v16350_v62, 1 }
 0x30a   : > { %v4615_v26 = vrot.slane %v12688_v13, 1  ;;  %v4427_v51 = vshrl.u32 %v18904_v36, 16  ;;  %v4429_v4 = vshll.u32 %v18904_v36, 16  ;;  %4034 = vst [vmem:[#allocation2 + $0x9c] sm:$0xf] %v4033_v37  ;;  %v4434_v9 = vshll.u32 %v16350_v62, 16 }
 0x30b   : > { %v3847_v0 = vsel %vm17223_vm6, %v3839_v10, %v3846_v32  ;;  %v4037_v41 = vsel %vm17242_vm8, %v3848_v2, %v4036_v44  ;;  %v13154_v30 = vpack.c.bf16 %v3526_v43, %v3526_v43  ;;  %v13155_v15 = vpack.c.bf16 %v3527_v29, %v3527_v29 }
 0x30c   : > { %v18919_v49 = vsel %vm1612_vm9, %v4615_v26, %v4616_v5  ;;  %v4431_v59 = vrot.slane %v4429_v4, 1  ;;  %4035 = vst [vmem:[#allocation2 + $0xa0] sm:$0xf] %v3847_v0  ;;  %4038 = vst [vmem:[#allocation2 + $0xa4] sm:$0x1] %v4037_v41  ;;  %v3528_v63 = vmax.f32 %v18828_v14, 0.0  ;;  %v3462_v60 = vmul.f32 %v18664_v1, %v18862_v39 }
 0x30d   : > { %15037 = vmatprep.mubr.bf16.mxu1 %v18919_v49  ;;  %v4436_v58 = vrot.slane %v4434_v9, 1  ;;  %v3850_v38 = vshrl.u32 %v13154_v30, 16  ;;  %v3853_v46 = vshll.u32 %v13154_v30, 16  ;;  %v3529_v45 = vmax.f32 %v3497_v20, 0.0  ;;  %v4039_v4 = vld [vmem:[#allocation2 + $0xa8] sm:$0xf] }
 0x30e   : > { %v4432_v61 = vor.u32 %v4431_v59, %v4427_v51  ;;  %v4084_v10 = vld [vmem:[#allocation2 + $0x90] sm:$0xf]  ;;  %v4085_v62 = vld [vmem:[#allocation2 + $0x94] sm:$0xf]  ;;  %v13156_v32 = vpack.c.bf16 %v3528_v63, %v3528_v63  ;;  %v18927_v2 = vadd.f32 %v18675_v11, %v18860_v7  ;;  %v3858_v20 = vshrl.u32 %v13155_v15, 16 }
 0x30f   : > { %v4126_v13 = vld [vmem:[#allocation2 + $0x90] sm:$0xe]  ;;  %v18929_v44 = vcombine.low %v4084_v10, %v4085_v62  ;;  %v16354_v14 = vld [vmem:[#allocation2 + $0x98] ss:$0 sps:$4 sm:$0x11]   ;;  %v3852_v43 = vrot.slane %v3850_v38, 7  ;;  %v3499_v63 = vadd.f32 %v18675_v11, %v3462_v60  ;;  %v13157_v10 = vpack.c.bf16 %v3529_v45, %v3529_v45 }
 0x310   : > { %v12689_v37 = vcombine.low %v4126_v13, %v4085_v62  ;;  %v18932_v29 = vsel %vm1323_vm3, %v4432_v61, %v4436_v58  ;;  %v3861_v26 = vshll.u32 %v13155_v15, 16  ;;  %v3867_v1 = vshrl.u32 %v13156_v32, 16 }
 0x311   : > { %21832 = vst [vmem:[#allocation26_spill] sm:$0xff] %v18932_v29  ;;  %5008 = vmatprep.mubr.bf16.mxu0 %v18932_v29  ;;  %v4619_v5 = vrot.slane %v16354_v14, 1  ;;  %v4439_v51 = vshrl.u32 %v18929_v44, 16  ;;  %v4441_v7 = vshll.u32 %v18929_v44, 16  ;;  %v4446_v9 = vshll.u32 %v16354_v14, 16 }
 0x312   : > { %v4618_v39 = vrot.slane %v12689_v37, 1  ;;  %5009 = vmatmul.mubr.bf16.gmra.mrb[200].mxu0 %v18904_v36  ;;  %v4086_v0 = vld [vmem:[#allocation2 + $0x9c] sm:$0xf]  ;;  %v3855_v30 = vor.u32 %v3853_v46, %v3852_v43  ;;  %v3860_v59 = vrot.slane %v3858_v20, 7  ;;  %v3856_v61 = vrot.slane %v3852_v43, 4 }
 0x313   : > { %v4127_v41 = vld [vmem:[#allocation2 + $0x9c] sm:$0xe]  ;;  %v4443_v58 = vrot.slane %v4441_v7, 1  ;;  %v4087_v38 = vld [vmem:[#allocation2 + $0xa0] sm:$0xf]  ;;  %v3869_v29 = vrot.slane %v3867_v1, 7 }
 0x314   : > { %v18940_v15 = vsel %vm1612_vm9, %v4618_v39, %v4619_v5  ;;  %v18943_v62 = vcombine.low %v4086_v0, %v4087_v38  ;;  %v16358_v13 = vld [vmem:[#allocation2 + $0xa4] ss:$0 sps:$4 sm:$0x11]   ;;  %v12690_v37 = vcombine.low %v4127_v41, %v4087_v38  ;;  %v3863_v14 = vor.u32 %v3861_v26, %v3860_v59  ;;  %v4043_v36 = vld [vmem:[#allocation2 + $0xb0] sm:$0x1] }
 0x315   : > { %15038 = vmatmul.mubr.bf16.gmra.mrb[116].mxu1 %v18940_v15  ;;  %v4444_v46 = vor.u32 %v4443_v58, %v4439_v51  ;;  %v4448_v20 = vrot.slane %v4446_v9, 1  ;;  %v3865_v8 = vrot.slane %v3860_v59, 4  ;;  %v4040_v11 = vsel %vm17232_vm7, %v3855_v30, %v4039_v4  ;;  %v4046_v51 = vld [vmem:[#allocation2 + $0xb4] sm:$0xf] }
 0x316   : > { %v4621_v60 = vrot.slane %v12690_v37, 1  ;;  %v4622_v39 = vrot.slane %v16358_v13, 1  ;;  %v4453_v43 = vshll.u32 %v18943_v62, 16  ;;  %4041 = vst [vmem:[#allocation2 + $0xa8] sm:$0xf] %v4040_v11  ;;  %v3870_v45 = vshll.u32 %v13156_v32, 16 }
 0x317   : > { %v18949_v5 = vsel %vm1323_vm3, %v4444_v46, %v4448_v20  ;;  %v4458_v7 = vshll.u32 %v16358_v13, 16  ;;  %v3864_v26 = vsel %vm17223_vm6, %v3856_v61, %v3863_v14  ;;  %v4044_v1 = vsel %vm17242_vm8, %v3865_v8, %v4043_v36  ;;  %v4050_v14 = vld [vmem:[#allocation2 + $0xbc] sm:$0x1] }
 0x318   : > { %5016 = vmatprep.mubr.bf16.mxu0 %v18949_v5  ;;  %v18957_v4 = vsel %vm1612_vm9, %v4621_v60, %v4622_v39  ;;  %v4451_v9 = vshrl.u32 %v18943_v62, 16  ;;  %v4455_v0 = vrot.slane %v4453_v43, 1  ;;  %4042 = vst [vmem:[#allocation2 + $0xac] sm:$0xf] %v3864_v26  ;;  %4045 = vst [vmem:[#allocation2 + $0xb0] sm:$0x1] %v4044_v1  ;;  %v3872_v32 = vor.u32 %v3870_v45, %v3869_v29 }
 0x319   : > { %15041 = vmatprep.mubr.bf16.mxu1 %v18957_v4  ;;  %v3875_v41 = vshrl.u32 %v13157_v10, 16  ;;  %v3530_v30 = vmax.f32 %v18927_v2, 0.0  ;;  %v4460_v36 = vrot.slane %v4458_v7, 1  ;;  %v3531_v58 = vmax.f32 %v3499_v63, 0.0 }
 0x31a   : > { %5017 = vmatmul.mubr.bf16.gmra.mrb[204].mxu0 %v18929_v44  ;;  %v4456_v8 = vor.u32 %v4455_v0, %v4451_v9  ;;  %v4047_v59 = vsel %vm17232_vm7, %v3872_v32, %v4046_v51  ;;  %v3878_v61 = vshll.u32 %v13157_v10, 16  ;;  %v3873_v2 = vrot.slane %v3869_v29, 4  ;;  %v4053_v32 = vld [vmem:[#allocation2 + $0xc0] sm:$0xf] }
 0x31b   : > { %v3877_v38 = vrot.slane %v3875_v41, 7  ;;  %4048 = vst [vmem:[#allocation2 + $0xb4] sm:$0xf] %v4047_v59  ;;  %v13158_v13 = vpack.c.bf16 %v3530_v30, %v3530_v30  ;;  %v13159_v46 = vpack.c.bf16 %v3531_v58, %v3531_v58 }
 0x31c   : > { %v18966_v37 = vsel %vm1323_vm3, %v4456_v8, %v4460_v36 }
 0x31d   : > { %5024 = vmatprep.mubr.bf16.mxu0 %v18966_v37  ;;  %v3880_v20 = vor.u32 %v3878_v61, %v3877_v38  ;;  %v3882_v11 = vrot.slane %v3877_v38, 4  ;;  %v3884_v60 = vshrl.u32 %v13158_v13, 16  ;;  %v4088_v39 = vld [vmem:[#allocation2 + $0xa8] sm:$0xf]  ;;  %v3892_v45 = vshrl.u32 %v13159_v46, 16 }
 0x31e   : > { %v4128_v43 = vld [vmem:[#allocation2 + $0xa8] sm:$0xe]  ;;  %v3887_v1 = vshll.u32 %v13158_v13, 16  ;;  %v3895_v30 = vshll.u32 %v13159_v46, 16  ;;  %v4057_v38 = vld [vmem:[#allocation2 + $0xc8] sm:$0x1] }
 0x31f   : > { %v4089_v7 = vld [vmem:[#allocation2 + $0xac] sm:$0xf]  ;;  %v3881_v63 = vsel %vm17223_vm6, %v3873_v2, %v3880_v20  ;;  %v4051_v10 = vsel %vm17242_vm8, %v3882_v11, %v4050_v14  ;;  %v3886_v26 = vrot.slane %v3884_v60, 7  ;;  %v16364_v9 = vld [vmem:[#allocation2 + $0xb0] ss:$0 sps:$4 sm:$0x11]  }
 0x320   : > { %v18973_v51 = vcombine.low %v4088_v39, %v4089_v7  ;;  %v12691_v0 = vcombine.low %v4128_v43, %v4089_v7  ;;  %4049 = vst [vmem:[#allocation2 + $0xb8] sm:$0xf] %v3881_v63  ;;  %4052 = vst [vmem:[#allocation2 + $0xbc] sm:$0x1] %v4051_v10  ;;  %v3894_v29 = vrot.slane %v3892_v45, 7  ;;  %v4625_v36 = vrot.slane %v16364_v9, 1 }
 0x321   : > { %v3889_v41 = vor.u32 %v3887_v1, %v3886_v26  ;;  %v3890_v58 = vrot.slane %v3886_v26, 4  ;;  %v4470_v61 = vshll.u32 %v16364_v9, 16  ;;  %v4061_v60 = vld [vmem:[#allocation2 + $0x4] sm:$0xf]  ;;  %v4114_v39 = vld [vmem:[#allocation2] sm:$0xe] }
 0x322   : > { %5025 = vmatmul.mubr.bf16.gmra.mrb[208].mxu0 %v18943_v62  ;;  %v4624_v8 = vrot.slane %v12691_v0, 1  ;;  %v4465_v59 = vshll.u32 %v18973_v51, 16  ;;  %v3897_v13 = vor.u32 %v3895_v30, %v3894_v29  ;;  %v3899_v14 = vrot.slane %v3894_v29, 4  ;;  %v4060_v7 = vld [vmem:[#allocation2] sm:$0xf] }
 0x323   : > { %v4054_v2 = vsel %vm17232_vm7, %v3889_v41, %v4053_v32  ;;  %v4463_v11 = vshrl.u32 %v18973_v51, 16  ;;  %v4472_v10 = vrot.slane %v4470_v61, 1  ;;  %v4090_v26 = vld [vmem:[#allocation2 + $0xb4] sm:$0xf]  ;;  %v12677_v29 = vcombine.low %v4114_v39, %v4061_v60 }
 0x324   : > { %v18980_v20 = vsel %vm1612_vm9, %v4624_v8, %v4625_v36  ;;  %v4467_v46 = vrot.slane %v4465_v59, 1  ;;  %4055 = vst [vmem:[#allocation2 + $0xc0] sm:$0xf] %v4054_v2  ;;  %v3898_v43 = vsel %vm17223_vm6, %v3890_v58, %v3897_v13  ;;  %v4058_v45 = vsel %vm17242_vm8, %v3899_v14, %v4057_v38  ;;  %v16387_v1 = vld [vmem:[#allocation2 + $0x8] ss:$0 sps:$4 sm:$0x11]  }
 0x325   : > { %15042 = vmatmul.mubr.bf16.gmra.mrb[120].mxu1 %v18980_v20  ;;  %4056 = vst [vmem:[#allocation2 + $0xc4] sm:$0xf] %v3898_v43  ;;  %4059 = vst [vmem:[#allocation2 + $0xc8] sm:$0x1] %v4058_v45  ;;  %v4129_v0 = vld [vmem:[#allocation2 + $0xb4] sm:$0xe]  ;;  %v12641_v36 = vcombine.low %v4060_v7, %v4061_v60 }
 0x326   : > { %v4468_v63 = vor.u32 %v4467_v46, %v4463_v11  ;;  %v4582_v13 = vrot.slane %v12677_v29, 1  ;;  %v4583_v14 = vrot.slane %v16387_v1, 1  ;;  %v4302_v29 = vshll.u32 %v16387_v1, 16 }
 0x327   : > { %v4091_v9 = vld [vmem:[#allocation2 + $0xb8] sm:$0xf]  ;;  %v16372_v30 = vld [vmem:[#allocation2 + $0xbc] ss:$0 sps:$4 sm:$0x11]   ;;  %v4297_v43 = vshll.u32 %v12641_v36, 16 }
 0x328   : > { %v18989_v32 = vsel %vm1323_vm3, %v4468_v63, %v4472_v10  ;;  %v18991_v41 = vcombine.low %v4090_v26, %v4091_v9  ;;  %v12692_v8 = vcombine.low %v4129_v0, %v4091_v9  ;;  %v4628_v58 = vrot.slane %v16372_v30, 1 }
 0x329   : > { %5032 = vmatprep.mubr.bf16.mxu0 %v18989_v32  ;;  %v4482_v61 = vshll.u32 %v16372_v30, 16  ;;  %v4295_v0 = vshrl.u32 %v12641_v36, 16 }
 0x32a   : > { %5033 = vmatmul.mubr.bf16.gmra.mrb[212].mxu0 %v18973_v51  ;;  %v4627_v59 = vrot.slane %v12692_v8, 1  ;;  %v4477_v38 = vshll.u32 %v18991_v41, 16  ;;  %v4475_v11 = vshrl.u32 %v18991_v41, 16 }
 0x32b   : > { %v4092_v39 = vld [vmem:[#allocation2 + $0xc0] sm:$0xf]  ;;  %v4484_v63 = vrot.slane %v4482_v61, 1 }
 0x32c   : > { %v18997_v2 = vsel %vm1612_vm9, %v4627_v59, %v4628_v58  ;;  %v4479_v46 = vrot.slane %v4477_v38, 1  ;;  %v4093_v60 = vld [vmem:[#allocation2 + $0xc4] sm:$0xf]  ;;  %v4130_v45 = vld [vmem:[#allocation2 + $0xc0] sm:$0xe]  ;;  %v4299_v58 = vrot.slane %v4297_v43, 1 }
 0x32d   : > { %15045 = vmatprep.mubr.bf16.mxu1 %v18997_v2  ;;  %v19001_v10 = vcombine.low %v4092_v39, %v4093_v60  ;;  %v16380_v26 = vld [vmem:[#allocation2 + $0xc8] ss:$0 sps:$4 sm:$0x11]   ;;  %v12693_v9 = vcombine.low %v4130_v45, %v4093_v60  ;;  %v4304_v43 = vrot.slane %v4302_v29, 1  ;;  %v16397_v29 = vld [vmem:[#allocation9 + $0x418] sm:$0xff]  }
 0x32e   : > { %v4480_v7 = vor.u32 %v4479_v46, %v4475_v11  ;;  %v4631_v59 = vrot.slane %v16380_v26, 1  ;;  %v4494_v6 = vshll.u32 %v16380_v26, 16  ;;  %v4584_v11 = vsel %vm1612_vm9, %v4582_v13, %v4583_v14  ;;  %v16390_v13 = vld [vmem:[#allocation9 + $0x3c0] sm:$0xff]  }
 0x32f   : > { %v4630_v8 = vrot.slane %v12693_v9, 1  ;;  %v4489_v38 = vshll.u32 %v19001_v10, 16  ;;  %v4487_v1 = vshrl.u32 %v19001_v10, 16  ;;  %v4300_v39 = vor.u32 %v4299_v58, %v4295_v0  ;;  %v21833_v26 = vld [vmem:[#allocation28_spill] sm:$0xff]  ;;  %v16394_v9 = vld [vmem:[#allocation9 + $0x3c8] sm:$0xff]   ;;  %v16396_v0 = vld [vmem:[#allocation9 + $0x3d0] sm:$0xff]  }
 0x330   : > { %v19004_v30 = vsel %vm1323_vm3, %v4480_v7, %v4484_v63  ;;  %v4496_v45 = vrot.slane %v4494_v6, 1  ;;  %v16393_v63 = vld [vmem:[#allocation9 + $0x408] sm:$0xff]   ;;  %v16395_v6 = vld [vmem:[#allocation9 + $0x410] sm:$0xff]   ;;  %v16399_v58 = vld [vmem:[#allocation9 + $0x420] sm:$0xff]  }
 0x331   : > { %5040 = vmatprep.mubr.bf16.mxu0 %v19004_v30  ;;  %v19011_v61 = vsel %vm1612_vm9, %v4630_v8, %v4631_v59  ;;  %v4491_v46 = vrot.slane %v4489_v38, 1  ;;  %v4305_v14 = vsel %vm1323_vm3, %v4300_v39, %v4304_v43  ;;  %v21834_v8 = vld [vmem:[#allocation32_spill] sm:$0xff]  ;;  %v16404_v39 = vld [vmem:[#allocation9 + $0x3f0] sm:$0xff]  }
 0x332   : > { %5041 = vmatmul.mubr.bf16.gmra.mrb[216].mxu0 %v18991_v41  ;;  %15046 = vmatmul.mubr.bf16.gmra.mrb[124].mxu1 %v19011_v61  ;;  %v16398_v59 = vld [vmem:[#allocation9 + $0x3d8] sm:$0xff]   ;;  %v16400_v38 = vld [vmem:[#allocation9 + $0x3e0] sm:$0xff]  }
 0x333   : > { %15065 = vmatprep.mubr.bf16.mxu1 %v4584_v11  ;;  %v4492_v60 = vor.u32 %v4491_v46, %v4487_v1  ;;  %v16401_v11 = vld [vmem:[#allocation9 + $0x428] sm:$0xff]   ;;  %v16403_v46 = vld [vmem:[#allocation9 + $0x430] sm:$0xff]   ;;  %v16405_v43 = vld [vmem:[#allocation9 + $0x438] sm:$0xff]  }
 0x334   : > { %v21835_v1 = vld [vmem:[#allocation25_spill] sm:$0xff] }
 0x335   : > { %v19016_v7 = vsel %vm1323_vm3, %v4492_v60, %v4496_v45  ;;  %v16406_v60 = vld [vmem:[#allocation9 + $0x3f8] sm:$0xff]   ;;  %v16407_v45 = vld [vmem:[#allocation9 + $0x440] sm:$0xff]  }
 0x336   : > { %5048 = vmatprep.mubr.bf16.mxu0 %v19016_v7 }
 0x33a   : > { %5049 = vmatmul.mubr.bf16.gmra.mrb[220].mxu0 %v19001_v10  ;;  %15066 = vmatmul.mubr.bf16.vlgmr.msra.gmra.mrb[96].mxu1 %v21833_v26 }
 0x33b   : > { %5394 = vmatprep.mubr.bf16.mxu0 %v4305_v14  ;;  %13906 = vmatpush3.bf16.msra.mxu1 %v16390_v13 }
 0x33c   : > { %15069 = vmatprep.mubr.bf16.mxu1 %v18463_v25  ;;  %13907 = vmatprep.subr.bf16.mxu1 %v16393_v63 }
 0x33f   : > { %13908 = vmatpush3.bf16.msra.mxu1 %v16394_v9 }
 0x340   : > { %13909 = vmatprep.subr.bf16.mxu1 %v16395_v6 }
 0x342   : > { %5395 = vmatmul.mubr.bf16.vlgmr.msra.gmra.mrb[224].mxu0 %v12641_v36  ;;  %15070 = vmatmul.mubr.bf16.gmra.mrb[100].mxu1 %v18546_v31  ;;  %v16402_v36 = vld [vmem:[#allocation9 + $0x3e8] sm:$0xff]  }
 0x343   : > { %5402 = vmatprep.mubr.bf16.mxu0 %v21834_v8  ;;  %15073 = vmatprep.mubr.bf16.mxu1 %v18606_v57 }
 0x344   : > { %13910 = vmatpush3.bf16.msra.mxu1 %v16396_v0  ;;  %v16408_v0 = vld [vmem:[#allocation9 + $0x448] sm:$0xff]  }
 0x345   : > { %13911 = vmatprep.subr.bf16.mxu1 %v16397_v29 }
 0x348   : > { %13912 = vmatpush3.bf16.msra.mxu1 %v16398_v59 }
 0x349   : > { %13913 = vmatprep.subr.bf16.mxu1 %v16399_v58 }
 0x34a   : > { %5403 = vmatmul.mubr.bf16.gmra.mrb[228].mxu0 %v21835_v1  ;;  %15074 = vmatmul.mubr.bf16.gmra.mrb[104].mxu1 %v18653_v16  ;;  %v16410_v1 = vld [vmem:[#allocation9 + $0x458] sm:$0xff]  }
 0x34b   : > { %5410 = vmatprep.mubr.bf16.mxu0 %v18483_v18  ;;  %15077 = vmatprep.mubr.bf16.mxu1 %v18727_v40 }
 0x34c   : > { %13914 = vmatpush3.bf16.msra.mxu1 %v16400_v38 }
 0x34d   : > { %13915 = vmatprep.subr.bf16.mxu1 %v16401_v11 }
 0x350   : > { %13916 = vmatpush3.bf16.msra.mxu1 %v16402_v36 }
 0x351   : > { %13917 = vmatprep.subr.bf16.mxu1 %v16403_v46 }
 0x352   : > { %5411 = vmatmul.mubr.bf16.gmra.mrb[232].mxu0 %v18431_v54  ;;  %15078 = vmatmul.mubr.bf16.gmra.mrb[108].mxu1 %v18768_v55 }
 0x353   : > { %5418 = vmatprep.mubr.bf16.mxu0 %v18571_v23  ;;  %15081 = vmatprep.mubr.bf16.mxu1 %v18816_v24 }
 0x354   : > { %13918 = vmatpush3.bf16.msra.mxu1 %v16404_v39  ;;  %v16413_v39 = vld [vmem:[#allocation9 + $0x470] sm:$0xff]  }
 0x355   : > { %13919 = vmatprep.subr.bf16.mxu1 %v16405_v43 }
 0x358   : > { %13920 = vmatpush3.bf16.msra.mxu1 %v16406_v60 }
 0x359   : > { %15097 = vmatprep.subr.bf16.mxu1 %v16407_v45 }
 0x35a   : > { %5419 = vmatmul.mubr.bf16.gmra.mrb[236].mxu0 %v18524_v34  ;;  %15082 = vmatmul.mubr.bf16.gmra.mrb[112].mxu1 %v18865_v50 }
 0x35b   : > { %5426 = vmatprep.mubr.bf16.mxu0 %v18622_v19  ;;  %15085 = vmatprep.mubr.bf16.mxu1 %v18889_v21 }
 0x362   : > { %5427 = vmatmul.mubr.bf16.gmra.mrb[240].mxu0 %v18582_v35  ;;  %15086 = vmatmul.mubr.bf16.gmra.mrb[116].mxu1 %v18919_v49 }
 0x363   : > { %5434 = vmatprep.mubr.bf16.mxu0 %v18671_v3  ;;  %15089 = vmatprep.mubr.bf16.mxu1 %v18940_v15 }
 0x36a   : > { %5435 = vmatmul.mubr.bf16.gmra.mrb[244].mxu0 %v18631_v17  ;;  %15090 = vmatmul.mubr.bf16.gmra.mrb[120].mxu1 %v18957_v4 }
 0x36b   : > { %5442 = vmatprep.mubr.bf16.mxu0 %v18738_v12  ;;  %15093 = vmatprep.mubr.bf16.mxu1 %v18980_v20 }
 0x36f   : > { %v13649_v13 = vpop.f32.mrb[160].mxu0 }
 0x370   : > { %v13650_v14 = vpop.f32.mrb[161].mxu0 }
 0x371   : > { %v19049_v63 = vadd.f32 %v13650_v14, %v13649_v13  ;;  %v13652_v26 = vpop.f32.mrb[162].mxu0  ;;  %v21836_v13 = vld [vmem:[#allocation27_spill] sm:$0xff]  ;;  %v21837_v14 = vld [vmem:[#allocation26_spill] sm:$0xff] }
 0x372   : > { %5443 = vmatmul.mubr.bf16.gmra.mrb[248].mxu0 %v18707_v52  ;;  %15094 = vmatmul.mubr.bf16.gmra.mrb[124].mxu1 %v18997_v2  ;;  %v13653_v9 = vpop.f32.mrb[163].mxu0 }
 0x373   : > { %5450 = vmatprep.mubr.bf16.mxu0 %v18782_v48  ;;  %5909 = vmatprep.mubr.bf16.mxu1 %v18483_v18  ;;  %v19052_v6 = vadd.f32 %v13653_v9, %v13652_v26  ;;  %v16409_v18 = vld [vmem:[#allocation9 + $0x450] sm:$0xff]  }
 0x377   : > { %v13655_v29 = vpop.f32.mrb[164].mxu0 }
 0x378   : > { %v13656_v8 = vpop.f32.mrb[165].mxu0 }
 0x379   : > { %v19057_v59 = vadd.f32 %v13656_v8, %v13655_v29  ;;  %v13658_v58 = vpop.f32.mrb[166].mxu0  ;;  %v21838_v8 = vld [vmem:[#allocation35_spill] sm:$0xff] }
 0x37a   : > { %5451 = vmatmul.mubr.bf16.gmra.mrb[252].mxu0 %v18749_v56  ;;  %5910 = vmatmul.mubr.bf16.vlgmr.msra.gmra.mrb[128].mxu1 %v18431_v54  ;;  %v13659_v38 = vpop.f32.mrb[167].mxu0  ;;  %v16411_v54 = vld [vmem:[#allocation9 + $0x460] sm:$0xff]  }
 0x37b   : > { %5458 = vmatprep.mubr.bf16.mxu0 %v18835_v33  ;;  %15098 = vmatpush3.bf16.msra.mxu1 %v16407_v45  ;;  %v19060_v11 = vadd.f32 %v13659_v38, %v13658_v58  ;;  %v16414_v45 = vld [vmem:[#allocation9 + $0x478] sm:$0xff]  }
 0x37c   : > { %5917 = vmatprep.mubr.bf16.mxu1 %v18571_v23  ;;  %15099 = vmatprep.subr.bf16.mxu1 %v16408_v0  ;;  %v16412_v23 = vld [vmem:[#allocation9 + $0x468] sm:$0xff]  }
 0x37f   : > { %15100 = vmatpush3.bf16.msra.mxu1 %v16408_v0 }
 0x380   : > { %15101 = vmatprep.subr.bf16.mxu1 %v16409_v18 }
 0x382   : > { %5459 = vmatmul.mubr.bf16.gmra.mrb[0].mxu0 %v18801_v22  ;;  %5918 = vmatmul.mubr.bf16.gmra.mrb[132].mxu1 %v18524_v34 }
 0x383   : > { %5466 = vmatprep.mubr.bf16.mxu0 %v18874_v27  ;;  %5925 = vmatprep.mubr.bf16.mxu1 %v18622_v19 }
 0x384   : > { %15102 = vmatpush3.bf16.msra.mxu1 %v16409_v18 }
 0x385   : > { %15103 = vmatprep.subr.bf16.mxu1 %v16410_v1 }
 0x388   : > { %15104 = vmatpush3.bf16.msra.mxu1 %v16410_v1 }
 0x389   : > { %15105 = vmatprep.subr.bf16.mxu1 %v16411_v54 }
 0x38a   : > { %5467 = vmatmul.mubr.bf16.gmra.mrb[4].mxu0 %v18843_v28  ;;  %5926 = vmatmul.mubr.bf16.gmra.mrb[136].mxu1 %v18582_v35  ;;  %v13661_v36 = vpop.f32.mrb[168].mxu0 }
 0x38b   : > { %5474 = vmatprep.mubr.bf16.mxu0 %v18899_v42  ;;  %5933 = vmatprep.mubr.bf16.mxu1 %v18671_v3  ;;  %v13662_v46 = vpop.f32.mrb[169].mxu0 }
 0x38c   : > { %15106 = vmatpush3.bf16.msra.mxu1 %v16411_v54  ;;  %v19070_v34 = vadd.f32 %v13662_v46, %v13661_v36  ;;  %v13664_v19 = vpop.f32.mrb[170].mxu0 }
 0x38d   : > { %15107 = vmatprep.subr.bf16.mxu1 %v16412_v23  ;;  %v13665_v43 = vpop.f32.mrb[171].mxu0 }
 0x38e   : > { %v19072_v60 = vadd.f32 %v13665_v43, %v13664_v19 }
 0x390   : > { %15108 = vmatpush3.bf16.msra.mxu1 %v16412_v23 }
 0x391   : > { %15109 = vmatprep.subr.bf16.mxu1 %v16413_v39 }
 0x392   : > { %5475 = vmatmul.mubr.bf16.gmra.mrb[8].mxu0 %v21836_v13  ;;  %5934 = vmatmul.mubr.bf16.gmra.mrb[140].mxu1 %v18631_v17 }
 0x393   : > { %5482 = vmatprep.mubr.bf16.mxu0 %v21837_v14  ;;  %5941 = vmatprep.mubr.bf16.mxu1 %v18738_v12 }
 0x394   : > { %15110 = vmatpush3.bf16.msra.mxu1 %v16413_v39  ;;  %v13667_v35 = vpop.f32.mrb[172].mxu0 }
 0x395   : > { %15111 = vmatprep.subr.bf16.mxu1 %v16414_v45  ;;  %v13668_v3 = vpop.f32.mrb[173].mxu0 }
 0x396   : > { %v19078_v26 = vadd.f32 %v13668_v3, %v13667_v35  ;;  %v13670_v9 = vpop.f32.mrb[174].mxu0 }
 0x397   : > { %v13671_v0 = vpop.f32.mrb[175].mxu0 }
 0x398   : > { %15112 = vmatpush3.bf16.msra.mxu1 %v16414_v45  ;;  %v19080_v29 = vadd.f32 %v13671_v0, %v13670_v9 }
 0x39a   : > { %5483 = vmatmul.mubr.bf16.gmra.mrb[12].mxu0 %v21838_v8  ;;  %5942 = vmatmul.mubr.bf16.gmra.mrb[144].mxu1 %v18707_v52 }
 0x39b   : > { %5490 = vmatprep.mubr.bf16.mxu0 %v18949_v5  ;;  %5949 = vmatprep.mubr.bf16.mxu1 %v18782_v48 }
 0x39e   : > { %v13673_v17 = vpop.f32.mrb[176].mxu0 }
 0x39f   : > { %v13674_v12 = vpop.f32.mrb[177].mxu0 }
 0x3a0   : > { %v19086_v58 = vadd.f32 %v13674_v12, %v13673_v17  ;;  %v13676_v38 = vpop.f32.mrb[178].mxu0  ;;  %v4094_v17 = vld [vmem:[#allocation2 + $0xcc] sm:$0xf]  ;;  %v19127_v12 = vld [vmem:[#allocation2 + $0xd0] sm:$0xf] }
 0x3a1   : > { %v13677_v18 = vpop.f32.mrb[179].mxu0 }
 0x3a2   : > { %5491 = vmatmul.mubr.bf16.gmra.mrb[16].mxu0 %v18929_v44  ;;  %5950 = vmatmul.mubr.bf16.gmra.mrb[148].mxu1 %v18749_v56  ;;  %v19091_v1 = vadd.f32 %v13677_v18, %v13676_v38  ;;  %v12658_v38 = vcombine.low %v4094_v17, %v19127_v12 }
 0x3a3   : > { %5498 = vmatprep.mubr.bf16.mxu0 %v18966_v37  ;;  %5957 = vmatprep.mubr.bf16.mxu1 %v18835_v33 }
 0x3a4   : > { %v4501_v18 = vshll.u32 %v12658_v38, 16 }
 0x3aa   : > { %5499 = vmatmul.mubr.bf16.gmra.mrb[20].mxu0 %v18943_v62  ;;  %5958 = vmatmul.mubr.bf16.gmra.mrb[152].mxu1 %v18801_v22 }
 0x3ab   : > { %5506 = vmatprep.mubr.bf16.mxu0 %v18989_v32  ;;  %5965 = vmatprep.mubr.bf16.mxu1 %v18874_v27 }
 0x3ae   : > { %v13679_v52 = vpop.f32.mrb[180].mxu0 }
 0x3af   : > { %v13680_v48 = vpop.f32.mrb[181].mxu0 }
 0x3b0   : > { %v19098_v54 = vadd.f32 %v13680_v48, %v13679_v52  ;;  %v13682_v23 = vpop.f32.mrb[182].mxu0 }
 0x3b1   : > { %v13683_v56 = vpop.f32.mrb[183].mxu0 }
 0x3b2   : > { %5507 = vmatmul.mubr.bf16.gmra.mrb[24].mxu0 %v18973_v51  ;;  %5966 = vmatmul.mubr.bf16.gmra.mrb[156].mxu1 %v18843_v28  ;;  %v19103_v33 = vadd.f32 %v13683_v56, %v13682_v23  ;;  %v4499_v56 = vshrl.u32 %v12658_v38, 16 }
 0x3b3   : > { %5514 = vmatprep.mubr.bf16.mxu0 %v19004_v30  ;;  %5973 = vmatprep.mubr.bf16.mxu1 %v18899_v42 }
 0x3b8   : > { %v13685_v36 = vpop.f32.mrb[184].mxu0 }
 0x3b9   : > { %v13686_v22 = vpop.f32.mrb[185].mxu0 }
 0x3ba   : > { %5515 = vmatmul.mubr.bf16.gmra.mrb[28].mxu0 %v18991_v41  ;;  %5974 = vmatmul.mubr.bf16.gmra.mrb[160].mxu1 %v21836_v13  ;;  %v19108_v27 = vadd.f32 %v13686_v22, %v13685_v36  ;;  %v13688_v46 = vpop.f32.mrb[186].mxu0  ;;  %v4503_v36 = vrot.slane %v4501_v18, 1 }
 0x3bb   : > { %5981 = vmatprep.mubr.bf16.mxu1 %v21837_v14  ;;  %v13689_v19 = vpop.f32.mrb[187].mxu0 }
 0x3bc   : > { %v19111_v39 = vadd.f32 %v13689_v19, %v13688_v46 }
 0x3c2   : > { %5982 = vmatmul.mubr.bf16.gmra.mrb[164].mxu1 %v21838_v8 }
 0x3c3   : > { %5989 = vmatprep.mubr.bf16.mxu1 %v18949_v5 }
 0x3c5   : > { %v13691_v28 = vpop.f32.mrb[188].mxu0 }
 0x3c6   : > { %v13692_v42 = vpop.f32.mrb[189].mxu0 }
 0x3c7   : > { %v19115_v43 = vadd.f32 %v13692_v42, %v13691_v28  ;;  %v13694_v45 = vpop.f32.mrb[190].mxu0 }
 0x3c8   : > { %v13695_v35 = vpop.f32.mrb[191].mxu0 }
 0x3c9   : > { %v19117_v3 = vadd.f32 %v13695_v35, %v13694_v45 }
 0x3ca   : > { %5990 = vmatmul.mubr.bf16.gmra.mrb[168].mxu1 %v18929_v44 }
 0x3cb   : > { %5997 = vmatprep.mubr.bf16.mxu1 %v18966_v37  ;;  %v19132_v37 = vld [vmem:[#allocation2 + $0xd4] ss:$0 sps:$4 sm:$0x11]  }
 0x3cc   : > { %v4506_v22 = vshll.u32 %v19132_v37, 16 }
 0x3ce   : > { %v4508_v46 = vrot.slane %v4506_v22, 1 }
 0x3d1   : > { %v13697_v13 = vpop.f32.mrb[192].mxu0 }
 0x3d2   : > { %5998 = vmatmul.mubr.bf16.gmra.mrb[172].mxu1 %v18943_v62  ;;  %v13698_v14 = vpop.f32.mrb[193].mxu0 }
 0x3d3   : > { %v19122_v9 = vadd.f32 %v13698_v14, %v13697_v13  ;;  %6005 = vmatprep.mubr.bf16.mxu1 %v18989_v32  ;;  %v13700_v5 = vpop.f32.mrb[194].mxu0 }
 0x3d4   : > { %v13701_v0 = vpop.f32.mrb[195].mxu0 }
 0x3d5   : > { %v19125_v8 = vadd.f32 %v13701_v0, %v13700_v5 }
 0x3da   : > { %6006 = vmatmul.mubr.bf16.gmra.mrb[176].mxu1 %v18973_v51 }
 0x3db   : > { %6013 = vmatprep.mubr.bf16.mxu1 %v19004_v30  ;;  %v4504_v30 = vor.u32 %v4503_v36, %v4499_v56 }
 0x3dc   : > { %v13703_v44 = vpop.f32.mrb[196].mxu0 }
 0x3dd   : > { %v13704_v62 = vpop.f32.mrb[197].mxu0  ;;  %v4509_v13 = vsel %vm1323_vm3, %v4504_v30, %v4508_v46  ;;  %v16419_v46 = vld [vmem:[#allocation9 + $0x540] sm:$0xff]  }
 0x3de   : > { %v19134_v52 = vadd.f32 %v13704_v62, %v13703_v44  ;;  %v13706_v32 = vpop.f32.mrb[198].mxu0 }
 0x3df   : > { %v13707_v48 = vpop.f32.mrb[199].mxu0 }
 0x3e0   : > { %v19136_v23 = vadd.f32 %v13707_v48, %v13706_v32 }
 0x3e2   : > { %6014 = vmatmul.mubr.bf16.gmra.mrb[180].mxu1 %v18991_v41 }
 0x3e3   : > { %6021 = vmatprep.mubr.bf16.mxu1 %v19016_v7 }
 0x3e5   : > { %v13709_v51 = vpop.f32.mrb[200].mxu0 }
 0x3e6   : > { %v13710_v19 = vpop.f32.mrb[201].mxu0 }
 0x3e7   : > { %v19141_v28 = vadd.f32 %v13710_v19, %v13709_v51  ;;  %v13712_v42 = vpop.f32.mrb[202].mxu0 }
 0x3e8   : > { %v13713_v45 = vpop.f32.mrb[203].mxu0 }
 0x3e9   : > { %v19143_v35 = vadd.f32 %v13713_v45, %v13712_v42 }
 0x3ea   : > { %6022 = vmatmul.mubr.bf16.gmra.mrb[184].mxu1 %v19001_v10 }
 0x3eb   : > { %6029 = vmatprep.mubr.bf16.mxu1 %v4509_v13 }
 0x3ed   : > { %v13715_v14 = vpop.f32.mrb[204].mxu0 }
 0x3ee   : > { %v13716_v5 = vpop.f32.mrb[205].mxu0 }
 0x3ef   : > { %v19147_v41 = vadd.f32 %v13716_v5, %v13715_v14  ;;  %v13718_v7 = vpop.f32.mrb[206].mxu0 }
 0x3f0   : > { %v13719_v0 = vpop.f32.mrb[207].mxu0 }
 0x3f1   : > { %v19149_v17 = vadd.f32 %v13719_v0, %v13718_v7 }
 0x3f2   : > { %6030 = vmatmul.mubr.bf16.gmra.mrb[188].mxu1 %v12658_v38 }
 0x3f3   : > { %15113 = vmatprep.mubr.bf16.mxu1 %v18463_v25  ;;  %v16418_v25 = vld [vmem:[#allocation9 + $0x580] sm:$0xff]  }
 0x3f4   : > { %14041 = vmatprep.subr.bf16.mxu0 %v16418_v25 }
 0x3f5   : > { %v13721_v44 = vpop.f32.mrb[208].mxu0  ;;  %14042 = vmatpush3.bf16.msra.mxu0 %v16419_v46 }
 0x3f6   : > { %v13722_v62 = vpop.f32.mrb[209].mxu0 }
 0x3f7   : > { %v19152_v18 = vadd.f32 %v13722_v62, %v13721_v44  ;;  %v13724_v32 = vpop.f32.mrb[210].mxu0  ;;  %v16420_v44 = vld [vmem:[#allocation9 + $0x588] sm:$0xff]  }
 0x3f8   : > { %v13725_v48 = vpop.f32.mrb[211].mxu0  ;;  %v16421_v62 = vld [vmem:[#allocation9 + $0x548] sm:$0xff]   ;;  %14043 = vmatprep.subr.bf16.mxu0 %v16420_v44 }
 0x3f9   : > { %v19154_v56 = vadd.f32 %v13725_v48, %v13724_v32  ;;  %14044 = vmatpush3.bf16.msra.mxu0 %v16421_v62 }
 0x3fa   : > { %15114 = vmatmul.mubr.bf16.vlgmr.msra.gmra.mrb[96].mxu1 %v18546_v31 }
 0x3fb   : > { %15117 = vmatprep.mubr.bf16.mxu1 %v18606_v57 }
 0x3fd   : > { %v13727_v10 = vpop.f32.mrb[212].mxu0 }
 0x3fe   : > { %v13728_v36 = vpop.f32.mrb[213].mxu0 }
 0x3ff   : > { %v19158_v22 = vadd.f32 %v13728_v36, %v13727_v10  ;;  %v13730_v51 = vpop.f32.mrb[214].mxu0 }
 0x400   : > { %v13731_v38 = vpop.f32.mrb[215].mxu0 }
 0x401   : > { %v19160_v30 = vadd.f32 %v13731_v38, %v13730_v51 }
 0x402   : > { %15118 = vmatmul.mubr.bf16.gmra.mrb[100].mxu1 %v18653_v16 }
 0x403   : > { %15121 = vmatprep.mubr.bf16.mxu1 %v18727_v40 }
 0x405   : > { %v13733_v19 = vpop.f32.mrb[216].mxu0 }
 0x406   : > { %v13734_v42 = vpop.f32.mrb[217].mxu0 }
 0x407   : > { %v19164_v31 = vadd.f32 %v13734_v42, %v13733_v19  ;;  %v13736_v57 = vpop.f32.mrb[218].mxu0  ;;  %v16422_v42 = vld [vmem:[#allocation9 + $0x590] sm:$0xff]  }
 0x408   : > { %v13737_v45 = vpop.f32.mrb[219].mxu0  ;;  %14045 = vmatprep.subr.bf16.mxu0 %v16422_v42 }
 0x409   : > { %v19166_v13 = vadd.f32 %v13737_v45, %v13736_v57 }
 0x40a   : > { %15122 = vmatmul.mubr.bf16.gmra.mrb[104].mxu1 %v18768_v55 }
 0x40b   : > { %15125 = vmatprep.mubr.bf16.mxu1 %v18816_v24 }
 0x40d   : > { %v13739_v14 = vpop.f32.mrb[220].mxu0 }
 0x40e   : > { %v13740_v16 = vpop.f32.mrb[221].mxu0 }
 0x40f   : > { %v19170_v5 = vadd.f32 %v13740_v16, %v13739_v14  ;;  %v13742_v7 = vpop.f32.mrb[222].mxu0 }
 0x410   : > { %v13743_v40 = vpop.f32.mrb[223].mxu0 }
 0x411   : > { %v19172_v0 = vadd.f32 %v13743_v40, %v13742_v7 }
 0x412   : > { %15126 = vmatmul.mubr.bf16.gmra.mrb[108].mxu1 %v18865_v50 }
 0x413   : > { %15129 = vmatprep.mubr.bf16.mxu1 %v18889_v21 }
 0x415   : > { %v13785_v32 = vpop.f32.mrb[224].mxu0 }
 0x416   : > { %v13786_v48 = vpop.f32.mrb[225].mxu0 }
 0x417   : > { %v13787_v55 = vadd.f32 %v13786_v48, %v13785_v32  ;;  %v13788_v24 = vpop.f32.mrb[226].mxu0 }
 0x418   : > { %v13789_v10 = vpop.f32.mrb[227].mxu0 }
 0x419   : > { %v13790_v36 = vadd.f32 %v13789_v10, %v13788_v24  ;;  %v19177_v51 = vadd.f32 %v13787_v55, %v19049_v63  ;;  %v16423_v63 = vld [vmem:[#allocation9 + $0x550] sm:$0xff]  }
 0x41a   : > { %15130 = vmatmul.mubr.bf16.gmra.mrb[112].mxu1 %v18919_v49  ;;  %14046 = vmatpush3.bf16.msra.mxu0 %v16423_v63 }
 0x41b   : > { %v19181_v38 = vadd.f32 %v13790_v36, %v19052_v6  ;;  %15133 = vmatprep.mubr.bf16.mxu1 %v18940_v15  ;;  %v4131_v6 = vld [vmem:[#allocation2 + $0xcc] sm:$0xe]  ;;  %v16424_v36 = vld [vmem:[#allocation9 + $0x598] sm:$0xff]  }
 0x41c   : > { %v12694_v44 = vcombine.low %v4131_v6, %v19127_v12  ;;  %14047 = vmatprep.subr.bf16.mxu0 %v16424_v36 }
 0x41d   : > { %v13791_v50 = vpop.f32.mrb[228].mxu0 }
 0x41e   : > { %v13792_v21 = vpop.f32.mrb[229].mxu0 }
 0x41f   : > { %v13793_v25 = vadd.f32 %v13792_v21, %v13791_v50  ;;  %v13794_v46 = vpop.f32.mrb[230].mxu0 }
 0x420   : > { %v13795_v19 = vpop.f32.mrb[231].mxu0 }
 0x421   : > { %v13796_v57 = vadd.f32 %v13795_v19, %v13794_v46  ;;  %v19185_v45 = vadd.f32 %v13793_v25, %v19057_v59 }
 0x422   : > { %15134 = vmatmul.mubr.bf16.gmra.mrb[116].mxu1 %v18957_v4 }
 0x423   : > { %v19189_v49 = vadd.f32 %v13796_v57, %v19060_v11  ;;  %15137 = vmatprep.mubr.bf16.mxu1 %v18980_v20  ;;  %v4633_v20 = vrot.slane %v12694_v44, 1  ;;  %v4634_v11 = vrot.slane %v19132_v37, 1 }
 0x425   : > { %v13797_v15 = vpop.f32.mrb[232].mxu0  ;;  %v4635_v12 = vsel %vm1612_vm9, %v4633_v20, %v4634_v11 }
 0x426   : > { %v13798_v14 = vpop.f32.mrb[233].mxu0 }
 0x427   : > { %v13799_v16 = vadd.f32 %v13798_v14, %v13797_v15  ;;  %v13800_v7 = vpop.f32.mrb[234].mxu0 }
 0x428   : > { %v13801_v40 = vpop.f32.mrb[235].mxu0 }
 0x429   : > { %v13802_v59 = vadd.f32 %v13801_v40, %v13800_v7  ;;  %v19194_v62 = vadd.f32 %v13799_v16, %v19070_v34  ;;  %v16427_v40 = vld [vmem:[#allocation9 + $0x560] sm:$0xff]  }
 0x42a   : > { %15138 = vmatmul.mubr.bf16.gmra.mrb[120].mxu1 %v18997_v2  ;;  %v16425_v2 = vld [vmem:[#allocation9 + $0x558] sm:$0xff]  }
 0x42b   : > { %v19198_v4 = vadd.f32 %v13802_v59, %v19072_v60  ;;  %15141 = vmatprep.mubr.bf16.mxu1 %v19011_v61  ;;  %14048 = vmatpush3.bf16.msra.mxu0 %v16425_v2 }
 0x42d   : > { %v13803_v32 = vpop.f32.mrb[236].mxu0 }
 0x42e   : > { %v13804_v48 = vpop.f32.mrb[237].mxu0 }
 0x42f   : > { %v13805_v55 = vadd.f32 %v13804_v48, %v13803_v32  ;;  %v13806_v24 = vpop.f32.mrb[238].mxu0 }
 0x430   : > { %v13807_v10 = vpop.f32.mrb[239].mxu0 }
 0x431   : > { %v13808_v34 = vadd.f32 %v13807_v10, %v13806_v24  ;;  %v19204_v50 = vadd.f32 %v13805_v55, %v19078_v26 }
 0x432   : > { %15142 = vmatmul.mubr.bf16.gmra.mrb[124].mxu1 %v4635_v12 }
 0x433   : > { %v19207_v61 = vadd.f32 %v13808_v34, %v19080_v29  ;;  %v16426_v29 = vld [vmem:[#allocation9 + $0x5a0] sm:$0xff]  }
 0x434   : > { %14049 = vmatprep.subr.bf16.mxu0 %v16426_v29 }
 0x435   : > { %v13809_v60 = vpop.f32.mrb[240].mxu0  ;;  %14050 = vmatpush3.bf16.msra.mxu0 %v16427_v40 }
 0x436   : > { %v13810_v37 = vpop.f32.mrb[241].mxu0 }
 0x437   : > { %v13811_v21 = vadd.f32 %v13810_v37, %v13809_v60  ;;  %v13812_v25 = vpop.f32.mrb[242].mxu0 }
 0x438   : > { %v13813_v46 = vpop.f32.mrb[243].mxu0 }
 0x439   : > { %v13814_v19 = vadd.f32 %v13813_v46, %v13812_v25  ;;  %v19210_v42 = vadd.f32 %v13811_v21, %v19086_v58 }
 0x43b   : > { %v19213_v57 = vadd.f32 %v13814_v19, %v19091_v1 }
 0x43d   : > { %v13815_v26 = vpop.f32.mrb[244].mxu0 }
 0x43e   : > { %v13816_v63 = vpop.f32.mrb[245].mxu0 }
 0x43f   : > { %v13817_v15 = vadd.f32 %v13816_v63, %v13815_v26  ;;  %v13818_v6 = vpop.f32.mrb[246].mxu0 }
 0x440   : > { %v13819_v14 = vpop.f32.mrb[247].mxu0 }
 0x441   : > { %v13820_v16 = vadd.f32 %v13819_v14, %v13818_v6  ;;  %v19216_v7 = vadd.f32 %v13817_v15, %v19098_v54 }
 0x443   : > { %v19219_v44 = vadd.f32 %v13820_v16, %v19103_v33  ;;  %v16430_v16 = vld [vmem:[#allocation9 + $0x4c0] sm:$0xff]  }
 0x444   : > { %14177 = vmatprep.subr.bf16.mxu1 %v16430_v16 }
 0x445   : > { %v13821_v58 = vpop.f32.mrb[248].mxu0 }
 0x446   : > { %v13822_v59 = vpop.f32.mrb[249].mxu0 }
 0x447   : > { %v13823_v1 = vadd.f32 %v13822_v59, %v13821_v58  ;;  %v13824_v20 = vpop.f32.mrb[250].mxu0  ;;  %v16431_v59 = vld [vmem:[#allocation9 + $0x480] sm:$0xff]  }
 0x448   : > { %v13825_v11 = vpop.f32.mrb[251].mxu0  ;;  %14178 = vmatpush3.bf16.msra.mxu1 %v16431_v59 }
 0x449   : > { %v13826_v32 = vadd.f32 %v13825_v11, %v13824_v20  ;;  %v19222_v48 = vadd.f32 %v13823_v1, %v19108_v27 }
 0x44b   : > { %v19225_v55 = vadd.f32 %v13826_v32, %v19111_v39  ;;  %v16432_v32 = vld [vmem:[#allocation9 + $0x4c8] sm:$0xff]  }
 0x44c   : > { %14179 = vmatprep.subr.bf16.mxu1 %v16432_v32 }
 0x44d   : > { %v13827_v54 = vpop.f32.mrb[252].mxu0  ;;  %v13921_v10 = vpop.f32.mrb[128].mxu1 }
 0x44e   : > { %v13828_v24 = vpop.f32.mrb[253].mxu0  ;;  %v13922_v33 = vpop.f32.mrb[129].mxu1 }
 0x44f   : > { %v13829_v12 = vadd.f32 %v13828_v24, %v13827_v54  ;;  %v13830_v36 = vpop.f32.mrb[254].mxu0  ;;  %v13923_v2 = vadd.f32 %v13922_v33, %v13921_v10  ;;  %v13924_v60 = vpop.f32.mrb[130].mxu1  ;;  %v16433_v24 = vld [vmem:[#allocation9 + $0x488] sm:$0xff]  }
 0x450   : > { %v13831_v34 = vpop.f32.mrb[255].mxu0  ;;  %v13925_v21 = vpop.f32.mrb[131].mxu1  ;;  %14180 = vmatpush3.bf16.msra.mxu1 %v16433_v24 }
 0x451   : > { %v13832_v37 = vadd.f32 %v13831_v34, %v13830_v36  ;;  %v19228_v25 = vadd.f32 %v13829_v12, %v19115_v43  ;;  %v13926_v46 = vadd.f32 %v13925_v21, %v13924_v60  ;;  %v19231_v27 = vadd.f32 %v19177_v51, %v13923_v2 }
 0x453   : > { %v19234_v39 = vadd.f32 %v13832_v37, %v19117_v3  ;;  %v19237_v19 = vadd.f32 %v19181_v38, %v13926_v46  ;;  %v16436_v46 = vld [vmem:[#allocation9 + $0x4d0] sm:$0xff]  }
 0x454   : > { %14181 = vmatprep.subr.bf16.mxu1 %v16436_v46 }
 0x455   : > { %v13833_v26 = vpop.f32.mrb[0].mxu0  ;;  %v13927_v15 = vpop.f32.mrb[132].mxu1 }
 0x456   : > { %v13834_v63 = vpop.f32.mrb[1].mxu0  ;;  %v13928_v29 = vpop.f32.mrb[133].mxu1 }
 0x457   : > { %v13835_v6 = vadd.f32 %v13834_v63, %v13833_v26  ;;  %v13836_v14 = vpop.f32.mrb[2].mxu0  ;;  %v13929_v43 = vadd.f32 %v13928_v29, %v13927_v15  ;;  %v13930_v58 = vpop.f32.mrb[134].mxu1  ;;  %v16437_v63 = vld [vmem:[#allocation9 + $0x490] sm:$0xff]   ;;  %v16438_v29 = vld [vmem:[#allocation9 + $0x4d8] sm:$0xff]  }
 0x458   : > { %v13837_v40 = vpop.f32.mrb[3].mxu0  ;;  %v13931_v3 = vpop.f32.mrb[135].mxu1  ;;  %14182 = vmatpush3.bf16.msra.mxu1 %v16437_v63 }
 0x459   : > { %v19240_v51 = vadd.f32 %v13835_v6, %v19122_v9  ;;  %v13838_v1 = vadd.f32 %v13837_v40, %v13836_v14  ;;  %v13932_v20 = vadd.f32 %v13931_v3, %v13930_v58  ;;  %v19243_v38 = vadd.f32 %v19185_v45, %v13929_v43  ;;  %v16428_v40 = vld [vmem:[#allocation9 + $0x5a8] sm:$0xff]   ;;  %14183 = vmatprep.subr.bf16.mxu1 %v16438_v29 }
 0x45a   : > { %v16429_v43 = vld [vmem:[#allocation9 + $0x568] sm:$0xff]   ;;  %14051 = vmatprep.subr.bf16.mxu0 %v16428_v40 }
 0x45b   : > { %v19246_v11 = vadd.f32 %v13838_v1, %v19125_v8  ;;  %v19249_v54 = vadd.f32 %v19189_v49, %v13932_v20  ;;  %14052 = vmatpush3.bf16.msra.mxu0 %v16429_v43 }
 0x45d   : > { %v13839_v10 = vpop.f32.mrb[4].mxu0  ;;  %v13933_v12 = vpop.f32.mrb[136].mxu1 }
 0x45e   : > { %v13840_v9 = vpop.f32.mrb[5].mxu0  ;;  %v13934_v34 = vpop.f32.mrb[137].mxu1 }
 0x45f   : > { %v13841_v36 = vadd.f32 %v13840_v9, %v13839_v10  ;;  %v13842_v33 = vpop.f32.mrb[6].mxu0  ;;  %v13935_v45 = vadd.f32 %v13934_v34, %v13933_v12  ;;  %v13936_v60 = vpop.f32.mrb[138].mxu1 }
 0x460   : > { %v13843_v2 = vpop.f32.mrb[7].mxu0  ;;  %v13937_v21 = vpop.f32.mrb[139].mxu1 }
 0x461   : > { %v19252_v37 = vadd.f32 %v13841_v36, %v19134_v52  ;;  %v13844_v8 = vadd.f32 %v13843_v2, %v13842_v33  ;;  %v13938_v49 = vadd.f32 %v13937_v21, %v13936_v60  ;;  %v19255_v26 = vadd.f32 %v19194_v62, %v13935_v45  ;;  %v16439_v62 = vld [vmem:[#allocation9 + $0x498] sm:$0xff]  }
 0x462   : > { %14184 = vmatpush3.bf16.msra.mxu1 %v16439_v62 }
 0x463   : > { %v19258_v15 = vadd.f32 %v13844_v8, %v19136_v23  ;;  %v19261_v6 = vadd.f32 %v19198_v4, %v13938_v49 }
 0x465   : > { %v13845_v14 = vpop.f32.mrb[8].mxu0  ;;  %v13939_v16 = vpop.f32.mrb[140].mxu1 }
 0x466   : > { %v13846_v52 = vpop.f32.mrb[9].mxu0  ;;  %v13940_v1 = vpop.f32.mrb[141].mxu1 }
 0x467   : > { %v13847_v58 = vadd.f32 %v13846_v52, %v13845_v14  ;;  %v13848_v59 = vpop.f32.mrb[10].mxu0  ;;  %v13941_v20 = vadd.f32 %v13940_v1, %v13939_v16  ;;  %v13942_v23 = vpop.f32.mrb[142].mxu1  ;;  %v16441_v52 = vld [vmem:[#allocation9 + $0x4a0] sm:$0xff]  }
 0x468   : > { %v13849_v3 = vpop.f32.mrb[11].mxu0  ;;  %v13943_v24 = vpop.f32.mrb[143].mxu1 }
 0x469   : > { %v19264_v32 = vadd.f32 %v13847_v58, %v19141_v28  ;;  %v13850_v4 = vadd.f32 %v13849_v3, %v13848_v59  ;;  %v13944_v10 = vadd.f32 %v13943_v24, %v13942_v23  ;;  %v19267_v9 = vadd.f32 %v19204_v50, %v13941_v20  ;;  %v16442_v58 = vld [vmem:[#allocation9 + $0x4e8] sm:$0xff]   ;;  %v16434_v3 = vld [vmem:[#allocation9 + $0x5b0] sm:$0xff]  }
 0x46a   : > { %14053 = vmatprep.subr.bf16.mxu0 %v16434_v3  ;;  %v16449_v3 = vld [vmem:[#allocation9 + $0x4b8] sm:$0xff]  }
 0x46b   : > { %v19270_v12 = vadd.f32 %v13850_v4, %v19143_v35  ;;  %v19273_v36 = vadd.f32 %v19207_v61, %v13944_v10  ;;  %v16440_v61 = vld [vmem:[#allocation9 + $0x4e0] sm:$0xff]  }
 0x46c   : > { %14185 = vmatprep.subr.bf16.mxu1 %v16440_v61 }
 0x46d   : > { %v13851_v33 = vpop.f32.mrb[12].mxu0  ;;  %v13945_v2 = vpop.f32.mrb[144].mxu1  ;;  %14186 = vmatpush3.bf16.msra.mxu1 %v16441_v52 }
 0x46e   : > { %v13852_v34 = vpop.f32.mrb[13].mxu0  ;;  %v13946_v60 = vpop.f32.mrb[145].mxu1  ;;  %14187 = vmatprep.subr.bf16.mxu1 %v16442_v58 }
 0x46f   : > { %v13853_v45 = vadd.f32 %v13852_v34, %v13851_v33  ;;  %v13854_v28 = vpop.f32.mrb[14].mxu0  ;;  %v13947_v21 = vadd.f32 %v13946_v60, %v13945_v2  ;;  %v13948_v46 = vpop.f32.mrb[146].mxu1  ;;  %v16435_v34 = vld [vmem:[#allocation9 + $0x570] sm:$0xff]  }
 0x470   : > { %v13855_v8 = vpop.f32.mrb[15].mxu0  ;;  %v13949_v63 = vpop.f32.mrb[147].mxu1  ;;  %14054 = vmatpush3.bf16.msra.mxu0 %v16435_v34 }
 0x471   : > { %v19276_v49 = vadd.f32 %v13853_v45, %v19147_v41  ;;  %v13856_v50 = vadd.f32 %v13855_v8, %v13854_v28  ;;  %v13950_v14 = vadd.f32 %v13949_v63, %v13948_v46  ;;  %v19279_v35 = vadd.f32 %v19210_v42, %v13947_v21  ;;  %v16443_v42 = vld [vmem:[#allocation9 + $0x4a8] sm:$0xff]   ;;  %v16446_v8 = vld [vmem:[#allocation9 + $0x4f0] sm:$0xff]  }
 0x472   : > { %14188 = vmatpush3.bf16.msra.mxu1 %v16443_v42  ;;  %v16447_v63 = vld [vmem:[#allocation9 + $0x4b0] sm:$0xff]  }
 0x473   : > { %v19282_v29 = vadd.f32 %v13856_v50, %v19149_v17  ;;  %v19285_v16 = vadd.f32 %v19213_v57, %v13950_v14  ;;  %14189 = vmatprep.subr.bf16.mxu1 %v16446_v8 }
 0x475   : > { %v13857_v40 = vpop.f32.mrb[16].mxu0  ;;  %v13951_v41 = vpop.f32.mrb[148].mxu1 }
 0x476   : > { %v13858_v43 = vpop.f32.mrb[17].mxu0  ;;  %v13952_v62 = vpop.f32.mrb[149].mxu1  ;;  %14190 = vmatpush3.bf16.msra.mxu1 %v16447_v63 }
 0x477   : > { %v13859_v59 = vadd.f32 %v13858_v43, %v13857_v40  ;;  %v13860_v1 = vpop.f32.mrb[18].mxu0  ;;  %v13953_v23 = vadd.f32 %v13952_v62, %v13951_v41  ;;  %v13954_v4 = vpop.f32.mrb[150].mxu1  ;;  %v7031_v43 = vld [vmem:[#allocation2 + $0x4] sm:$0xf] }
 0x478   : > { %v13861_v20 = vpop.f32.mrb[19].mxu0  ;;  %v13955_v24 = vpop.f32.mrb[151].mxu1 }
 0x479   : > { %v19288_v17 = vadd.f32 %v13859_v59, %v19152_v18  ;;  %v13862_v57 = vadd.f32 %v13861_v20, %v13860_v1  ;;  %v13956_v10 = vadd.f32 %v13955_v24, %v13954_v4  ;;  %v19291_v33 = vadd.f32 %v19216_v7, %v13953_v23  ;;  %v16448_v59 = vld [vmem:[#allocation9 + $0x4f8] sm:$0xff]  }
 0x47a   : > { %14191 = vmatprep.subr.bf16.mxu1 %v16448_v59  ;;  %v16444_v24 = vld [vmem:[#allocation9 + $0x5b8] sm:$0xff]  }
 0x47b   : > { %v19294_v2 = vadd.f32 %v13862_v57, %v19154_v56  ;;  %v19297_v45 = vadd.f32 %v19219_v44, %v13956_v10  ;;  %v7030_v44 = vld [vmem:[#allocation2] sm:$0xf]  ;;  %14192 = vmatpush3.bf16.msra.mxu1 %v16449_v3  ;;  %14055 = vmatprep.subr.bf16.mxu0 %v16444_v24 }
 0x47c   : > { %v12802_v1 = vcombine.low %v7030_v44, %v7031_v43  ;;  %v16445_v44 = vld [vmem:[#allocation9 + $0x578] sm:$0xff]  }
 0x47d   : > { %v13863_v28 = vpop.f32.mrb[20].mxu0  ;;  %v13957_v18 = vpop.f32.mrb[152].mxu1  ;;  %14056 = vmatpush3.bf16.msra.mxu0 %v16445_v44 }
 0x47e   : > { %v13864_v60 = vpop.f32.mrb[21].mxu0  ;;  %v13958_v50 = vpop.f32.mrb[153].mxu1  ;;  %v7267_v20 = vshll.u32 %v12802_v1, 16  ;;  %v7265_v10 = vshrl.u32 %v12802_v1, 16 }
 0x47f   : > { %v13865_v21 = vadd.f32 %v13864_v60, %v13863_v28  ;;  %v13866_v46 = vpop.f32.mrb[22].mxu0  ;;  %v13959_v61 = vadd.f32 %v13958_v50, %v13957_v18  ;;  %v13960_v7 = vpop.f32.mrb[154].mxu1 }
 0x480   : > { %v13867_v14 = vpop.f32.mrb[23].mxu0  ;;  %v13961_v40 = vpop.f32.mrb[155].mxu1 }
 0x481   : > { %v19300_v52 = vadd.f32 %v13865_v21, %v19158_v22  ;;  %v13868_v56 = vadd.f32 %v13867_v14, %v13866_v46  ;;  %v13962_v41 = vadd.f32 %v13961_v40, %v13960_v7  ;;  %v19303_v58 = vadd.f32 %v19222_v48, %v13959_v61  ;;  %v16451_v22 = vld [vmem:[#allocation2 + $0x8] ss:$0 sps:$4 sm:$0x11]  }
 0x482   : > { %v7269_v48 = vrot.slane %v7267_v20, 1  ;;  %v7272_v34 = vshll.u32 %v16451_v22, 16 }
 0x483   : > { %v19306_v62 = vadd.f32 %v13868_v56, %v19160_v30  ;;  %v19309_v42 = vadd.f32 %v19225_v55, %v13962_v41 }
 0x484   : > { %v7270_v55 = vor.u32 %v7269_v48, %v7265_v10  ;;  %v7274_v46 = vrot.slane %v7272_v34, 1 }
 0x485   : > { %v13869_v23 = vpop.f32.mrb[24].mxu0  ;;  %v13963_v57 = vpop.f32.mrb[156].mxu1 }
 0x486   : > { %v13870_v4 = vpop.f32.mrb[25].mxu0  ;;  %v13964_v18 = vpop.f32.mrb[157].mxu1  ;;  %v7275_v56 = vsel %vm1323_vm3, %v7270_v55, %v7274_v46 }
 0x487   : > { %v13871_v28 = vadd.f32 %v13870_v4, %v13869_v23  ;;  %v13872_v60 = vpop.f32.mrb[26].mxu0  ;;  %v13965_v8 = vadd.f32 %v13964_v18, %v13963_v57  ;;  %v13966_v21 = vpop.f32.mrb[158].mxu1  ;;  %8364 = vmatprep.mubr.bf16.mxu1 %v7275_v56 }
 0x488   : > { %v13873_v30 = vpop.f32.mrb[27].mxu0  ;;  %v13967_v14 = vpop.f32.mrb[159].mxu1  ;;  %8365 = vmatmul.mubr.bf16.vlgmr.msra.gmra.mrb[192].mxu1 %v12802_v1 }
 0x489   : > { %v19312_v50 = vadd.f32 %v13871_v28, %v19164_v31  ;;  %v13874_v63 = vadd.f32 %v13873_v30, %v13872_v60  ;;  %v13968_v61 = vadd.f32 %v13967_v14, %v13966_v21  ;;  %v19315_v7 = vadd.f32 %v19228_v25, %v13965_v8 }
 0x48b   : > { %v19319_v40 = vadd.f32 %v13874_v63, %v19166_v13  ;;  %v19322_v43 = vadd.f32 %v19234_v39, %v13968_v61 }
 0x48d   : > { %v13875_v41 = vpop.f32.mrb[28].mxu0  ;;  %v13969_v59 = vpop.f32.mrb[160].mxu1 }
 0x48e   : > { %v13876_v31 = vpop.f32.mrb[29].mxu0  ;;  %v13970_v20 = vpop.f32.mrb[161].mxu1 }
 0x48f   : > { %v13877_v3 = vadd.f32 %v13876_v31, %v13875_v41  ;;  %v13878_v22 = vpop.f32.mrb[30].mxu0  ;;  %v13971_v23 = vadd.f32 %v13970_v20, %v13969_v59  ;;  %v13972_v4 = vpop.f32.mrb[162].mxu1 }
 0x490   : > { %v13879_v25 = vpop.f32.mrb[31].mxu0  ;;  %v13973_v24 = vpop.f32.mrb[163].mxu1 }
 0x491   : > { %v19325_v57 = vadd.f32 %v13877_v3, %v19170_v5  ;;  %v13880_v13 = vadd.f32 %v13879_v25, %v13878_v22  ;;  %v13974_v10 = vadd.f32 %v13973_v24, %v13972_v4  ;;  %v19328_v39 = vadd.f32 %v19240_v51, %v13971_v23  ;;  %v16454_v24 = vld [vmem:[#allocation9 + $0x5c0] sm:$0xff]  }
 0x492   : > { %15145 = vmatprep.subr.bf16.mxu0 %v16454_v24 }
 0x493   : > { %v15651_v1 = vadd.f32 %v13880_v13, %v19172_v0  ;;  %v19332_v48 = vadd.f32 %v19246_v11, %v13974_v10 }
 0x495   : > { %v13975_v34 = vpop.f32.mrb[164].mxu1 }
 0x496   : > { %v13976_v28 = vpop.f32.mrb[165].mxu1 }
 0x497   : > { %v13977_v60 = vadd.f32 %v13976_v28, %v13975_v34  ;;  %v13978_v18 = vpop.f32.mrb[166].mxu1 }
 0x498   : > { %v13979_v30 = vpop.f32.mrb[167].mxu1 }
 0x499   : > { %v13980_v8 = vadd.f32 %v13979_v30, %v13978_v18  ;;  %v19335_v5 = vadd.f32 %v19252_v37, %v13977_v60 }
 0x49b   : > { %v19338_v21 = vadd.f32 %v19258_v15, %v13980_v8 }
 0x49d   : > { %v13981_v55 = vpop.f32.mrb[168].mxu1 }
 0x49e   : > { %v13982_v51 = vpop.f32.mrb[169].mxu1 }
 0x49f   : > { %v13983_v46 = vadd.f32 %v13982_v51, %v13981_v55  ;;  %v13984_v63 = vpop.f32.mrb[170].mxu1 }
 0x4a0   : > { %v13985_v0 = vpop.f32.mrb[171].mxu1 }
 0x4a1   : > { %v13986_v14 = vadd.f32 %v13985_v0, %v13984_v63  ;;  %v19341_v11 = vadd.f32 %v19264_v32, %v13983_v46 }
 0x4a3   : > { %v19344_v61 = vadd.f32 %v19270_v12, %v13986_v14 }
 0x4a5   : > { %v13987_v56 = vpop.f32.mrb[172].mxu1 }
 0x4a6   : > { %v13988_v44 = vpop.f32.mrb[173].mxu1 }
 0x4a7   : > { %v13989_v41 = vadd.f32 %v13988_v44, %v13987_v56  ;;  %v13990_v37 = vpop.f32.mrb[174].mxu1 }
 0x4a8   : > { %v13991_v31 = vpop.f32.mrb[175].mxu1 }
 0x4a9   : > { %v13992_v59 = vadd.f32 %v13991_v31, %v13990_v37  ;;  %v19347_v15 = vadd.f32 %v19276_v49, %v13989_v41 }
 0x4ab   : > { %v19350_v3 = vadd.f32 %v19282_v29, %v13992_v59 }
 0x4ad   : > { %v13993_v22 = vpop.f32.mrb[176].mxu1 }
 0x4ae   : > { %v13994_v20 = vpop.f32.mrb[177].mxu1 }
 0x4af   : > { %v13995_v25 = vadd.f32 %v13994_v20, %v13993_v22  ;;  %v13996_v32 = vpop.f32.mrb[178].mxu1  ;;  %v19375_v22 = vld [vmem:[#allocation11 + $0x1] ss:$0 sm:$0xff] }
 0x4b0   : > { %v13997_v23 = vpop.f32.mrb[179].mxu1 }
 0x4b1   : > { %v13998_v4 = vadd.f32 %v13997_v23, %v13996_v32  ;;  %v19353_v12 = vadd.f32 %v19288_v17, %v13995_v25 }
 0x4b3   : > { %v19356_v13 = vadd.f32 %v19294_v2, %v13998_v4  ;;  %v19382_v4 = vld [vmem:[#allocation6 + $0x2] ss:$0 sm:$0xff] }
 0x4b5   : > { %v13999_v10 = vpop.f32.mrb[180].mxu1 }
 0x4b6   : > { %v14000_v34 = vpop.f32.mrb[181].mxu1 }
 0x4b7   : > { %v14001_v49 = vadd.f32 %v14000_v34, %v13999_v10  ;;  %v14002_v28 = vpop.f32.mrb[182].mxu1  ;;  %v6268_v34 = vld [vmem:[%s17190_s24] sm:$0xff] }
 0x4b8   : > { %v14003_v29 = vpop.f32.mrb[183].mxu1 }
 0x4b9   : > { %v14004_v60 = vadd.f32 %v14003_v29, %v14002_v28  ;;  %v19359_v18 = vadd.f32 %v19300_v52, %v14001_v49  ;;  %v19388_v49 = vld [vmem:[#allocation8 + $0x2] ss:$0 sm:$0xff] }
 0x4ba   : > { %v6271_v29 = vld [vmem:[%s17190_s24 + $0x18] sm:$0xff] }
 0x4bb   : > { %v19362_v30 = vadd.f32 %v19306_v62, %v14004_v60 }
 0x4bd   : > { %v14005_v8 = vpop.f32.mrb[184].mxu1 }
 0x4be   : > { %v14006_v17 = vpop.f32.mrb[185].mxu1 }
 0x4bf   : > { %v14007_v55 = vadd.f32 %v14006_v17, %v14005_v8  ;;  %v14008_v51 = vpop.f32.mrb[186].mxu1  ;;  %v6269_v17 = vld [vmem:[%s17190_s24 + $0x8] sm:$0xff] }
 0x4c0   : > { %v14009_v2 = vpop.f32.mrb[187].mxu1 }
 0x4c1   : > { %v14010_v46 = vadd.f32 %v14009_v2, %v14008_v51  ;;  %v19365_v63 = vadd.f32 %v19312_v50, %v14007_v55 }
 0x4c3   : > { %v19368_v0 = vadd.f32 %v19319_v40, %v14010_v46 }
 0x4c5   : > { %v14011_v14 = vpop.f32.mrb[188].mxu1 }
 0x4c6   : > { %v14012_v56 = vpop.f32.mrb[189].mxu1 }
 0x4c7   : > { %v14013_v52 = vadd.f32 %v14012_v56, %v14011_v14  ;;  %v14014_v44 = vpop.f32.mrb[190].mxu1 }
 0x4c8   : > { %v14015_v41 = vpop.f32.mrb[191].mxu1 }
 0x4c9   : > { %v14016_v62 = vadd.f32 %v14015_v41, %v14014_v44  ;;  %v19371_v37 = vadd.f32 %v19325_v57, %v14013_v52 }
 0x4cb   : > { %v19373_v31 = vadd.f32 %v15651_v1, %v14016_v62  ;;  %v6270_v1 = vld [vmem:[%s17190_s24 + $0x10] sm:$0xff] }
 0x4cd   : > { %v15115_v59 = vpop.f32.mrb[96].mxu1 }
 0x4ce   : > { %v15563_v50 = vadd.f32 %v19243_v38, %v15115_v59  ;;  %v6072_v40 = vpop.f32.mrb[97].mxu1 }
 0x4cf   : > { %v15566_v20 = vadd.f32 %v19231_v27, %v6072_v40  ;;  %v15116_v25 = vpop.f32.mrb[98].mxu1 }
 0x4d0   : > { %v6238_v32 = vadd.f32 %v15563_v50, %v19375_v22  ;;  %v15569_v23 = vadd.f32 %v19249_v54, %v15116_v25  ;;  %v6075_v57 = vpop.f32.mrb[99].mxu1 }
 0x4d1   : > { %v6236_v24 = vadd.f32 %v15566_v20, %v19375_v22  ;;  %v15572_v38 = vadd.f32 %v19237_v19, %v6075_v57 }
 0x4d2   : > { %v6302_v10 = vadd.f32 %v6270_v1, %v6238_v32  ;;  %v6239_v27 = vadd.f32 %v15569_v23, %v19375_v22 }
 0x4d3   : > { %v6300_v28 = vadd.f32 %v6268_v34, %v6236_v24  ;;  %v6237_v54 = vadd.f32 %v15572_v38, %v19375_v22  ;;  %v6272_v24 = vld [vmem:[%s17190_s24 + $0x20] sm:$0xff] }
 0x4d4   : > { %6334 = vst [vmem:[%s17190_s24 + $0x10] sm:$0xff] %v6302_v10  ;;  %v6403_v60 = vmul.f32 %v19382_v4, %v6302_v10  ;;  %v6303_v8 = vadd.f32 %v6271_v29, %v6239_v27 }
 0x4d5   : > { %6332 = vst [vmem:[%s17190_s24] sm:$0xff] %v6300_v28  ;;  %v6401_v19 = vmul.f32 %v19382_v4, %v6300_v28  ;;  %v6301_v55 = vadd.f32 %v6269_v17, %v6237_v54  ;;  %v15119_v51 = vpop.f32.mrb[100].mxu1 }
 0x4d6   : > { %v6440_v2 = vadd.f32 %v19388_v49, %v6403_v60  ;;  %6335 = vst [vmem:[%s17190_s24 + $0x18] sm:$0xff] %v6303_v8  ;;  %v6404_v46 = vmul.f32 %v19382_v4, %v6303_v8  ;;  %v15575_v14 = vadd.f32 %v19267_v9, %v15119_v51  ;;  %v6088_v56 = vpop.f32.mrb[101].mxu1  ;;  %v6274_v9 = vld [vmem:[%s17190_s24 + $0x30] sm:$0xff] }
 0x4d7   : > { %v6438_v52 = vadd.f32 %v19388_v49, %v6401_v19  ;;  %6333 = vst [vmem:[%s17190_s24 + $0x8] sm:$0xff] %v6301_v55  ;;  %v15578_v44 = vadd.f32 %v19255_v26, %v6088_v56  ;;  %v15120_v41 = vpop.f32.mrb[102].mxu1  ;;  %v6402_v29 = vmul.f32 %v19382_v4, %v6301_v55 }
 0x4d8   : > { %v6472_v62 = vmax.f32 %v6440_v2, 0.0  ;;  %v6441_v59 = vadd.f32 %v19388_v49, %v6404_v46  ;;  %v6242_v50 = vadd.f32 %v15575_v14, %v19375_v22  ;;  %v15581_v40 = vadd.f32 %v19273_v36, %v15120_v41  ;;  %v6091_v20 = vpop.f32.mrb[103].mxu1 }
 0x4d9   : > { %v6470_v25 = vmax.f32 %v6438_v52, 0.0  ;;  %v6240_v32 = vadd.f32 %v15578_v44, %v19375_v22  ;;  %v15584_v23 = vadd.f32 %v19261_v6, %v6091_v20 }
 0x4da   : > { %v13162_v57 = vpack.c.bf16 %v6472_v62, %v6472_v62  ;;  %v6473_v1 = vmax.f32 %v6441_v59, 0.0  ;;  %v6306_v26 = vadd.f32 %v6274_v9, %v6242_v50  ;;  %v6243_v56 = vadd.f32 %v15581_v40, %v19375_v22  ;;  %v6925_v50 = vld [vmem:[#allocation2 + $0x18] sm:$0xf]  ;;  %v6918_v40 = vld [vmem:[#allocation2 + $0xc] sm:$0xf] }
 0x4db   : > { %v13160_v38 = vpack.c.bf16 %v6470_v25, %v6470_v25  ;;  %v6304_v10 = vadd.f32 %v6272_v24, %v6240_v32  ;;  %v6241_v9 = vadd.f32 %v15584_v23, %v19375_v22 }
 0x4dc   : > { %v6616_v34 = vshrl.u32 %v13162_v57, 16  ;;  %v13163_v27 = vpack.c.bf16 %v6473_v1, %v6473_v1  ;;  %6338 = vst [vmem:[%s17190_s24 + $0x30] sm:$0xff] %v6306_v26  ;;  %v6407_v28 = vmul.f32 %v19382_v4, %v6306_v26  ;;  %v6619_v6 = vshll.u32 %v13162_v57, 16 }
 0x4dd   : > { %v6599_v36 = vshrl.u32 %v13160_v38, 16  ;;  %6336 = vst [vmem:[%s17190_s24 + $0x20] sm:$0xff] %v6304_v10  ;;  %v6405_v54 = vmul.f32 %v19382_v4, %v6304_v10  ;;  %v15123_v60 = vpop.f32.mrb[104].mxu1  ;;  %v6602_v46 = vshll.u32 %v13160_v38, 16  ;;  %v19431_v38 = vadd.f32 %v19388_v49, %v6402_v29 }
 0x4de   : > { %v6618_v8 = vrot.slane %v6616_v34, 7  ;;  %v6624_v17 = vshrl.u32 %v13163_v27, 16  ;;  %v6444_v19 = vadd.f32 %v19388_v49, %v6407_v28  ;;  %v6104_v51 = vpop.f32.mrb[105].mxu1  ;;  %v6627_v41 = vshll.u32 %v13163_v27, 16  ;;  %v6275_v34 = vld [vmem:[%s17190_s24 + $0x38] sm:$0xff] }
 0x4df   : > { %v19417_v2 = vrot.slane %v6599_v36, 7  ;;  %v6442_v14 = vadd.f32 %v19388_v49, %v6405_v54  ;;  %v15124_v52 = vpop.f32.mrb[106].mxu1  ;;  %v6307_v36 = vadd.f32 %v6275_v34, %v6243_v56  ;;  %v6273_v54 = vld [vmem:[%s17190_s24 + $0x28] sm:$0xff] }
 0x4e0   : > { %v6621_v44 = vor.u32 %v6619_v6, %v6618_v8  ;;  %v19421_v55 = vrot.slane %v6624_v17, 7  ;;  %v6476_v62 = vmax.f32 %v6444_v19, 0.0  ;;  %v6107_v59 = vpop.f32.mrb[107].mxu1  ;;  %v6622_v32 = vrot.slane %v6618_v8, 4 }
 0x4e1   : > { %v6604_v20 = vor.u32 %v6602_v46, %v19417_v2  ;;  %v6474_v25 = vmax.f32 %v6442_v14, 0.0  ;;  %v6305_v17 = vadd.f32 %v6273_v54, %v6241_v9  ;;  %v15587_v19 = vadd.f32 %v19291_v33, %v15123_v60  ;;  %6339 = vst [vmem:[%s17190_s24 + $0x38] sm:$0xff] %v6307_v36 }
 0x4e2   : > { %v6926_v57 = vsel %vm17232_vm7, %v6621_v44, %v6925_v50  ;;  %v6629_v1 = vor.u32 %v6627_v41, %v19421_v55  ;;  %v13166_v26 = vpack.c.bf16 %v6476_v62, %v6476_v62  ;;  %v6408_v14 = vmul.f32 %v19382_v4, %v6307_v36 }
 0x4e3   : > { %6927 = vst [vmem:[#allocation2 + $0x18] sm:$0xf] %v6926_v57  ;;  %v6919_v24 = vsel %vm17232_vm7, %v6604_v20, %v6918_v40  ;;  %v13164_v10 = vpack.c.bf16 %v6474_v25, %v6474_v25  ;;  %v15590_v44 = vadd.f32 %v19279_v35, %v6104_v51  ;;  %v15593_v41 = vadd.f32 %v19297_v45, %v15124_v52  ;;  %v6278_v35 = vld [vmem:[%s17190_s24 + $0x50] sm:$0xff]  ;;  %v6276_v40 = vld [vmem:[%s17190_s24 + $0x40] sm:$0xff] }
 0x4e4   : > { %6920 = vst [vmem:[#allocation2 + $0xc] sm:$0xf] %v6919_v24  ;;  %v6630_v23 = vsel %vm17223_vm6, %v6622_v32, %v6629_v1  ;;  %v6650_v27 = vshrl.u32 %v13166_v26, 16  ;;  %v6653_v28 = vshll.u32 %v13166_v26, 16  ;;  %6337 = vst [vmem:[%s17190_s24 + $0x28] sm:$0xff] %v6305_v17  ;;  %v6406_v50 = vmul.f32 %v19382_v4, %v6305_v17  ;;  %v6277_v17 = vld [vmem:[%s17190_s24 + $0x48] sm:$0xff] }
 0x4e5   : > { %6928 = vst [vmem:[#allocation2 + $0x1c] sm:$0xf] %v6630_v23  ;;  %v6633_v8 = vshrl.u32 %v13164_v10, 16  ;;  %v6636_v6 = vshll.u32 %v13164_v10, 16  ;;  %v15127_v29 = vpop.f32.mrb[108].mxu1  ;;  %v6246_v33 = vadd.f32 %v15587_v19, %v19375_v22  ;;  %v15596_v60 = vadd.f32 %v19285_v16, %v6107_v59 }
 0x4e6   : > { %v19438_v46 = vrot.slane %v6650_v27, 7  ;;  %v6120_v62 = vpop.f32.mrb[109].mxu1  ;;  %v6445_v9 = vadd.f32 %v19388_v49, %v6408_v14  ;;  %v6244_v45 = vadd.f32 %v15590_v44, %v19375_v22  ;;  %v6471_v52 = vmax.f32 %v19431_v38, 0.0  ;;  %v6939_v32 = vld [vmem:[#allocation2 + $0x30] sm:$0xf] }
 0x4e7   : > { %v19444_v56 = vrot.slane %v6633_v8, 7  ;;  %v19450_v20 = vpop.f32.mrb[110].mxu1  ;;  %v6443_v16 = vadd.f32 %v19388_v49, %v6406_v50  ;;  %v6310_v59 = vadd.f32 %v6278_v35, %v6246_v33  ;;  %v6932_v26 = vld [vmem:[#allocation2 + $0x24] sm:$0xf]  ;;  %v6247_v34 = vadd.f32 %v15593_v41, %v19375_v22 }
 0x4e8   : > { %v6655_v25 = vor.u32 %v6653_v28, %v19438_v46  ;;  %v19456_v51 = vpop.f32.mrb[111].mxu1  ;;  %v6477_v24 = vmax.f32 %v6445_v9, 0.0  ;;  %v6308_v10 = vadd.f32 %v6276_v40, %v6244_v45  ;;  %v6279_v28 = vld [vmem:[%s17190_s24 + $0x58] sm:$0xff]  ;;  %v6245_v36 = vadd.f32 %v15596_v60, %v19375_v22 }
 0x4e9   : > { %v6638_v57 = vor.u32 %v6636_v6, %v19444_v56  ;;  %v6475_v23 = vmax.f32 %v6443_v16, 0.0  ;;  %6342 = vst [vmem:[%s17190_s24 + $0x50] sm:$0xff] %v6310_v59  ;;  %v6411_v27 = vmul.f32 %v19382_v4, %v6310_v59  ;;  %v6311_v6 = vadd.f32 %v6279_v28, %v6247_v34 }
 0x4ea   : > { %v6940_v1 = vsel %vm17232_vm7, %v6655_v25, %v6939_v32  ;;  %v13167_v54 = vpack.c.bf16 %v6477_v24, %v6477_v24  ;;  %6340 = vst [vmem:[%s17190_s24 + $0x40] sm:$0xff] %v6308_v10  ;;  %v6409_v8 = vmul.f32 %v19382_v4, %v6308_v10  ;;  %v15599_v19 = vadd.f32 %v19315_v7, %v15127_v29 }
 0x4eb   : > { %6941 = vst [vmem:[#allocation2 + $0x30] sm:$0xf] %v6940_v1  ;;  %v6933_v38 = vsel %vm17232_vm7, %v6638_v57, %v6932_v26  ;;  %v13165_v14 = vpack.c.bf16 %v6475_v23, %v6475_v23  ;;  %v6448_v44 = vadd.f32 %v19388_v49, %v6411_v27  ;;  %v6309_v41 = vadd.f32 %v6277_v17, %v6245_v36 }
 0x4ec   : > { %6934 = vst [vmem:[#allocation2 + $0x24] sm:$0xf] %v6933_v38  ;;  %v15602_v50 = vadd.f32 %v19303_v58, %v6120_v62  ;;  %v6656_v60 = vrot.slane %v19438_v46, 4  ;;  %v6658_v25 = vshrl.u32 %v13167_v54, 16  ;;  %v6446_v9 = vadd.f32 %v19388_v49, %v6409_v8  ;;  %6343 = vst [vmem:[%s17190_s24 + $0x58] sm:$0xff] %v6311_v6 }
 0x4ed   : > { %v19477_v33 = vpop.f32.mrb[112].mxu1  ;;  %v6412_v35 = vmul.f32 %v19382_v4, %v6311_v6  ;;  %v6661_v32 = vshll.u32 %v13167_v54, 16  ;;  %v6641_v7 = vshrl.u32 %v13165_v14, 16  ;;  %v6480_v29 = vmax.f32 %v6448_v44, 0.0  ;;  %6341 = vst [vmem:[%s17190_s24 + $0x48] sm:$0xff] %v6309_v41  ;;  %v6282_v44 = vld [vmem:[%s17190_s24 + $0x70] sm:$0xff] }
 0x4ee   : > { %v19483_v45 = vpop.f32.mrb[113].mxu1  ;;  %v6410_v57 = vmul.f32 %v19382_v4, %v6309_v41  ;;  %v19489_v58 = vrot.slane %v6658_v25, 7  ;;  %v6644_v62 = vshll.u32 %v13165_v14, 16  ;;  %v6478_v46 = vmax.f32 %v6446_v9, 0.0  ;;  %v6280_v9 = vld [vmem:[%s17190_s24 + $0x60] sm:$0xff] }
 0x4ef   : > { %v19487_v16 = vpop.f32.mrb[114].mxu1  ;;  %v6449_v59 = vadd.f32 %v19388_v49, %v6412_v35  ;;  %v19494_v1 = vrot.slane %v6641_v7, 7  ;;  %v13170_v26 = vpack.c.bf16 %v6480_v29, %v6480_v29  ;;  %v6250_v10 = vadd.f32 %v15599_v19, %v19375_v22 }
 0x4f0   : > { %v19492_v40 = vpop.f32.mrb[115].mxu1  ;;  %v6447_v24 = vadd.f32 %v19388_v49, %v6410_v57  ;;  %v6663_v34 = vor.u32 %v6661_v32, %v19489_v58  ;;  %v13168_v38 = vpack.c.bf16 %v6478_v46, %v6478_v46  ;;  %v6248_v27 = vadd.f32 %v15602_v50, %v19375_v22 }
 0x4f1   : > { %v6481_v23 = vmax.f32 %v6449_v59, 0.0  ;;  %v19500_v28 = vpack.c.bf16 %v6471_v52, %v6471_v52  ;;  %v6639_v36 = vrot.slane %v19444_v56, 4  ;;  %v6646_v54 = vor.u32 %v6644_v62, %v19494_v1 }
 0x4f2   : > { %v6684_v8 = vshrl.u32 %v13170_v26, 16  ;;  %v6664_v6 = vsel %vm17223_vm6, %v6656_v60, %v6663_v34  ;;  %v6687_v17 = vshll.u32 %v13170_v26, 16  ;;  %v6667_v14 = vshrl.u32 %v13168_v38, 16 }
 0x4f3   : > { %v13171_v19 = vpack.c.bf16 %v6481_v23, %v6481_v23  ;;  %6942 = vst [vmem:[#allocation2 + $0x34] sm:$0xf] %v6664_v6  ;;  %v6647_v41 = vsel %vm17223_vm6, %v6639_v36, %v6646_v54  ;;  %v6479_v52 = vmax.f32 %v6447_v24, 0.0  ;;  %v6314_v25 = vadd.f32 %v6282_v44, %v6250_v10  ;;  %v6953_v24 = vld [vmem:[#allocation2 + $0x48] sm:$0xf] }
 0x4f4   : > { %v6686_v50 = vrot.slane %v6684_v8, 7  ;;  %6935 = vst [vmem:[#allocation2 + $0x28] sm:$0xf] %v6647_v41  ;;  %v6669_v35 = vrot.slane %v6667_v14, 7  ;;  %v6670_v32 = vshll.u32 %v13168_v38, 16  ;;  %v6312_v7 = vadd.f32 %v6280_v9, %v6248_v27 }
 0x4f5   : > { %v19510_v56 = vpop.f32.mrb[116].mxu1  ;;  %v6692_v60 = vshrl.u32 %v13171_v19, 16  ;;  %v6607_v57 = vshrl.u32 %v19500_v28, 16  ;;  %v13169_v46 = vpack.c.bf16 %v6479_v52, %v6479_v52  ;;  %6346 = vst [vmem:[%s17190_s24 + $0x70] sm:$0xff] %v6314_v25  ;;  %v6415_v59 = vmul.f32 %v19382_v4, %v6314_v25  ;;  %v6946_v8 = vld [vmem:[#allocation2 + $0x3c] sm:$0xf] }
 0x4f6   : > { %v19512_v29 = vpop.f32.mrb[117].mxu1  ;;  %v6689_v62 = vor.u32 %v6687_v17, %v6686_v50  ;;  %v6672_v10 = vor.u32 %v6670_v32, %v6669_v35  ;;  %v6695_v23 = vshll.u32 %v13171_v19, 16  ;;  %6344 = vst [vmem:[%s17190_s24 + $0x60] sm:$0xff] %v6312_v7  ;;  %v6413_v38 = vmul.f32 %v19382_v4, %v6312_v7 }
 0x4f7   : > { %v19517_v26 = vpop.f32.mrb[118].mxu1  ;;  %v19519_v34 = vrot.slane %v6692_v60, 7  ;;  %v6690_v36 = vrot.slane %v6686_v50, 4  ;;  %v6675_v6 = vshrl.u32 %v13169_v46, 16  ;;  %v6452_v17 = vadd.f32 %v19388_v49, %v6415_v59 }
 0x4f8   : > { %v19523_v27 = vpop.f32.mrb[119].mxu1  ;;  %v6954_v54 = vsel %vm17232_vm7, %v6689_v62, %v6953_v24  ;;  %v6947_v14 = vsel %vm17232_vm7, %v6672_v10, %v6946_v8  ;;  %v6678_v19 = vshll.u32 %v13169_v46, 16  ;;  %v6450_v41 = vadd.f32 %v19388_v49, %v6413_v38  ;;  %v6283_v24 = vld [vmem:[%s17190_s24 + $0x78] sm:$0xff] }
 0x4f9   : > { %6955 = vst [vmem:[#allocation2 + $0x48] sm:$0xf] %v6954_v54  ;;  %v6697_v44 = vor.u32 %v6695_v23, %v19519_v34  ;;  %6948 = vst [vmem:[#allocation2 + $0x3c] sm:$0xf] %v6947_v14  ;;  %v19532_v52 = vrot.slane %v6675_v6, 7  ;;  %v6484_v50 = vmax.f32 %v6452_v17, 0.0  ;;  %v15605_v25 = vadd.f32 %v19322_v43, %v19450_v20 }
 0x4fa   : > { %v15608_v9 = vadd.f32 %v19309_v42, %v19456_v51  ;;  %v6482_v60 = vmax.f32 %v6450_v41, 0.0  ;;  %v15611_v7 = vadd.f32 %v19335_v5, %v19477_v33  ;;  %v15614_v62 = vadd.f32 %v19328_v39, %v19483_v45  ;;  %v6286_v54 = vld [vmem:[%s17190_s24 + $0x90] sm:$0xff] }
 0x4fb   : > { %v6698_v32 = vsel %vm17223_vm6, %v6690_v36, %v6697_v44  ;;  %v6673_v46 = vrot.slane %v6669_v35, 4  ;;  %v6680_v59 = vor.u32 %v6678_v19, %v19532_v52  ;;  %v13174_v43 = vpack.c.bf16 %v6484_v50, %v6484_v50  ;;  %v6281_v36 = vld [vmem:[%s17190_s24 + $0x68] sm:$0xff]  ;;  %v6284_v19 = vld [vmem:[%s17190_s24 + $0x80] sm:$0xff] }
 0x4fc   : > { %6956 = vst [vmem:[#allocation2 + $0x4c] sm:$0xf] %v6698_v32  ;;  %v6251_v20 = vadd.f32 %v15605_v25, %v19375_v22  ;;  %v13172_v51 = vpack.c.bf16 %v6482_v60, %v6482_v60  ;;  %v6249_v10 = vadd.f32 %v15608_v9, %v19375_v22  ;;  %v6254_v5 = vadd.f32 %v15611_v7, %v19375_v22 }
 0x4fd   : > { %v19546_v42 = vpop.f32.mrb[120].mxu1  ;;  %v6252_v39 = vadd.f32 %v15614_v62, %v19375_v22  ;;  %v6681_v45 = vsel %vm17223_vm6, %v6673_v46, %v6680_v59  ;;  %v6718_v35 = vshrl.u32 %v13174_v43, 16  ;;  %v6721_v23 = vshll.u32 %v13174_v43, 16 }
 0x4fe   : > { %v19552_v33 = vpop.f32.mrb[121].mxu1  ;;  %v6315_v38 = vadd.f32 %v6283_v24, %v6251_v20  ;;  %6949 = vst [vmem:[#allocation2 + $0x40] sm:$0xf] %v6681_v45  ;;  %v6701_v6 = vshrl.u32 %v13172_v51, 16  ;;  %v6704_v17 = vshll.u32 %v13172_v51, 16  ;;  %v6313_v14 = vadd.f32 %v6281_v36, %v6249_v10  ;;  %v6287_v36 = vld [vmem:[%s17190_s24 + $0x98] sm:$0xff] }
 0x4ff   : > { %v19558_v8 = vpop.f32.mrb[122].mxu1  ;;  %v6318_v44 = vadd.f32 %v6286_v54, %v6254_v5  ;;  %v19563_v50 = vrot.slane %v6718_v35, 7  ;;  %v6316_v9 = vadd.f32 %v6284_v19, %v6252_v39  ;;  %v15617_v32 = vadd.f32 %v19338_v21, %v19487_v16  ;;  %v6967_v51 = vld [vmem:[#allocation2 + $0x60] sm:$0xf]  ;;  %v6960_v5 = vld [vmem:[#allocation2 + $0x54] sm:$0xf] }
 0x500   : > { %v19561_v41 = vpop.f32.mrb[123].mxu1  ;;  %6347 = vst [vmem:[%s17190_s24 + $0x78] sm:$0xff] %v6315_v38  ;;  %v6416_v25 = vmul.f32 %v19382_v4, %v6315_v38  ;;  %v19569_v60 = vrot.slane %v6701_v6, 7  ;;  %6345 = vst [vmem:[%s17190_s24 + $0x68] sm:$0xff] %v6313_v14  ;;  %v6414_v7 = vmul.f32 %v19382_v4, %v6313_v14  ;;  %v15620_v46 = vadd.f32 %v19332_v48, %v19492_v40  ;;  %v6285_v19 = vld [vmem:[%s17190_s24 + $0x88] sm:$0xff] }
 0x501   : > { %6350 = vst [vmem:[%s17190_s24 + $0x90] sm:$0xff] %v6318_v44  ;;  %v6419_v62 = vmul.f32 %v19382_v4, %v6318_v44  ;;  %v6610_v59 = vshll.u32 %v19500_v28, 16  ;;  %v6723_v43 = vor.u32 %v6721_v23, %v19563_v50  ;;  %6348 = vst [vmem:[%s17190_s24 + $0x80] sm:$0xff] %v6316_v9  ;;  %v6417_v21 = vmul.f32 %v19382_v4, %v6316_v9 }
 0x502   : > { %v6453_v20 = vadd.f32 %v19388_v49, %v6416_v25  ;;  %v19584_v16 = vrot.slane %v6607_v57, 7  ;;  %v6706_v24 = vor.u32 %v6704_v17, %v19569_v60  ;;  %v6451_v10 = vadd.f32 %v19388_v49, %v6414_v7 }
 0x503   : > { %v6456_v48 = vadd.f32 %v19388_v49, %v6419_v62  ;;  %v6968_v40 = vsel %vm17232_vm7, %v6723_v43, %v6967_v51  ;;  %v6454_v45 = vadd.f32 %v19388_v49, %v6417_v21  ;;  %v6255_v28 = vadd.f32 %v15617_v32, %v19375_v22 }
 0x504   : > { %v6485_v39 = vmax.f32 %v6453_v20, 0.0  ;;  %6969 = vst [vmem:[#allocation2 + $0x60] sm:$0xf] %v6968_v40  ;;  %v6961_v57 = vsel %vm17232_vm7, %v6706_v24, %v6960_v5  ;;  %v6483_v23 = vmax.f32 %v6451_v10, 0.0  ;;  %v6253_v54 = vadd.f32 %v15620_v46, %v19375_v22 }
 0x505   : > { %v19593_v35 = vpop.f32.mrb[124].mxu1  ;;  %v6488_v38 = vmax.f32 %v6456_v48, 0.0  ;;  %6962 = vst [vmem:[#allocation2 + $0x54] sm:$0xf] %v6961_v57  ;;  %v6486_v14 = vmax.f32 %v6454_v45, 0.0  ;;  %v6319_v44 = vadd.f32 %v6287_v36, %v6255_v28  ;;  %v15623_v25 = vadd.f32 %v19347_v15, %v19510_v56 }
 0x506   : > { %v19599_v6 = vpop.f32.mrb[125].mxu1  ;;  %v13175_v17 = vpack.c.bf16 %v6485_v39, %v6485_v39  ;;  %v13173_v32 = vpack.c.bf16 %v6483_v23, %v6483_v23  ;;  %v6317_v62 = vadd.f32 %v6285_v19, %v6253_v54  ;;  %v15626_v46 = vadd.f32 %v19341_v11, %v19512_v29 }
 0x507   : > { %v19604_v9 = vpop.f32.mrb[126].mxu1  ;;  %v13178_v7 = vpack.c.bf16 %v6488_v38, %v6488_v38  ;;  %v6724_v20 = vrot.slane %v19563_v50, 4  ;;  %v13176_v51 = vpack.c.bf16 %v6486_v14, %v6486_v14  ;;  %6351 = vst [vmem:[%s17190_s24 + $0x98] sm:$0xff] %v6319_v44  ;;  %v6420_v24 = vmul.f32 %v19382_v4, %v6319_v44 }
 0x508   : > { %v19608_v43 = vpop.f32.mrb[127].mxu1  ;;  %v6726_v21 = vshrl.u32 %v13175_v17, 16  ;;  %v6729_v10 = vshll.u32 %v13175_v17, 16  ;;  %v6709_v15 = vshrl.u32 %v13173_v32, 16  ;;  %v6712_v56 = vshll.u32 %v13173_v32, 16  ;;  %6349 = vst [vmem:[%s17190_s24 + $0x88] sm:$0xff] %v6317_v62 }
 0x509   : > { %v6752_v48 = vshrl.u32 %v13178_v7, 16  ;;  %v6755_v5 = vshll.u32 %v13178_v7, 16  ;;  %v6735_v39 = vshrl.u32 %v13176_v51, 16  ;;  %v6457_v11 = vadd.f32 %v19388_v49, %v6420_v24  ;;  %v6974_v24 = vld [vmem:[#allocation2 + $0x6c] sm:$0xf] }
 0x50a   : > { %v19614_v40 = vrot.slane %v6726_v21, 7  ;;  %v19617_v29 = vrot.slane %v6709_v15, 7  ;;  %v6418_v50 = vmul.f32 %v19382_v4, %v6317_v62  ;;  %v6258_v28 = vadd.f32 %v15623_v25, %v19375_v22  ;;  %v6981_v25 = vld [vmem:[#allocation2 + $0x78] sm:$0xf] }
 0x50b   : > { %v6754_v45 = vrot.slane %v6752_v48, 7  ;;  %v19622_v23 = vrot.slane %v6735_v39, 7  ;;  %v6738_v38 = vshll.u32 %v13176_v51, 16  ;;  %v6489_v36 = vmax.f32 %v6457_v11, 0.0  ;;  %v6290_v21 = vld [vmem:[%s17190_s24 + $0xb0] sm:$0xff]  ;;  %v6288_v11 = vld [vmem:[%s17190_s24 + $0xa0] sm:$0xff] }
 0x50c   : > { %v6731_v57 = vor.u32 %v6729_v10, %v19614_v40  ;;  %v6605_v54 = vrot.slane %v19417_v2, 4  ;;  %v6707_v17 = vrot.slane %v19569_v60, 4  ;;  %v6714_v14 = vor.u32 %v6712_v56, %v19617_v29 }
 0x50d   : > { %v6757_v44 = vor.u32 %v6755_v5, %v6754_v45  ;;  %v19628_v19 = vor.u32 %v6610_v59, %v19584_v16  ;;  %v6740_v7 = vor.u32 %v6738_v38, %v19622_v23  ;;  %v13179_v62 = vpack.c.bf16 %v6489_v36, %v6489_v36 }
 0x50e   : > { %v6732_v32 = vsel %vm17223_vm6, %v6724_v20, %v6731_v57  ;;  %v6715_v60 = vsel %vm17223_vm6, %v6707_v17, %v6714_v14  ;;  %v6455_v59 = vadd.f32 %v19388_v49, %v6418_v50  ;;  %v6322_v10 = vadd.f32 %v6290_v21, %v6258_v28 }
 0x50f   : > { %6970 = vst [vmem:[#allocation2 + $0x64] sm:$0xf] %v6732_v32  ;;  %v6982_v51 = vsel %vm17232_vm7, %v6757_v44, %v6981_v25  ;;  %6963 = vst [vmem:[#allocation2 + $0x58] sm:$0xf] %v6715_v60  ;;  %v6975_v20 = vsel %vm17232_vm7, %v6740_v7, %v6974_v24  ;;  %v6760_v15 = vshrl.u32 %v13179_v62, 16  ;;  %v6763_v56 = vshll.u32 %v13179_v62, 16 }
 0x510   : > { %6983 = vst [vmem:[#allocation2 + $0x78] sm:$0xf] %v6982_v51  ;;  %v6256_v48 = vadd.f32 %v15626_v46, %v19375_v22  ;;  %6976 = vst [vmem:[#allocation2 + $0x6c] sm:$0xf] %v6975_v20  ;;  %v6487_v5 = vmax.f32 %v6455_v59, 0.0  ;;  %v6423_v39 = vmul.f32 %v19382_v4, %v6322_v10  ;;  %v15629_v50 = vadd.f32 %v19350_v3, %v19517_v26  ;;  %v6289_v7 = vld [vmem:[%s17190_s24 + $0xa8] sm:$0xff] }
 0x511   : > { %6354 = vst [vmem:[%s17190_s24 + $0xb0] sm:$0xff] %v6322_v10  ;;  %v15632_v28 = vadd.f32 %v19344_v61, %v19523_v27  ;;  %v19649_v57 = vrot.slane %v6760_v15, 7  ;;  %v15635_v46 = vadd.f32 %v19359_v18, %v19546_v42  ;;  %v15638_v36 = vadd.f32 %v19353_v12, %v19552_v33  ;;  %v6291_v18 = vld [vmem:[%s17190_s24 + $0xb8] sm:$0xff]  ;;  %v6294_v62 = vld [vmem:[%s17190_s24 + $0xd0] sm:$0xff] }
 0x512   : > { %v6320_v38 = vadd.f32 %v6288_v11, %v6256_v48  ;;  %v13177_v17 = vpack.c.bf16 %v6487_v5, %v6487_v5  ;;  %v6460_v14 = vadd.f32 %v19388_v49, %v6423_v39  ;;  %v6259_v44 = vadd.f32 %v15629_v50, %v19375_v22 }
 0x513   : > { %v6257_v3 = vadd.f32 %v15632_v28, %v19375_v22  ;;  %v6758_v26 = vrot.slane %v6754_v45, 4  ;;  %v6765_v61 = vor.u32 %v6763_v56, %v19649_v57  ;;  %v6262_v42 = vadd.f32 %v15635_v46, %v19375_v22 }
 0x514   : > { %6352 = vst [vmem:[%s17190_s24 + $0xa0] sm:$0xff] %v6320_v38  ;;  %v6421_v27 = vmul.f32 %v19382_v4, %v6320_v38  ;;  %v6743_v32 = vshrl.u32 %v13177_v17, 16  ;;  %v6746_v12 = vshll.u32 %v13177_v17, 16  ;;  %v6492_v33 = vmax.f32 %v6460_v14, 0.0  ;;  %v6292_v14 = vld [vmem:[%s17190_s24 + $0xc0] sm:$0xff] }
 0x515   : > { %v6323_v25 = vadd.f32 %v6291_v18, %v6259_v44  ;;  %v6766_v45 = vsel %vm17223_vm6, %v6758_v26, %v6765_v61  ;;  %v6321_v60 = vadd.f32 %v6289_v7, %v6257_v3  ;;  %v6326_v51 = vadd.f32 %v6294_v62, %v6262_v42 }
 0x516   : > { %v6458_v21 = vadd.f32 %v19388_v49, %v6421_v27  ;;  %6984 = vst [vmem:[#allocation2 + $0x7c] sm:$0xf] %v6766_v45  ;;  %v19668_v24 = vrot.slane %v6743_v32, 7  ;;  %v13182_v59 = vpack.c.bf16 %v6492_v33, %v6492_v33  ;;  %v6260_v20 = vadd.f32 %v15638_v36, %v19375_v22  ;;  %v6295_v33 = vld [vmem:[%s17190_s24 + $0xd8] sm:$0xff] }
 0x517   : > { %6355 = vst [vmem:[%s17190_s24 + $0xb8] sm:$0xff] %v6323_v25  ;;  %v6424_v10 = vmul.f32 %v19382_v4, %v6323_v25  ;;  %6353 = vst [vmem:[%s17190_s24 + $0xa8] sm:$0xff] %v6321_v60  ;;  %v6422_v56 = vmul.f32 %v19382_v4, %v6321_v60  ;;  %v6427_v48 = vmul.f32 %v19382_v4, %v6326_v51  ;;  %v6741_v39 = vrot.slane %v19622_v23, 4  ;;  %v6995_v25 = vld [vmem:[#allocation2 + $0x90] sm:$0xf] }
 0x518   : > { %v6490_v15 = vmax.f32 %v6458_v21, 0.0  ;;  %6358 = vst [vmem:[%s17190_s24 + $0xd0] sm:$0xff] %v6326_v51  ;;  %v15641_v5 = vadd.f32 %v19362_v30, %v19558_v8  ;;  %v6748_v11 = vor.u32 %v6746_v12, %v19668_v24  ;;  %v6786_v50 = vshrl.u32 %v13182_v59, 16 }
 0x519   : > { %v6789_v28 = vshll.u32 %v13182_v59, 16  ;;  %v6461_v46 = vadd.f32 %v19388_v49, %v6424_v10  ;;  %v6459_v36 = vadd.f32 %v19388_v49, %v6422_v56  ;;  %v6464_v17 = vadd.f32 %v19388_v49, %v6427_v48  ;;  %v6988_v48 = vld [vmem:[#allocation2 + $0x84] sm:$0xf] }
 0x51a   : > { %v13180_v38 = vpack.c.bf16 %v6490_v15, %v6490_v15  ;;  %v6749_v44 = vsel %vm17223_vm6, %v6741_v39, %v6748_v11  ;;  %v6788_v30 = vrot.slane %v6786_v50, 7  ;;  %v6324_v8 = vadd.f32 %v6292_v14, %v6260_v20 }
 0x51b   : > { %v6263_v23 = vadd.f32 %v15641_v5, %v19375_v22  ;;  %v6614_v3 = vrot.slane %v19584_v16, 4  ;;  %6977 = vst [vmem:[#allocation2 + $0x70] sm:$0xf] %v6749_v44  ;;  %v6493_v61 = vmax.f32 %v6461_v46, 0.0  ;;  %v6491_v27 = vmax.f32 %v6459_v36, 0.0 }
 0x51c   : > { %v6769_v26 = vshrl.u32 %v13180_v38, 16  ;;  %v6791_v18 = vor.u32 %v6789_v28, %v6788_v30  ;;  %v6772_v42 = vshll.u32 %v13180_v38, 16  ;;  %v6496_v32 = vmax.f32 %v6464_v17, 0.0  ;;  %6356 = vst [vmem:[%s17190_s24 + $0xc0] sm:$0xff] %v6324_v8 }
 0x51d   : > { %v6425_v12 = vmul.f32 %v19382_v4, %v6324_v8  ;;  %v13183_v62 = vpack.c.bf16 %v6493_v61, %v6493_v61  ;;  %v13181_v45 = vpack.c.bf16 %v6491_v27, %v6491_v27  ;;  %v6327_v21 = vadd.f32 %v6295_v33, %v6263_v23 }
 0x51e   : > { %v6771_v7 = vrot.slane %v6769_v26, 7  ;;  %v6996_v16 = vsel %vm17232_vm7, %v6791_v18, %v6995_v25  ;;  %v13186_v60 = vpack.c.bf16 %v6496_v32, %v6496_v32  ;;  %v6613_v59 = vsel %vm17223_vm6, %v6605_v54, %v19628_v19  ;;  %v7032_v25 = vld [vmem:[#allocation2 + $0xc] sm:$0xf] }
 0x51f   : > { %v6462_v51 = vadd.f32 %v19388_v49, %v6425_v12  ;;  %v6631_v10 = vrot.slane %v19421_v55, 4  ;;  %6997 = vst [vmem:[#allocation2 + $0x90] sm:$0xf] %v6996_v16  ;;  %v6794_v15 = vshrl.u32 %v13183_v62, 16  ;;  %v6797_v56 = vshll.u32 %v13183_v62, 16  ;;  %6359 = vst [vmem:[%s17190_s24 + $0xd8] sm:$0xff] %v6327_v21 }
 0x520   : > { %v6774_v20 = vor.u32 %v6772_v42, %v6771_v7  ;;  %6921 = vst [vmem:[#allocation2 + $0x10] sm:$0xf] %v6613_v59  ;;  %v6777_v5 = vshrl.u32 %v13181_v45, 16  ;;  %v6780_v39 = vshll.u32 %v13181_v45, 16  ;;  %v6820_v11 = vshrl.u32 %v13186_v60, 16  ;;  %v6293_v59 = vld [vmem:[%s17190_s24 + $0xc8] sm:$0xff] }
 0x521   : > { %v6823_v50 = vshll.u32 %v13186_v60, 16  ;;  %v19704_v2 = vrot.slane %v6794_v15, 7  ;;  %v6494_v38 = vmax.f32 %v6462_v51, 0.0  ;;  %v6428_v54 = vmul.f32 %v19382_v4, %v6327_v21  ;;  %v6922_v55 = vld [vmem:[#allocation2 + $0x14] sm:$0x1] }
 0x522   : > { %v6989_v28 = vsel %vm17232_vm7, %v6774_v20, %v6988_v48  ;;  %v19707_v19 = vrot.slane %v6777_v5, 7  ;;  %v19709_v46 = vrot.slane %v6820_v11, 7  ;;  %v6923_v17 = vsel %vm17242_vm8, %v6614_v3, %v6922_v55  ;;  %v6929_v42 = vld [vmem:[#allocation2 + $0x20] sm:$0x1]  ;;  %v7009_v3 = vld [vmem:[#allocation2 + $0xa8] sm:$0xf] }
 0x523   : > { %6990 = vst [vmem:[#allocation2 + $0x84] sm:$0xf] %v6989_v28  ;;  %v15644_v14 = vadd.f32 %v19356_v13, %v19561_v41  ;;  %v6792_v44 = vrot.slane %v6788_v30, 4  ;;  %v6799_v8 = vor.u32 %v6797_v56, %v19704_v2  ;;  %v13184_v23 = vpack.c.bf16 %v6494_v38, %v6494_v38  ;;  %6924 = vst [vmem:[#allocation2 + $0x14] sm:$0x1] %v6923_v17 }
 0x524   : > { %v6465_v26 = vadd.f32 %v19388_v49, %v6428_v54  ;;  %v6775_v61 = vrot.slane %v6771_v7, 4  ;;  %v6782_v27 = vor.u32 %v6780_v39, %v19707_v19  ;;  %v6825_v18 = vor.u32 %v6823_v50, %v19709_v46  ;;  %v19721_v41 = vld [vmem:[#allocation2 + $0x1c] sm:$0xf]  ;;  %v7034_v20 = vld [vmem:[#allocation2 + $0x18] sm:$0xf] }
 0x525   : > { %v6800_v32 = vsel %vm17223_vm6, %v6792_v44, %v6799_v8  ;;  %v6803_v12 = vshrl.u32 %v13184_v23, 16  ;;  %v6261_v62 = vadd.f32 %v15644_v14, %v19375_v22  ;;  %v6930_v45 = vsel %vm17242_vm8, %v6631_v10, %v6929_v42  ;;  %v7002_v11 = vld [vmem:[#allocation2 + $0x9c] sm:$0xf] }
 0x526   : > { %v6497_v13 = vmax.f32 %v6465_v26, 0.0  ;;  %6998 = vst [vmem:[#allocation2 + $0x94] sm:$0xf] %v6800_v32  ;;  %v6783_v30 = vsel %vm17223_vm6, %v6775_v61, %v6782_v27  ;;  %v7010_v33 = vsel %vm17232_vm7, %v6825_v18, %v7009_v3  ;;  %v6806_v16 = vshll.u32 %v13184_v23, 16  ;;  %6931 = vst [vmem:[#allocation2 + $0x20] sm:$0x1] %v6930_v45 }
 0x527   : > { %v19727_v7 = vld [vmem:[#allocation2 + $0x10] sm:$0xf]  ;;  %6991 = vst [vmem:[#allocation2 + $0x88] sm:$0xf] %v6783_v30  ;;  %7011 = vst [vmem:[#allocation2 + $0xa8] sm:$0xf] %v7010_v33  ;;  %v6325_v15 = vadd.f32 %v6293_v59, %v6261_v62  ;;  %v19739_v56 = vcombine.low %v7034_v20, %v19721_v41  ;;  %v15647_v10 = vadd.f32 %v19371_v37, %v19593_v35 }
 0x528   : > { %v19732_v21 = vrot.slane %v6803_v12, 7  ;;  %v13187_v60 = vpack.c.bf16 %v6497_v13, %v6497_v13  ;;  %v19735_v51 = vcombine.low %v7032_v25, %v19727_v7  ;;  %v15650_v48 = vadd.f32 %v19365_v63, %v19599_v6  ;;  %v6298_v23 = vld [vmem:[%s17190_s24 + $0xf0] sm:$0xff]  ;;  %v6296_v18 = vld [vmem:[%s17190_s24 + $0xe0] sm:$0xff] }
 0x529   : > { %v6665_v5 = vrot.slane %v19489_v58, 4  ;;  %v6826_v28 = vrot.slane %v19709_v46, 4  ;;  %6357 = vst [vmem:[%s17190_s24 + $0xc8] sm:$0xff] %v6325_v15  ;;  %v6426_v54 = vmul.f32 %v19382_v4, %v6325_v15  ;;  %v6266_v55 = vadd.f32 %v15647_v10, %v19375_v22 }
 0x52a   : > { %v6808_v39 = vor.u32 %v6806_v16, %v19732_v21  ;;  %v6828_v50 = vshrl.u32 %v13187_v60, 16  ;;  %v19748_v38 = vld [vmem:[#allocation2 + $0x14] ss:$0 sps:$4 sm:$0x11]   ;;  %v6264_v37 = vadd.f32 %v15650_v48, %v19375_v22  ;;  %v6831_v6 = vshll.u32 %v13187_v60, 16 }
 0x52b   : > { %v7279_v17 = vshll.u32 %v19735_v51, 16  ;;  %v7277_v46 = vshrl.u32 %v19735_v51, 16  ;;  %v7284_v14 = vshll.u32 %v19748_v38, 16  ;;  %v6463_v44 = vadd.f32 %v19388_v49, %v6426_v54  ;;  %v6299_v54 = vld [vmem:[%s17190_s24 + $0xf8] sm:$0xff] }
 0x52c   : > { %v7003_v63 = vsel %vm17232_vm7, %v6808_v39, %v7002_v11  ;;  %v19756_v35 = vrot.slane %v6828_v50, 7  ;;  %v7291_v8 = vshll.u32 %v19739_v56, 16  ;;  %v7289_v61 = vshrl.u32 %v19739_v56, 16  ;;  %v16460_v39 = vld [vmem:[#allocation9 + $0x5c8] sm:$0xff]  }
 0x52d   : > { %7004 = vst [vmem:[#allocation2 + $0x9c] sm:$0xf] %v7003_v63  ;;  %v7281_v26 = vrot.slane %v7279_v17, 1  ;;  %v6330_v27 = vadd.f32 %v6298_v23, %v6266_v55  ;;  %v7286_v42 = vrot.slane %v7284_v14, 1  ;;  %v6495_v32 = vmax.f32 %v6463_v44, 0.0  ;;  %v6297_v14 = vld [vmem:[%s17190_s24 + $0xe8] sm:$0xff] }
 0x52e   : > { %v6833_v22 = vor.u32 %v6831_v6, %v19756_v35  ;;  %v7293_v3 = vrot.slane %v7291_v8, 1  ;;  %v6328_v12 = vadd.f32 %v6296_v18, %v6264_v37  ;;  %v19769_v33 = vld [vmem:[#allocation2 + $0x20] ss:$0 sps:$4 sm:$0x11]   ;;  %v15653_v62 = vadd.f32 %v19373_v31, %v19604_v9  ;;  %v16687_v9 = vld [vmem:[#allocation8 + $0x2] ss:$0 sm:$0xff] }
 0x52f   : > { %v7282_v30 = vor.u32 %v7281_v26, %v7277_v46  ;;  %6362 = vst [vmem:[%s17190_s24 + $0xf0] sm:$0xff] %v6330_v27  ;;  %v6431_v25 = vmul.f32 %v19382_v4, %v6330_v27  ;;  %v6648_v45 = vrot.slane %v19494_v1, 4  ;;  %v13185_v16 = vpack.c.bf16 %v6495_v32, %v6495_v32  ;;  %v6936_v37 = vld [vmem:[#allocation2 + $0x2c] sm:$0x1]  ;;  %v16689_v6 = vld [vmem:[#allocation9 + $0x5c0] sm:$0xff]  }
 0x530   : > { %v6834_v13 = vsel %vm17223_vm6, %v6826_v28, %v6833_v22  ;;  %6360 = vst [vmem:[%s17190_s24 + $0xe0] sm:$0xff] %v6328_v12  ;;  %v6429_v60 = vmul.f32 %v19382_v4, %v6328_v12  ;;  %v15656_v59 = vadd.f32 %v19368_v0, %v19608_v43  ;;  %v7294_v15 = vor.u32 %v7293_v3, %v7289_v61  ;;  %v16688_v4 = vld [vmem:[#allocation11 + $0x1] ss:$0 sm:$0xff]  ;;  %v19784_v0 = vld [vmem:[#allocation2 + $0x28] sm:$0xf]  ;;  %v16465_v61 = vld [vmem:[#allocation9 + $0x5d0] sm:$0xff]  }
 0x531   : > { %7012 = vst [vmem:[#allocation2 + $0xac] sm:$0xf] %v6834_v13  ;;  %v7287_v20 = vsel %vm1323_vm3, %v7282_v30, %v7286_v42  ;;  %v7296_v10 = vshll.u32 %v19769_v33, 16  ;;  %v6468_v48 = vadd.f32 %v19388_v49, %v6431_v25  ;;  %v6682_v31 = vrot.slane %v19532_v52, 4  ;;  %v7036_v8 = vld [vmem:[#allocation2 + $0x24] sm:$0xf] }
 0x532   : > { %7898 = vmatprep.mubr.bf16.mxu0 %v7287_v20  ;;  %8372 = vmatprep.mubr.bf16.mxu1 %v7287_v20  ;;  %v6811_v1 = vshrl.u32 %v13185_v16, 16  ;;  %v6466_v11 = vadd.f32 %v16687_v9, %v6429_v60  ;;  %v6267_v50 = vadd.f32 %v16688_v4, %v15653_v62  ;;  %v6814_v43 = vshll.u32 %v13185_v16, 16  ;;  %v16690_v32 = vld [vmem:[#allocation6 + $0x2] ss:$0 sm:$0xff]  ;;  %v6943_v30 = vld [vmem:[#allocation2 + $0x38] sm:$0x1] }
 0x533   : > { %7899 = vmatmul.mubr.bf16.vlgmr.msra.gmra.mrb[32].mxu0 %v19735_v51  ;;  %8373 = vmatmul.mubr.bf16.gmra.mrb[196].mxu1 %v19735_v51  ;;  %v7298_v49 = vrot.slane %v7296_v10, 1  ;;  %v6500_v28 = vmax.f32 %v6468_v48, 0.0  ;;  %v6265_v55 = vadd.f32 %v16688_v4, %v15656_v59  ;;  %v6937_v44 = vsel %vm17242_vm8, %v6648_v45, %v6936_v37  ;;  %v6950_v25 = vld [vmem:[#allocation2 + $0x44] sm:$0x1]  ;;  %v19809_v60 = vld [vmem:[#allocation2 + $0x34] sm:$0xf] }
 0x534   : > { %v19789_v63 = vrot.slane %v6811_v1, 7  ;;  %15146 = vmatpush3.bf16.msra.mxu0 %v16689_v6  ;;  %v6498_v17 = vmax.f32 %v6466_v11, 0.0  ;;  %v6331_v46 = vadd.f32 %v6299_v54, %v6267_v50  ;;  %6938 = vst [vmem:[#allocation2 + $0x2c] sm:$0x1] %v6937_v44  ;;  %v19798_v26 = vcombine.low %v7036_v8, %v19784_v0  ;;  %v16470_v48 = vld [vmem:[#allocation9 + $0x5d8] sm:$0xff]  }
 0x535   : > { %v19795_v23 = vsel %vm1323_vm3, %v7294_v15, %v7298_v49  ;;  %v13190_v51 = vpack.c.bf16 %v6500_v28, %v6500_v28  ;;  %v6329_v22 = vadd.f32 %v6297_v14, %v6265_v55  ;;  %15147 = vmatprep.subr.bf16.mxu0 %v16460_v39  ;;  %v6809_v27 = vrot.slane %v19732_v21, 4  ;;  %v7038_v4 = vld [vmem:[#allocation2 + $0x30] sm:$0xf]  ;;  %v16475_v14 = vld [vmem:[#allocation9 + $0x5e0] sm:$0xff]  }
 0x536   : > { %v6816_v18 = vor.u32 %v6814_v43, %v19789_v63  ;;  %7906 = vmatprep.mubr.bf16.mxu0 %v19795_v23  ;;  %8380 = vmatprep.mubr.bf16.mxu1 %v19795_v23  ;;  %v13188_v42 = vpack.c.bf16 %v6498_v17, %v6498_v17  ;;  %6363 = vst [vmem:[%s17190_s24 + $0xf8] sm:$0xff] %v6331_v46  ;;  %v6699_v62 = vrot.slane %v19519_v34, 4  ;;  %v7303_v15 = vshll.u32 %v19798_v26, 16  ;;  %v19818_v34 = vld [vmem:[#allocation2 + $0x40] sm:$0xf] }
 0x537   : > { %v6432_v3 = vmul.f32 %v16690_v32, %v6331_v46  ;;  %v6854_v12 = vshrl.u32 %v13190_v51, 16  ;;  %6361 = vst [vmem:[%s17190_s24 + $0xe8] sm:$0xff] %v6329_v22  ;;  %v6430_v13 = vmul.f32 %v16690_v32, %v6329_v22  ;;  %v6857_v45 = vshll.u32 %v13190_v51, 16  ;;  %v7023_v43 = vld [vmem:[#allocation2 + $0xc0] sm:$0xf] }
 0x538   : > { %v6817_v21 = vsel %vm17223_vm6, %v6809_v27, %v6816_v18  ;;  %v6837_v16 = vshrl.u32 %v13188_v42, 16  ;;  %15148 = vmatpush3.bf16.msra.mxu0 %v16460_v39  ;;  %v6944_v10 = vsel %vm17242_vm8, %v6665_v5, %v6943_v30  ;;  %v6840_v39 = vshll.u32 %v13188_v42, 16  ;;  %v7016_v17 = vld [vmem:[#allocation2 + $0xb4] sm:$0xf]  ;;  %v6957_v22 = vld [vmem:[#allocation2 + $0x50] sm:$0x1] }
 0x539   : > { %7005 = vst [vmem:[#allocation2 + $0xa0] sm:$0xf] %v6817_v21  ;;  %v19811_v59 = vrot.slane %v6854_v12, 7  ;;  %v6467_v20 = vadd.f32 %v16687_v9, %v6430_v13  ;;  %15149 = vmatprep.subr.bf16.mxu0 %v16465_v61  ;;  %v19822_v11 = vadd.f32 %v16687_v9, %v6432_v3  ;;  %6945 = vst [vmem:[#allocation2 + $0x38] sm:$0x1] %v6944_v10  ;;  %v7305_v49 = vrot.slane %v7303_v15, 1 }
 0x53a   : > { %v19820_v1 = vrot.slane %v6837_v16, 7  ;;  %v6951_v50 = vsel %vm17242_vm8, %v6682_v31, %v6950_v25  ;;  %v19832_v28 = vcombine.low %v7038_v4, %v19809_v60  ;;  %v7040_v9 = vld [vmem:[#allocation2 + $0x3c] sm:$0xf]  ;;  %v7301_v31 = vshrl.u32 %v19798_v26, 16  ;;  %v19852_v13 = vld [vmem:[#allocation2 + $0x4c] sm:$0xf] }
 0x53b   : > { %v6859_v58 = vor.u32 %v6857_v45, %v19811_v59  ;;  %v6499_v5 = vmax.f32 %v6467_v20, 0.0  ;;  %7907 = vmatmul.mubr.bf16.gmra.mrb[36].mxu0 %v19739_v56  ;;  %8381 = vmatmul.mubr.bf16.gmra.mrb[200].mxu1 %v19739_v56  ;;  %6952 = vst [vmem:[#allocation2 + $0x44] sm:$0x1] %v6951_v50  ;;  %v19835_v52 = vld [vmem:[#allocation2 + $0x2c] ss:$0 sps:$4 sm:$0x11]   ;;  %v19839_v55 = vcombine.low %v7040_v9, %v19818_v34 }
 0x53c   : > { %v6842_v54 = vor.u32 %v6840_v39, %v19820_v1  ;;  %15150 = vmatpush3.bf16.msra.mxu0 %v16465_v61  ;;  %v6716_v37 = vrot.slane %v19617_v29, 4  ;;  %v7306_v8 = vor.u32 %v7305_v49, %v7301_v31  ;;  %v7308_v51 = vshll.u32 %v19835_v52, 16  ;;  %v6964_v18 = vld [vmem:[#allocation2 + $0x5c] sm:$0x1]  ;;  %v7042_v21 = vld [vmem:[#allocation2 + $0x48] sm:$0xf] }
 0x53d   : > { %v7024_v6 = vsel %vm17232_vm7, %v6859_v58, %v7023_v43  ;;  %v13189_v46 = vpack.c.bf16 %v6499_v5, %v6499_v5  ;;  %15151 = vmatprep.subr.bf16.mxu0 %v16470_v48  ;;  %v6501_v61 = vmax.f32 %v19822_v11, 0.0  ;;  %v7315_v29 = vshll.u32 %v19832_v28, 16  ;;  %v16480_v10 = vld [vmem:[#allocation9 + $0x5e8] sm:$0xff]  }
 0x53e   : > { %7025 = vst [vmem:[#allocation2 + $0xc0] sm:$0xf] %v7024_v6  ;;  %v7017_v44 = vsel %vm17232_vm7, %v6842_v54, %v7016_v17  ;;  %v7310_v32 = vrot.slane %v7308_v51, 1  ;;  %v7327_v3 = vshll.u32 %v19839_v55, 16  ;;  %v6958_v12 = vsel %vm17242_vm8, %v6699_v62, %v6957_v22  ;;  %v6971_v54 = vld [vmem:[#allocation2 + $0x68] sm:$0x1] }
 0x53f   : > { %7018 = vst [vmem:[#allocation2 + $0xb4] sm:$0xf] %v7017_v44  ;;  %v6845_v27 = vshrl.u32 %v13189_v46, 16  ;;  %v6848_v42 = vshll.u32 %v13189_v46, 16  ;;  %6959 = vst [vmem:[#allocation2 + $0x50] sm:$0x1] %v6958_v12  ;;  %v6965_v45 = vsel %vm17242_vm8, %v6716_v37, %v6964_v18  ;;  %v19880_v5 = vpack.c.bf16 %v6501_v61, %v6501_v61 }
 0x540   : > { %15152 = vmatpush3.bf16.msra.mxu0 %v16470_v48  ;;  %v19856_v25 = vld [vmem:[#allocation2 + $0x38] ss:$0 sps:$4 sm:$0x11]   ;;  %v6733_v16 = vrot.slane %v19614_v40, 4  ;;  %v19862_v20 = vsel %vm1323_vm3, %v7306_v8, %v7310_v32  ;;  %v7313_v62 = vshrl.u32 %v19832_v28, 16  ;;  %v7317_v15 = vrot.slane %v7315_v29, 1 }
 0x541   : > { %v19854_v30 = vrot.slane %v6845_v27, 7  ;;  %15153 = vmatprep.subr.bf16.mxu0 %v16475_v14  ;;  %6966 = vst [vmem:[#allocation2 + $0x5c] sm:$0x1] %v6965_v45  ;;  %v6750_v48 = vrot.slane %v19668_v24, 4  ;;  %v6843_v39 = vrot.slane %v19820_v1, 4  ;;  %7914 = vmatprep.mubr.bf16.mxu0 %v19862_v20  ;;  %v7320_v40 = vshll.u32 %v19856_v25, 16 }
 0x542   : > { %8388 = vmatprep.mubr.bf16.mxu1 %v19862_v20  ;;  %v19871_v4 = vld [vmem:[#allocation2 + $0x44] ss:$0 sps:$4 sm:$0x11]   ;;  %v6767_v50 = vrot.slane %v19649_v57, 4  ;;  %v7318_v58 = vor.u32 %v7317_v15, %v7313_v62  ;;  %v7329_v24 = vrot.slane %v7327_v3, 1  ;;  %v19877_v1 = vcombine.low %v7042_v21, %v19852_v13  ;;  %v16485_v17 = vld [vmem:[#allocation9 + $0x5f0] sm:$0xff]  }
 0x543   : > { %v6850_v11 = vor.u32 %v6848_v42, %v19854_v30  ;;  %7915 = vmatmul.mubr.bf16.gmra.mrb[40].mxu0 %v19798_v26  ;;  %8389 = vmatmul.mubr.bf16.gmra.mrb[204].mxu1 %v19798_v26  ;;  %v6784_v43 = vrot.slane %v19707_v19, 4  ;;  %v7322_v9 = vrot.slane %v7320_v40, 1  ;;  %v7325_v57 = vshrl.u32 %v19839_v55, 16  ;;  %v6978_v6 = vld [vmem:[#allocation2 + $0x74] sm:$0x1]  ;;  %v16490_v21 = vld [vmem:[#allocation9 + $0x5f8] sm:$0xff]  }
 0x544   : > { %15154 = vmatpush3.bf16.msra.mxu0 %v16475_v14  ;;  %v7332_v31 = vshll.u32 %v19871_v4, 16  ;;  %v6972_v37 = vsel %vm17242_vm8, %v6733_v16, %v6971_v54  ;;  %v6979_v46 = vsel %vm17242_vm8, %v6750_v48, %v6978_v6  ;;  %v6985_v44 = vld [vmem:[#allocation2 + $0x80] sm:$0x1]  ;;  %v7339_v8 = vshll.u32 %v19877_v1, 16  ;;  %v6992_v22 = vld [vmem:[#allocation2 + $0x8c] sm:$0x1] }
 0x545   : > { %v6851_v49 = vsel %vm17223_vm6, %v6843_v39, %v6850_v11  ;;  %15155 = vmatprep.subr.bf16.mxu0 %v16480_v10  ;;  %v19889_v19 = vsel %vm1323_vm3, %v7318_v58, %v7322_v9  ;;  %6973 = vst [vmem:[#allocation2 + $0x68] sm:$0x1] %v6972_v37  ;;  %v7330_v14 = vor.u32 %v7329_v24, %v7325_v57  ;;  %6980 = vst [vmem:[#allocation2 + $0x74] sm:$0x1] %v6979_v46  ;;  %v19900_v29 = vld [vmem:[#allocation2 + $0x58] sm:$0xf] }
 0x546   : > { %7019 = vst [vmem:[#allocation2 + $0xb8] sm:$0xf] %v6851_v49  ;;  %7922 = vmatprep.mubr.bf16.mxu0 %v19889_v19  ;;  %8396 = vmatprep.mubr.bf16.mxu1 %v19889_v19  ;;  %v6986_v51 = vsel %vm17242_vm8, %v6767_v50, %v6985_v44  ;;  %v6801_v61 = vrot.slane %v19704_v2, 4  ;;  %v6862_v27 = vshrl.u32 %v19880_v5, 16  ;;  %v6993_v18 = vsel %vm17242_vm8, %v6784_v43, %v6992_v22  ;;  %v7044_v12 = vld [vmem:[#allocation2 + $0x54] sm:$0xf] }
 0x547   : > { %6987 = vst [vmem:[#allocation2 + $0x80] sm:$0x1] %v6986_v51  ;;  %v6818_v42 = vrot.slane %v19789_v63, 4  ;;  %v7334_v32 = vrot.slane %v7332_v31, 1  ;;  %6994 = vst [vmem:[#allocation2 + $0x8c] sm:$0x1] %v6993_v18  ;;  %v19913_v16 = vcombine.low %v7044_v12, %v19900_v29 }
 0x548   : > { %15156 = vmatpush3.bf16.msra.mxu0 %v16480_v10  ;;  %v19905_v3 = vld [vmem:[#allocation2 + $0x50] ss:$0 sps:$4 sm:$0x11]   ;;  %v7341_v45 = vrot.slane %v7339_v8, 1  ;;  %v6999_v62 = vld [vmem:[#allocation2 + $0x98] sm:$0x1] }
 0x549   : > { %15157 = vmatprep.subr.bf16.mxu0 %v16485_v17  ;;  %v19910_v2 = vsel %vm1323_vm3, %v7330_v14, %v7334_v32  ;;  %v6835_v63 = vrot.slane %v19756_v35, 4  ;;  %v6864_v15 = vrot.slane %v6862_v27, 7  ;;  %v6852_v10 = vrot.slane %v19854_v30, 4  ;;  %v7006_v39 = vld [vmem:[#allocation2 + $0xa4] sm:$0x1] }
 0x54a   : > { %v7000_v48 = vsel %vm17242_vm8, %v6801_v61, %v6999_v62  ;;  %v7337_v11 = vshrl.u32 %v19877_v1, 16  ;;  %v7344_v40 = vshll.u32 %v19905_v3, 16  ;;  %v7007_v50 = vsel %vm17242_vm8, %v6818_v42, %v7006_v39  ;;  %v7013_v30 = vld [vmem:[#allocation2 + $0xb0] sm:$0x1]  ;;  %v19926_v58 = vld [vmem:[#allocation9 + $0x500] sm:$0xff]  }
 0x54b   : > { %7923 = vmatmul.mubr.bf16.gmra.mrb[44].mxu0 %v19832_v28  ;;  %8397 = vmatmul.mubr.bf16.gmra.mrb[208].mxu1 %v19832_v28  ;;  %7001 = vst [vmem:[#allocation2 + $0x98] sm:$0x1] %v7000_v48  ;;  %v6865_v35 = vshll.u32 %v19880_v5, 16  ;;  %7008 = vst [vmem:[#allocation2 + $0xa4] sm:$0x1] %v7007_v50  ;;  %v7351_v43 = vshll.u32 %v19913_v16, 16  ;;  %v7014_v31 = vsel %vm17242_vm8, %v6835_v63, %v7013_v30 }
 0x54c   : > { %7930 = vmatprep.mubr.bf16.mxu0 %v19910_v2  ;;  %8404 = vmatprep.mubr.bf16.mxu1 %v19910_v2  ;;  %v7342_v24 = vor.u32 %v7341_v45, %v7337_v11  ;;  %v7020_v49 = vld [vmem:[#allocation2 + $0xbc] sm:$0x1]  ;;  %v6869_v54 = vrot.slane %v6864_v15, 4  ;;  %v19929_v57 = vld [vmem:[#allocation2 + $0x64] sm:$0xf]  ;;  %v7346_v5 = vrot.slane %v7344_v40, 1 }
 0x54d   : > { %15158 = vmatpush3.bf16.msra.mxu0 %v16485_v17  ;;  %v6867_v9 = vor.u32 %v6865_v35, %v6864_v15  ;;  %v7021_v37 = vsel %vm17242_vm8, %v6852_v10, %v7020_v49  ;;  %v19935_v6 = vld [vmem:[#allocation2 + $0x5c] ss:$0 sps:$4 sm:$0x11]   ;;  %7015 = vst [vmem:[#allocation2 + $0xb0] sm:$0x1] %v7014_v31  ;;  %v6860_v17 = vrot.slane %v19811_v59, 4 }
 0x54e   : > { %15159 = vmatprep.subr.bf16.mxu0 %v16490_v21  ;;  %7022 = vst [vmem:[#allocation2 + $0xbc] sm:$0x1] %v7021_v37  ;;  %v7046_v46 = vld [vmem:[#allocation2 + $0x60] sm:$0xf]  ;;  %v19942_v44 = vsel %vm1323_vm3, %v7342_v24, %v7346_v5  ;;  %v7353_v14 = vrot.slane %v7351_v43, 1  ;;  %v7349_v61 = vshrl.u32 %v19913_v16, 16 }
 0x54f   : > { %v19945_v8 = vcombine.low %v7046_v46, %v19929_v57  ;;  %v7027_v51 = vld [vmem:[#allocation2 + $0xc8] sm:$0x1]  ;;  %v6868_v59 = vsel %vm17223_vm6, %v6860_v17, %v6867_v9  ;;  %v7356_v27 = vshll.u32 %v19935_v6, 16  ;;  %v19956_v32 = vld [vmem:[#allocation2 + $0x70] sm:$0xf] }
 0x550   : > { %v7028_v22 = vsel %vm17242_vm8, %v6869_v54, %v7027_v51  ;;  %7026 = vst [vmem:[#allocation2 + $0xc4] sm:$0xf] %v6868_v59  ;;  %v7354_v18 = vor.u32 %v7353_v14, %v7349_v61  ;;  %v7048_v45 = vld [vmem:[#allocation2 + $0x6c] sm:$0xf]  ;;  %v19973_v40 = vld [vmem:[#allocation2 + $0x7c] sm:$0xf] }
 0x551   : > { %15160 = vmatpush3.bf16.msra.mxu0 %v16490_v21  ;;  %7029 = vst [vmem:[#allocation2 + $0xc8] sm:$0x1] %v7028_v22  ;;  %v7363_v42 = vshll.u32 %v19945_v8, 16  ;;  %v7358_v12 = vrot.slane %v7356_v27, 1  ;;  %v19966_v15 = vcombine.low %v7048_v45, %v19956_v32  ;;  %v7361_v10 = vshrl.u32 %v19945_v8, 16 }
 0x552   : > { %15193 = vmatprep.subr.bf16.mxu0 %v19926_v58  ;;  %v19958_v21 = vld [vmem:[#allocation2 + $0x68] ss:$0 sps:$4 sm:$0x11]   ;;  %v19975_v35 = vld [vmem:[#allocation2 + $0x74] ss:$0 sps:$4 sm:$0x11]  }
 0x553   : > { %7931 = vmatmul.mubr.bf16.gmra.mrb[48].mxu0 %v19839_v55  ;;  %8405 = vmatmul.mubr.bf16.gmra.mrb[212].mxu1 %v19839_v55  ;;  %v19963_v62 = vsel %vm1323_vm3, %v7354_v18, %v7358_v12  ;;  %v7365_v63 = vrot.slane %v7363_v42, 1  ;;  %21840 = vst [vmem:[#allocation36_spill] sm:$0xff] %v19966_v15  ;;  %v7368_v48 = vshll.u32 %v19958_v21, 16  ;;  %v7375_v11 = vshll.u32 %v19966_v15, 16  ;;  %v7050_v30 = vld [vmem:[#allocation2 + $0x78] sm:$0xf] }
 0x554   : > { %7938 = vmatprep.mubr.bf16.mxu0 %v19942_v44  ;;  %8412 = vmatprep.mubr.bf16.mxu1 %v19942_v44  ;;  %v19983_v49 = vcombine.low %v7050_v30, %v19973_v40  ;;  %v7373_v9 = vshrl.u32 %v19966_v15, 16  ;;  %v7380_v54 = vshll.u32 %v19975_v35, 16  ;;  %v19990_v5 = vld [vmem:[#allocation2 + $0x88] sm:$0xf]  ;;  %v7052_v14 = vld [vmem:[#allocation2 + $0x84] sm:$0xf] }
 0x555   : > { %v7366_v39 = vor.u32 %v7365_v63, %v7361_v10  ;;  %v7370_v50 = vrot.slane %v7368_v48, 1  ;;  %v7377_v43 = vrot.slane %v7375_v11, 1  ;;  %v19992_v46 = vld [vmem:[#allocation2 + $0x80] ss:$0 sps:$4 sm:$0x11]   ;;  %v20000_v22 = vcombine.low %v7052_v14, %v19990_v5 }
 0x556   : > { %21841 = vst [vmem:[#allocation24_spill] sm:$0xff] %v19983_v49  ;;  %v7387_v37 = vshll.u32 %v19983_v49, 16  ;;  %v7382_v17 = vrot.slane %v7380_v54, 1  ;;  %v7385_v61 = vshrl.u32 %v19983_v49, 16  ;;  %v7392_v27 = vshll.u32 %v19992_v46, 16 }
 0x557   : > { %v19980_v24 = vsel %vm1323_vm3, %v7366_v39, %v7370_v50  ;;  %v7378_v31 = vor.u32 %v7377_v43, %v7373_v9  ;;  %21842 = vst [vmem:[#allocation31_spill] sm:$0xff] %v20000_v22  ;;  %v7399_v42 = vshll.u32 %v20000_v22, 16  ;;  %v20007_v12 = vld [vmem:[#allocation2 + $0x94] sm:$0xf]  ;;  %v7054_v10 = vld [vmem:[#allocation2 + $0x90] sm:$0xf] }
 0x558   : > { %v7389_v59 = vrot.slane %v7387_v37, 1  ;;  %v7394_v45 = vrot.slane %v7392_v27, 1  ;;  %v20009_v63 = vld [vmem:[#allocation2 + $0x8c] ss:$0 sps:$4 sm:$0x11]   ;;  %v20017_v11 = vcombine.low %v7054_v10, %v20007_v12  ;;  %v7397_v50 = vshrl.u32 %v20000_v22, 16 }
 0x559   : > { %v19997_v51 = vsel %vm1323_vm3, %v7378_v31, %v7382_v17  ;;  %v7401_v39 = vrot.slane %v7399_v42, 1  ;;  %v7404_v30 = vshll.u32 %v20009_v63, 16  ;;  %v20024_v54 = vld [vmem:[#allocation2 + $0xa0] sm:$0xf]  ;;  %v7056_v17 = vld [vmem:[#allocation2 + $0x9c] sm:$0xf] }
 0x55a   : > { %v7390_v18 = vor.u32 %v7389_v59, %v7385_v61  ;;  %21844 = vst [vmem:[#allocation33_spill] sm:$0xff] %v20017_v11  ;;  %v7411_v9 = vshll.u32 %v20017_v11, 16  ;;  %v20026_v37 = vld [vmem:[#allocation2 + $0x98] ss:$0 sps:$4 sm:$0x11]   ;;  %v20034_v61 = vcombine.low %v7056_v17, %v20024_v54 }
 0x55b   : > { %7939 = vmatmul.mubr.bf16.gmra.mrb[52].mxu0 %v19877_v1  ;;  %8413 = vmatmul.mubr.bf16.gmra.mrb[216].mxu1 %v19877_v1  ;;  %v7402_v43 = vor.u32 %v7401_v39, %v7397_v50  ;;  %v7406_v31 = vrot.slane %v7404_v30, 1  ;;  %v14193_v27 = vpop.f32.mrb[192].mxu1  ;;  %v7416_v42 = vshll.u32 %v20026_v37, 16  ;;  %v20043_v30 = vld [vmem:[#allocation2 + $0xac] sm:$0xf] }
 0x55c   : > { %7946 = vmatprep.mubr.bf16.mxu0 %v19963_v62  ;;  %8420 = vmatprep.mubr.bf16.mxu1 %v19963_v62  ;;  %v20014_v48 = vsel %vm1323_vm3, %v7390_v18, %v7394_v45  ;;  %v7413_v59 = vrot.slane %v7411_v9, 1  ;;  %21846 = vst [vmem:[#allocation23_spill] sm:$0xff] %v20034_v61  ;;  %v7409_v18 = vshrl.u32 %v20017_v11, 16  ;;  %v14194_v45 = vpop.f32.mrb[193].mxu1  ;;  %v7423_v50 = vshll.u32 %v20034_v61, 16 }
 0x55d   : > { %21843 = vst [vmem:[#allocation29_spill] sm:$0xff] %v20014_v48  ;;  %v20031_v14 = vsel %vm1323_vm3, %v7402_v43, %v7406_v31  ;;  %v20040_v10 = vadd.f32 %v14194_v45, %v14193_v27  ;;  %v7418_v43 = vrot.slane %v7416_v42, 1  ;;  %v20045_v9 = vld [vmem:[#allocation2 + $0xa4] ss:$0 sps:$4 sm:$0x11]   ;;  %v7421_v42 = vshrl.u32 %v20034_v61, 16 }
 0x55e   : > { %21845 = vst [vmem:[#allocation30_spill] sm:$0xff] %v20031_v14  ;;  %v7414_v39 = vor.u32 %v7413_v59, %v7409_v18  ;;  %v7058_v31 = vld [vmem:[#allocation2 + $0xa8] sm:$0xf]  ;;  %v7425_v36 = vrot.slane %v7423_v50, 1  ;;  %v14196_v59 = vpop.f32.mrb[194].mxu1  ;;  %v7428_v45 = vshll.u32 %v20045_v9, 16 }
 0x55f   : > { %v20053_v27 = vcombine.low %v7058_v31, %v20043_v30  ;;  %v14197_v18 = vpop.f32.mrb[195].mxu1  ;;  %v20064_v31 = vld [vmem:[#allocation2 + $0xb0] ss:$0 sps:$4 sm:$0x11]  }
 0x560   : > { %v20050_v17 = vsel %vm1323_vm3, %v7414_v39, %v7418_v43  ;;  %v20059_v53 = vadd.f32 %v14197_v18, %v14196_v59  ;;  %v7426_v47 = vor.u32 %v7425_v36, %v7421_v42  ;;  %v20062_v43 = vld [vmem:[#allocation2 + $0xb8] sm:$0xf]  ;;  %v7430_v50 = vrot.slane %v7428_v45, 1 }
 0x561   : > { %21847 = vst [vmem:[#allocation37_spill] sm:$0xff] %v20050_v17  ;;  %21848 = vst [vmem:[#allocation20_spill] sm:$0xff] %v20053_v27  ;;  %v7435_v39 = vshll.u32 %v20053_v27, 16  ;;  %v7433_v36 = vshrl.u32 %v20053_v27, 16  ;;  %v7440_v18 = vshll.u32 %v20064_v31, 16 }
 0x563   : > { %7947 = vmatmul.mubr.bf16.gmra.mrb[56].mxu0 %v19913_v16  ;;  %8421 = vmatmul.mubr.bf16.gmra.mrb[220].mxu1 %v19913_v16 }
 0x564   : > { %7954 = vmatprep.mubr.bf16.mxu0 %v19980_v24  ;;  %8428 = vmatprep.mubr.bf16.mxu1 %v19980_v24 }
 0x56b   : > { %7955 = vmatmul.mubr.bf16.gmra.mrb[60].mxu0 %v19945_v8  ;;  %8429 = vmatmul.mubr.bf16.gmra.mrb[224].mxu1 %v19945_v8 }
 0x56c   : > { %7962 = vmatprep.mubr.bf16.mxu0 %v19997_v51  ;;  %8436 = vmatprep.mubr.bf16.mxu1 %v19997_v51 }
 0x573   : > { %7963 = vmatmul.mubr.bf16.gmra.mrb[64].mxu0 %v19966_v15  ;;  %8437 = vmatmul.mubr.bf16.gmra.mrb[228].mxu1 %v19966_v15 }
 0x574   : > { %7970 = vmatprep.mubr.bf16.mxu0 %v20014_v48  ;;  %8444 = vmatprep.mubr.bf16.mxu1 %v20014_v48 }
 0x57b   : > { %7971 = vmatmul.mubr.bf16.gmra.mrb[68].mxu0 %v19983_v49  ;;  %8445 = vmatmul.mubr.bf16.gmra.mrb[232].mxu1 %v19983_v49  ;;  %v20079_v49 = vld [vmem:[#allocation2 + $0xc4] sm:$0xf] }
 0x57c   : > { %7978 = vmatprep.mubr.bf16.mxu0 %v20031_v14  ;;  %8452 = vmatprep.mubr.bf16.mxu1 %v20031_v14  ;;  %v7437_v14 = vrot.slane %v7435_v39, 1  ;;  %v7062_v39 = vld [vmem:[#allocation2 + $0xc0] sm:$0xf] }
 0x57e   : > { %v7438_v42 = vor.u32 %v7437_v14, %v7433_v36 }
 0x583   : > { %7979 = vmatmul.mubr.bf16.gmra.mrb[72].mxu0 %v20000_v22  ;;  %8453 = vmatmul.mubr.bf16.gmra.mrb[236].mxu1 %v20000_v22  ;;  %v7060_v22 = vld [vmem:[#allocation2 + $0xb4] sm:$0xf] }
 0x584   : > { %7986 = vmatprep.mubr.bf16.mxu0 %v20050_v17  ;;  %8460 = vmatprep.mubr.bf16.mxu1 %v20050_v17  ;;  %v20069_v17 = vsel %vm1323_vm3, %v7426_v47, %v7430_v50  ;;  %v20072_v59 = vcombine.low %v7060_v22, %v20062_v43  ;;  %v20081_v47 = vld [vmem:[#allocation2 + $0xbc] ss:$0 sps:$4 sm:$0x11]  }
 0x585   : > { %21849 = vst [vmem:[#allocation22_spill] sm:$0xff] %v20069_v17  ;;  %v7452_v36 = vshll.u32 %v20081_v47, 16 }
 0x586   : > { %v7447_v45 = vshll.u32 %v20072_v59, 16  ;;  %v7445_v14 = vshrl.u32 %v20072_v59, 16 }
 0x587   : > { %v7454_v15 = vrot.slane %v7452_v36, 1  ;;  %v7085_v36 = vld [vmem:[#allocation2 + $0xc] sm:$0xe] }
 0x588   : > { %v7449_v50 = vrot.slane %v7447_v45, 1 }
 0x58b   : > { %7987 = vmatmul.mubr.bf16.gmra.mrb[76].mxu0 %v20017_v11  ;;  %8461 = vmatmul.mubr.bf16.gmra.mrb[240].mxu1 %v20017_v11  ;;  %v7442_v11 = vrot.slane %v7440_v18, 1  ;;  %v7450_v18 = vor.u32 %v7449_v50, %v7445_v14 }
 0x58c   : > { %7994 = vmatprep.mubr.bf16.mxu0 %v20069_v17  ;;  %8468 = vmatprep.mubr.bf16.mxu1 %v20069_v17  ;;  %v20089_v17 = vcombine.low %v7062_v39, %v20079_v49 }
 0x58d   : > { %v20086_v22 = vsel %vm1323_vm3, %v7438_v42, %v7442_v11  ;;  %v20101_v11 = vsel %vm1323_vm3, %v7450_v18, %v7454_v15  ;;  %v12839_v15 = vcombine.low %v7085_v36, %v19727_v7  ;;  %v7556_v18 = vrot.slane %v19748_v38, 1  ;;  %v16496_v38 = vld [vmem:[#allocation9 + $0x508] sm:$0xff]  }
 0x58e   : > { %21850 = vst [vmem:[#allocation34_spill] sm:$0xff] %v20086_v22  ;;  %21851 = vst [vmem:[#allocation21_spill] sm:$0xff] %v20089_v17  ;;  %v7459_v48 = vshll.u32 %v20089_v17, 16  ;;  %v7457_v45 = vshrl.u32 %v20089_v17, 16  ;;  %v7559_v7 = vrot.slane %v19769_v33, 1  ;;  %v7562_v36 = vrot.slane %v19835_v52, 1 }
 0x58f   : > { %21852 = vst [vmem:[#allocation28_spill] sm:$0xff] %v20101_v11  ;;  %v16499_v33 = vld [vmem:[#allocation9 + $0x510] sm:$0xff]   ;;  %v7565_v52 = vrot.slane %v19856_v25, 1 }
 0x590   : > { %v7461_v42 = vrot.slane %v7459_v48, 1  ;;  %v7555_v48 = vrot.slane %v12839_v15, 1  ;;  %v7088_v15 = vld [vmem:[#allocation2 + $0x30] sm:$0xe] }
 0x592   : > { %v7462_v50 = vor.u32 %v7461_v42, %v7457_v45  ;;  %v7087_v42 = vld [vmem:[#allocation2 + $0x24] sm:$0xe]  ;;  %v20118_v45 = vsel %vm1612_vm9, %v7555_v48, %v7556_v18 }
 0x593   : > { %7995 = vmatmul.mubr.bf16.gmra.mrb[80].mxu0 %v20034_v61  ;;  %8469 = vmatmul.mubr.bf16.gmra.mrb[244].mxu1 %v20034_v61  ;;  %v20096_v61 = vld [vmem:[#allocation2 + $0xc8] ss:$0 sps:$4 sm:$0x11]  }
 0x594   : > { %8002 = vmatprep.mubr.bf16.mxu0 %v20086_v22  ;;  %8476 = vmatprep.mubr.bf16.mxu1 %v20086_v22  ;;  %v7464_v39 = vshll.u32 %v20096_v61, 16 }
 0x596   : > { %v7466_v14 = vrot.slane %v7464_v39, 1  ;;  %v12841_v39 = vcombine.low %v7087_v42, %v19784_v0  ;;  %v7090_v42 = vld [vmem:[#allocation2 + $0x48] sm:$0xe] }
 0x59b   : > { %8003 = vmatmul.mubr.bf16.gmra.mrb[84].mxu0 %v20053_v27  ;;  %8477 = vmatmul.mubr.bf16.gmra.mrb[248].mxu1 %v20053_v27  ;;  %v20110_v27 = vsel %vm1323_vm3, %v7462_v50, %v7466_v14  ;;  %v7561_v14 = vrot.slane %v12841_v39, 1  ;;  %v16502_v39 = vld [vmem:[#allocation9 + $0x518] sm:$0xff]  }
 0x59c   : > { %8010 = vmatprep.mubr.bf16.mxu0 %v20101_v11  ;;  %8484 = vmatprep.mubr.bf16.mxu1 %v20101_v11  ;;  %v7086_v11 = vld [vmem:[#allocation2 + $0x18] sm:$0xe] }
 0x59d   : > { %v12840_v22 = vcombine.low %v7086_v11, %v19721_v41  ;;  %v12842_v11 = vcombine.low %v7088_v15, %v19809_v60  ;;  %v20130_v0 = vsel %vm1612_vm9, %v7561_v14, %v7562_v36  ;;  %v7568_v60 = vrot.slane %v19871_v4, 1  ;;  %v16505_v4 = vld [vmem:[#allocation9 + $0x520] sm:$0xff]   ;;  %v16508_v15 = vld [vmem:[#allocation9 + $0x528] sm:$0xff]  }
 0x59f   : > { %v7558_v50 = vrot.slane %v12840_v22, 1  ;;  %v7564_v48 = vrot.slane %v12842_v11, 1 }
 0x5a1   : > { %v20125_v41 = vsel %vm1612_vm9, %v7558_v50, %v7559_v7  ;;  %v20138_v50 = vsel %vm1612_vm9, %v7564_v48, %v7565_v52  ;;  %v7571_v7 = vrot.slane %v19905_v3, 1  ;;  %v7577_v52 = vrot.slane %v19958_v21, 1 }
 0x5a3   : > { %8011 = vmatmul.mubr.bf16.gmra.mrb[88].mxu0 %v20072_v59  ;;  %8485 = vmatmul.mubr.bf16.gmra.mrb[252].mxu1 %v20072_v59 }
 0x5a4   : > { %8018 = vmatprep.mubr.bf16.mxu0 %v20110_v27 }
 0x5ab   : > { %8019 = vmatmul.mubr.bf16.gmra.mrb[92].mxu0 %v20089_v17  ;;  %v7089_v17 = vld [vmem:[#allocation2 + $0x3c] sm:$0xe] }
 0x5ac   : > { %15161 = vmatprep.mubr.bf16.mxu0 %v20118_v45  ;;  %v12843_v22 = vcombine.low %v7089_v17, %v19818_v34  ;;  %v12844_v34 = vcombine.low %v7090_v42, %v19852_v13  ;;  %v7092_v13 = vld [vmem:[#allocation2 + $0x60] sm:$0xe]  ;;  %v16514_v42 = vld [vmem:[#allocation9 + $0x538] sm:$0xff]  }
 0x5ae   : > { %v7567_v18 = vrot.slane %v12843_v22, 1  ;;  %v7570_v14 = vrot.slane %v12844_v34, 1  ;;  %v7093_v22 = vld [vmem:[#allocation2 + $0x6c] sm:$0xe]  ;;  %v7095_v34 = vld [vmem:[#allocation2 + $0x84] sm:$0xe] }
 0x5af   : > { %v12847_v3 = vcombine.low %v7093_v22, %v19956_v32  ;;  %v12849_v21 = vcombine.low %v7095_v34, %v19990_v5  ;;  %v7097_v5 = vld [vmem:[#allocation2 + $0x9c] sm:$0xe]  ;;  %v7592_v22 = vrot.slane %v20045_v9, 1  ;;  %v7084_v9 = vld [vmem:[#allocation2] sm:$0xe] }
 0x5b0   : > { %v20143_v17 = vsel %vm1612_vm9, %v7567_v18, %v7568_v60  ;;  %v20150_v11 = vsel %vm1612_vm9, %v7570_v14, %v7571_v7  ;;  %v7580_v60 = vrot.slane %v19975_v35, 1  ;;  %v16517_v35 = vld [vmem:[#allocation9 + $0x640] sm:$0xff]   ;;  %v7586_v14 = vrot.slane %v20009_v63, 1 }
 0x5b1   : > { %v7579_v18 = vrot.slane %v12847_v3, 1  ;;  %v7585_v7 = vrot.slane %v12849_v21, 1  ;;  %v7589_v63 = vrot.slane %v20026_v37, 1  ;;  %v7098_v3 = vld [vmem:[#allocation2 + $0xa8] sm:$0xe]  ;;  %v7595_v37 = vrot.slane %v20064_v31, 1 }
 0x5b3   : > { %15162 = vmatmul.mubr.bf16.vlgmr.msra.gmra.mrb[96].mxu0 %v20125_v41 }
 0x5b4   : > { %15194 = vmatpush3.bf16.msra.mxu0 %v19926_v58  ;;  %15165 = vmatprep.mubr.bf16.mxu0 %v20130_v0  ;;  %v7091_v58 = vld [vmem:[#allocation2 + $0x54] sm:$0xe] }
 0x5b5   : > { %15195 = vmatprep.subr.bf16.mxu0 %v16496_v38  ;;  %v12845_v25 = vcombine.low %v7091_v58, %v19900_v29  ;;  %v12846_v29 = vcombine.low %v7092_v13, %v19929_v57  ;;  %v7094_v57 = vld [vmem:[#allocation2 + $0x78] sm:$0xe]  ;;  %v20167_v58 = vsel %vm1612_vm9, %v7579_v18, %v7580_v60  ;;  %v20179_v13 = vsel %vm1612_vm9, %v7585_v7, %v7586_v14 }
 0x5b6   : > { %v12848_v32 = vcombine.low %v7094_v57, %v19973_v40  ;;  %v7096_v40 = vld [vmem:[#allocation2 + $0x90] sm:$0xe]  ;;  %v7598_v57 = vrot.slane %v20081_v47, 1  ;;  %v7601_v47 = vrot.slane %v20096_v61, 1 }
 0x5b7   : > { %v7573_v36 = vrot.slane %v12845_v25, 1  ;;  %v7576_v48 = vrot.slane %v12846_v29, 1  ;;  %v7583_v25 = vrot.slane %v19992_v46, 1  ;;  %v12851_v46 = vcombine.low %v7097_v5, %v20024_v54  ;;  %v16521_v5 = vld [vmem:[#allocation9 + $0x650] sm:$0xff]  }
 0x5b8   : > { %15196 = vmatpush3.bf16.msra.mxu0 %v16496_v38  ;;  %v7574_v38 = vrot.slane %v19935_v6, 1  ;;  %v16511_v6 = vld [vmem:[#allocation9 + $0x530] sm:$0xff]  }
 0x5b9   : > { %15197 = vmatprep.subr.bf16.mxu0 %v16499_v33  ;;  %v7591_v29 = vrot.slane %v12851_v46, 1  ;;  %v16522_v61 = vld [vmem:[#allocation9 + $0x610] sm:$0xff]   ;;  %v16523_v46 = vld [vmem:[#allocation9 + $0x658] sm:$0xff]  }
 0x5bb   : > { %15166 = vmatmul.mubr.bf16.gmra.mrb[100].mxu0 %v20138_v50 }
 0x5bc   : > { %15169 = vmatprep.mubr.bf16.mxu0 %v20143_v17  ;;  %15198 = vmatpush3.bf16.msra.mxu0 %v16499_v33  ;;  %v20155_v33 = vsel %vm1612_vm9, %v7573_v36, %v7574_v38  ;;  %v12850_v38 = vcombine.low %v7096_v40, %v20007_v12  ;;  %v12852_v12 = vcombine.low %v7098_v3, %v20043_v30  ;;  %v16519_v40 = vld [vmem:[#allocation9 + $0x648] sm:$0xff]  }
 0x5bd   : > { %15199 = vmatprep.subr.bf16.mxu0 %v16502_v39 }
 0x5be   : > { %v7594_v18 = vrot.slane %v12852_v12, 1 }
 0x5c0   : > { %15200 = vmatpush3.bf16.msra.mxu0 %v16502_v39  ;;  %v20162_v39 = vsel %vm1612_vm9, %v7576_v48, %v7577_v52  ;;  %v7099_v52 = vld [vmem:[#allocation2 + $0xb4] sm:$0xe]  ;;  %v20191_v48 = vsel %vm1612_vm9, %v7591_v29, %v7592_v22  ;;  %v20198_v34 = vsel %vm1612_vm9, %v7594_v18, %v7595_v37  ;;  %v16527_v29 = vld [vmem:[#allocation9 + $0x668] sm:$0xff]  }
 0x5c1   : > { %15201 = vmatprep.subr.bf16.mxu0 %v16505_v4  ;;  %v12853_v54 = vcombine.low %v7099_v52, %v20062_v43  ;;  %v16528_v22 = vld [vmem:[#allocation9 + $0x628] sm:$0xff]   ;;  %v16529_v52 = vld [vmem:[#allocation9 + $0x670] sm:$0xff]  }
 0x5c3   : > { %15170 = vmatmul.mubr.bf16.gmra.mrb[104].mxu0 %v20150_v11  ;;  %v7597_v60 = vrot.slane %v12853_v54, 1 }
 0x5c4   : > { %15173 = vmatprep.mubr.bf16.mxu0 %v20155_v33  ;;  %15202 = vmatpush3.bf16.msra.mxu0 %v16505_v4  ;;  %v7582_v4 = vrot.slane %v12848_v32, 1  ;;  %v16691_v32 = vld [vmem:[#allocation2 + $0x4] sm:$0xf] }
 0x5c5   : > { %15203 = vmatprep.subr.bf16.mxu0 %v16508_v15  ;;  %v12838_v30 = vcombine.low %v7084_v9, %v16691_v32  ;;  %v20203_v43 = vsel %vm1612_vm9, %v7597_v60, %v7598_v57 }
 0x5c6   : > { %v20174_v36 = vsel %vm1612_vm9, %v7582_v4, %v7583_v25 }
 0x5c7   : > { %v7552_v31 = vrot.slane %v12838_v30, 1  ;;  %v16530_v30 = vld [vmem:[#allocation9 + $0x630] sm:$0xff]  }
 0x5c8   : > { %15204 = vmatpush3.bf16.msra.mxu0 %v16508_v15  ;;  %v7588_v15 = vrot.slane %v12850_v38, 1  ;;  %v16520_v38 = vld [vmem:[#allocation9 + $0x608] sm:$0xff]  }
 0x5c9   : > { %15205 = vmatprep.subr.bf16.mxu0 %v16511_v6 }
 0x5cb   : > { %15174 = vmatmul.mubr.bf16.gmra.mrb[108].mxu0 %v20162_v39 }
 0x5cc   : > { %15177 = vmatprep.mubr.bf16.mxu0 %v20167_v58  ;;  %15206 = vmatpush3.bf16.msra.mxu0 %v16511_v6  ;;  %v20186_v6 = vsel %vm1612_vm9, %v7588_v15, %v7589_v63  ;;  %v16524_v63 = vld [vmem:[#allocation9 + $0x618] sm:$0xff]   ;;  %v16525_v15 = vld [vmem:[#allocation9 + $0x660] sm:$0xff]  }
 0x5cd   : > { %15207 = vmatprep.subr.bf16.mxu0 %v16514_v42 }
 0x5d0   : > { %15208 = vmatpush3.bf16.msra.mxu0 %v16514_v42  ;;  %v7100_v42 = vld [vmem:[#allocation2 + $0xc0] sm:$0xe] }
 0x5d1   : > { %14313 = vmatprep.subr.bf16.mxu0 %v16517_v35  ;;  %v12854_v21 = vcombine.low %v7100_v42, %v20079_v49  ;;  %v16692_v35 = vld [vmem:[#allocation2 + $0x8] ss:$0 sps:$4 sm:$0x11]   ;;  %v16518_v49 = vld [vmem:[#allocation9 + $0x600] sm:$0xff]  }
 0x5d2   : > { %v7553_v25 = vrot.slane %v16692_v35, 1 }
 0x5d3   : > { %15178 = vmatmul.mubr.bf16.gmra.mrb[112].mxu0 %v20174_v36  ;;  %v7600_v4 = vrot.slane %v12854_v21, 1 }
 0x5d4   : > { %15181 = vmatprep.mubr.bf16.mxu0 %v20179_v13  ;;  %v7554_v7 = vsel %vm1612_vm9, %v7552_v31, %v7553_v25  ;;  %v16531_v25 = vld [vmem:[#allocation9 + $0x678] sm:$0xff]  }
 0x5d5   : > { %v20209_v14 = vsel %vm1612_vm9, %v7600_v4, %v7601_v47  ;;  %v16532_v4 = vld [vmem:[#allocation9 + $0x638] sm:$0xff]  }
 0x5db   : > { %15182 = vmatmul.mubr.bf16.gmra.mrb[116].mxu0 %v20186_v6 }
 0x5dc   : > { %15185 = vmatprep.mubr.bf16.mxu0 %v20191_v48 }
 0x5e3   : > { %15186 = vmatmul.mubr.bf16.gmra.mrb[120].mxu0 %v20198_v34 }
 0x5e4   : > { %15189 = vmatprep.mubr.bf16.mxu0 %v20203_v43 }
 0x5eb   : > { %15190 = vmatmul.mubr.bf16.gmra.mrb[124].mxu0 %v20209_v14 }
 0x5ec   : > { %15209 = vmatprep.mubr.bf16.mxu0 %v7554_v7 }
 0x5f3   : > { %15210 = vmatmul.mubr.bf16.vlgmr.msra.gmra.mrb[96].mxu0 %v20118_v45  ;;  %v16526_v45 = vld [vmem:[#allocation9 + $0x620] sm:$0xff]  }
 0x5f4   : > { %14314 = vmatpush3.bf16.msra.mxu0 %v16518_v49  ;;  %15213 = vmatprep.mubr.bf16.mxu0 %v20125_v41 }
 0x5f5   : > { %14315 = vmatprep.subr.bf16.mxu0 %v16519_v40  ;;  %v20226_v40 = vld [vmem:[#allocation9 + $0x680] sm:$0xff]  }
 0x5f8   : > { %14316 = vmatpush3.bf16.msra.mxu0 %v16520_v38 }
 0x5f9   : > { %14317 = vmatprep.subr.bf16.mxu0 %v16521_v5 }
 0x5fb   : > { %15214 = vmatmul.mubr.bf16.gmra.mrb[100].mxu0 %v20130_v0 }
 0x5fc   : > { %15217 = vmatprep.mubr.bf16.mxu0 %v20138_v50  ;;  %14318 = vmatpush3.bf16.msra.mxu0 %v16522_v61 }
 0x5fd   : > { %14319 = vmatprep.subr.bf16.mxu0 %v16523_v46 }
 0x600   : > { %14320 = vmatpush3.bf16.msra.mxu0 %v16524_v63 }
 0x601   : > { %14321 = vmatprep.subr.bf16.mxu0 %v16525_v15 }
 0x603   : > { %15218 = vmatmul.mubr.bf16.gmra.mrb[104].mxu0 %v20143_v17 }
 0x604   : > { %15221 = vmatprep.mubr.bf16.mxu0 %v20150_v11  ;;  %14322 = vmatpush3.bf16.msra.mxu0 %v16526_v45 }
 0x605   : > { %14323 = vmatprep.subr.bf16.mxu0 %v16527_v29 }
 0x606   : > { %v14057_v3 = vpop.f32.mrb[32].mxu0  ;;  %v14199_v12 = vpop.f32.mrb[196].mxu1 }
 0x607   : > { %v14058_v54 = vpop.f32.mrb[33].mxu0  ;;  %v14200_v37 = vpop.f32.mrb[197].mxu1 }
 0x608   : > { %v14059_v18 = vadd.f32 %v14058_v54, %v14057_v3  ;;  %v14201_v9 = vadd.f32 %v14200_v37, %v14199_v12  ;;  %v14060_v60 = vpop.f32.mrb[34].mxu0  ;;  %v14202_v57 = vpop.f32.mrb[198].mxu1  ;;  %14324 = vmatpush3.bf16.msra.mxu0 %v16528_v22 }
 0x609   : > { %v14061_v42 = vpop.f32.mrb[35].mxu0  ;;  %v14203_v32 = vpop.f32.mrb[199].mxu1  ;;  %14325 = vmatprep.subr.bf16.mxu0 %v16529_v52 }
 0x60a   : > { %v20219_v21 = vadd.f32 %v20040_v10, %v14059_v18  ;;  %v14062_v31 = vadd.f32 %v14061_v42, %v14060_v60  ;;  %v14204_v35 = vadd.f32 %v14203_v32, %v14202_v57 }
 0x60b   : > { %15222 = vmatmul.mubr.bf16.gmra.mrb[108].mxu0 %v20155_v33 }
 0x60c   : > { %v20222_v47 = vadd.f32 %v20059_v53, %v14062_v31  ;;  %15225 = vmatprep.mubr.bf16.mxu0 %v20162_v39  ;;  %14326 = vmatpush3.bf16.msra.mxu0 %v16530_v30 }
 0x60d   : > { %14327 = vmatprep.subr.bf16.mxu0 %v16531_v25 }
 0x60e   : > { %v14063_v7 = vpop.f32.mrb[36].mxu0  ;;  %v14205_v49 = vpop.f32.mrb[200].mxu1 }
 0x60f   : > { %v14064_v10 = vpop.f32.mrb[37].mxu0  ;;  %v14206_v38 = vpop.f32.mrb[201].mxu1 }
 0x610   : > { %v14065_v5 = vadd.f32 %v14064_v10, %v14063_v7  ;;  %v14207_v61 = vadd.f32 %v14206_v38, %v14205_v49  ;;  %v14066_v46 = vpop.f32.mrb[38].mxu0  ;;  %v14208_v63 = vpop.f32.mrb[202].mxu1  ;;  %14328 = vmatpush3.bf16.msra.mxu0 %v16532_v4 }
 0x611   : > { %v14067_v15 = vpop.f32.mrb[39].mxu0  ;;  %v14209_v53 = vpop.f32.mrb[203].mxu1  ;;  %15241 = vmatprep.subr.bf16.mxu0 %v20226_v40 }
 0x612   : > { %v20228_v45 = vadd.f32 %v14201_v9, %v14065_v5  ;;  %v14068_v29 = vadd.f32 %v14067_v15, %v14066_v46  ;;  %v14210_v22 = vadd.f32 %v14209_v53, %v14208_v63 }
 0x613   : > { %15226 = vmatmul.mubr.bf16.gmra.mrb[112].mxu0 %v20167_v58 }
 0x614   : > { %v20231_v3 = vadd.f32 %v14204_v35, %v14068_v29  ;;  %15229 = vmatprep.mubr.bf16.mxu0 %v20174_v36 }
 0x616   : > { %v14069_v12 = vpop.f32.mrb[40].mxu0  ;;  %v14211_v52 = vpop.f32.mrb[204].mxu1 }
 0x617   : > { %v14070_v54 = vpop.f32.mrb[41].mxu0  ;;  %v14212_v37 = vpop.f32.mrb[205].mxu1 }
 0x618   : > { %v14071_v18 = vadd.f32 %v14070_v54, %v14069_v12  ;;  %v14213_v60 = vadd.f32 %v14212_v37, %v14211_v52  ;;  %v14072_v57 = vpop.f32.mrb[42].mxu0  ;;  %v14214_v42 = vpop.f32.mrb[206].mxu1 }
 0x619   : > { %v14073_v9 = vpop.f32.mrb[43].mxu0  ;;  %v14215_v32 = vpop.f32.mrb[207].mxu1 }
 0x61a   : > { %v20235_v30 = vadd.f32 %v14207_v61, %v14071_v18  ;;  %v14074_v31 = vadd.f32 %v14073_v9, %v14072_v57  ;;  %v14216_v25 = vadd.f32 %v14215_v32, %v14214_v42 }
 0x61b   : > { %15230 = vmatmul.mubr.bf16.gmra.mrb[116].mxu0 %v20179_v13 }
 0x61c   : > { %v20238_v35 = vadd.f32 %v14210_v22, %v14074_v31  ;;  %15233 = vmatprep.mubr.bf16.mxu0 %v20186_v6 }
 0x61e   : > { %v14075_v4 = vpop.f32.mrb[44].mxu0  ;;  %v14217_v7 = vpop.f32.mrb[208].mxu1 }
 0x61f   : > { %v14076_v49 = vpop.f32.mrb[45].mxu0  ;;  %v14218_v10 = vpop.f32.mrb[209].mxu1 }
 0x620   : > { %v14077_v38 = vadd.f32 %v14076_v49, %v14075_v4  ;;  %v14219_v5 = vadd.f32 %v14218_v10, %v14217_v7  ;;  %v14078_v46 = vpop.f32.mrb[46].mxu0  ;;  %v14220_v63 = vpop.f32.mrb[210].mxu1 }
 0x621   : > { %v14079_v15 = vpop.f32.mrb[47].mxu0  ;;  %v14221_v53 = vpop.f32.mrb[211].mxu1 }
 0x622   : > { %v20241_v61 = vadd.f32 %v14213_v60, %v14077_v38  ;;  %v14080_v29 = vadd.f32 %v14079_v15, %v14078_v46  ;;  %v14222_v12 = vadd.f32 %v14221_v53, %v14220_v63 }
 0x623   : > { %15234 = vmatmul.mubr.bf16.gmra.mrb[120].mxu0 %v20191_v48 }
 0x624   : > { %v20244_v22 = vadd.f32 %v14216_v25, %v14080_v29  ;;  %15237 = vmatprep.mubr.bf16.mxu0 %v20198_v34 }
 0x626   : > { %v14081_v52 = vpop.f32.mrb[48].mxu0  ;;  %v14223_v54 = vpop.f32.mrb[212].mxu1 }
 0x627   : > { %v14082_v37 = vpop.f32.mrb[49].mxu0  ;;  %v14224_v18 = vpop.f32.mrb[213].mxu1 }
 0x628   : > { %v14083_v57 = vadd.f32 %v14082_v37, %v14081_v52  ;;  %v14225_v42 = vadd.f32 %v14224_v18, %v14223_v54  ;;  %v14084_v9 = vpop.f32.mrb[50].mxu0  ;;  %v14226_v32 = vpop.f32.mrb[214].mxu1 }
 0x629   : > { %v14085_v31 = vpop.f32.mrb[51].mxu0  ;;  %v14227_v4 = vpop.f32.mrb[215].mxu1 }
 0x62a   : > { %v20247_v60 = vadd.f32 %v14219_v5, %v14083_v57  ;;  %v14086_v7 = vadd.f32 %v14085_v31, %v14084_v9  ;;  %v14228_v49 = vadd.f32 %v14227_v4, %v14226_v32  ;;  %v16534_v5 = vld [vmem:[#allocation9 + $0x688] sm:$0xff]  }
 0x62b   : > { %15238 = vmatmul.mubr.bf16.gmra.mrb[124].mxu0 %v20203_v43 }
 0x62c   : > { %v20250_v25 = vadd.f32 %v14222_v12, %v14086_v7  ;;  %8879 = vmatprep.mubr.bf16.mxu0 %v19795_v23  ;;  %v16535_v23 = vld [vmem:[#allocation9 + $0x690] sm:$0xff]  }
 0x62e   : > { %v14087_v10 = vpop.f32.mrb[52].mxu0  ;;  %v14229_v38 = vpop.f32.mrb[216].mxu1 }
 0x62f   : > { %v14088_v46 = vpop.f32.mrb[53].mxu0  ;;  %v14230_v63 = vpop.f32.mrb[217].mxu1 }
 0x630   : > { %v14089_v15 = vadd.f32 %v14088_v46, %v14087_v10  ;;  %v14231_v53 = vadd.f32 %v14230_v63, %v14229_v38  ;;  %v14090_v29 = vpop.f32.mrb[54].mxu0  ;;  %v14232_v52 = vpop.f32.mrb[218].mxu1 }
 0x631   : > { %v14091_v54 = vpop.f32.mrb[55].mxu0  ;;  %v14233_v37 = vpop.f32.mrb[219].mxu1 }
 0x632   : > { %v20253_v18 = vadd.f32 %v14225_v42, %v14089_v15  ;;  %v14092_v57 = vadd.f32 %v14091_v54, %v14090_v29  ;;  %v14234_v9 = vadd.f32 %v14233_v37, %v14232_v52  ;;  %v16537_v52 = vld [vmem:[#allocation9 + $0x6a0] sm:$0xff]  }
 0x633   : > { %8880 = vmatmul.mubr.bf16.vlgmr.msra.gmra.mrb[128].mxu0 %v19739_v56  ;;  %v16536_v56 = vld [vmem:[#allocation9 + $0x698] sm:$0xff]  }
 0x634   : > { %v20256_v12 = vadd.f32 %v14228_v49, %v14092_v57  ;;  %15242 = vmatpush3.bf16.msra.mxu0 %v20226_v40  ;;  %8887 = vmatprep.mubr.bf16.mxu0 %v19862_v20 }
 0x635   : > { %15243 = vmatprep.subr.bf16.mxu0 %v16534_v5 }
 0x636   : > { %v14093_v32 = vpop.f32.mrb[56].mxu0  ;;  %v14235_v31 = vpop.f32.mrb[220].mxu1 }
 0x637   : > { %v14094_v4 = vpop.f32.mrb[57].mxu0  ;;  %v14236_v7 = vpop.f32.mrb[221].mxu1 }
 0x638   : > { %v14095_v10 = vadd.f32 %v14094_v4, %v14093_v32  ;;  %v14237_v38 = vadd.f32 %v14236_v7, %v14235_v31  ;;  %v14096_v42 = vpop.f32.mrb[58].mxu0  ;;  %v14238_v46 = vpop.f32.mrb[222].mxu1  ;;  %15244 = vmatpush3.bf16.msra.mxu0 %v16534_v5 }
 0x639   : > { %v14097_v63 = vpop.f32.mrb[59].mxu0  ;;  %v14239_v15 = vpop.f32.mrb[223].mxu1  ;;  %15245 = vmatprep.subr.bf16.mxu0 %v16535_v23 }
 0x63a   : > { %v20260_v49 = vadd.f32 %v14231_v53, %v14095_v10  ;;  %v14098_v40 = vadd.f32 %v14097_v63, %v14096_v42  ;;  %v14240_v29 = vadd.f32 %v14239_v15, %v14238_v46  ;;  %v16539_v46 = vld [vmem:[#allocation9 + $0x6b0] sm:$0xff]  }
 0x63b   : > { %8888 = vmatmul.mubr.bf16.gmra.mrb[132].mxu0 %v19798_v26  ;;  %v16538_v26 = vld [vmem:[#allocation9 + $0x6a8] sm:$0xff]  }
 0x63c   : > { %v20263_v20 = vadd.f32 %v14234_v9, %v14098_v40  ;;  %8895 = vmatprep.mubr.bf16.mxu0 %v19889_v19  ;;  %15246 = vmatpush3.bf16.msra.mxu0 %v16535_v23 }
 0x63d   : > { %15247 = vmatprep.subr.bf16.mxu0 %v16536_v56 }
 0x63e   : > { %v14099_v54 = vpop.f32.mrb[60].mxu0  ;;  %v14241_v37 = vpop.f32.mrb[224].mxu1 }
 0x63f   : > { %v14100_v5 = vpop.f32.mrb[61].mxu0  ;;  %v14242_v57 = vpop.f32.mrb[225].mxu1 }
 0x640   : > { %v14101_v32 = vadd.f32 %v14100_v5, %v14099_v54  ;;  %v14243_v31 = vadd.f32 %v14242_v57, %v14241_v37  ;;  %v14102_v4 = vpop.f32.mrb[62].mxu0  ;;  %v14244_v53 = vpop.f32.mrb[226].mxu1  ;;  %15248 = vmatpush3.bf16.msra.mxu0 %v16536_v56 }
 0x641   : > { %v14103_v7 = vpop.f32.mrb[63].mxu0  ;;  %v14245_v10 = vpop.f32.mrb[227].mxu1  ;;  %15249 = vmatprep.subr.bf16.mxu0 %v16537_v52 }
 0x642   : > { %v20266_v9 = vadd.f32 %v14237_v38, %v14101_v32  ;;  %v14104_v42 = vadd.f32 %v14103_v7, %v14102_v4  ;;  %v14246_v19 = vadd.f32 %v14245_v10, %v14244_v53 }
 0x643   : > { %8896 = vmatmul.mubr.bf16.gmra.mrb[136].mxu0 %v19832_v28  ;;  %v16540_v28 = vld [vmem:[#allocation9 + $0x6b8] sm:$0xff]  }
 0x644   : > { %v20269_v23 = vadd.f32 %v14240_v29, %v14104_v42  ;;  %8903 = vmatprep.mubr.bf16.mxu0 %v19910_v2  ;;  %15250 = vmatpush3.bf16.msra.mxu0 %v16537_v52 }
 0x645   : > { %15251 = vmatprep.subr.bf16.mxu0 %v16538_v26 }
 0x646   : > { %v14105_v63 = vpop.f32.mrb[64].mxu0  ;;  %v14247_v15 = vpop.f32.mrb[228].mxu1 }
 0x647   : > { %v14106_v56 = vpop.f32.mrb[65].mxu0  ;;  %v14248_v40 = vpop.f32.mrb[229].mxu1 }
 0x648   : > { %v14107_v54 = vadd.f32 %v14106_v56, %v14105_v63  ;;  %v14249_v37 = vadd.f32 %v14248_v40, %v14247_v15  ;;  %v14108_v5 = vpop.f32.mrb[66].mxu0  ;;  %v14250_v38 = vpop.f32.mrb[230].mxu1  ;;  %15252 = vmatpush3.bf16.msra.mxu0 %v16538_v26 }
 0x649   : > { %v14109_v57 = vpop.f32.mrb[67].mxu0  ;;  %v14251_v32 = vpop.f32.mrb[231].mxu1  ;;  %15253 = vmatprep.subr.bf16.mxu0 %v16539_v46 }
 0x64a   : > { %v20272_v29 = vadd.f32 %v14243_v31, %v14107_v54  ;;  %v14110_v4 = vadd.f32 %v14109_v57, %v14108_v5  ;;  %v14252_v2 = vadd.f32 %v14251_v32, %v14250_v38 }
 0x64b   : > { %8904 = vmatmul.mubr.bf16.gmra.mrb[140].mxu0 %v19839_v55 }
 0x64c   : > { %v20275_v52 = vadd.f32 %v14246_v19, %v14110_v4  ;;  %8911 = vmatprep.mubr.bf16.mxu0 %v19942_v44  ;;  %15254 = vmatpush3.bf16.msra.mxu0 %v16539_v46 }
 0x64d   : > { %15255 = vmatprep.subr.bf16.mxu0 %v16540_v28 }
 0x64e   : > { %v14111_v53 = vpop.f32.mrb[68].mxu0  ;;  %v14253_v7 = vpop.f32.mrb[232].mxu1 }
 0x64f   : > { %v14112_v10 = vpop.f32.mrb[69].mxu0  ;;  %v14254_v26 = vpop.f32.mrb[233].mxu1 }
 0x650   : > { %v14113_v42 = vadd.f32 %v14112_v10, %v14111_v53  ;;  %v14255_v63 = vadd.f32 %v14254_v26, %v14253_v7  ;;  %v14114_v15 = vpop.f32.mrb[70].mxu0  ;;  %v14256_v56 = vpop.f32.mrb[234].mxu1  ;;  %15256 = vmatpush3.bf16.msra.mxu0 %v16540_v28 }
 0x651   : > { %v14115_v31 = vpop.f32.mrb[71].mxu0  ;;  %v14257_v40 = vpop.f32.mrb[235].mxu1 }
 0x652   : > { %v20278_v54 = vadd.f32 %v14249_v37, %v14113_v42  ;;  %v14116_v55 = vadd.f32 %v14115_v31, %v14114_v15  ;;  %v14258_v19 = vadd.f32 %v14257_v40, %v14256_v56  ;;  %v7101_v37 = vld [vmem:[#allocation2 + $0xcc] sm:$0xe]  ;;  %v20293_v40 = vld [vmem:[#allocation2 + $0xd4] ss:$0 sps:$4 sm:$0x11]  }
 0x653   : > { %8912 = vmatmul.mubr.bf16.gmra.mrb[144].mxu0 %v19877_v1  ;;  %v20287_v1 = vld [vmem:[#allocation2 + $0xd0] sm:$0xf] }
 0x654   : > { %v20281_v44 = vadd.f32 %v14252_v2, %v14116_v55  ;;  %8919 = vmatprep.mubr.bf16.mxu0 %v19963_v62  ;;  %v12855_v2 = vcombine.low %v7101_v37, %v20287_v1 }
 0x656   : > { %v14117_v46 = vpop.f32.mrb[72].mxu0  ;;  %v14259_v5 = vpop.f32.mrb[236].mxu1 }
 0x657   : > { %v14118_v38 = vpop.f32.mrb[73].mxu0  ;;  %v14260_v57 = vpop.f32.mrb[237].mxu1 }
 0x658   : > { %v14119_v32 = vadd.f32 %v14118_v38, %v14117_v46  ;;  %v14261_v4 = vadd.f32 %v14260_v57, %v14259_v5  ;;  %v14120_v53 = vpop.f32.mrb[74].mxu0  ;;  %v14262_v28 = vpop.f32.mrb[238].mxu1 }
 0x659   : > { %v14121_v7 = vpop.f32.mrb[75].mxu0  ;;  %v14263_v10 = vpop.f32.mrb[239].mxu1 }
 0x65a   : > { %v20284_v26 = vadd.f32 %v14255_v63, %v14119_v32  ;;  %v14122_v42 = vadd.f32 %v14121_v7, %v14120_v53  ;;  %v14264_v15 = vadd.f32 %v14263_v10, %v14262_v28  ;;  %v7603_v32 = vrot.slane %v12855_v2, 1 }
 0x65b   : > { %8920 = vmatmul.mubr.bf16.gmra.mrb[148].mxu0 %v19913_v16  ;;  %v7604_v16 = vrot.slane %v20293_v40, 1 }
 0x65c   : > { %21853 = vst [vmem:[#allocation32_spill] sm:$0xff] %v20284_v26  ;;  %v20289_v62 = vadd.f32 %v14258_v19, %v14122_v42  ;;  %8927 = vmatprep.mubr.bf16.mxu0 %v19980_v24 }
 0x65d   : > { %v20303_v37 = vsel %vm1612_vm9, %v7603_v32, %v7604_v16  ;;  %v21860_v32 = vld [vmem:[#allocation29_spill] sm:$0xff] }
 0x65e   : > { %21854 = vst [vmem:[#allocation25_spill] sm:$0xff] %v20289_v62  ;;  %v14123_v56 = vpop.f32.mrb[76].mxu0  ;;  %v14265_v31 = vpop.f32.mrb[240].mxu1 }
 0x65f   : > { %v14124_v55 = vpop.f32.mrb[77].mxu0  ;;  %v14266_v46 = vpop.f32.mrb[241].mxu1 }
 0x660   : > { %v14125_v63 = vadd.f32 %v14124_v55, %v14123_v56  ;;  %v14267_v5 = vadd.f32 %v14266_v46, %v14265_v31  ;;  %v14126_v38 = vpop.f32.mrb[78].mxu0  ;;  %v14268_v57 = vpop.f32.mrb[242].mxu1 }
 0x661   : > { %v14127_v53 = vpop.f32.mrb[79].mxu0  ;;  %v14269_v19 = vpop.f32.mrb[243].mxu1 }
 0x662   : > { %v20296_v28 = vadd.f32 %v14261_v4, %v14125_v63  ;;  %v14128_v24 = vadd.f32 %v14127_v53, %v14126_v38  ;;  %v14270_v7 = vadd.f32 %v14269_v19, %v14268_v57  ;;  %v21858_v53 = vld [vmem:[#allocation36_spill] sm:$0xff] }
 0x663   : > { %8928 = vmatmul.mubr.bf16.gmra.mrb[152].mxu0 %v19945_v8 }
 0x664   : > { %21855 = vst [vmem:[#allocation27_spill] sm:$0xff] %v20296_v28  ;;  %v20299_v10 = vadd.f32 %v14264_v15, %v14128_v24  ;;  %8935 = vmatprep.mubr.bf16.mxu0 %v19997_v51 }
 0x666   : > { %21856 = vst [vmem:[#allocation26_spill] sm:$0xff] %v20299_v10  ;;  %v14129_v42 = vpop.f32.mrb[80].mxu0  ;;  %v14271_v56 = vpop.f32.mrb[244].mxu1 }
 0x667   : > { %v14130_v2 = vpop.f32.mrb[81].mxu0  ;;  %v14272_v31 = vpop.f32.mrb[245].mxu1 }
 0x668   : > { %v14131_v55 = vadd.f32 %v14130_v2, %v14129_v42  ;;  %v14273_v46 = vadd.f32 %v14272_v31, %v14271_v56  ;;  %v14132_v62 = vpop.f32.mrb[82].mxu0  ;;  %v14274_v4 = vpop.f32.mrb[246].mxu1 }
 0x669   : > { %v14133_v63 = vpop.f32.mrb[83].mxu0  ;;  %v14275_v38 = vpop.f32.mrb[247].mxu1 }
 0x66a   : > { %v20305_v57 = vadd.f32 %v14267_v5, %v14131_v55  ;;  %v14134_v8 = vadd.f32 %v14133_v63, %v14132_v62  ;;  %v14276_v15 = vadd.f32 %v14275_v38, %v14274_v4  ;;  %v21861_v4 = vld [vmem:[#allocation24_spill] sm:$0xff]  ;;  %v21862_v63 = vld [vmem:[#allocation30_spill] sm:$0xff] }
 0x66b   : > { %8936 = vmatmul.mubr.bf16.gmra.mrb[156].mxu0 %v21858_v53 }
 0x66c   : > { %21857 = vst [vmem:[#allocation35_spill] sm:$0xff] %v20305_v57  ;;  %v20308_v51 = vadd.f32 %v14270_v7, %v14134_v8  ;;  %8943 = vmatprep.mubr.bf16.mxu0 %v21860_v32 }
 0x66e   : > { %21859 = vst [vmem:[#allocation36_spill] sm:$0xff] %v20308_v51  ;;  %v14135_v16 = vpop.f32.mrb[84].mxu0  ;;  %v14277_v19 = vpop.f32.mrb[248].mxu1 }
 0x66f   : > { %v14136_v24 = vpop.f32.mrb[85].mxu0  ;;  %v14278_v10 = vpop.f32.mrb[249].mxu1 }
 0x670   : > { %v14137_v42 = vadd.f32 %v14136_v24, %v14135_v16  ;;  %v14279_v56 = vadd.f32 %v14278_v10, %v14277_v19  ;;  %v14138_v2 = vpop.f32.mrb[86].mxu0  ;;  %v14280_v31 = vpop.f32.mrb[250].mxu1 }
 0x671   : > { %v14139_v28 = vpop.f32.mrb[87].mxu0  ;;  %v14281_v26 = vpop.f32.mrb[251].mxu1 }
 0x672   : > { %v20311_v5 = vadd.f32 %v14273_v46, %v14137_v42  ;;  %v14140_v62 = vadd.f32 %v14139_v28, %v14138_v2  ;;  %v14282_v55 = vadd.f32 %v14281_v26, %v14280_v31  ;;  %v21863_v42 = vld [vmem:[#allocation31_spill] sm:$0xff]  ;;  %v21864_v2 = vld [vmem:[#allocation37_spill] sm:$0xff] }
 0x673   : > { %8944 = vmatmul.mubr.bf16.gmra.mrb[160].mxu0 %v21861_v4 }
 0x674   : > { %v20314_v7 = vadd.f32 %v14276_v15, %v14140_v62  ;;  %8951 = vmatprep.mubr.bf16.mxu0 %v21862_v63 }
 0x676   : > { %v14141_v38 = vpop.f32.mrb[88].mxu0  ;;  %v14283_v8 = vpop.f32.mrb[252].mxu1 }
 0x677   : > { %v14142_v53 = vpop.f32.mrb[89].mxu0  ;;  %v14284_v32 = vpop.f32.mrb[253].mxu1 }
 0x678   : > { %v14143_v16 = vadd.f32 %v14142_v53, %v14141_v38  ;;  %v14285_v10 = vadd.f32 %v14284_v32, %v14283_v8  ;;  %v14144_v19 = vpop.f32.mrb[90].mxu0  ;;  %v14286_v24 = vpop.f32.mrb[254].mxu1  ;;  %v21865_v32 = vld [vmem:[#allocation33_spill] sm:$0xff] }
 0x679   : > { %v14145_v51 = vpop.f32.mrb[91].mxu0  ;;  %v14287_v57 = vpop.f32.mrb[255].mxu1 }
 0x67a   : > { %v20317_v46 = vadd.f32 %v14279_v56, %v14143_v16  ;;  %v14146_v28 = vadd.f32 %v14145_v51, %v14144_v19  ;;  %v14288_v26 = vadd.f32 %v14287_v57, %v14286_v24  ;;  %v21866_v51 = vld [vmem:[#allocation22_spill] sm:$0xff]  ;;  %v21867_v57 = vld [vmem:[#allocation23_spill] sm:$0xff]  ;;  %v21869_v24 = vld [vmem:[#allocation20_spill] sm:$0xff] }
 0x67b   : > { %8952 = vmatmul.mubr.bf16.gmra.mrb[164].mxu0 %v21863_v42  ;;  %v7064_v16 = vld [vmem:[#allocation2 + $0xcc] sm:$0xf] }
 0x67c   : > { %v20320_v15 = vadd.f32 %v14282_v55, %v14146_v28  ;;  %8959 = vmatprep.mubr.bf16.mxu0 %v21864_v2  ;;  %v21868_v55 = vld [vmem:[#allocation34_spill] sm:$0xff]  ;;  %v12819_v19 = vcombine.low %v7064_v16, %v20287_v1  ;;  %v21870_v28 = vld [vmem:[#allocation28_spill] sm:$0xff] }
 0x67d   : > { %v16544_v1 = vld [vmem:[#allocation9 + $0x7c0] sm:$0xff]  }
 0x67e   : > { %v14147_v31 = vpop.f32.mrb[92].mxu0  ;;  %v7469_v42 = vshrl.u32 %v12819_v19, 16  ;;  %14449 = vmatprep.subr.bf16.mxu1 %v16544_v1 }
 0x67f   : > { %v14148_v62 = vpop.f32.mrb[93].mxu0 }
 0x680   : > { %v14149_v4 = vadd.f32 %v14148_v62, %v14147_v31  ;;  %v14150_v63 = vpop.f32.mrb[94].mxu0  ;;  %v7476_v31 = vshll.u32 %v20293_v40, 16  ;;  %v16545_v40 = vld [vmem:[#allocation9 + $0x780] sm:$0xff]  }
 0x681   : > { %v14151_v38 = vpop.f32.mrb[95].mxu0  ;;  %14450 = vmatpush3.bf16.msra.mxu1 %v16545_v40 }
 0x682   : > { %v20323_v8 = vadd.f32 %v14285_v10, %v14149_v4  ;;  %v14152_v53 = vadd.f32 %v14151_v38, %v14150_v63  ;;  %v7471_v10 = vshll.u32 %v12819_v19, 16  ;;  %v7478_v62 = vrot.slane %v7476_v31, 1  ;;  %v21871_v63 = vld [vmem:[#allocation21_spill] sm:$0xff] }
 0x683   : > { %8960 = vmatmul.mubr.bf16.gmra.mrb[168].mxu0 %v21865_v32  ;;  %v16554_v31 = vld [vmem:[#allocation9 + $0x7e8] sm:$0xff]  }
 0x684   : > { %v20326_v56 = vadd.f32 %v14288_v26, %v14152_v53  ;;  %8967 = vmatprep.mubr.bf16.mxu0 %v21866_v51  ;;  %v7473_v2 = vrot.slane %v7471_v10, 1 }
 0x686   : > { %v7474_v26 = vor.u32 %v7473_v2, %v7469_v42 }
 0x688   : > { %v7479_v4 = vsel %vm1323_vm3, %v7474_v26, %v7478_v62 }
 0x68b   : > { %8968 = vmatmul.mubr.bf16.gmra.mrb[172].mxu0 %v21867_v57 }
 0x68c   : > { %8975 = vmatprep.mubr.bf16.mxu0 %v21868_v55 }
 0x693   : > { %8976 = vmatmul.mubr.bf16.gmra.mrb[176].mxu0 %v21869_v24 }
 0x694   : > { %8983 = vmatprep.mubr.bf16.mxu0 %v21870_v28 }
 0x69b   : > { %8984 = vmatmul.mubr.bf16.gmra.mrb[180].mxu0 %v20072_v59  ;;  %v16547_v59 = vld [vmem:[#allocation9 + $0x788] sm:$0xff]  }
 0x69c   : > { %8991 = vmatprep.mubr.bf16.mxu0 %v20110_v27  ;;  %v16546_v27 = vld [vmem:[#allocation9 + $0x7c8] sm:$0xff]  }
 0x69d   : > { %14451 = vmatprep.subr.bf16.mxu1 %v16546_v27 }
 0x69e   : > { %14452 = vmatpush3.bf16.msra.mxu1 %v16547_v59 }
 0x6a3   : > { %8992 = vmatmul.mubr.bf16.gmra.mrb[184].mxu0 %v21871_v63 }
 0x6a4   : > { %8999 = vmatprep.mubr.bf16.mxu0 %v7479_v4 }
 0x6ab   : > { %9000 = vmatmul.mubr.bf16.gmra.mrb[188].mxu0 %v12819_v19 }
 0x6ac   : > { %15257 = vmatprep.mubr.bf16.mxu0 %v20125_v41  ;;  %v16548_v41 = vld [vmem:[#allocation9 + $0x7d0] sm:$0xff]  }
 0x6ad   : > { %14453 = vmatprep.subr.bf16.mxu1 %v16548_v41 }
 0x6b3   : > { %15258 = vmatmul.mubr.bf16.vlgmr.msra.gmra.mrb[96].mxu0 %v20130_v0  ;;  %v16549_v0 = vld [vmem:[#allocation9 + $0x790] sm:$0xff]  }
 0x6b4   : > { %15261 = vmatprep.mubr.bf16.mxu0 %v20138_v50  ;;  %14454 = vmatpush3.bf16.msra.mxu1 %v16549_v0  ;;  %v16550_v50 = vld [vmem:[#allocation9 + $0x7d8] sm:$0xff]  }
 0x6b5   : > { %14455 = vmatprep.subr.bf16.mxu1 %v16550_v50 }
 0x6bb   : > { %15262 = vmatmul.mubr.bf16.gmra.mrb[100].mxu0 %v20143_v17  ;;  %v16551_v17 = vld [vmem:[#allocation9 + $0x798] sm:$0xff]  }
 0x6bc   : > { %15265 = vmatprep.mubr.bf16.mxu0 %v20150_v11  ;;  %14456 = vmatpush3.bf16.msra.mxu1 %v16551_v17  ;;  %v16552_v11 = vld [vmem:[#allocation9 + $0x7e0] sm:$0xff]  }
 0x6bd   : > { %14457 = vmatprep.subr.bf16.mxu1 %v16552_v11 }
 0x6c3   : > { %15266 = vmatmul.mubr.bf16.gmra.mrb[104].mxu0 %v20155_v33  ;;  %v16553_v33 = vld [vmem:[#allocation9 + $0x7a0] sm:$0xff]  }
 0x6c4   : > { %15269 = vmatprep.mubr.bf16.mxu0 %v20162_v39  ;;  %14458 = vmatpush3.bf16.msra.mxu1 %v16553_v33 }
 0x6c5   : > { %14459 = vmatprep.subr.bf16.mxu1 %v16554_v31 }
 0x6cb   : > { %15270 = vmatmul.mubr.bf16.gmra.mrb[108].mxu0 %v20167_v58 }
 0x6cc   : > { %15273 = vmatprep.mubr.bf16.mxu0 %v20174_v36 }
 0x6d3   : > { %15274 = vmatmul.mubr.bf16.gmra.mrb[112].mxu0 %v20179_v13 }
 0x6d4   : > { %15277 = vmatprep.mubr.bf16.mxu0 %v20186_v6 }
 0x6db   : > { %15278 = vmatmul.mubr.bf16.gmra.mrb[116].mxu0 %v20191_v48 }
 0x6dc   : > { %15281 = vmatprep.mubr.bf16.mxu0 %v20198_v34 }
 0x6e3   : > { %15282 = vmatmul.mubr.bf16.gmra.mrb[120].mxu0 %v20203_v43 }
 0x6e4   : > { %15285 = vmatprep.mubr.bf16.mxu0 %v20209_v14 }
 0x6eb   : > { %15286 = vmatmul.mubr.bf16.gmra.mrb[124].mxu0 %v20303_v37 }
 0x706   : > { %v14329_v39 = vpop.f32.mrb[128].mxu0 }
 0x707   : > { %v14330_v58 = vpop.f32.mrb[129].mxu0 }
 0x708   : > { %v14331_v36 = vadd.f32 %v14330_v58, %v14329_v39  ;;  %v14332_v13 = vpop.f32.mrb[130].mxu0  ;;  %v16556_v58 = vld [vmem:[#allocation9 + $0x700] sm:$0xff]  }
 0x709   : > { %v14333_v6 = vpop.f32.mrb[131].mxu0  ;;  %14585 = vmatprep.subr.bf16.mxu0 %v16556_v58  ;;  %v10001_v58 = vld [vmem:[#allocation2 + $0x4] sm:$0xf] }
 0x70a   : > { %v14334_v48 = vadd.f32 %v14333_v6, %v14332_v13  ;;  %v20356_v34 = vadd.f32 %v20219_v21, %v14331_v36  ;;  %v16557_v36 = vld [vmem:[#allocation9 + $0x6c0] sm:$0xff]  }
 0x70b   : > { %14586 = vmatpush3.bf16.msra.mxu0 %v16557_v36 }
 0x70c   : > { %v20359_v43 = vadd.f32 %v20222_v47, %v14334_v48 }
 0x70e   : > { %v14335_v14 = vpop.f32.mrb[132].mxu0 }
 0x70f   : > { %v14336_v38 = vpop.f32.mrb[133].mxu0 }
 0x710   : > { %v14337_v37 = vadd.f32 %v14336_v38, %v14335_v14  ;;  %v14338_v53 = vpop.f32.mrb[134].mxu0 }
 0x711   : > { %v14339_v32 = vpop.f32.mrb[135].mxu0 }
 0x712   : > { %v14340_v51 = vadd.f32 %v14339_v32, %v14338_v53  ;;  %v20362_v57 = vadd.f32 %v20228_v45, %v14337_v37  ;;  %v16555_v45 = vld [vmem:[#allocation9 + $0x7a8] sm:$0xff]   ;;  %v16560_v32 = vld [vmem:[#allocation9 + $0x7f0] sm:$0xff]  }
 0x713   : > { %14460 = vmatpush3.bf16.msra.mxu1 %v16555_v45  ;;  %v16565_v45 = vld [vmem:[#allocation9 + $0x6d8] sm:$0xff]  }
 0x714   : > { %v20365_v55 = vadd.f32 %v20231_v3, %v14340_v51  ;;  %14461 = vmatprep.subr.bf16.mxu1 %v16560_v32 }
 0x716   : > { %v14341_v16 = vpop.f32.mrb[136].mxu0 }
 0x717   : > { %v14342_v19 = vpop.f32.mrb[137].mxu0 }
 0x718   : > { %v14343_v24 = vadd.f32 %v14342_v19, %v14341_v16  ;;  %v14344_v21 = vpop.f32.mrb[138].mxu0  ;;  %v16561_v16 = vld [vmem:[#allocation9 + $0x7b0] sm:$0xff]  }
 0x719   : > { %v14345_v28 = vpop.f32.mrb[139].mxu0  ;;  %v16562_v19 = vld [vmem:[#allocation9 + $0x710] sm:$0xff]   ;;  %14462 = vmatpush3.bf16.msra.mxu1 %v16561_v16 }
 0x71a   : > { %v14346_v10 = vadd.f32 %v14345_v28, %v14344_v21  ;;  %v20368_v47 = vadd.f32 %v20235_v30, %v14343_v24  ;;  %v16563_v24 = vld [vmem:[#allocation9 + $0x6d0] sm:$0xff]  }
 0x71c   : > { %v20371_v42 = vadd.f32 %v20238_v35, %v14346_v10 }
 0x71e   : > { %v14347_v2 = vpop.f32.mrb[140].mxu0 }
 0x71f   : > { %v14348_v26 = vpop.f32.mrb[141].mxu0 }
 0x720   : > { %v14349_v62 = vadd.f32 %v14348_v26, %v14347_v2  ;;  %v14350_v4 = vpop.f32.mrb[142].mxu0 }
 0x721   : > { %v14351_v3 = vpop.f32.mrb[143].mxu0 }
 0x722   : > { %v14352_v63 = vadd.f32 %v14351_v3, %v14350_v4  ;;  %v20374_v1 = vadd.f32 %v20241_v61, %v14349_v62 }
 0x724   : > { %v20377_v40 = vadd.f32 %v20244_v22, %v14352_v63  ;;  %v16558_v22 = vld [vmem:[#allocation9 + $0x708] sm:$0xff]  }
 0x725   : > { %14587 = vmatprep.subr.bf16.mxu0 %v16558_v22  ;;  %v16572_v22 = vld [vmem:[#allocation9 + $0x730] sm:$0xff]  }
 0x726   : > { %v14353_v30 = vpop.f32.mrb[144].mxu0 }
 0x727   : > { %v14354_v27 = vpop.f32.mrb[145].mxu0 }
 0x728   : > { %v14355_v35 = vadd.f32 %v14354_v27, %v14353_v30  ;;  %v14356_v59 = vpop.f32.mrb[146].mxu0  ;;  %v16566_v27 = vld [vmem:[#allocation9 + $0x720] sm:$0xff]  }
 0x729   : > { %v14357_v41 = vpop.f32.mrb[147].mxu0 }
 0x72a   : > { %v14358_v0 = vadd.f32 %v14357_v41, %v14356_v59  ;;  %v20380_v50 = vadd.f32 %v20247_v60, %v14355_v35  ;;  %v16559_v60 = vld [vmem:[#allocation9 + $0x6c8] sm:$0xff]   ;;  %v16567_v59 = vld [vmem:[#allocation9 + $0x6e0] sm:$0xff]  }
 0x72b   : > { %14588 = vmatpush3.bf16.msra.mxu0 %v16559_v60 }
 0x72c   : > { %v20383_v17 = vadd.f32 %v20250_v25, %v14358_v0  ;;  %14589 = vmatprep.subr.bf16.mxu0 %v16562_v19  ;;  %v16568_v0 = vld [vmem:[#allocation9 + $0x728] sm:$0xff]  }
 0x72e   : > { %v14359_v11 = vpop.f32.mrb[148].mxu0 }
 0x72f   : > { %v14360_v33 = vpop.f32.mrb[149].mxu0  ;;  %14590 = vmatpush3.bf16.msra.mxu0 %v16563_v24 }
 0x730   : > { %v14361_v39 = vadd.f32 %v14360_v33, %v14359_v11  ;;  %v14362_v61 = vpop.f32.mrb[150].mxu0 }
 0x731   : > { %v14363_v13 = vpop.f32.mrb[151].mxu0 }
 0x732   : > { %v14364_v6 = vadd.f32 %v14363_v13, %v14362_v61  ;;  %v20386_v48 = vadd.f32 %v20253_v18, %v14361_v39  ;;  %v16564_v18 = vld [vmem:[#allocation9 + $0x718] sm:$0xff]   ;;  %v10000_v61 = vld [vmem:[#allocation2] sm:$0xf] }
 0x733   : > { %14591 = vmatprep.subr.bf16.mxu0 %v16564_v18  ;;  %v12963_v13 = vcombine.low %v10000_v61, %v10001_v58  ;;  %v16575_v18 = vld [vmem:[#allocation9 + $0x6f8] sm:$0xff]  }
 0x734   : > { %v20389_v14 = vadd.f32 %v20256_v12, %v14364_v6  ;;  %14592 = vmatpush3.bf16.msra.mxu0 %v16565_v45  ;;  %v21874_v61 = vld [vmem:[#allocation27_spill] sm:$0xff] }
 0x735   : > { %14593 = vmatprep.subr.bf16.mxu0 %v16566_v27  ;;  %v10235_v16 = vshrl.u32 %v12963_v13, 16  ;;  %v21872_v27 = vld [vmem:[#allocation32_spill] sm:$0xff] }
 0x736   : > { %v14365_v25 = vpop.f32.mrb[152].mxu0 }
 0x737   : > { %v14366_v38 = vpop.f32.mrb[153].mxu0 }
 0x738   : > { %v14367_v37 = vadd.f32 %v14366_v38, %v14365_v25  ;;  %v14368_v53 = vpop.f32.mrb[154].mxu0  ;;  %14594 = vmatpush3.bf16.msra.mxu0 %v16567_v59  ;;  %v16573_v25 = vld [vmem:[#allocation9 + $0x6f0] sm:$0xff]  }
 0x739   : > { %v14369_v51 = vpop.f32.mrb[155].mxu0  ;;  %14595 = vmatprep.subr.bf16.mxu0 %v16568_v0 }
 0x73a   : > { %v14370_v21 = vadd.f32 %v14369_v51, %v14368_v53  ;;  %v20392_v28 = vadd.f32 %v20260_v49, %v14367_v37  ;;  %v16570_v37 = vld [vmem:[#allocation9 + $0x7f8] sm:$0xff]   ;;  %v10237_v53 = vshll.u32 %v12963_v13, 16 }
 0x73b   : > { %14463 = vmatprep.subr.bf16.mxu1 %v16570_v37 }
 0x73c   : > { %v20395_v12 = vadd.f32 %v20263_v20, %v14370_v21  ;;  %v10239_v19 = vrot.slane %v10237_v53, 1 }
 0x73e   : > { %v14371_v10 = vpop.f32.mrb[156].mxu0 }
 0x73f   : > { %v14372_v2 = vpop.f32.mrb[157].mxu0 }
 0x740   : > { %v14373_v31 = vadd.f32 %v14372_v2, %v14371_v10  ;;  %v14374_v26 = vpop.f32.mrb[158].mxu0  ;;  %v10240_v10 = vor.u32 %v10239_v19, %v10235_v16 }
 0x741   : > { %v14375_v62 = vpop.f32.mrb[159].mxu0 }
 0x742   : > { %v14376_v4 = vadd.f32 %v14375_v62, %v14374_v26  ;;  %v20398_v3 = vadd.f32 %v20266_v9, %v14373_v31  ;;  %v16569_v9 = vld [vmem:[#allocation9 + $0x6e8] sm:$0xff]  }
 0x743   : > { %14596 = vmatpush3.bf16.msra.mxu0 %v16569_v9 }
 0x744   : > { %v20401_v49 = vadd.f32 %v20269_v23, %v14376_v4  ;;  %14597 = vmatprep.subr.bf16.mxu0 %v16572_v22 }
 0x746   : > { %v14377_v63 = vpop.f32.mrb[160].mxu0 }
 0x747   : > { %v14378_v30 = vpop.f32.mrb[161].mxu0  ;;  %14598 = vmatpush3.bf16.msra.mxu0 %v16573_v25 }
 0x748   : > { %v14379_v20 = vadd.f32 %v14378_v30, %v14377_v63  ;;  %v14380_v35 = vpop.f32.mrb[162].mxu0  ;;  %v16571_v63 = vld [vmem:[#allocation9 + $0x7b8] sm:$0xff]  }
 0x749   : > { %v14381_v41 = vpop.f32.mrb[163].mxu0  ;;  %14464 = vmatpush3.bf16.msra.mxu1 %v16571_v63 }
 0x74a   : > { %v14382_v11 = vadd.f32 %v14381_v41, %v14380_v35  ;;  %v20404_v33 = vadd.f32 %v20272_v29, %v14379_v20  ;;  %v16577_v29 = vld [vmem:[#allocation2 + $0x8] ss:$0 sps:$4 sm:$0x11]  }
 0x74b   : > { %v10242_v24 = vshll.u32 %v16577_v29, 16  ;;  %v21876_v29 = vld [vmem:[#allocation35_spill] sm:$0xff] }
 0x74c   : > { %v20407_v39 = vadd.f32 %v20275_v52, %v14382_v11  ;;  %v16574_v52 = vld [vmem:[#allocation9 + $0x738] sm:$0xff]  }
 0x74d   : > { %14599 = vmatprep.subr.bf16.mxu0 %v16574_v52  ;;  %v10244_v2 = vrot.slane %v10242_v24, 1 }
 0x74e   : > { %v14383_v23 = vpop.f32.mrb[164].mxu0  ;;  %14600 = vmatpush3.bf16.msra.mxu0 %v16575_v18 }
 0x74f   : > { %v14384_v36 = vpop.f32.mrb[165].mxu0  ;;  %v10245_v45 = vsel %vm1323_vm3, %v10240_v10, %v10244_v2  ;;  %v16580_v10 = vld [vmem:[#allocation9 + $0x800] sm:$0xff]  }
 0x750   : > { %v14385_v6 = vadd.f32 %v14384_v36, %v14383_v23  ;;  %v14386_v60 = vpop.f32.mrb[166].mxu0  ;;  %11334 = vmatprep.mubr.bf16.mxu0 %v10245_v45  ;;  %v21875_v36 = vld [vmem:[#allocation26_spill] sm:$0xff]  ;;  %15289 = vmatprep.subr.bf16.mxu1 %v16580_v10 }
 0x751   : > { %v14387_v38 = vpop.f32.mrb[167].mxu0  ;;  %11335 = vmatmul.mubr.bf16.vlgmr.msra.gmra.mrb[192].mxu0 %v12963_v13 }
 0x752   : > { %v14388_v32 = vadd.f32 %v14387_v38, %v14386_v60  ;;  %v20410_v51 = vadd.f32 %v20278_v54, %v14385_v6 }
 0x754   : > { %v20413_v21 = vadd.f32 %v20281_v44, %v14388_v32  ;;  %v21873_v44 = vld [vmem:[#allocation25_spill] sm:$0xff]  ;;  %v21877_v32 = vld [vmem:[#allocation36_spill] sm:$0xff] }
 0x756   : > { %v14389_v31 = vpop.f32.mrb[168].mxu0 }
 0x757   : > { %v14390_v26 = vpop.f32.mrb[169].mxu0 }
 0x758   : > { %v14391_v54 = vadd.f32 %v14390_v26, %v14389_v31  ;;  %v14392_v62 = vpop.f32.mrb[170].mxu0 }
 0x759   : > { %v14393_v4 = vpop.f32.mrb[171].mxu0 }
 0x75a   : > { %v14394_v30 = vadd.f32 %v14393_v4, %v14392_v62  ;;  %v20417_v20 = vadd.f32 %v21872_v27, %v14391_v54 }
 0x75c   : > { %v20420_v35 = vadd.f32 %v21873_v44, %v14394_v30 }
 0x75e   : > { %v14395_v59 = vpop.f32.mrb[172].mxu0 }
 0x75f   : > { %v14396_v41 = vpop.f32.mrb[173].mxu0 }
 0x760   : > { %v14397_v0 = vadd.f32 %v14396_v41, %v14395_v59  ;;  %v14398_v11 = vpop.f32.mrb[174].mxu0 }
 0x761   : > { %v14399_v9 = vpop.f32.mrb[175].mxu0 }
 0x762   : > { %v14400_v23 = vadd.f32 %v14399_v9, %v14398_v11  ;;  %v20423_v58 = vadd.f32 %v21874_v61, %v14397_v0 }
 0x764   : > { %v20426_v22 = vadd.f32 %v21875_v36, %v14400_v23 }
 0x766   : > { %v14401_v13 = vpop.f32.mrb[176].mxu0 }
 0x767   : > { %v14402_v6 = vpop.f32.mrb[177].mxu0 }
 0x768   : > { %v14403_v60 = vadd.f32 %v14402_v6, %v14401_v13  ;;  %v14404_v25 = vpop.f32.mrb[178].mxu0 }
 0x769   : > { %v14405_v38 = vpop.f32.mrb[179].mxu0 }
 0x76a   : > { %v14406_v37 = vadd.f32 %v14405_v38, %v14404_v25  ;;  %v20429_v53 = vadd.f32 %v21876_v29, %v14403_v60 }
 0x76c   : > { %v20432_v52 = vadd.f32 %v21877_v32, %v14406_v37  ;;  %v20459_v37 = vld [vmem:[#allocation6 + $0x3] ss:$0 sm:$0xff] }
 0x76e   : > { %v14407_v16 = vpop.f32.mrb[180].mxu0 }
 0x76f   : > { %v14408_v19 = vpop.f32.mrb[181].mxu0 }
 0x770   : > { %v14409_v24 = vadd.f32 %v14408_v19, %v14407_v16  ;;  %v14410_v18 = vpop.f32.mrb[182].mxu0  ;;  %v9238_v16 = vld [vmem:[%s17190_s24] sm:$0xff]  ;;  %v20465_v19 = vld [vmem:[#allocation8 + $0x3] ss:$0 sm:$0xff] }
 0x771   : > { %v14411_v2 = vpop.f32.mrb[183].mxu0 }
 0x772   : > { %v14412_v31 = vadd.f32 %v14411_v2, %v14410_v18  ;;  %v20435_v26 = vadd.f32 %v20311_v5, %v14409_v24  ;;  %v9241_v18 = vld [vmem:[%s17190_s24 + $0x18] sm:$0xff] }
 0x774   : > { %v20438_v45 = vadd.f32 %v20314_v7, %v14412_v31  ;;  %v9239_v31 = vld [vmem:[%s17190_s24 + $0x8] sm:$0xff] }
 0x776   : > { %v14413_v54 = vpop.f32.mrb[184].mxu0 }
 0x777   : > { %v14414_v62 = vpop.f32.mrb[185].mxu0 }
 0x778   : > { %v14415_v4 = vadd.f32 %v14414_v62, %v14413_v54  ;;  %v14416_v63 = vpop.f32.mrb[186].mxu0 }
 0x779   : > { %v14417_v30 = vpop.f32.mrb[187].mxu0 }
 0x77a   : > { %v14418_v27 = vadd.f32 %v14417_v30, %v14416_v63  ;;  %v20441_v44 = vadd.f32 %v20317_v46, %v14415_v4  ;;  %v20452_v46 = vld [vmem:[#allocation11 + $0x2] ss:$0 sm:$0xff] }
 0x77c   : > { %v20444_v59 = vadd.f32 %v20320_v15, %v14418_v27 }
 0x77e   : > { %v14419_v41 = vpop.f32.mrb[188].mxu0 }
 0x77f   : > { %v14420_v0 = vpop.f32.mrb[189].mxu0 }
 0x780   : > { %v14421_v5 = vadd.f32 %v14420_v0, %v14419_v41  ;;  %v14422_v11 = vpop.f32.mrb[190].mxu0 }
 0x781   : > { %v14423_v9 = vpop.f32.mrb[191].mxu0 }
 0x782   : > { %v14424_v7 = vadd.f32 %v14423_v9, %v14422_v11  ;;  %v20447_v23 = vadd.f32 %v20323_v8, %v14421_v5 }
 0x784   : > { %v20450_v61 = vadd.f32 %v20326_v56, %v14424_v7  ;;  %v9240_v56 = vld [vmem:[%s17190_s24 + $0x10] sm:$0xff] }
 0x786   : > { %v15259_v36 = vpop.f32.mrb[96].mxu0 }
 0x787   : > { %v15659_v15 = vadd.f32 %v20362_v57, %v15259_v36  ;;  %v9042_v13 = vpop.f32.mrb[97].mxu0 }
 0x788   : > { %v15662_v6 = vadd.f32 %v20356_v34, %v9042_v13  ;;  %v15260_v60 = vpop.f32.mrb[98].mxu0 }
 0x789   : > { %v9208_v25 = vadd.f32 %v15659_v15, %v20452_v46  ;;  %v15665_v8 = vadd.f32 %v20365_v55, %v15260_v60  ;;  %v9045_v38 = vpop.f32.mrb[99].mxu0  ;;  %v9244_v60 = vld [vmem:[%s17190_s24 + $0x30] sm:$0xff] }
 0x78a   : > { %v9206_v29 = vadd.f32 %v15662_v6, %v20452_v46  ;;  %v15668_v57 = vadd.f32 %v20359_v43, %v9045_v38 }
 0x78b   : > { %v9272_v32 = vadd.f32 %v9240_v56, %v9208_v25  ;;  %v9209_v34 = vadd.f32 %v15665_v8, %v20452_v46 }
 0x78c   : > { %v9270_v24 = vadd.f32 %v9238_v16, %v9206_v29  ;;  %v9207_v55 = vadd.f32 %v15668_v57, %v20452_v46  ;;  %v9242_v29 = vld [vmem:[%s17190_s24 + $0x20] sm:$0xff] }
 0x78d   : > { %9304 = vst [vmem:[%s17190_s24 + $0x10] sm:$0xff] %v9272_v32  ;;  %v9373_v10 = vmul.f32 %v20459_v37, %v9272_v32  ;;  %v9273_v2 = vadd.f32 %v9241_v18, %v9209_v34 }
 0x78e   : > { %9302 = vst [vmem:[%s17190_s24] sm:$0xff] %v9270_v24  ;;  %v9371_v43 = vmul.f32 %v20459_v37, %v9270_v24  ;;  %v9271_v54 = vadd.f32 %v9239_v31, %v9207_v55  ;;  %v15263_v62 = vpop.f32.mrb[100].mxu0 }
 0x78f   : > { %v9410_v4 = vadd.f32 %v20465_v19, %v9373_v10  ;;  %9305 = vst [vmem:[%s17190_s24 + $0x18] sm:$0xff] %v9273_v2  ;;  %v9374_v63 = vmul.f32 %v20459_v37, %v9273_v2  ;;  %v15671_v30 = vadd.f32 %v20374_v1, %v15263_v62  ;;  %v9058_v27 = vpop.f32.mrb[101].mxu0 }
 0x790   : > { %v9408_v41 = vadd.f32 %v20465_v19, %v9371_v43  ;;  %9303 = vst [vmem:[%s17190_s24 + $0x8] sm:$0xff] %v9271_v54  ;;  %v9372_v0 = vmul.f32 %v20459_v37, %v9271_v54  ;;  %v15674_v5 = vadd.f32 %v20368_v47, %v9058_v27  ;;  %v15264_v11 = vpop.f32.mrb[102].mxu0 }
 0x791   : > { %v9442_v9 = vmax.f32 %v9410_v4, 0.0  ;;  %v9411_v7 = vadd.f32 %v20465_v19, %v9374_v63  ;;  %v9212_v36 = vadd.f32 %v15671_v30, %v20452_v46  ;;  %v15677_v15 = vadd.f32 %v20377_v40, %v15264_v11  ;;  %v9061_v13 = vpop.f32.mrb[103].mxu0 }
 0x792   : > { %v9440_v1 = vmax.f32 %v9408_v41, 0.0  ;;  %v9409_v6 = vadd.f32 %v20465_v19, %v9372_v0  ;;  %v9210_v25 = vadd.f32 %v15674_v5, %v20452_v46  ;;  %v15680_v8 = vadd.f32 %v20371_v42, %v9061_v13 }
 0x793   : > { %v13194_v38 = vpack.c.bf16 %v9442_v9, %v9442_v9  ;;  %v9443_v47 = vmax.f32 %v9411_v7, 0.0  ;;  %v9276_v56 = vadd.f32 %v9244_v60, %v9212_v36  ;;  %v9213_v40 = vadd.f32 %v15677_v15, %v20452_v46 }
 0x794   : > { %v13192_v57 = vpack.c.bf16 %v9440_v1, %v9440_v1  ;;  %v9441_v32 = vmax.f32 %v9409_v6, 0.0  ;;  %v9274_v16 = vadd.f32 %v9242_v29, %v9210_v25  ;;  %v9211_v55 = vadd.f32 %v15680_v8, %v20452_v46  ;;  %v9895_v6 = vld [vmem:[#allocation2 + $0x18] sm:$0xf] }
 0x795   : > { %v9586_v34 = vshrl.u32 %v13194_v38, 16  ;;  %v13195_v24 = vpack.c.bf16 %v9443_v47, %v9443_v47  ;;  %9308 = vst [vmem:[%s17190_s24 + $0x30] sm:$0xff] %v9276_v56  ;;  %v9377_v18 = vmul.f32 %v20459_v37, %v9276_v56  ;;  %v9589_v10 = vshll.u32 %v13194_v38, 16  ;;  %v9888_v56 = vld [vmem:[#allocation2 + $0xc] sm:$0xf] }
 0x796   : > { %v9569_v2 = vshrl.u32 %v13192_v57, 16  ;;  %v13193_v42 = vpack.c.bf16 %v9441_v32, %v9441_v32  ;;  %9306 = vst [vmem:[%s17190_s24 + $0x20] sm:$0xff] %v9274_v16  ;;  %v9375_v31 = vmul.f32 %v20459_v37, %v9274_v16  ;;  %v15267_v43 = vpop.f32.mrb[104].mxu0  ;;  %v9572_v62 = vshll.u32 %v13192_v57, 16 }
 0x797   : > { %v9588_v54 = vrot.slane %v9586_v34, 7  ;;  %v9594_v4 = vshrl.u32 %v13195_v24, 16  ;;  %v9414_v63 = vadd.f32 %v20465_v19, %v9377_v18  ;;  %v9074_v30 = vpop.f32.mrb[105].mxu0  ;;  %v9597_v41 = vshll.u32 %v13195_v24, 16  ;;  %v9899_v34 = vld [vmem:[#allocation2 + $0x20] sm:$0x1] }
 0x798   : > { %v20497_v27 = vrot.slane %v9569_v2, 7  ;;  %v9577_v0 = vshrl.u32 %v13193_v42, 16  ;;  %v9412_v5 = vadd.f32 %v20465_v19, %v9375_v31  ;;  %v15268_v11 = vpop.f32.mrb[106].mxu0  ;;  %v9580_v36 = vshll.u32 %v13193_v42, 16  ;;  %v20935_v31 = vld [vmem:[#allocation9 + $0x740] sm:$0xff]  }
 0x799   : > { %v9591_v9 = vor.u32 %v9589_v10, %v9588_v54  ;;  %v9596_v7 = vrot.slane %v9594_v4, 7  ;;  %v9446_v15 = vmax.f32 %v9414_v63, 0.0  ;;  %v9077_v13 = vpop.f32.mrb[107].mxu0  ;;  %v9592_v1 = vrot.slane %v9588_v54, 4 }
 0x79a   : > { %v9574_v60 = vor.u32 %v9572_v62, %v20497_v27  ;;  %v9579_v25 = vrot.slane %v9577_v0, 7  ;;  %v9444_v8 = vmax.f32 %v9412_v5, 0.0  ;;  %v9892_v62 = vld [vmem:[#allocation2 + $0x14] sm:$0x1] }
 0x79b   : > { %v9896_v47 = vsel %vm17232_vm7, %v9591_v9, %v9895_v6  ;;  %v9599_v29 = vor.u32 %v9597_v41, %v9596_v7  ;;  %v9601_v57 = vrot.slane %v9596_v7, 4  ;;  %v13198_v32 = vpack.c.bf16 %v9446_v15, %v9446_v15  ;;  %v9245_v41 = vld [vmem:[%s17190_s24 + $0x38] sm:$0xff] }
 0x79c   : > { %9897 = vst [vmem:[#allocation2 + $0x18] sm:$0xf] %v9896_v47  ;;  %v9889_v16 = vsel %vm17232_vm7, %v9574_v60, %v9888_v56  ;;  %v20505_v24 = vor.u32 %v9580_v36, %v9579_v25  ;;  %v9584_v18 = vrot.slane %v9579_v25, 4  ;;  %v13196_v10 = vpack.c.bf16 %v9444_v8, %v9444_v8  ;;  %v9243_v36 = vld [vmem:[%s17190_s24 + $0x28] sm:$0xff] }
 0x79d   : > { %9890 = vst [vmem:[#allocation2 + $0xc] sm:$0xf] %v9889_v16  ;;  %v9600_v42 = vsel %vm17223_vm6, %v9592_v1, %v9599_v29  ;;  %v9900_v54 = vsel %vm17242_vm8, %v9601_v57, %v9899_v34  ;;  %v9620_v4 = vshrl.u32 %v13198_v32, 16  ;;  %v9623_v63 = vshll.u32 %v13198_v32, 16 }
 0x79e   : > { %9898 = vst [vmem:[#allocation2 + $0x1c] sm:$0xf] %v9600_v42  ;;  %9901 = vst [vmem:[#allocation2 + $0x20] sm:$0x1] %v9900_v54  ;;  %v9893_v0 = vsel %vm17242_vm8, %v9584_v18, %v9892_v62  ;;  %v9603_v5 = vshrl.u32 %v13196_v10, 16  ;;  %v9606_v9 = vshll.u32 %v13196_v10, 16  ;;  %v9277_v7 = vadd.f32 %v9245_v41, %v9213_v40 }
 0x79f   : > { %v15271_v15 = vpop.f32.mrb[108].mxu0  ;;  %9894 = vst [vmem:[#allocation2 + $0x14] sm:$0x1] %v9893_v0  ;;  %v20515_v1 = vrot.slane %v9620_v4, 7  ;;  %v9275_v6 = vadd.f32 %v9243_v36, %v9211_v55  ;;  %v15683_v60 = vadd.f32 %v20386_v48, %v15267_v43  ;;  %v15686_v25 = vadd.f32 %v20380_v50, %v9074_v30  ;;  %v9909_v30 = vld [vmem:[#allocation2 + $0x30] sm:$0xf] }
 0x7a0   : > { %v9090_v8 = vpop.f32.mrb[109].mxu0  ;;  %v20519_v47 = vrot.slane %v9603_v5, 7  ;;  %9309 = vst [vmem:[%s17190_s24 + $0x38] sm:$0xff] %v9277_v7  ;;  %v9378_v56 = vmul.f32 %v20459_v37, %v9277_v7  ;;  %v15689_v40 = vadd.f32 %v20389_v14, %v15268_v11  ;;  %v15692_v29 = vadd.f32 %v20383_v17, %v9077_v13  ;;  %v9248_v13 = vld [vmem:[%s17190_s24 + $0x50] sm:$0xff]  ;;  %v9902_v18 = vld [vmem:[#allocation2 + $0x24] sm:$0xf] }
 0x7a1   : > { %v20525_v57 = vpop.f32.mrb[110].mxu0  ;;  %v9625_v32 = vor.u32 %v9623_v63, %v20515_v1  ;;  %v9626_v48 = vrot.slane %v20515_v1, 4  ;;  %9307 = vst [vmem:[%s17190_s24 + $0x28] sm:$0xff] %v9275_v6  ;;  %v9376_v50 = vmul.f32 %v20459_v37, %v9275_v6  ;;  %v9216_v55 = vadd.f32 %v15683_v60, %v20452_v46  ;;  %v9246_v54 = vld [vmem:[%s17190_s24 + $0x40] sm:$0xff]  ;;  %v9249_v0 = vld [vmem:[%s17190_s24 + $0x58] sm:$0xff]  ;;  %v9247_v6 = vld [vmem:[%s17190_s24 + $0x48] sm:$0xff] }
 0x7a2   : > { %v20532_v43 = vpop.f32.mrb[111].mxu0  ;;  %v9608_v14 = vor.u32 %v9606_v9, %v20519_v47  ;;  %v9609_v17 = vrot.slane %v20519_v47, 4  ;;  %v9415_v11 = vadd.f32 %v20465_v19, %v9378_v56  ;;  %v9214_v16 = vadd.f32 %v15686_v25, %v20452_v46 }
 0x7a3   : > { %v9910_v34 = vsel %vm17232_vm7, %v9625_v32, %v9909_v30  ;;  %v9413_v10 = vadd.f32 %v20465_v19, %v9376_v50  ;;  %v9280_v42 = vadd.f32 %v9248_v13, %v9216_v55  ;;  %v9217_v62 = vadd.f32 %v15689_v40, %v20452_v46 }
 0x7a4   : > { %9911 = vst [vmem:[#allocation2 + $0x30] sm:$0xf] %v9910_v34  ;;  %v9903_v4 = vsel %vm17232_vm7, %v9608_v14, %v9902_v18  ;;  %v9447_v63 = vmax.f32 %v9415_v11, 0.0  ;;  %v9278_v41 = vadd.f32 %v9246_v54, %v9214_v16  ;;  %v9215_v5 = vadd.f32 %v15692_v29, %v20452_v46 }
 0x7a5   : > { %9904 = vst [vmem:[#allocation2 + $0x24] sm:$0xf] %v9903_v4  ;;  %v9445_v9 = vmax.f32 %v9413_v10, 0.0  ;;  %9312 = vst [vmem:[%s17190_s24 + $0x50] sm:$0xff] %v9280_v42  ;;  %v9381_v7 = vmul.f32 %v20459_v37, %v9280_v42  ;;  %v9281_v36 = vadd.f32 %v9249_v0, %v9217_v62  ;;  %v15695_v60 = vadd.f32 %v20398_v3, %v15271_v15  ;;  %v9252_v42 = vld [vmem:[%s17190_s24 + $0x70] sm:$0xff] }
 0x7a6   : > { %v13199_v25 = vpack.c.bf16 %v9447_v63, %v9447_v63  ;;  %9310 = vst [vmem:[%s17190_s24 + $0x40] sm:$0xff] %v9278_v41  ;;  %v9379_v56 = vmul.f32 %v20459_v37, %v9278_v41  ;;  %v9279_v40 = vadd.f32 %v9247_v6, %v9215_v5  ;;  %v15698_v32 = vadd.f32 %v20392_v28, %v9090_v8  ;;  %v20555_v50 = vpop.f32.mrb[112].mxu0 }
 0x7a7   : > { %v13197_v29 = vpack.c.bf16 %v9445_v9, %v9445_v9  ;;  %v9418_v55 = vadd.f32 %v20465_v19, %v9381_v7  ;;  %9313 = vst [vmem:[%s17190_s24 + $0x58] sm:$0xff] %v9281_v36  ;;  %v9382_v30 = vmul.f32 %v20459_v37, %v9281_v36  ;;  %v9220_v14 = vadd.f32 %v15695_v60, %v20452_v46  ;;  %v20561_v3 = vpop.f32.mrb[113].mxu0 }
 0x7a8   : > { %v9628_v15 = vshrl.u32 %v13199_v25, 16  ;;  %v9631_v11 = vshll.u32 %v13199_v25, 16  ;;  %v9416_v13 = vadd.f32 %v20465_v19, %v9379_v56  ;;  %9311 = vst [vmem:[%s17190_s24 + $0x48] sm:$0xff] %v9279_v40  ;;  %v9380_v28 = vmul.f32 %v20459_v37, %v9279_v40  ;;  %v20566_v8 = vpop.f32.mrb[114].mxu0  ;;  %v9913_v56 = vld [vmem:[#allocation2 + $0x38] sm:$0x1] }
 0x7a9   : > { %v9611_v16 = vshrl.u32 %v13197_v29, 16  ;;  %v9614_v34 = vshll.u32 %v13197_v29, 16  ;;  %v9450_v18 = vmax.f32 %v9418_v55, 0.0  ;;  %v9419_v10 = vadd.f32 %v20465_v19, %v9382_v30  ;;  %v20570_v54 = vpop.f32.mrb[115].mxu0 }
 0x7aa   : > { %v9630_v62 = vrot.slane %v9628_v15, 7  ;;  %v9448_v4 = vmax.f32 %v9416_v13, 0.0  ;;  %v9417_v63 = vadd.f32 %v20465_v19, %v9380_v28  ;;  %v9284_v41 = vadd.f32 %v9252_v42, %v9220_v14 }
 0x7ab   : > { %v9613_v0 = vrot.slane %v9611_v16, 7  ;;  %v13202_v5 = vpack.c.bf16 %v9450_v18, %v9450_v18  ;;  %v9451_v9 = vmax.f32 %v9419_v10, 0.0  ;;  %v9218_v7 = vadd.f32 %v15698_v32, %v20452_v46  ;;  %v9906_v32 = vld [vmem:[#allocation2 + $0x2c] sm:$0x1]  ;;  %v9250_v18 = vld [vmem:[%s17190_s24 + $0x60] sm:$0xff] }
 0x7ac   : > { %v9633_v36 = vor.u32 %v9631_v11, %v9630_v62  ;;  %v9635_v6 = vrot.slane %v9630_v62, 4  ;;  %v13200_v60 = vpack.c.bf16 %v9448_v4, %v9448_v4  ;;  %v9449_v25 = vmax.f32 %v9417_v63, 0.0  ;;  %9316 = vst [vmem:[%s17190_s24 + $0x70] sm:$0xff] %v9284_v41 }
 0x7ad   : > { %v9616_v40 = vor.u32 %v9614_v34, %v9613_v0  ;;  %v9618_v29 = vrot.slane %v9613_v0, 4  ;;  %v9654_v55 = vshrl.u32 %v13202_v5, 16  ;;  %v9657_v30 = vshll.u32 %v13202_v5, 16 }
 0x7ae   : > { %v9634_v14 = vsel %vm17223_vm6, %v9626_v48, %v9633_v36  ;;  %v9914_v15 = vsel %vm17242_vm8, %v9635_v6, %v9913_v56  ;;  %v9637_v11 = vshrl.u32 %v13200_v60, 16  ;;  %v9640_v13 = vshll.u32 %v13200_v60, 16  ;;  %v20581_v28 = vpop.f32.mrb[116].mxu0 }
 0x7af   : > { %9912 = vst [vmem:[#allocation2 + $0x34] sm:$0xf] %v9634_v14  ;;  %9915 = vst [vmem:[#allocation2 + $0x38] sm:$0x1] %v9914_v15  ;;  %v9617_v16 = vsel %vm17223_vm6, %v9609_v17, %v9616_v40  ;;  %v9907_v1 = vsel %vm17242_vm8, %v9618_v29, %v9906_v32  ;;  %v9656_v34 = vrot.slane %v9654_v55, 7  ;;  %v13203_v48 = vpack.c.bf16 %v9451_v9, %v9451_v9  ;;  %v20590_v10 = vpop.f32.mrb[117].mxu0 }
 0x7b0   : > { %9905 = vst [vmem:[#allocation2 + $0x28] sm:$0xf] %v9617_v16  ;;  %9908 = vst [vmem:[#allocation2 + $0x2c] sm:$0x1] %v9907_v1  ;;  %v9639_v42 = vrot.slane %v9637_v11, 7  ;;  %v13201_v62 = vpack.c.bf16 %v9449_v25, %v9449_v25  ;;  %v9385_v4 = vmul.f32 %v20459_v37, %v9284_v41  ;;  %v9282_v63 = vadd.f32 %v9250_v18, %v9218_v7  ;;  %v20593_v47 = vpop.f32.mrb[118].mxu0 }
 0x7b1   : > { %v9659_v0 = vor.u32 %v9657_v30, %v9656_v34  ;;  %v9660_v17 = vrot.slane %v9656_v34, 4  ;;  %v9662_v5 = vshrl.u32 %v13203_v48, 16  ;;  %v9665_v36 = vshll.u32 %v13203_v48, 16  ;;  %v20595_v6 = vpop.f32.mrb[119].mxu0  ;;  %v9923_v9 = vld [vmem:[#allocation2 + $0x48] sm:$0xf] }
 0x7b2   : > { %v9642_v60 = vor.u32 %v9640_v13, %v9639_v42  ;;  %v9643_v56 = vrot.slane %v9639_v42, 4  ;;  %v9645_v40 = vshrl.u32 %v13201_v62, 16  ;;  %v9648_v29 = vshll.u32 %v13201_v62, 16  ;;  %9314 = vst [vmem:[%s17190_s24 + $0x60] sm:$0xff] %v9282_v63  ;;  %v9916_v41 = vld [vmem:[#allocation2 + $0x3c] sm:$0xf] }
 0x7b3   : > { %v9924_v25 = vsel %vm17232_vm7, %v9659_v0, %v9923_v9  ;;  %v9664_v7 = vrot.slane %v9662_v5, 7  ;;  %v9422_v55 = vadd.f32 %v20465_v19, %v9385_v4  ;;  %v9383_v30 = vmul.f32 %v20459_v37, %v9282_v63  ;;  %v9253_v48 = vld [vmem:[%s17190_s24 + $0x78] sm:$0xff]  ;;  %v9251_v18 = vld [vmem:[%s17190_s24 + $0x68] sm:$0xff] }
 0x7b4   : > { %9925 = vst [vmem:[#allocation2 + $0x48] sm:$0xf] %v9924_v25  ;;  %v9917_v14 = vsel %vm17232_vm7, %v9642_v60, %v9916_v41  ;;  %v9647_v15 = vrot.slane %v9645_v40, 7  ;;  %v15701_v32 = vadd.f32 %v20401_v49, %v20525_v57  ;;  %v15704_v11 = vadd.f32 %v20395_v12, %v20532_v43  ;;  %v9927_v42 = vld [vmem:[#allocation2 + $0x50] sm:$0x1] }
 0x7b5   : > { %9918 = vst [vmem:[#allocation2 + $0x3c] sm:$0xf] %v9917_v14  ;;  %v9667_v13 = vor.u32 %v9665_v36, %v9664_v7  ;;  %v9669_v16 = vrot.slane %v9664_v7, 4  ;;  %v9454_v1 = vmax.f32 %v9422_v55, 0.0  ;;  %v9420_v34 = vadd.f32 %v20465_v19, %v9383_v30  ;;  %v9920_v57 = vld [vmem:[#allocation2 + $0x44] sm:$0x1] }
 0x7b6   : > { %v9650_v62 = vor.u32 %v9648_v29, %v9647_v15  ;;  %v9652_v4 = vrot.slane %v9647_v15, 4  ;;  %v9221_v63 = vadd.f32 %v15701_v32, %v20452_v46  ;;  %v9219_v0 = vadd.f32 %v15704_v11, %v20452_v46  ;;  %v20613_v5 = vpop.f32.mrb[120].mxu0 }
 0x7b7   : > { %v9668_v12 = vsel %vm17223_vm6, %v9660_v17, %v9667_v13  ;;  %v9928_v49 = vsel %vm17242_vm8, %v9669_v16, %v9927_v42  ;;  %v13206_v43 = vpack.c.bf16 %v9454_v1, %v9454_v1  ;;  %v9452_v36 = vmax.f32 %v9420_v34, 0.0  ;;  %v20619_v9 = vpop.f32.mrb[121].mxu0 }
 0x7b8   : > { %9926 = vst [vmem:[#allocation2 + $0x4c] sm:$0xf] %v9668_v12  ;;  %9929 = vst [vmem:[#allocation2 + $0x50] sm:$0x1] %v9928_v49  ;;  %v9651_v60 = vsel %vm17223_vm6, %v9643_v56, %v9650_v62  ;;  %v9921_v40 = vsel %vm17242_vm8, %v9652_v4, %v9920_v57  ;;  %v9285_v29 = vadd.f32 %v9253_v48, %v9221_v63  ;;  %v20625_v25 = vpop.f32.mrb[122].mxu0  ;;  %v9256_v48 = vld [vmem:[%s17190_s24 + $0x90] sm:$0xff] }
 0x7b9   : > { %v9283_v17 = vadd.f32 %v9251_v18, %v9219_v0  ;;  %9919 = vst [vmem:[#allocation2 + $0x40] sm:$0xf] %v9651_v60  ;;  %9922 = vst [vmem:[#allocation2 + $0x44] sm:$0x1] %v9921_v40  ;;  %v9688_v41 = vshrl.u32 %v13206_v43, 16  ;;  %v9691_v7 = vshll.u32 %v13206_v43, 16  ;;  %v13204_v55 = vpack.c.bf16 %v9452_v36, %v9452_v36 }
 0x7ba   : > { %v15707_v30 = vadd.f32 %v20410_v51, %v20555_v50  ;;  %v20629_v14 = vpop.f32.mrb[123].mxu0  ;;  %9317 = vst [vmem:[%s17190_s24 + $0x78] sm:$0xff] %v9285_v29  ;;  %v9386_v56 = vmul.f32 %v20459_v37, %v9285_v29  ;;  %v15710_v32 = vadd.f32 %v20404_v33, %v20561_v3  ;;  %v15713_v11 = vadd.f32 %v20413_v21, %v20566_v8  ;;  %v9254_v62 = vld [vmem:[%s17190_s24 + $0x80] sm:$0xff]  ;;  %v9257_v4 = vld [vmem:[%s17190_s24 + $0x98] sm:$0xff] }
 0x7bb   : > { %9315 = vst [vmem:[%s17190_s24 + $0x68] sm:$0xff] %v9283_v17  ;;  %v9384_v15 = vmul.f32 %v20459_v37, %v9283_v17  ;;  %v20639_v13 = vrot.slane %v9688_v41, 7  ;;  %v9671_v16 = vshrl.u32 %v13204_v55, 16  ;;  %v9674_v51 = vshll.u32 %v13204_v55, 16  ;;  %v9937_v63 = vld [vmem:[#allocation2 + $0x60] sm:$0xf] }
 0x7bc   : > { %v9224_v50 = vadd.f32 %v15707_v30, %v20452_v46  ;;  %v9423_v1 = vadd.f32 %v20465_v19, %v9386_v56  ;;  %v9222_v18 = vadd.f32 %v15710_v32, %v20452_v46  ;;  %v9225_v42 = vadd.f32 %v15713_v11, %v20452_v46  ;;  %v9930_v41 = vld [vmem:[#allocation2 + $0x54] sm:$0xf] }
 0x7bd   : > { %v9421_v34 = vadd.f32 %v20465_v19, %v9384_v15  ;;  %v9693_v33 = vor.u32 %v9691_v7, %v20639_v13  ;;  %v9694_v21 = vrot.slane %v20639_v13, 4  ;;  %v20649_v3 = vrot.slane %v9671_v16, 7 }
 0x7be   : > { %v9288_v8 = vadd.f32 %v9256_v48, %v9224_v50  ;;  %v9455_v0 = vmax.f32 %v9423_v1, 0.0  ;;  %v9286_v49 = vadd.f32 %v9254_v62, %v9222_v18  ;;  %v9289_v57 = vadd.f32 %v9257_v4, %v9225_v42  ;;  %v20653_v43 = vpop.f32.mrb[124].mxu0 }
 0x7bf   : > { %v9453_v12 = vmax.f32 %v9421_v34, 0.0  ;;  %v9938_v36 = vsel %vm17232_vm7, %v9693_v33, %v9937_v63  ;;  %v9676_v60 = vor.u32 %v9674_v51, %v20649_v3  ;;  %v9677_v40 = vrot.slane %v20649_v3, 4  ;;  %v20661_v17 = vpop.f32.mrb[125].mxu0 }
 0x7c0   : > { %9320 = vst [vmem:[%s17190_s24 + $0x90] sm:$0xff] %v9288_v8  ;;  %v9389_v29 = vmul.f32 %v20459_v37, %v9288_v8  ;;  %9939 = vst [vmem:[#allocation2 + $0x60] sm:$0xf] %v9938_v36  ;;  %v13207_v7 = vpack.c.bf16 %v9455_v0, %v9455_v0  ;;  %v9387_v30 = vmul.f32 %v20459_v37, %v9286_v49  ;;  %v20667_v15 = vpop.f32.mrb[126].mxu0 }
 0x7c1   : > { %v13205_v55 = vpack.c.bf16 %v9453_v12, %v9453_v12  ;;  %9318 = vst [vmem:[%s17190_s24 + $0x80] sm:$0xff] %v9286_v49  ;;  %9321 = vst [vmem:[%s17190_s24 + $0x98] sm:$0xff] %v9289_v57  ;;  %v9390_v56 = vmul.f32 %v20459_v37, %v9289_v57  ;;  %v9931_v32 = vsel %vm17232_vm7, %v9676_v60, %v9930_v41  ;;  %v20676_v51 = vpop.f32.mrb[127].mxu0  ;;  %v9941_v60 = vld [vmem:[#allocation2 + $0x68] sm:$0x1] }
 0x7c2   : > { %v9426_v11 = vadd.f32 %v20465_v19, %v9389_v29  ;;  %v15716_v13 = vadd.f32 %v20407_v39, %v20570_v54  ;;  %v15719_v16 = vadd.f32 %v20423_v58, %v20581_v28  ;;  %9932 = vst [vmem:[#allocation2 + $0x54] sm:$0xf] %v9931_v32  ;;  %v9696_v50 = vshrl.u32 %v13207_v7, 16  ;;  %v9255_v39 = vld [vmem:[%s17190_s24 + $0x88] sm:$0xff]  ;;  %v9934_v29 = vld [vmem:[#allocation2 + $0x5c] sm:$0x1] }
 0x7c3   : > { %v9699_v1 = vshll.u32 %v13207_v7, 16  ;;  %v9679_v34 = vshrl.u32 %v13205_v55, 16  ;;  %v9682_v48 = vshll.u32 %v13205_v55, 16  ;;  %v9424_v42 = vadd.f32 %v20465_v19, %v9387_v30 }
 0x7c4   : > { %v9458_v18 = vmax.f32 %v9426_v11, 0.0  ;;  %v9427_v33 = vadd.f32 %v20465_v19, %v9390_v56  ;;  %v9223_v3 = vadd.f32 %v15716_v13, %v20452_v46  ;;  %v9698_v8 = vrot.slane %v9696_v50, 7 }
 0x7c5   : > { %v9681_v62 = vrot.slane %v9679_v34, 7  ;;  %v9228_v54 = vadd.f32 %v15719_v16, %v20452_v46  ;;  %v15722_v58 = vadd.f32 %v20417_v20, %v20590_v10  ;;  %v9456_v4 = vmax.f32 %v9424_v42, 0.0 }
 0x7c6   : > { %v13210_v28 = vpack.c.bf16 %v9458_v18, %v9458_v18  ;;  %v9459_v63 = vmax.f32 %v9427_v33, 0.0  ;;  %v9287_v0 = vadd.f32 %v9255_v39, %v9223_v3  ;;  %v9701_v12 = vor.u32 %v9699_v1, %v9698_v8 }
 0x7c7   : > { %v9703_v49 = vrot.slane %v9698_v8, 4  ;;  %v9684_v57 = vor.u32 %v9682_v48, %v9681_v62  ;;  %v9686_v36 = vrot.slane %v9681_v62, 4  ;;  %v13208_v55 = vpack.c.bf16 %v9456_v4, %v9456_v4  ;;  %v9258_v8 = vld [vmem:[%s17190_s24 + $0xa0] sm:$0xff]  ;;  %v9951_v62 = vld [vmem:[#allocation2 + $0x78] sm:$0xf] }
 0x7c8   : > { %v9722_v41 = vshrl.u32 %v13210_v28, 16  ;;  %v9725_v7 = vshll.u32 %v13210_v28, 16  ;;  %v13211_v30 = vpack.c.bf16 %v9459_v63, %v9459_v63  ;;  %9319 = vst [vmem:[%s17190_s24 + $0x88] sm:$0xff] %v9287_v0  ;;  %v9702_v56 = vsel %vm17223_vm6, %v9694_v21, %v9701_v12  ;;  %v9260_v21 = vld [vmem:[%s17190_s24 + $0xb0] sm:$0xff] }
 0x7c9   : > { %v9942_v20 = vsel %vm17242_vm8, %v9703_v49, %v9941_v60  ;;  %v9685_v10 = vsel %vm17223_vm6, %v9677_v40, %v9684_v57  ;;  %v9935_v32 = vsel %vm17242_vm8, %v9686_v36, %v9934_v29  ;;  %9940 = vst [vmem:[#allocation2 + $0x64] sm:$0xf] %v9702_v56  ;;  %v9705_v13 = vshrl.u32 %v13208_v55, 16  ;;  %v9944_v49 = vld [vmem:[#allocation2 + $0x6c] sm:$0xf] }
 0x7ca   : > { %9943 = vst [vmem:[#allocation2 + $0x68] sm:$0x1] %v9942_v20  ;;  %9933 = vst [vmem:[#allocation2 + $0x58] sm:$0xf] %v9685_v10  ;;  %v9724_v11 = vrot.slane %v9722_v41, 7  ;;  %v9708_v16 = vshll.u32 %v13208_v55, 16  ;;  %v9388_v34 = vmul.f32 %v20459_v37, %v9287_v0  ;;  %v9292_v48 = vadd.f32 %v9260_v21, %v9228_v54 }
 0x7cb   : > { %9936 = vst [vmem:[#allocation2 + $0x5c] sm:$0x1] %v9935_v32  ;;  %v9730_v50 = vshrl.u32 %v13211_v30, 16  ;;  %v9733_v1 = vshll.u32 %v13211_v30, 16  ;;  %v9226_v40 = vadd.f32 %v15722_v58, %v20452_v46  ;;  %v20697_v33 = vrot.slane %v9705_v13, 7  ;;  %v9261_v32 = vld [vmem:[%s17190_s24 + $0xb8] sm:$0xff] }
 0x7cc   : > { %v9727_v18 = vor.u32 %v9725_v7, %v9724_v11  ;;  %v9728_v42 = vrot.slane %v9724_v11, 4  ;;  %v9425_v39 = vadd.f32 %v20465_v19, %v9388_v34  ;;  %9324 = vst [vmem:[%s17190_s24 + $0xb0] sm:$0xff] %v9292_v48  ;;  %v9393_v28 = vmul.f32 %v20459_v37, %v9292_v48  ;;  %v9955_v41 = vld [vmem:[#allocation2 + $0x80] sm:$0x1]  ;;  %v9259_v34 = vld [vmem:[%s17190_s24 + $0xa8] sm:$0xff] }
 0x7cd   : > { %v9732_v3 = vrot.slane %v9730_v50, 7  ;;  %v9290_v4 = vadd.f32 %v9258_v8, %v9226_v40  ;;  %v15725_v63 = vadd.f32 %v20426_v22, %v20593_v47  ;;  %v9710_v58 = vor.u32 %v9708_v16, %v20697_v33 }
 0x7ce   : > { %v9952_v54 = vsel %vm17232_vm7, %v9727_v18, %v9951_v62  ;;  %v9711_v0 = vrot.slane %v20697_v33, 4  ;;  %v9457_v36 = vmax.f32 %v9425_v39, 0.0  ;;  %v9430_v60 = vadd.f32 %v20465_v19, %v9393_v28 }
 0x7cf   : > { %v9735_v12 = vor.u32 %v9733_v1, %v9732_v3  ;;  %9953 = vst [vmem:[#allocation2 + $0x78] sm:$0xf] %v9952_v54  ;;  %v9737_v57 = vrot.slane %v9732_v3, 4  ;;  %9322 = vst [vmem:[%s17190_s24 + $0xa0] sm:$0xff] %v9290_v4  ;;  %v9391_v29 = vmul.f32 %v20459_v37, %v9290_v4  ;;  %v9945_v22 = vsel %vm17232_vm7, %v9710_v58, %v9944_v49  ;;  %v9948_v49 = vld [vmem:[#allocation2 + $0x74] sm:$0x1] }
 0x7d0   : > { %v9229_v7 = vadd.f32 %v15725_v63, %v20452_v46  ;;  %v15728_v55 = vadd.f32 %v20420_v35, %v20595_v6  ;;  %9946 = vst [vmem:[#allocation2 + $0x6c] sm:$0xf] %v9945_v22  ;;  %v13209_v56 = vpack.c.bf16 %v9457_v36, %v9457_v36  ;;  %v9462_v20 = vmax.f32 %v9430_v60, 0.0 }
 0x7d1   : > { %v9736_v47 = vsel %vm17223_vm6, %v9728_v42, %v9735_v12  ;;  %v9956_v30 = vsel %vm17242_vm8, %v9737_v57, %v9955_v41  ;;  %v9428_v10 = vadd.f32 %v20465_v19, %v9391_v29  ;;  %v15731_v16 = vadd.f32 %v20435_v26, %v20613_v5 }
 0x7d2   : > { %9954 = vst [vmem:[#allocation2 + $0x7c] sm:$0xf] %v9736_v47  ;;  %9957 = vst [vmem:[#allocation2 + $0x80] sm:$0x1] %v9956_v30  ;;  %v9293_v11 = vadd.f32 %v9261_v32, %v9229_v7  ;;  %v9227_v13 = vadd.f32 %v15728_v55, %v20452_v46  ;;  %v15734_v35 = vadd.f32 %v20429_v53, %v20619_v9  ;;  %v9713_v6 = vshrl.u32 %v13209_v56, 16  ;;  %v9264_v53 = vld [vmem:[%s17190_s24 + $0xd0] sm:$0xff] }
 0x7d3   : > { %v9716_v50 = vshll.u32 %v13209_v56, 16  ;;  %v13214_v21 = vpack.c.bf16 %v9462_v20, %v9462_v20  ;;  %v9460_v1 = vmax.f32 %v9428_v10, 0.0  ;;  %v9232_v18 = vadd.f32 %v15731_v16, %v20452_v46  ;;  %v9262_v9 = vld [vmem:[%s17190_s24 + $0xc0] sm:$0xff]  ;;  %v9965_v7 = vld [vmem:[#allocation2 + $0x90] sm:$0xf] }
 0x7d4   : > { %9325 = vst [vmem:[%s17190_s24 + $0xb8] sm:$0xff] %v9293_v11  ;;  %v9394_v48 = vmul.f32 %v20459_v37, %v9293_v11  ;;  %v9291_v40 = vadd.f32 %v9259_v34, %v9227_v13  ;;  %v9230_v42 = vadd.f32 %v15734_v35, %v20452_v46  ;;  %v9715_v26 = vrot.slane %v9713_v6, 7  ;;  %v20756_v11 = vld [vmem:[#allocation2 + $0x14] ss:$0 sps:$4 sm:$0x11]  }
 0x7d5   : > { %v9756_v5 = vshrl.u32 %v13214_v21, 16  ;;  %v9759_v33 = vshll.u32 %v13214_v21, 16  ;;  %v13212_v3 = vpack.c.bf16 %v9460_v1, %v9460_v1  ;;  %v9296_v39 = vadd.f32 %v9264_v53, %v9232_v18 }
 0x7d6   : > { %v9431_v8 = vadd.f32 %v20465_v19, %v9394_v48  ;;  %9323 = vst [vmem:[%s17190_s24 + $0xa8] sm:$0xff] %v9291_v40  ;;  %v9392_v62 = vmul.f32 %v20459_v37, %v9291_v40  ;;  %v9294_v28 = vadd.f32 %v9262_v9, %v9230_v42  ;;  %v9718_v4 = vor.u32 %v9716_v50, %v9715_v26  ;;  %v9958_v50 = vld [vmem:[#allocation2 + $0x84] sm:$0xf]  ;;  %v9969_v9 = vld [vmem:[#allocation2 + $0x98] sm:$0x1] }
 0x7d7   : > { %v9720_v63 = vrot.slane %v9715_v26, 4  ;;  %v9758_v54 = vrot.slane %v9756_v5, 7  ;;  %v9739_v58 = vshrl.u32 %v13212_v3, 16  ;;  %v9575_v12 = vrot.slane %v20497_v27, 4  ;;  %9328 = vst [vmem:[%s17190_s24 + $0xd0] sm:$0xff] %v9296_v39  ;;  %v9265_v5 = vld [vmem:[%s17190_s24 + $0xd8] sm:$0xff] }
 0x7d8   : > { %v9463_v57 = vmax.f32 %v9431_v8, 0.0  ;;  %v9429_v36 = vadd.f32 %v20465_v19, %v9392_v62  ;;  %v9397_v60 = vmul.f32 %v20459_v37, %v9296_v39  ;;  %9326 = vst [vmem:[%s17190_s24 + $0xc0] sm:$0xff] %v9294_v28  ;;  %v9719_v29 = vsel %vm17223_vm6, %v9711_v0, %v9718_v4 }
 0x7d9   : > { %v9949_v22 = vsel %vm17242_vm8, %v9720_v63, %v9948_v49  ;;  %v9761_v47 = vor.u32 %v9759_v33, %v9758_v54  ;;  %v9742_v41 = vshll.u32 %v13212_v3, 16  ;;  %9947 = vst [vmem:[#allocation2 + $0x70] sm:$0xf] %v9719_v29  ;;  %v9741_v27 = vrot.slane %v9739_v58, 7 }
 0x7da   : > { %9950 = vst [vmem:[#allocation2 + $0x74] sm:$0x1] %v9949_v22  ;;  %v13215_v55 = vpack.c.bf16 %v9463_v57, %v9463_v57  ;;  %v9461_v30 = vmax.f32 %v9429_v36, 0.0  ;;  %v9434_v56 = vadd.f32 %v20465_v19, %v9397_v60  ;;  %v9395_v10 = vmul.f32 %v20459_v37, %v9294_v28  ;;  %v20773_v49 = vld [vmem:[#allocation2 + $0x20] ss:$0 sps:$4 sm:$0x11]  }
 0x7db   : > { %v9966_v20 = vsel %vm17232_vm7, %v9761_v47, %v9965_v7  ;;  %v15737_v0 = vadd.f32 %v20438_v45, %v20625_v25  ;;  %v9583_v32 = vsel %vm17223_vm6, %v9575_v12, %v20505_v24  ;;  %v9762_v13 = vrot.slane %v9758_v54, 4  ;;  %v10002_v54 = vld [vmem:[#allocation2 + $0xc] sm:$0xf] }
 0x7dc   : > { %9967 = vst [vmem:[#allocation2 + $0x90] sm:$0xf] %v9966_v20  ;;  %v9744_v16 = vor.u32 %v9742_v41, %v9741_v27  ;;  %v9745_v35 = vrot.slane %v9741_v27, 4  ;;  %v9764_v6 = vshrl.u32 %v13215_v55, 16  ;;  %9891 = vst [vmem:[#allocation2 + $0x10] sm:$0xf] %v9583_v32  ;;  %v13213_v21 = vpack.c.bf16 %v9461_v30, %v9461_v30 }
 0x7dd   : > { %v9466_v1 = vmax.f32 %v9434_v56, 0.0  ;;  %v9432_v34 = vadd.f32 %v20465_v19, %v9395_v10  ;;  %v9233_v45 = vadd.f32 %v15737_v0, %v20452_v46  ;;  %v9767_v48 = vshll.u32 %v13215_v55, 16  ;;  %v9263_v47 = vld [vmem:[%s17190_s24 + $0xc8] sm:$0xff]  ;;  %v10005_v55 = vld [vmem:[#allocation2 + $0x1c] sm:$0xf] }
 0x7de   : > { %v9959_v25 = vsel %vm17232_vm7, %v9744_v16, %v9958_v50  ;;  %v9766_v24 = vrot.slane %v9764_v6, 7  ;;  %v15740_v40 = vadd.f32 %v20432_v52, %v20629_v14  ;;  %v9747_v18 = vshrl.u32 %v13213_v21, 16  ;;  %v9962_v41 = vld [vmem:[#allocation2 + $0x8c] sm:$0x1]  ;;  %v9979_v10 = vld [vmem:[#allocation2 + $0xa8] sm:$0xf] }
 0x7df   : > { %9960 = vst [vmem:[#allocation2 + $0x84] sm:$0xf] %v9959_v25  ;;  %v13218_v42 = vpack.c.bf16 %v9466_v1, %v9466_v1  ;;  %v9464_v26 = vmax.f32 %v9432_v34, 0.0  ;;  %v10254_v33 = vshll.u32 %v20756_v11, 16  ;;  %v9750_v8 = vshll.u32 %v13213_v21, 16 }
 0x7e0   : > { %v9769_v3 = vor.u32 %v9767_v48, %v9766_v24  ;;  %v9771_v53 = vrot.slane %v9766_v24, 4  ;;  %v9297_v62 = vadd.f32 %v9265_v5, %v9233_v45  ;;  %v9749_v39 = vrot.slane %v9747_v18, 7  ;;  %v10004_v6 = vld [vmem:[#allocation2 + $0x18] sm:$0xf]  ;;  %v20800_v18 = vld [vmem:[#allocation8 + $0x3] ss:$0 sm:$0xff] }
 0x7e1   : > { %v9790_v28 = vshrl.u32 %v13218_v42, 16  ;;  %v9793_v4 = vshll.u32 %v13218_v42, 16  ;;  %v13216_v63 = vpack.c.bf16 %v9464_v26, %v9464_v26  ;;  %v9231_v12 = vadd.f32 %v15740_v40, %v20452_v46  ;;  %v20793_v50 = vld [vmem:[#allocation6 + $0x3] ss:$0 sm:$0xff]  ;;  %v9972_v40 = vld [vmem:[#allocation2 + $0x9c] sm:$0xf] }
 0x7e2   : > { %v9770_v52 = vsel %vm17223_vm6, %v9762_v13, %v9769_v3  ;;  %v9970_v14 = vsel %vm17242_vm8, %v9771_v53, %v9969_v9  ;;  %9329 = vst [vmem:[%s17190_s24 + $0xd8] sm:$0xff] %v9297_v62  ;;  %v9398_v58 = vmul.f32 %v20459_v37, %v9297_v62  ;;  %v9752_v57 = vor.u32 %v9750_v8, %v9749_v39  ;;  %v10056_v62 = vld [vmem:[#allocation2 + $0x18] sm:$0xe] }
 0x7e3   : > { %9968 = vst [vmem:[#allocation2 + $0x94] sm:$0xf] %v9770_v52  ;;  %9971 = vst [vmem:[#allocation2 + $0x98] sm:$0x1] %v9970_v14  ;;  %v9754_v36 = vrot.slane %v9749_v39, 4  ;;  %v20775_v60 = vrot.slane %v9790_v28, 7  ;;  %v9295_v46 = vadd.f32 %v9263_v47, %v9231_v12  ;;  %v20796_v1 = vcombine.low %v10004_v6, %v10005_v55 }
 0x7e4   : > { %v9773_v29 = vshrl.u32 %v13216_v63, 16  ;;  %v20777_v22 = vld [vmem:[#allocation2 + $0x10] sm:$0xf]  ;;  %v9435_v7 = vadd.f32 %v20465_v19, %v9398_v58  ;;  %v10256_v27 = vrot.slane %v10254_v33, 1  ;;  %v9753_v30 = vsel %vm17223_vm6, %v9745_v35, %v9752_v57 }
 0x7e5   : > { %v12964_v37 = vcombine.low %v10002_v54, %v20777_v22  ;;  %v9963_v56 = vsel %vm17242_vm8, %v9754_v36, %v9962_v41  ;;  %v9795_v20 = vor.u32 %v9793_v4, %v20775_v60  ;;  %v9776_v0 = vshll.u32 %v13216_v63, 16  ;;  %9961 = vst [vmem:[#allocation2 + $0x88] sm:$0xf] %v9753_v30  ;;  %9327 = vst [vmem:[%s17190_s24 + $0xc8] sm:$0xff] %v9295_v46  ;;  %v9983_v41 = vld [vmem:[#allocation2 + $0xb0] sm:$0x1] }
 0x7e6   : > { %9964 = vst [vmem:[#allocation2 + $0x8c] sm:$0x1] %v9963_v56  ;;  %v9796_v19 = vrot.slane %v20775_v60, 4  ;;  %v20788_v32 = vrot.slane %v9773_v29, 7  ;;  %v9467_v13 = vmax.f32 %v9435_v7, 0.0  ;;  %v9396_v21 = vmul.f32 %v20793_v50, %v9295_v46  ;;  %v16586_v29 = vld [vmem:[#allocation9 + $0x808] sm:$0xff]  }
 0x7e7   : > { %v10249_v16 = vshll.u32 %v12964_v37, 16  ;;  %v9980_v35 = vsel %vm17232_vm7, %v9795_v20, %v9979_v10  ;;  %v10266_v34 = vshll.u32 %v20773_v49, 16  ;;  %v10247_v24 = vshrl.u32 %v12964_v37, 16  ;;  %v16695_v7 = vld [vmem:[#allocation11 + $0x2] ss:$0 sm:$0xff]  ;;  %v9266_v10 = vld [vmem:[%s17190_s24 + $0xe0] sm:$0xff] }
 0x7e8   : > { %9981 = vst [vmem:[#allocation2 + $0xa8] sm:$0xf] %v9980_v35  ;;  %v9778_v45 = vor.u32 %v9776_v0, %v20788_v32  ;;  %v13219_v25 = vpack.c.bf16 %v9467_v13, %v9467_v13  ;;  %v9433_v42 = vadd.f32 %v20800_v18, %v9396_v21  ;;  %v10259_v26 = vshrl.u32 %v20796_v1, 16  ;;  %v20833_v0 = vld [vmem:[#allocation2 + $0x2c] ss:$0 sps:$4 sm:$0x11]  }
 0x7e9   : > { %v10251_v48 = vrot.slane %v10249_v16, 1  ;;  %v10261_v5 = vshll.u32 %v20796_v1, 16  ;;  %v10268_v33 = vrot.slane %v10266_v34, 1  ;;  %v13001_v4 = vcombine.low %v10056_v62, %v10005_v55  ;;  %v20824_v55 = vld [vmem:[#allocation2 + $0x34] sm:$0xf] }
 0x7ea   : > { %v9973_v3 = vsel %vm17232_vm7, %v9778_v45, %v9972_v40  ;;  %v9798_v53 = vshrl.u32 %v13219_v25, 16  ;;  %v9801_v9 = vshll.u32 %v13219_v25, 16  ;;  %v9465_v39 = vmax.f32 %v9433_v42, 0.0  ;;  %v16591_v13 = vld [vmem:[#allocation9 + $0x810] sm:$0xff]   ;;  %v10006_v21 = vld [vmem:[#allocation2 + $0x24] sm:$0xf] }
 0x7eb   : > { %v10252_v8 = vor.u32 %v10251_v48, %v10247_v24  ;;  %9974 = vst [vmem:[#allocation2 + $0x9c] sm:$0xf] %v9973_v3  ;;  %v10263_v28 = vrot.slane %v10261_v5, 1  ;;  %v10529_v63 = vrot.slane %v20773_v49, 1  ;;  %v15743_v14 = vadd.f32 %v20447_v23, %v20653_v43  ;;  %v10008_v34 = vld [vmem:[#allocation2 + $0x30] sm:$0xf] }
 0x7ec   : > { %v9800_v54 = vrot.slane %v9798_v53, 7  ;;  %v15746_v58 = vadd.f32 %v20441_v44, %v20661_v17  ;;  %v13217_v12 = vpack.c.bf16 %v9465_v39, %v9465_v39  ;;  %v10528_v36 = vrot.slane %v13001_v4, 1  ;;  %v16696_v17 = vld [vmem:[#allocation9 + $0x800] sm:$0xff]  }
 0x7ed   : > { %v10257_v52 = vsel %vm1323_vm3, %v10252_v8, %v10256_v27  ;;  %v10264_v57 = vor.u32 %v10263_v28, %v10259_v26  ;;  %v15749_v60 = vadd.f32 %v20450_v61, %v20667_v15  ;;  %v9236_v23 = vadd.f32 %v16695_v7, %v15743_v14  ;;  %v9268_v61 = vld [vmem:[%s17190_s24 + $0xf0] sm:$0xff]  ;;  %v20822_v15 = vld [vmem:[#allocation2 + $0x28] sm:$0xf]  ;;  %v9269_v24 = vld [vmem:[%s17190_s24 + $0xf8] sm:$0xff] }
 0x7ee   : > { %10868 = vmatprep.mubr.bf16.mxu1 %v10257_v52  ;;  %11342 = vmatprep.mubr.bf16.mxu0 %v10257_v52  ;;  %v9803_v49 = vor.u32 %v9801_v9, %v9800_v54  ;;  %v9805_v47 = vrot.slane %v9800_v54, 4  ;;  %v9234_v43 = vadd.f32 %v16695_v7, %v15746_v58  ;;  %v9781_v44 = vshrl.u32 %v13217_v12, 16  ;;  %v9976_v5 = vld [vmem:[#allocation2 + $0xa4] sm:$0x1]  ;;  %v16596_v8 = vld [vmem:[#allocation9 + $0x818] sm:$0xff]  }
 0x7ef   : > { %10869 = vmatmul.mubr.bf16.vlgmr.msra.gmra.mrb[0].mxu1 %v12964_v37  ;;  %11343 = vmatmul.mubr.bf16.gmra.mrb[196].mxu0 %v12964_v37  ;;  %v20816_v27 = vsel %vm1323_vm3, %v10264_v57, %v10268_v33  ;;  %v20819_v46 = vsel %vm1612_vm9, %v10528_v36, %v10529_v63  ;;  %v9784_v56 = vshll.u32 %v13217_v12, 16  ;;  %v9300_v20 = vadd.f32 %v9268_v61, %v9236_v23  ;;  %v9267_v63 = vld [vmem:[%s17190_s24 + $0xe8] sm:$0xff]  ;;  %v16601_v61 = vld [vmem:[#allocation9 + $0x820] sm:$0xff]  }
 0x7f0   : > { %15290 = vmatpush3.bf16.msra.mxu1 %v16696_v17  ;;  %v9804_v37 = vsel %vm17223_vm6, %v9796_v19, %v9803_v49  ;;  %v9984_v30 = vsel %vm17242_vm8, %v9805_v47, %v9983_v41  ;;  %10876 = vmatprep.mubr.bf16.mxu1 %v20816_v27  ;;  %v9783_v16 = vrot.slane %v9781_v44, 7  ;;  %v9298_v19 = vadd.f32 %v9266_v10, %v9234_v43  ;;  %v20871_v17 = vld [vmem:[#allocation2 + $0x40] sm:$0xf] }
 0x7f1   : > { %11350 = vmatprep.mubr.bf16.mxu0 %v20816_v27  ;;  %9982 = vst [vmem:[#allocation2 + $0xac] sm:$0xf] %v9804_v37  ;;  %9985 = vst [vmem:[#allocation2 + $0xb0] sm:$0x1] %v9984_v30  ;;  %v9237_v6 = vadd.f32 %v16695_v7, %v15749_v60  ;;  %v15752_v35 = vadd.f32 %v20444_v59, %v20676_v51  ;;  %15291 = vmatprep.subr.bf16.mxu1 %v16586_v29  ;;  %v9779_v45 = vrot.slane %v20788_v32, 4 }
 0x7f2   : > { %9332 = vst [vmem:[%s17190_s24 + $0xf0] sm:$0xff] %v9300_v20  ;;  %v9401_v25 = vmul.f32 %v20793_v50, %v9300_v20  ;;  %v20842_v48 = vcombine.low %v10006_v21, %v20822_v15  ;;  %v20845_v40 = vcombine.low %v10008_v34, %v20824_v55  ;;  %v9786_v42 = vor.u32 %v9784_v56, %v9783_v16  ;;  %v20849_v32 = vld [vmem:[#allocation2 + $0x38] ss:$0 sps:$4 sm:$0x11]  }
 0x7f3   : > { %v9788_v26 = vrot.slane %v9783_v16, 4  ;;  %9330 = vst [vmem:[%s17190_s24 + $0xe0] sm:$0xff] %v9298_v19  ;;  %v9399_v59 = vmul.f32 %v20793_v50, %v9298_v19  ;;  %v9301_v51 = vadd.f32 %v9269_v24, %v9237_v6  ;;  %v9235_v3 = vadd.f32 %v16695_v7, %v15752_v35  ;;  %v10010_v16 = vld [vmem:[#allocation2 + $0x3c] sm:$0xf]  ;;  %v16606_v24 = vld [vmem:[#allocation9 + $0x828] sm:$0xff]  }
 0x7f4   : > { %15292 = vmatpush3.bf16.msra.mxu1 %v16586_v29  ;;  %v9438_v33 = vadd.f32 %v20800_v18, %v9401_v25  ;;  %v10273_v53 = vshll.u32 %v20842_v48, 16  ;;  %v10278_v9 = vshll.u32 %v20833_v0, 16  ;;  %v9787_v62 = vsel %vm17223_vm6, %v9779_v45, %v9786_v42 }
 0x7f5   : > { %15293 = vmatprep.subr.bf16.mxu1 %v16591_v13  ;;  %v9977_v39 = vsel %vm17242_vm8, %v9788_v26, %v9976_v5  ;;  %v9436_v28 = vadd.f32 %v20800_v18, %v9399_v59  ;;  %9333 = vst [vmem:[%s17190_s24 + $0xf8] sm:$0xff] %v9301_v51  ;;  %v9402_v4 = vmul.f32 %v20793_v50, %v9301_v51  ;;  %9975 = vst [vmem:[#allocation2 + $0xa0] sm:$0xf] %v9787_v62  ;;  %v9993_v51 = vld [vmem:[#allocation2 + $0xc0] sm:$0xf] }
 0x7f6   : > { %9978 = vst [vmem:[#allocation2 + $0xa4] sm:$0x1] %v9977_v39  ;;  %v9470_v54 = vmax.f32 %v9438_v33, 0.0  ;;  %v9299_v52 = vadd.f32 %v9267_v63, %v9235_v3  ;;  %v10271_v14 = vshrl.u32 %v20842_v48, 16  ;;  %v10275_v58 = vrot.slane %v10273_v53, 1 }
 0x7f7   : > { %10877 = vmatmul.mubr.bf16.gmra.mrb[4].mxu1 %v20796_v1  ;;  %11351 = vmatmul.mubr.bf16.gmra.mrb[200].mxu0 %v20796_v1  ;;  %v9468_v12 = vmax.f32 %v9436_v28, 0.0  ;;  %v9439_v57 = vadd.f32 %v20800_v18, %v9402_v4  ;;  %v10285_v36 = vshll.u32 %v20845_v40, 16  ;;  %v10290_v60 = vshll.u32 %v20849_v32, 16  ;;  %v20900_v53 = vld [vmem:[#allocation2 + $0x4c] sm:$0xf] }
 0x7f8   : > { %15294 = vmatpush3.bf16.msra.mxu1 %v16591_v13  ;;  %v13222_v29 = vpack.c.bf16 %v9470_v54, %v9470_v54  ;;  %9331 = vst [vmem:[%s17190_s24 + $0xe8] sm:$0xff] %v9299_v52  ;;  %v9400_v49 = vmul.f32 %v20793_v50, %v9299_v52  ;;  %v10276_v47 = vor.u32 %v10275_v58, %v10271_v14  ;;  %v10280_v41 = vrot.slane %v10278_v9, 1  ;;  %v10012_v52 = vld [vmem:[#allocation2 + $0x48] sm:$0xf]  ;;  %v16611_v14 = vld [vmem:[#allocation9 + $0x830] sm:$0xff]  }
 0x7f9   : > { %15295 = vmatprep.subr.bf16.mxu1 %v16596_v8  ;;  %v13220_v7 = vpack.c.bf16 %v9468_v12, %v9468_v12  ;;  %v9471_v23 = vmax.f32 %v9439_v57, 0.0  ;;  %v10283_v43 = vshrl.u32 %v20845_v40, 16  ;;  %v10287_v44 = vrot.slane %v10285_v36, 1  ;;  %v9997_v58 = vld [vmem:[#allocation2 + $0xc8] sm:$0x1] }
 0x7fa   : > { %v9824_v37 = vshrl.u32 %v13222_v29, 16  ;;  %v9437_v30 = vadd.f32 %v20800_v18, %v9400_v49  ;;  %v20875_v56 = vsel %vm1323_vm3, %v10276_v47, %v10280_v41  ;;  %v10292_v13 = vrot.slane %v10290_v60, 1  ;;  %v20886_v18 = vld [vmem:[#allocation2 + $0x44] ss:$0 sps:$4 sm:$0x11]  }
 0x7fb   : > { %v9807_v20 = vshrl.u32 %v13220_v7, 16  ;;  %v20877_v10 = vpack.c.bf16 %v9471_v23, %v9471_v23  ;;  %10884 = vmatprep.mubr.bf16.mxu1 %v20875_v56  ;;  %11358 = vmatprep.mubr.bf16.mxu0 %v20875_v56  ;;  %v10288_v50 = vor.u32 %v10287_v44, %v10283_v43  ;;  %v9827_v6 = vshll.u32 %v13222_v29, 16  ;;  %v20912_v60 = vld [vmem:[#allocation2 + $0x58] sm:$0xf]  ;;  %v10014_v44 = vld [vmem:[#allocation2 + $0x54] sm:$0xf] }
 0x7fc   : > { %v20881_v19 = vrot.slane %v9824_v37, 7  ;;  %v9469_v35 = vmax.f32 %v9437_v30, 0.0  ;;  %v20884_v21 = vcombine.low %v10010_v16, %v20871_v17  ;;  %15296 = vmatpush3.bf16.msra.mxu1 %v16596_v8  ;;  %v9810_v45 = vshll.u32 %v13220_v7, 16  ;;  %v9986_v8 = vld [vmem:[#allocation2 + $0xb4] sm:$0xf]  ;;  %v16616_v30 = vld [vmem:[#allocation9 + $0x838] sm:$0xff]  }
 0x7fd   : > { %v9809_v34 = vrot.slane %v9807_v20, 7  ;;  %v9832_v25 = vshrl.u32 %v20877_v10, 16  ;;  %15297 = vmatprep.subr.bf16.mxu1 %v16601_v61  ;;  %v20893_v59 = vsel %vm1323_vm3, %v10288_v50, %v10292_v13  ;;  %v10302_v39 = vshll.u32 %v20886_v18, 16  ;;  %v20916_v47 = vld [vmem:[#allocation2 + $0x50] ss:$0 sps:$4 sm:$0x11]  }
 0x7fe   : > { %v9829_v42 = vor.u32 %v9827_v6, %v20881_v19  ;;  %v13221_v26 = vpack.c.bf16 %v9469_v35, %v9469_v35  ;;  %v10297_v3 = vshll.u32 %v20884_v21, 16  ;;  %v10295_v63 = vshrl.u32 %v20884_v21, 16 }
 0x7ff   : > { %10885 = vmatmul.mubr.bf16.gmra.mrb[8].mxu1 %v20842_v48  ;;  %11359 = vmatmul.mubr.bf16.gmra.mrb[204].mxu0 %v20842_v48  ;;  %v9812_v5 = vor.u32 %v9810_v45, %v9809_v34  ;;  %v20895_v33 = vrot.slane %v9832_v25, 7  ;;  %v20910_v36 = vcombine.low %v10012_v52, %v20900_v53  ;;  %v9813_v29 = vrot.slane %v9809_v34, 4  ;;  %v20938_v25 = vld [vmem:[#allocation2 + $0x64] sm:$0xf] }
 0x800   : > { %10892 = vmatprep.mubr.bf16.mxu1 %v20893_v59  ;;  %11366 = vmatprep.mubr.bf16.mxu0 %v20893_v59  ;;  %v9994_v9 = vsel %vm17232_vm7, %v9829_v42, %v9993_v51  ;;  %v9815_v62 = vshrl.u32 %v13221_v26, 16  ;;  %v10299_v54 = vrot.slane %v10297_v3, 1  ;;  %v9818_v57 = vshll.u32 %v13221_v26, 16  ;;  %v20940_v42 = vld [vmem:[#allocation2 + $0x5c] ss:$0 sps:$4 sm:$0x11]  }
 0x801   : > { %15298 = vmatpush3.bf16.msra.mxu1 %v16601_v61  ;;  %9995 = vst [vmem:[#allocation2 + $0xc0] sm:$0xf] %v9994_v9  ;;  %v9987_v28 = vsel %vm17232_vm7, %v9812_v5, %v9986_v8  ;;  %v9839_v4 = vrot.slane %v20895_v33, 4  ;;  %v10304_v23 = vrot.slane %v10302_v39, 1  ;;  %v10309_v43 = vshll.u32 %v20910_v36, 16 }
 0x802   : > { %15299 = vmatprep.subr.bf16.mxu1 %v16606_v24  ;;  %9988 = vst [vmem:[#allocation2 + $0xb4] sm:$0xf] %v9987_v28  ;;  %v9817_v12 = vrot.slane %v9815_v62, 7  ;;  %v10300_v49 = vor.u32 %v10299_v54, %v10295_v63  ;;  %v9990_v61 = vld [vmem:[#allocation2 + $0xbc] sm:$0x1]  ;;  %v20920_v37 = vcombine.low %v10014_v44, %v20912_v60  ;;  %v10307_v6 = vshrl.u32 %v20910_v36, 16 }
 0x803   : > { %v9998_v38 = vsel %vm17242_vm8, %v9839_v4, %v9997_v58  ;;  %v10311_v16 = vrot.slane %v10309_v43, 1  ;;  %v10314_v35 = vshll.u32 %v20916_v47, 16  ;;  %v10016_v26 = vld [vmem:[#allocation2 + $0x60] sm:$0xf]  ;;  %v20953_v8 = vld [vmem:[#allocation2 + $0x70] sm:$0xf] }
 0x804   : > { %9999 = vst [vmem:[#allocation2 + $0xc8] sm:$0x1] %v9998_v38  ;;  %v9820_v41 = vor.u32 %v9818_v57, %v9817_v12  ;;  %v9822_v7 = vrot.slane %v9817_v12, 4  ;;  %v20929_v13 = vsel %vm1323_vm3, %v10300_v49, %v10304_v23  ;;  %v10321_v45 = vshll.u32 %v20920_v37, 16  ;;  %v10018_v62 = vld [vmem:[#allocation2 + $0x6c] sm:$0xf] }
 0x805   : > { %15300 = vmatpush3.bf16.msra.mxu1 %v16606_v24  ;;  %v10312_v34 = vor.u32 %v10311_v16, %v10307_v6  ;;  %v10316_v24 = vrot.slane %v10314_v35, 1  ;;  %v20943_v51 = vcombine.low %v10016_v26, %v20938_v25  ;;  %v20951_v9 = vld [vmem:[#allocation2 + $0x68] ss:$0 sps:$4 sm:$0x11]   ;;  %v9835_v39 = vshll.u32 %v20877_v10, 16 }
 0x806   : > { %15301 = vmatprep.subr.bf16.mxu1 %v16611_v14  ;;  %v9821_v20 = vsel %vm17223_vm6, %v9813_v29, %v9820_v41  ;;  %v9991_v50 = vsel %vm17242_vm8, %v9822_v7, %v9990_v61  ;;  %v10323_v3 = vrot.slane %v10321_v45, 1  ;;  %v10319_v28 = vshrl.u32 %v20920_v37, 16  ;;  %v20960_v63 = vld [vmem:[#allocation2 + $0x74] ss:$0 sps:$4 sm:$0x11]  }
 0x807   : > { %10893 = vmatmul.mubr.bf16.gmra.mrb[12].mxu1 %v20845_v40  ;;  %11367 = vmatmul.mubr.bf16.gmra.mrb[208].mxu0 %v20845_v40  ;;  %9989 = vst [vmem:[#allocation2 + $0xb8] sm:$0xf] %v9821_v20  ;;  %9992 = vst [vmem:[#allocation2 + $0xbc] sm:$0x1] %v9991_v50  ;;  %v20949_v5 = vsel %vm1323_vm3, %v10312_v34, %v10316_v24  ;;  %v10326_v4 = vshll.u32 %v20940_v42, 16  ;;  %v10333_v54 = vshll.u32 %v20943_v51, 16 }
 0x808   : > { %10900 = vmatprep.mubr.bf16.mxu1 %v20929_v13  ;;  %11374 = vmatprep.mubr.bf16.mxu0 %v20929_v13  ;;  %v20964_v52 = vcombine.low %v10018_v62, %v20953_v8  ;;  %v10324_v58 = vor.u32 %v10323_v3, %v10319_v28  ;;  %v20967_v12 = vld [vmem:[#allocation2 + $0x7c] sm:$0xf]  ;;  %v9830_v57 = vrot.slane %v20881_v19, 4  ;;  %v10338_v10 = vshll.u32 %v20951_v9, 16  ;;  %v10020_v49 = vld [vmem:[#allocation2 + $0x78] sm:$0xf] }
 0x809   : > { %15302 = vmatpush3.bf16.msra.mxu1 %v16611_v14  ;;  %v9837_v14 = vor.u32 %v9835_v39, %v20895_v33  ;;  %v10328_v29 = vrot.slane %v10326_v4, 1  ;;  %v10350_v38 = vshll.u32 %v20960_v63, 16  ;;  %v10335_v41 = vrot.slane %v10333_v54, 1  ;;  %v20981_v19 = vld [vmem:[#allocation2 + $0x80] ss:$0 sps:$4 sm:$0x11]  }
 0x80a   : > { %15303 = vmatprep.subr.bf16.mxu1 %v16616_v30  ;;  %v10345_v7 = vshll.u32 %v20964_v52, 16  ;;  %v20974_v23 = vcombine.low %v10020_v49, %v20967_v12  ;;  %v10055_v44 = vld [vmem:[#allocation2 + $0xc] sm:$0xe]  ;;  %v10535_v61 = vrot.slane %v20849_v32, 1  ;;  %v10331_v20 = vshrl.u32 %v20943_v51, 16 }
 0x80b   : > { %v20979_v33 = vsel %vm1323_vm3, %v10324_v58, %v10328_v29  ;;  %v9838_v43 = vsel %vm17223_vm6, %v9830_v57, %v9837_v14  ;;  %v10547_v50 = vrot.slane %v20951_v9, 1  ;;  %v10057_v16 = vld [vmem:[#allocation2 + $0x24] sm:$0xe]  ;;  %v10340_v6 = vrot.slane %v10338_v10, 1  ;;  %v20994_v34 = vld [vmem:[#allocation2 + $0x88] sm:$0xf] }
 0x80c   : > { %9996 = vst [vmem:[#allocation2 + $0xc4] sm:$0xf] %v9838_v43  ;;  %v10343_v35 = vshrl.u32 %v20964_v52, 16  ;;  %v20992_v2 = vrot.slane %v10350_v38, 1  ;;  %v13000_v32 = vcombine.low %v10055_v44, %v20777_v22  ;;  %v10336_v45 = vor.u32 %v10335_v41, %v10331_v20  ;;  %v10059_v62 = vld [vmem:[#allocation2 + $0x3c] sm:$0xe] }
 0x80d   : > { %15304 = vmatpush3.bf16.msra.mxu1 %v16616_v30  ;;  %v10541_v30 = vrot.slane %v20916_v47, 1  ;;  %v10058_v47 = vld [vmem:[#allocation2 + $0x30] sm:$0xe]  ;;  %v10347_v24 = vrot.slane %v10345_v7, 1  ;;  %v10357_v26 = vshll.u32 %v20974_v23, 16  ;;  %v10526_v3 = vrot.slane %v20756_v11, 1 }
 0x80e   : > { %15337 = vmatprep.subr.bf16.mxu1 %v20935_v31  ;;  %v10553_v39 = vrot.slane %v20981_v19, 1  ;;  %v10022_v28 = vld [vmem:[#allocation2 + $0x84] sm:$0xf]  ;;  %v10525_v4 = vrot.slane %v13000_v32, 1  ;;  %v13002_v54 = vcombine.low %v10057_v16, %v20822_v15  ;;  %v10532_v14 = vrot.slane %v20833_v0, 1 }
 0x80f   : > { %10901 = vmatmul.mubr.bf16.gmra.mrb[16].mxu1 %v20884_v21  ;;  %11375 = vmatmul.mubr.bf16.gmra.mrb[212].mxu0 %v20884_v21  ;;  %v21003_v58 = vcombine.low %v10022_v28, %v20994_v34  ;;  %v13003_v22 = vcombine.low %v10058_v47, %v20824_v55  ;;  %v13004_v57 = vcombine.low %v10059_v62, %v20871_v17  ;;  %v10538_v29 = vrot.slane %v20886_v18, 1  ;;  %v10060_v10 = vld [vmem:[#allocation2 + $0x48] sm:$0xe]  ;;  %v10061_v11 = vld [vmem:[#allocation2 + $0x54] sm:$0xe] }
 0x810   : > { %10908 = vmatprep.mubr.bf16.mxu1 %v20949_v5  ;;  %11382 = vmatprep.mubr.bf16.mxu0 %v20949_v5  ;;  %v21009_v38 = vsel %vm1612_vm9, %v10525_v4, %v10526_v3  ;;  %v10531_v49 = vrot.slane %v13002_v54, 1  ;;  %v13005_v41 = vcombine.low %v10060_v10, %v20900_v53  ;;  %v13006_v15 = vcombine.low %v10061_v11, %v20912_v60  ;;  %v10062_v0 = vld [vmem:[#allocation2 + $0x60] sm:$0xe]  ;;  %v21016_v43 = vld [vmem:[#allocation2 + $0x94] sm:$0xf] }
 0x811   : > { %v21014_v7 = vsel %vm1323_vm3, %v10336_v45, %v10340_v6  ;;  %v21018_v55 = vld [vmem:[#allocation2 + $0x98] ss:$0 sps:$4 sm:$0x11]   ;;  %v10534_v17 = vrot.slane %v13003_v22, 1  ;;  %v10537_v18 = vrot.slane %v13004_v57, 1  ;;  %v10544_v44 = vrot.slane %v20940_v42, 1 }
 0x812   : > { %v10063_v20 = vld [vmem:[#allocation2 + $0x6c] sm:$0xe]  ;;  %v21023_v53 = vld [vmem:[#allocation2 + $0x8c] ss:$0 sps:$4 sm:$0x11]   ;;  %v21026_v60 = vsel %vm1612_vm9, %v10531_v49, %v10532_v14  ;;  %v10540_v16 = vrot.slane %v13005_v41, 1  ;;  %v13007_v32 = vcombine.low %v10062_v0, %v20938_v25  ;;  %v10348_v11 = vor.u32 %v10347_v24, %v10343_v35 }
 0x813   : > { %v10543_v6 = vrot.slane %v13006_v15, 1  ;;  %v10064_v47 = vld [vmem:[#allocation2 + $0x78] sm:$0xe]  ;;  %v10065_v45 = vld [vmem:[#allocation2 + $0x84] sm:$0xe]  ;;  %v10359_v42 = vrot.slane %v10357_v26, 1  ;;  %v21034_v62 = vsel %vm1612_vm9, %v10534_v17, %v10535_v61  ;;  %v21037_v28 = vsel %vm1612_vm9, %v10537_v18, %v10538_v29 }
 0x814   : > { %v21031_v3 = vld [vmem:[#allocation2 + $0xb0] ss:$0 sps:$4 sm:$0x11]   ;;  %v10550_v4 = vrot.slane %v20960_v63, 1  ;;  %v10066_v54 = vld [vmem:[#allocation2 + $0x90] sm:$0xe]  ;;  %v21045_v22 = vsel %vm1612_vm9, %v10540_v16, %v10541_v30  ;;  %v13008_v61 = vcombine.low %v10063_v20, %v20953_v8  ;;  %v13009_v41 = vcombine.low %v10064_v47, %v20967_v12 }
 0x815   : > { %v21040_v14 = vld [vmem:[#allocation2 + $0xa0] sm:$0xf]  ;;  %v21042_v25 = vld [vmem:[#allocation2 + $0xa4] ss:$0 sps:$4 sm:$0x11]   ;;  %21881 = vst [vmem:[#allocation29_spill] sm:$0xff] %v21045_v22  ;;  %v21048_v26 = vsel %vm1612_vm9, %v10543_v6, %v10544_v44  ;;  %v13010_v15 = vcombine.low %v10065_v45, %v20994_v34  ;;  %v13011_v24 = vcombine.low %v10066_v54, %v21016_v43  ;;  %v21080_v47 = vsel %vm1323_vm3, %v10348_v11, %v20992_v2 }
 0x816   : > { %21882 = vst [vmem:[#allocation24_spill] sm:$0xff] %v21048_v26  ;;  %v10546_v57 = vrot.slane %v13007_v32, 1  ;;  %v10067_v10 = vld [vmem:[#allocation2 + $0x9c] sm:$0xe]  ;;  %v10559_v29 = vrot.slane %v21018_v55, 1  ;;  %v10549_v8 = vrot.slane %v13008_v61, 1 }
 0x817   : > { %10909 = vmatmul.mubr.bf16.gmra.mrb[20].mxu1 %v20910_v36  ;;  %11383 = vmatmul.mubr.bf16.gmra.mrb[216].mxu0 %v20910_v36  ;;  %v21052_v49 = vld [vmem:[#allocation2 + $0xac] sm:$0xf]  ;;  %v21054_v63 = vld [vmem:[#allocation2 + $0xc8] ss:$0 sps:$4 sm:$0x11]   ;;  %v10556_v35 = vrot.slane %v21023_v53, 1  ;;  %v13012_v34 = vcombine.low %v10067_v10, %v21040_v14 }
 0x818   : > { %10916 = vmatprep.mubr.bf16.mxu1 %v20979_v33  ;;  %11390 = vmatprep.mubr.bf16.mxu0 %v20979_v33  ;;  %v10068_v30 = vld [vmem:[#allocation2 + $0xa8] sm:$0xe]  ;;  %v21058_v0 = vld [vmem:[#allocation2 + $0xbc] ss:$0 sps:$4 sm:$0x11]   ;;  %v21063_v17 = vsel %vm1612_vm9, %v10546_v57, %v10547_v50  ;;  %v10565_v18 = vrot.slane %v21031_v3, 1  ;;  %v21074_v9 = vsel %vm1612_vm9, %v10549_v8, %v10550_v4 }
 0x819   : > { %21883 = vst [vmem:[#allocation30_spill] sm:$0xff] %v21063_v17  ;;  %v21068_v44 = vld [vmem:[#allocation2 + $0xb8] sm:$0xf]  ;;  %v10552_v12 = vrot.slane %v13009_v41, 1  ;;  %v10555_v20 = vrot.slane %v13010_v15, 1  ;;  %v10558_v50 = vrot.slane %v13011_v24, 1  ;;  %v13013_v32 = vcombine.low %v10068_v30, %v21052_v49 }
 0x81a   : > { %v21071_v16 = vld [vmem:[#allocation2 + $0xc4] sm:$0xf]  ;;  %v10562_v6 = vrot.slane %v21042_v25, 1  ;;  %v10561_v57 = vrot.slane %v13012_v34, 1  ;;  %v10069_v4 = vld [vmem:[#allocation2 + $0xb4] sm:$0xe] }
 0x81b   : > { %v21085_v45 = vsel %vm1612_vm9, %v10552_v12, %v10553_v39  ;;  %v21088_v54 = vsel %vm1612_vm9, %v10555_v20, %v10556_v35  ;;  %v21093_v61 = vsel %vm1612_vm9, %v10558_v50, %v10559_v29  ;;  %v10564_v10 = vrot.slane %v13013_v32, 1  ;;  %v10070_v41 = vld [vmem:[#allocation2 + $0xc0] sm:$0xe] }
 0x81c   : > { %v13014_v2 = vcombine.low %v10069_v4, %v21068_v44  ;;  %v10568_v11 = vrot.slane %v21058_v0, 1  ;;  %v10571_v39 = vrot.slane %v21054_v63, 1  ;;  %v21101_v15 = vsel %vm1612_vm9, %v10561_v57, %v10562_v6  ;;  %v10024_v57 = vld [vmem:[#allocation2 + $0x90] sm:$0xf] }
 0x81d   : > { %v13015_v30 = vcombine.low %v10070_v41, %v21071_v16  ;;  %v10355_v29 = vshrl.u32 %v20974_v23, 16  ;;  %v10362_v8 = vshll.u32 %v20981_v19, 16  ;;  %v21107_v35 = vsel %vm1612_vm9, %v10564_v10, %v10565_v18 }
 0x81e   : > { %v10567_v24 = vrot.slane %v13014_v2, 1  ;;  %v10369_v34 = vshll.u32 %v21003_v58, 16  ;;  %v10367_v4 = vshrl.u32 %v21003_v58, 16  ;;  %v10374_v10 = vshll.u32 %v21023_v53, 16 }
 0x81f   : > { %10917 = vmatmul.mubr.bf16.gmra.mrb[24].mxu1 %v20920_v37  ;;  %11391 = vmatmul.mubr.bf16.gmra.mrb[220].mxu0 %v20920_v37  ;;  %v10570_v12 = vrot.slane %v13015_v30, 1  ;;  %v10360_v20 = vor.u32 %v10359_v42, %v10355_v29  ;;  %v10364_v32 = vrot.slane %v10362_v8, 1  ;;  %v21122_v42 = vcombine.low %v10024_v57, %v21016_v43 }
 0x820   : > { %10924 = vmatprep.mubr.bf16.mxu1 %v21014_v7  ;;  %11398 = vmatprep.mubr.bf16.mxu0 %v21014_v7  ;;  %v21111_v50 = vsel %vm1612_vm9, %v10567_v24, %v10568_v11  ;;  %v10371_v18 = vrot.slane %v10369_v34, 1  ;;  %v10376_v41 = vrot.slane %v10374_v10, 1  ;;  %v10386_v24 = vshll.u32 %v21018_v55, 16 }
 0x821   : > { %v21114_v6 = vsel %vm1612_vm9, %v10570_v12, %v10571_v39  ;;  %v21119_v19 = vsel %vm1323_vm3, %v10360_v20, %v10364_v32  ;;  %v10381_v11 = vshll.u32 %v21122_v42, 16  ;;  %v10026_v39 = vld [vmem:[#allocation2 + $0x9c] sm:$0xf]  ;;  %v10379_v8 = vshrl.u32 %v21122_v42, 16 }
 0x822   : > { %21884 = vst [vmem:[#allocation31_spill] sm:$0xff] %v21114_v6  ;;  %v10372_v2 = vor.u32 %v10371_v18, %v10367_v4  ;;  %v21135_v29 = vcombine.low %v10026_v39, %v21040_v14  ;;  %v10388_v57 = vrot.slane %v10386_v24, 1  ;;  %v10028_v18 = vld [vmem:[#allocation2 + $0xa8] sm:$0xf]  ;;  %v10030_v24 = vld [vmem:[#allocation2 + $0xb4] sm:$0xf] }
 0x823   : > { %v10383_v30 = vrot.slane %v10381_v11, 1  ;;  %v21150_v10 = vcombine.low %v10028_v18, %v21052_v49 }
 0x824   : > { %v21132_v43 = vsel %vm1323_vm3, %v10372_v2, %v10376_v41  ;;  %v14601_v53 = vpop.f32.mrb[192].mxu0  ;;  %v10393_v32 = vshll.u32 %v21135_v29, 16  ;;  %v10391_v11 = vshrl.u32 %v21135_v29, 16  ;;  %v10398_v41 = vshll.u32 %v21042_v25, 16 }
 0x825   : > { %v14602_v12 = vpop.f32.mrb[193].mxu0  ;;  %v10384_v34 = vor.u32 %v10383_v30, %v10379_v8  ;;  %v10403_v25 = vshrl.u32 %v21150_v10, 16 }
 0x826   : > { %v21141_v20 = vadd.f32 %v14602_v12, %v14601_v53  ;;  %v10395_v4 = vrot.slane %v10393_v32, 1  ;;  %v14604_v55 = vpop.f32.mrb[194].mxu0  ;;  %v10405_v53 = vshll.u32 %v21150_v10, 16  ;;  %v10400_v8 = vrot.slane %v10398_v41, 1 }
 0x827   : > { %10925 = vmatmul.mubr.bf16.gmra.mrb[28].mxu1 %v20943_v51  ;;  %11399 = vmatmul.mubr.bf16.gmra.mrb[224].mxu0 %v20943_v51  ;;  %v21147_v14 = vsel %vm1323_vm3, %v10384_v34, %v10388_v57  ;;  %v14605_v2 = vpop.f32.mrb[195].mxu0  ;;  %v21165_v34 = vcombine.low %v10030_v24, %v21068_v44  ;;  %v10410_v32 = vshll.u32 %v21031_v3, 16  ;;  %v10422_v41 = vshll.u32 %v21058_v0, 16 }
 0x828   : > { %10932 = vmatprep.mubr.bf16.mxu1 %v21080_v47  ;;  %11406 = vmatprep.mubr.bf16.mxu0 %v21080_v47  ;;  %v21156_v39 = vadd.f32 %v14605_v2, %v14604_v55  ;;  %v10396_v30 = vor.u32 %v10395_v4, %v10391_v11  ;;  %v10407_v12 = vrot.slane %v10405_v53, 1  ;;  %v10032_v55 = vld [vmem:[#allocation2 + $0xc0] sm:$0xf]  ;;  %v10434_v0 = vshll.u32 %v21054_v63, 16  ;;  %v16625_v63 = vld [vmem:[#allocation9 + $0x750] sm:$0xff]  }
 0x829   : > { %v10417_v18 = vshll.u32 %v21165_v34, 16  ;;  %v10412_v4 = vrot.slane %v10410_v32, 1  ;;  %v21178_v11 = vcombine.low %v10032_v55, %v21071_v16  ;;  %v10415_v3 = vshrl.u32 %v21165_v34, 16  ;;  %v16631_v55 = vld [vmem:[#allocation9 + $0x760] sm:$0xff]  }
 0x82a   : > { %v21162_v49 = vsel %vm1323_vm3, %v10396_v30, %v10400_v8  ;;  %v10408_v57 = vor.u32 %v10407_v12, %v10403_v25  ;;  %v10424_v8 = vrot.slane %v10422_v41, 1  ;;  %v10436_v32 = vrot.slane %v10434_v0, 1  ;;  %v16643_v41 = vld [vmem:[#allocation9 + $0x880] sm:$0xff]  }
 0x82b   : > { %v10419_v2 = vrot.slane %v10417_v18, 1  ;;  %v10429_v53 = vshll.u32 %v21178_v11, 16  ;;  %v10427_v12 = vshrl.u32 %v21178_v11, 16  ;;  %v16622_v18 = vld [vmem:[#allocation9 + $0x748] sm:$0xff]  }
 0x82c   : > { %v21175_v44 = vsel %vm1323_vm3, %v10408_v57, %v10412_v4  ;;  %v16628_v4 = vld [vmem:[#allocation9 + $0x758] sm:$0xff]  }
 0x82d   : > { %v10420_v30 = vor.u32 %v10419_v2, %v10415_v3  ;;  %v10431_v16 = vrot.slane %v10429_v53, 1  ;;  %v16634_v2 = vld [vmem:[#allocation9 + $0x768] sm:$0xff]   ;;  %v16640_v3 = vld [vmem:[#allocation9 + $0x778] sm:$0xff]   ;;  %v16697_v53 = vld [vmem:[#allocation2 + $0x4] sm:$0xf] }
 0x82f   : > { %10933 = vmatmul.mubr.bf16.gmra.mrb[32].mxu1 %v20964_v52  ;;  %11407 = vmatmul.mubr.bf16.gmra.mrb[228].mxu0 %v20964_v52  ;;  %v21188_v24 = vsel %vm1323_vm3, %v10420_v30, %v10424_v8  ;;  %v10432_v25 = vor.u32 %v10431_v16, %v10427_v12  ;;  %v10054_v30 = vld [vmem:[#allocation2] sm:$0xe]  ;;  %v16698_v12 = vld [vmem:[#allocation2 + $0x8] ss:$0 sps:$4 sm:$0x11]  }
 0x830   : > { %10940 = vmatprep.mubr.bf16.mxu1 %v21119_v19  ;;  %11414 = vmatprep.mubr.bf16.mxu0 %v21119_v19  ;;  %v12999_v8 = vcombine.low %v10054_v30, %v16697_v53  ;;  %v10523_v0 = vrot.slane %v16698_v12, 1  ;;  %v16654_v30 = vld [vmem:[#allocation9 + $0x868] sm:$0xff]   ;;  %v16655_v53 = vld [vmem:[#allocation9 + $0x8b0] sm:$0xff]  }
 0x831   : > { %v21197_v57 = vsel %vm1323_vm3, %v10432_v25, %v10436_v32  ;;  %v16644_v32 = vld [vmem:[#allocation9 + $0x840] sm:$0xff]  }
 0x832   : > { %v10522_v16 = vrot.slane %v12999_v8, 1 }
 0x834   : > { %v10524_v25 = vsel %vm1612_vm9, %v10522_v16, %v10523_v0 }
 0x837   : > { %10941 = vmatmul.mubr.bf16.gmra.mrb[36].mxu1 %v20974_v23  ;;  %11415 = vmatmul.mubr.bf16.gmra.mrb[232].mxu0 %v20974_v23 }
 0x838   : > { %10948 = vmatprep.mubr.bf16.mxu1 %v21132_v43  ;;  %11422 = vmatprep.mubr.bf16.mxu0 %v21132_v43 }
 0x83f   : > { %10949 = vmatmul.mubr.bf16.gmra.mrb[40].mxu1 %v21003_v58  ;;  %11423 = vmatmul.mubr.bf16.gmra.mrb[236].mxu0 %v21003_v58 }
 0x840   : > { %10956 = vmatprep.mubr.bf16.mxu1 %v21147_v14  ;;  %11430 = vmatprep.mubr.bf16.mxu0 %v21147_v14 }
 0x847   : > { %10957 = vmatmul.mubr.bf16.gmra.mrb[44].mxu1 %v21122_v42  ;;  %11431 = vmatmul.mubr.bf16.gmra.mrb[240].mxu0 %v21122_v42 }
 0x848   : > { %10964 = vmatprep.mubr.bf16.mxu1 %v21162_v49  ;;  %11438 = vmatprep.mubr.bf16.mxu0 %v21162_v49 }
 0x84f   : > { %10965 = vmatmul.mubr.bf16.gmra.mrb[48].mxu1 %v21135_v29  ;;  %11439 = vmatmul.mubr.bf16.gmra.mrb[244].mxu0 %v21135_v29 }
 0x850   : > { %10972 = vmatprep.mubr.bf16.mxu1 %v21175_v44  ;;  %11446 = vmatprep.mubr.bf16.mxu0 %v21175_v44 }
 0x857   : > { %10973 = vmatmul.mubr.bf16.gmra.mrb[52].mxu1 %v21150_v10  ;;  %11447 = vmatmul.mubr.bf16.gmra.mrb[248].mxu0 %v21150_v10 }
 0x858   : > { %10980 = vmatprep.mubr.bf16.mxu1 %v21188_v24  ;;  %11454 = vmatprep.mubr.bf16.mxu0 %v21188_v24 }
 0x85f   : > { %10981 = vmatmul.mubr.bf16.gmra.mrb[56].mxu1 %v21165_v34  ;;  %11455 = vmatmul.mubr.bf16.gmra.mrb[252].mxu0 %v21165_v34 }
 0x860   : > { %10988 = vmatprep.mubr.bf16.mxu1 %v21197_v57 }
 0x867   : > { %10989 = vmatmul.mubr.bf16.gmra.mrb[60].mxu1 %v21178_v11 }
 0x868   : > { %15305 = vmatprep.mubr.bf16.mxu1 %v21009_v38 }
 0x86f   : > { %15306 = vmatmul.mubr.bf16.vlgmr.msra.gmra.mrb[64].mxu1 %v20819_v46 }
 0x870   : > { %15338 = vmatpush3.bf16.msra.mxu1 %v20935_v31  ;;  %15309 = vmatprep.mubr.bf16.mxu1 %v21026_v60  ;;  %v16637_v31 = vld [vmem:[#allocation9 + $0x770] sm:$0xff]  }
 0x871   : > { %15339 = vmatprep.subr.bf16.mxu1 %v16622_v18 }
 0x874   : > { %15340 = vmatpush3.bf16.msra.mxu1 %v16622_v18  ;;  %v16645_v18 = vld [vmem:[#allocation9 + $0x888] sm:$0xff]  }
 0x875   : > { %15341 = vmatprep.subr.bf16.mxu1 %v16625_v63 }
 0x877   : > { %15310 = vmatmul.mubr.bf16.gmra.mrb[68].mxu1 %v21034_v62 }
 0x878   : > { %15313 = vmatprep.mubr.bf16.mxu1 %v21037_v28  ;;  %15342 = vmatpush3.bf16.msra.mxu1 %v16625_v63  ;;  %v16646_v63 = vld [vmem:[#allocation9 + $0x848] sm:$0xff]  }
 0x879   : > { %15343 = vmatprep.subr.bf16.mxu1 %v16628_v4 }
 0x87c   : > { %15344 = vmatpush3.bf16.msra.mxu1 %v16628_v4  ;;  %v16647_v4 = vld [vmem:[#allocation9 + $0x890] sm:$0xff]  }
 0x87d   : > { %15345 = vmatprep.subr.bf16.mxu1 %v16631_v55 }
 0x87f   : > { %15314 = vmatmul.mubr.bf16.gmra.mrb[72].mxu1 %v21045_v22 }
 0x880   : > { %15317 = vmatprep.mubr.bf16.mxu1 %v21048_v26  ;;  %15346 = vmatpush3.bf16.msra.mxu1 %v16631_v55  ;;  %v16648_v55 = vld [vmem:[#allocation9 + $0x850] sm:$0xff]  }
 0x881   : > { %15347 = vmatprep.subr.bf16.mxu1 %v16634_v2 }
 0x884   : > { %15348 = vmatpush3.bf16.msra.mxu1 %v16634_v2  ;;  %v16649_v2 = vld [vmem:[#allocation9 + $0x898] sm:$0xff]  }
 0x885   : > { %15349 = vmatprep.subr.bf16.mxu1 %v16637_v31 }
 0x887   : > { %15318 = vmatmul.mubr.bf16.gmra.mrb[76].mxu1 %v21063_v17 }
 0x888   : > { %15321 = vmatprep.mubr.bf16.mxu1 %v21074_v9  ;;  %15350 = vmatpush3.bf16.msra.mxu1 %v16637_v31  ;;  %v16650_v31 = vld [vmem:[#allocation9 + $0x858] sm:$0xff]  }
 0x889   : > { %15351 = vmatprep.subr.bf16.mxu1 %v16640_v3 }
 0x88c   : > { %15352 = vmatpush3.bf16.msra.mxu1 %v16640_v3  ;;  %v16651_v3 = vld [vmem:[#allocation9 + $0x8a0] sm:$0xff]  }
 0x88d   : > { %14721 = vmatprep.subr.bf16.mxu1 %v16643_v41  ;;  %v16653_v41 = vld [vmem:[#allocation9 + $0x8a8] sm:$0xff]  }
 0x88f   : > { %15322 = vmatmul.mubr.bf16.gmra.mrb[80].mxu1 %v21085_v45 }
 0x890   : > { %15325 = vmatprep.mubr.bf16.mxu1 %v21088_v54 }
 0x897   : > { %15326 = vmatmul.mubr.bf16.gmra.mrb[84].mxu1 %v21093_v61 }
 0x898   : > { %15329 = vmatprep.mubr.bf16.mxu1 %v21101_v15 }
 0x89f   : > { %15330 = vmatmul.mubr.bf16.gmra.mrb[88].mxu1 %v21107_v35 }
 0x8a0   : > { %15333 = vmatprep.mubr.bf16.mxu1 %v21111_v50 }
 0x8a7   : > { %15334 = vmatmul.mubr.bf16.gmra.mrb[92].mxu1 %v21114_v6 }
 0x8a8   : > { %15353 = vmatprep.mubr.bf16.mxu1 %v10524_v25 }
 0x8af   : > { %15354 = vmatmul.mubr.bf16.vlgmr.msra.gmra.mrb[64].mxu1 %v21009_v38  ;;  %v16652_v38 = vld [vmem:[#allocation9 + $0x860] sm:$0xff]  }
 0x8b0   : > { %14722 = vmatpush3.bf16.msra.mxu1 %v16644_v32  ;;  %15357 = vmatprep.mubr.bf16.mxu1 %v20819_v46 }
 0x8b1   : > { %14723 = vmatprep.subr.bf16.mxu1 %v16645_v18 }
 0x8b4   : > { %14724 = vmatpush3.bf16.msra.mxu1 %v16646_v63 }
 0x8b5   : > { %14725 = vmatprep.subr.bf16.mxu1 %v16647_v4  ;;  %v16656_v4 = vld [vmem:[#allocation9 + $0x870] sm:$0xff]  }
 0x8b7   : > { %15358 = vmatmul.mubr.bf16.gmra.mrb[68].mxu1 %v21026_v60 }
 0x8b8   : > { %15361 = vmatprep.mubr.bf16.mxu1 %v21034_v62  ;;  %14726 = vmatpush3.bf16.msra.mxu1 %v16648_v55 }
 0x8b9   : > { %14727 = vmatprep.subr.bf16.mxu1 %v16649_v2 }
 0x8bc   : > { %14728 = vmatpush3.bf16.msra.mxu1 %v16650_v31  ;;  %v16657_v31 = vld [vmem:[#allocation9 + $0x8b8] sm:$0xff]  }
 0x8bd   : > { %14729 = vmatprep.subr.bf16.mxu1 %v16651_v3 }
 0x8bf   : > { %15362 = vmatmul.mubr.bf16.gmra.mrb[72].mxu1 %v21037_v28 }
 0x8c0   : > { %15365 = vmatprep.mubr.bf16.mxu1 %v21045_v22  ;;  %14730 = vmatpush3.bf16.msra.mxu1 %v16652_v38 }
 0x8c1   : > { %14731 = vmatprep.subr.bf16.mxu1 %v16653_v41 }
 0x8c2   : > { %v14465_v8 = vpop.f32.mrb[0].mxu1  ;;  %v14607_v16 = vpop.f32.mrb[196].mxu0 }
 0x8c3   : > { %v14466_v12 = vpop.f32.mrb[1].mxu1  ;;  %v14608_v0 = vpop.f32.mrb[197].mxu0 }
 0x8c4   : > { %v14467_v25 = vadd.f32 %v14466_v12, %v14465_v8  ;;  %v14609_v32 = vadd.f32 %v14608_v0, %v14607_v16  ;;  %v14468_v18 = vpop.f32.mrb[2].mxu1  ;;  %v14610_v63 = vpop.f32.mrb[198].mxu0  ;;  %14732 = vmatpush3.bf16.msra.mxu1 %v16654_v30  ;;  %v16658_v8 = vld [vmem:[#allocation9 + $0x878] sm:$0xff]   ;;  %v21233_v30 = vld [vmem:[#allocation9 + $0x8c0] sm:$0xff]  }
 0x8c5   : > { %v14469_v55 = vpop.f32.mrb[3].mxu1  ;;  %v14611_v2 = vpop.f32.mrb[199].mxu0  ;;  %14733 = vmatprep.subr.bf16.mxu1 %v16655_v53 }
 0x8c6   : > { %v21226_v3 = vadd.f32 %v21141_v20, %v14467_v25  ;;  %v14470_v38 = vadd.f32 %v14469_v55, %v14468_v18  ;;  %v14612_v41 = vadd.f32 %v14611_v2, %v14610_v63 }
 0x8c7   : > { %15366 = vmatmul.mubr.bf16.gmra.mrb[76].mxu1 %v21048_v26 }
 0x8c8   : > { %21885 = vst [vmem:[#allocation37_spill] sm:$0xff] %v21226_v3  ;;  %v21230_v6 = vadd.f32 %v21156_v39, %v14470_v38  ;;  %15369 = vmatprep.mubr.bf16.mxu1 %v21063_v17  ;;  %14734 = vmatpush3.bf16.msra.mxu1 %v16656_v4 }
 0x8c9   : > { %14735 = vmatprep.subr.bf16.mxu1 %v16657_v31 }
 0x8ca   : > { %21886 = vst [vmem:[#allocation33_spill] sm:$0xff] %v21230_v6  ;;  %v14471_v16 = vpop.f32.mrb[4].mxu1  ;;  %v14613_v53 = vpop.f32.mrb[200].mxu0 }
 0x8cb   : > { %v14472_v12 = vpop.f32.mrb[5].mxu1  ;;  %v14614_v0 = vpop.f32.mrb[201].mxu0 }
 0x8cc   : > { %v14473_v20 = vadd.f32 %v14472_v12, %v14471_v16  ;;  %v14615_v25 = vadd.f32 %v14614_v0, %v14613_v53  ;;  %v14474_v18 = vpop.f32.mrb[6].mxu1  ;;  %v14616_v63 = vpop.f32.mrb[202].mxu0  ;;  %14736 = vmatpush3.bf16.msra.mxu1 %v16658_v8 }
 0x8cd   : > { %v14475_v55 = vpop.f32.mrb[7].mxu1  ;;  %v14617_v2 = vpop.f32.mrb[203].mxu0  ;;  %15385 = vmatprep.subr.bf16.mxu1 %v21233_v30 }
 0x8ce   : > { %v21236_v39 = vadd.f32 %v14609_v32, %v14473_v20  ;;  %v14476_v4 = vadd.f32 %v14475_v55, %v14474_v18  ;;  %v14618_v38 = vadd.f32 %v14617_v2, %v14616_v63 }
 0x8cf   : > { %15370 = vmatmul.mubr.bf16.gmra.mrb[80].mxu1 %v21074_v9 }
 0x8d0   : > { %21887 = vst [vmem:[#allocation22_spill] sm:$0xff] %v21236_v39  ;;  %v21239_v31 = vadd.f32 %v14612_v41, %v14476_v4  ;;  %15373 = vmatprep.mubr.bf16.mxu1 %v21085_v45 }
 0x8d2   : > { %21888 = vst [vmem:[#allocation23_spill] sm:$0xff] %v21239_v31  ;;  %v14477_v6 = vpop.f32.mrb[8].mxu1  ;;  %v14619_v16 = vpop.f32.mrb[204].mxu0 }
 0x8d3   : > { %v14478_v53 = vpop.f32.mrb[9].mxu1  ;;  %v14620_v12 = vpop.f32.mrb[205].mxu0 }
 0x8d4   : > { %v14479_v0 = vadd.f32 %v14478_v53, %v14477_v6  ;;  %v14621_v8 = vadd.f32 %v14620_v12, %v14619_v16  ;;  %v14480_v3 = vpop.f32.mrb[10].mxu1  ;;  %v14622_v17 = vpop.f32.mrb[206].mxu0 }
 0x8d5   : > { %v14481_v26 = vpop.f32.mrb[11].mxu1  ;;  %v14623_v22 = vpop.f32.mrb[207].mxu0 }
 0x8d6   : > { %v21242_v32 = vadd.f32 %v14615_v25, %v14479_v0  ;;  %v14482_v20 = vadd.f32 %v14481_v26, %v14480_v3  ;;  %v14624_v18 = vadd.f32 %v14623_v22, %v14622_v17 }
 0x8d7   : > { %15374 = vmatmul.mubr.bf16.gmra.mrb[84].mxu1 %v21088_v54 }
 0x8d8   : > { %21889 = vst [vmem:[#allocation34_spill] sm:$0xff] %v21242_v32  ;;  %v21245_v41 = vadd.f32 %v14618_v38, %v14482_v20  ;;  %15377 = vmatprep.mubr.bf16.mxu1 %v21093_v61 }
 0x8da   : > { %21890 = vst [vmem:[#allocation20_spill] sm:$0xff] %v21245_v41  ;;  %v14483_v63 = vpop.f32.mrb[12].mxu1  ;;  %v14625_v55 = vpop.f32.mrb[208].mxu0 }
 0x8db   : > { %v14484_v2 = vpop.f32.mrb[13].mxu1  ;;  %v14626_v4 = vpop.f32.mrb[209].mxu0 }
 0x8dc   : > { %v14485_v6 = vadd.f32 %v14484_v2, %v14483_v63  ;;  %v14627_v16 = vadd.f32 %v14626_v4, %v14625_v55  ;;  %v14486_v53 = vpop.f32.mrb[14].mxu1  ;;  %v14628_v12 = vpop.f32.mrb[210].mxu0 }
 0x8dd   : > { %v14487_v31 = vpop.f32.mrb[15].mxu1  ;;  %v14629_v39 = vpop.f32.mrb[211].mxu0 }
 0x8de   : > { %v21248_v25 = vadd.f32 %v14621_v8, %v14485_v6  ;;  %v14488_v26 = vadd.f32 %v14487_v31, %v14486_v53  ;;  %v14630_v22 = vadd.f32 %v14629_v39, %v14628_v12 }
 0x8df   : > { %15378 = vmatmul.mubr.bf16.gmra.mrb[88].mxu1 %v21101_v15 }
 0x8e0   : > { %21891 = vst [vmem:[#allocation28_spill] sm:$0xff] %v21248_v25  ;;  %v21251_v17 = vadd.f32 %v14624_v18, %v14488_v26  ;;  %15381 = vmatprep.mubr.bf16.mxu1 %v21107_v35 }
 0x8e2   : > { %21892 = vst [vmem:[#allocation21_spill] sm:$0xff] %v21251_v17  ;;  %v14489_v3 = vpop.f32.mrb[16].mxu1  ;;  %v14631_v38 = vpop.f32.mrb[212].mxu0 }
 0x8e3   : > { %v14490_v0 = vpop.f32.mrb[17].mxu1  ;;  %v14632_v20 = vpop.f32.mrb[213].mxu0 }
 0x8e4   : > { %v14491_v63 = vadd.f32 %v14490_v0, %v14489_v3  ;;  %v14633_v55 = vadd.f32 %v14632_v20, %v14631_v38  ;;  %v14492_v2 = vpop.f32.mrb[18].mxu1  ;;  %v14634_v4 = vpop.f32.mrb[214].mxu0 }
 0x8e5   : > { %v14493_v41 = vpop.f32.mrb[19].mxu1  ;;  %v14635_v32 = vpop.f32.mrb[215].mxu0 }
 0x8e6   : > { %v21254_v8 = vadd.f32 %v14627_v16, %v14491_v63  ;;  %v14494_v31 = vadd.f32 %v14493_v41, %v14492_v2  ;;  %v14636_v39 = vadd.f32 %v14635_v32, %v14634_v4  ;;  %v16660_v16 = vld [vmem:[#allocation9 + $0x8c8] sm:$0xff]  }
 0x8e7   : > { %15382 = vmatmul.mubr.bf16.gmra.mrb[92].mxu1 %v21111_v50 }
 0x8e8   : > { %v21257_v18 = vadd.f32 %v14630_v22, %v14494_v31  ;;  %11849 = vmatprep.mubr.bf16.mxu1 %v20816_v27  ;;  %v16661_v27 = vld [vmem:[#allocation9 + $0x8d0] sm:$0xff]  }
 0x8ea   : > { %v14495_v6 = vpop.f32.mrb[20].mxu1  ;;  %v14637_v53 = vpop.f32.mrb[216].mxu0 }
 0x8eb   : > { %v14496_v12 = vpop.f32.mrb[21].mxu1  ;;  %v14638_v26 = vpop.f32.mrb[217].mxu0 }
 0x8ec   : > { %v14497_v3 = vadd.f32 %v14496_v12, %v14495_v6  ;;  %v14639_v38 = vadd.f32 %v14638_v26, %v14637_v53  ;;  %v14498_v0 = vpop.f32.mrb[22].mxu1  ;;  %v14640_v20 = vpop.f32.mrb[218].mxu0 }
 0x8ed   : > { %v14499_v17 = vpop.f32.mrb[23].mxu1  ;;  %v14641_v25 = vpop.f32.mrb[219].mxu0 }
 0x8ee   : > { %v21260_v63 = vadd.f32 %v14633_v55, %v14497_v3  ;;  %v14500_v32 = vadd.f32 %v14499_v17, %v14498_v0  ;;  %v14642_v41 = vadd.f32 %v14641_v25, %v14640_v20  ;;  %v16663_v0 = vld [vmem:[#allocation9 + $0x8e0] sm:$0xff]  }
 0x8ef   : > { %11850 = vmatmul.mubr.bf16.vlgmr.msra.gmra.mrb[128].mxu1 %v20796_v1  ;;  %v16662_v1 = vld [vmem:[#allocation9 + $0x8d8] sm:$0xff]  }
 0x8f0   : > { %v21263_v22 = vadd.f32 %v14636_v39, %v14500_v32  ;;  %15386 = vmatpush3.bf16.msra.mxu1 %v21233_v30  ;;  %11857 = vmatprep.mubr.bf16.mxu1 %v20875_v56 }
 0x8f1   : > { %15387 = vmatprep.subr.bf16.mxu1 %v16660_v16 }
 0x8f2   : > { %v14501_v2 = vpop.f32.mrb[24].mxu1  ;;  %v14643_v4 = vpop.f32.mrb[220].mxu0 }
 0x8f3   : > { %v14502_v31 = vpop.f32.mrb[25].mxu1  ;;  %v14644_v6 = vpop.f32.mrb[221].mxu0 }
 0x8f4   : > { %v14503_v53 = vadd.f32 %v14502_v31, %v14501_v2  ;;  %v14645_v12 = vadd.f32 %v14644_v6, %v14643_v4  ;;  %v14504_v55 = vpop.f32.mrb[26].mxu1  ;;  %v14646_v26 = vpop.f32.mrb[222].mxu0  ;;  %15388 = vmatpush3.bf16.msra.mxu1 %v16660_v16 }
 0x8f5   : > { %v14505_v25 = vpop.f32.mrb[27].mxu1  ;;  %v14647_v17 = vpop.f32.mrb[223].mxu0  ;;  %15389 = vmatprep.subr.bf16.mxu1 %v16661_v27 }
 0x8f6   : > { %v21267_v39 = vadd.f32 %v14639_v38, %v14503_v53  ;;  %v14506_v30 = vadd.f32 %v14505_v25, %v14504_v55  ;;  %v14648_v3 = vadd.f32 %v14647_v17, %v14646_v26  ;;  %v16665_v25 = vld [vmem:[#allocation9 + $0x8f0] sm:$0xff]  }
 0x8f7   : > { %11858 = vmatmul.mubr.bf16.gmra.mrb[132].mxu1 %v20842_v48  ;;  %v16664_v48 = vld [vmem:[#allocation9 + $0x8e8] sm:$0xff]  }
 0x8f8   : > { %v21270_v56 = vadd.f32 %v14642_v41, %v14506_v30  ;;  %11865 = vmatprep.mubr.bf16.mxu1 %v20893_v59  ;;  %15390 = vmatpush3.bf16.msra.mxu1 %v16661_v27 }
 0x8f9   : > { %15391 = vmatprep.subr.bf16.mxu1 %v16662_v1 }
 0x8fa   : > { %v14507_v20 = vpop.f32.mrb[28].mxu1  ;;  %v14649_v32 = vpop.f32.mrb[224].mxu0 }
 0x8fb   : > { %v14508_v16 = vpop.f32.mrb[29].mxu1  ;;  %v14650_v2 = vpop.f32.mrb[225].mxu0 }
 0x8fc   : > { %v14509_v4 = vadd.f32 %v14508_v16, %v14507_v20  ;;  %v14651_v31 = vadd.f32 %v14650_v2, %v14649_v32  ;;  %v14510_v6 = vpop.f32.mrb[30].mxu1  ;;  %v14652_v38 = vpop.f32.mrb[226].mxu0  ;;  %15392 = vmatpush3.bf16.msra.mxu1 %v16662_v1 }
 0x8fd   : > { %v14511_v53 = vpop.f32.mrb[31].mxu1  ;;  %v14653_v55 = vpop.f32.mrb[227].mxu0  ;;  %15393 = vmatprep.subr.bf16.mxu1 %v16663_v0 }
 0x8fe   : > { %v21273_v41 = vadd.f32 %v14645_v12, %v14509_v4  ;;  %v14512_v26 = vadd.f32 %v14511_v53, %v14510_v6  ;;  %v14654_v59 = vadd.f32 %v14653_v55, %v14652_v38 }
 0x8ff   : > { %11866 = vmatmul.mubr.bf16.gmra.mrb[136].mxu1 %v20845_v40  ;;  %v16666_v40 = vld [vmem:[#allocation9 + $0x8f8] sm:$0xff]  }
 0x900   : > { %v21276_v27 = vadd.f32 %v14648_v3, %v14512_v26  ;;  %11873 = vmatprep.mubr.bf16.mxu1 %v20929_v13  ;;  %15394 = vmatpush3.bf16.msra.mxu1 %v16663_v0 }
 0x901   : > { %15395 = vmatprep.subr.bf16.mxu1 %v16664_v48 }
 0x902   : > { %v14513_v17 = vpop.f32.mrb[32].mxu1  ;;  %v14655_v30 = vpop.f32.mrb[228].mxu0 }
 0x903   : > { %v14514_v1 = vpop.f32.mrb[33].mxu1  ;;  %v14656_v20 = vpop.f32.mrb[229].mxu0 }
 0x904   : > { %v14515_v32 = vadd.f32 %v14514_v1, %v14513_v17  ;;  %v14657_v16 = vadd.f32 %v14656_v20, %v14655_v30  ;;  %v14516_v2 = vpop.f32.mrb[34].mxu1  ;;  %v14658_v12 = vpop.f32.mrb[230].mxu0  ;;  %15396 = vmatpush3.bf16.msra.mxu1 %v16664_v48 }
 0x905   : > { %v14517_v4 = vpop.f32.mrb[35].mxu1  ;;  %v14659_v6 = vpop.f32.mrb[231].mxu0  ;;  %15397 = vmatprep.subr.bf16.mxu1 %v16665_v25 }
 0x906   : > { %v21279_v3 = vadd.f32 %v14651_v31, %v14515_v32  ;;  %v14518_v38 = vadd.f32 %v14517_v4, %v14516_v2  ;;  %v14660_v13 = vadd.f32 %v14659_v6, %v14658_v12 }
 0x907   : > { %11874 = vmatmul.mubr.bf16.gmra.mrb[140].mxu1 %v20884_v21 }
 0x908   : > { %v21282_v0 = vadd.f32 %v14654_v59, %v14518_v38  ;;  %11881 = vmatprep.mubr.bf16.mxu1 %v20949_v5  ;;  %15398 = vmatpush3.bf16.msra.mxu1 %v16665_v25 }
 0x909   : > { %15399 = vmatprep.subr.bf16.mxu1 %v16666_v40 }
 0x90a   : > { %v14519_v53 = vpop.f32.mrb[36].mxu1  ;;  %v14661_v55 = vpop.f32.mrb[232].mxu0 }
 0x90b   : > { %v14520_v26 = vpop.f32.mrb[37].mxu1  ;;  %v14662_v48 = vpop.f32.mrb[233].mxu0 }
 0x90c   : > { %v14521_v17 = vadd.f32 %v14520_v26, %v14519_v53  ;;  %v14663_v30 = vadd.f32 %v14662_v48, %v14661_v55  ;;  %v14522_v1 = vpop.f32.mrb[38].mxu1  ;;  %v14664_v20 = vpop.f32.mrb[234].mxu0  ;;  %15400 = vmatpush3.bf16.msra.mxu1 %v16666_v40 }
 0x90d   : > { %v14523_v31 = vpop.f32.mrb[39].mxu1  ;;  %v14665_v32 = vpop.f32.mrb[235].mxu0 }
 0x90e   : > { %v21285_v2 = vadd.f32 %v14657_v16, %v14521_v17  ;;  %v14524_v21 = vadd.f32 %v14523_v31, %v14522_v1  ;;  %v14666_v59 = vadd.f32 %v14665_v32, %v14664_v20  ;;  %v10071_v16 = vld [vmem:[#allocation2 + $0xcc] sm:$0xe] }
 0x90f   : > { %11882 = vmatmul.mubr.bf16.gmra.mrb[144].mxu1 %v20910_v36  ;;  %v21294_v36 = vld [vmem:[#allocation2 + $0xd0] sm:$0xf] }
 0x910   : > { %v21288_v5 = vadd.f32 %v14660_v13, %v14524_v21  ;;  %11889 = vmatprep.mubr.bf16.mxu1 %v20979_v33  ;;  %v13016_v13 = vcombine.low %v10071_v16, %v21294_v36  ;;  %v21300_v21 = vld [vmem:[#allocation2 + $0xd4] ss:$0 sps:$4 sm:$0x11]  }
 0x912   : > { %v14525_v25 = vpop.f32.mrb[40].mxu1  ;;  %v14667_v12 = vpop.f32.mrb[236].mxu0 }
 0x913   : > { %v14526_v4 = vpop.f32.mrb[41].mxu1  ;;  %v14668_v6 = vpop.f32.mrb[237].mxu0 }
 0x914   : > { %v14527_v38 = vadd.f32 %v14526_v4, %v14525_v25  ;;  %v14669_v53 = vadd.f32 %v14668_v6, %v14667_v12  ;;  %v14528_v55 = vpop.f32.mrb[42].mxu1  ;;  %v14670_v40 = vpop.f32.mrb[238].mxu0 }
 0x915   : > { %v14529_v26 = vpop.f32.mrb[43].mxu1  ;;  %v14671_v48 = vpop.f32.mrb[239].mxu0 }
 0x916   : > { %v21291_v17 = vadd.f32 %v14663_v30, %v14527_v38  ;;  %v14530_v1 = vadd.f32 %v14529_v26, %v14528_v55  ;;  %v14672_v20 = vadd.f32 %v14671_v48, %v14670_v40  ;;  %v10573_v55 = vrot.slane %v13016_v13, 1 }
 0x917   : > { %11890 = vmatmul.mubr.bf16.gmra.mrb[148].mxu1 %v20920_v37  ;;  %v10574_v37 = vrot.slane %v21300_v21, 1 }
 0x918   : > { %21893 = vst [vmem:[#allocation32_spill] sm:$0xff] %v21291_v17  ;;  %v21296_v33 = vadd.f32 %v14666_v59, %v14530_v1  ;;  %11897 = vmatprep.mubr.bf16.mxu1 %v21014_v7 }
 0x919   : > { %v21310_v1 = vsel %vm1612_vm9, %v10573_v55, %v10574_v37 }
 0x91a   : > { %21894 = vst [vmem:[#allocation25_spill] sm:$0xff] %v21296_v33  ;;  %v14531_v31 = vpop.f32.mrb[44].mxu1  ;;  %v14673_v32 = vpop.f32.mrb[240].mxu0 }
 0x91b   : > { %v14532_v25 = vpop.f32.mrb[45].mxu1  ;;  %v14674_v12 = vpop.f32.mrb[241].mxu0 }
 0x91c   : > { %v14533_v30 = vadd.f32 %v14532_v25, %v14531_v31  ;;  %v14675_v4 = vadd.f32 %v14674_v12, %v14673_v32  ;;  %v14534_v6 = vpop.f32.mrb[46].mxu1  ;;  %v14676_v38 = vpop.f32.mrb[242].mxu0 }
 0x91d   : > { %v14535_v40 = vpop.f32.mrb[47].mxu1  ;;  %v14677_v59 = vpop.f32.mrb[243].mxu0 }
 0x91e   : > { %v21303_v26 = vadd.f32 %v14669_v53, %v14533_v30  ;;  %v14536_v7 = vadd.f32 %v14535_v40, %v14534_v6  ;;  %v14678_v48 = vadd.f32 %v14677_v59, %v14676_v38 }
 0x91f   : > { %11898 = vmatmul.mubr.bf16.gmra.mrb[152].mxu1 %v20943_v51 }
 0x920   : > { %v21306_v16 = vadd.f32 %v14672_v20, %v14536_v7  ;;  %11905 = vmatprep.mubr.bf16.mxu1 %v21080_v47 }
 0x922   : > { %21895 = vst [vmem:[#allocation27_spill] sm:$0xff] %v21306_v16  ;;  %v14537_v31 = vpop.f32.mrb[48].mxu1  ;;  %v14679_v32 = vpop.f32.mrb[244].mxu0 }
 0x923   : > { %v14538_v13 = vpop.f32.mrb[49].mxu1  ;;  %v14680_v25 = vpop.f32.mrb[245].mxu0 }
 0x924   : > { %v14539_v12 = vadd.f32 %v14538_v13, %v14537_v31  ;;  %v14681_v33 = vadd.f32 %v14680_v25, %v14679_v32  ;;  %v14540_v17 = vpop.f32.mrb[50].mxu1  ;;  %v14682_v53 = vpop.f32.mrb[246].mxu0 }
 0x925   : > { %v14541_v30 = vpop.f32.mrb[51].mxu1  ;;  %v14683_v6 = vpop.f32.mrb[247].mxu0 }
 0x926   : > { %v21312_v38 = vadd.f32 %v14675_v4, %v14539_v12  ;;  %v14542_v51 = vadd.f32 %v14541_v30, %v14540_v17  ;;  %v14684_v20 = vadd.f32 %v14683_v6, %v14682_v53 }
 0x927   : > { %11906 = vmatmul.mubr.bf16.gmra.mrb[156].mxu1 %v20964_v52 }
 0x928   : > { %v21315_v47 = vadd.f32 %v14678_v48, %v14542_v51  ;;  %11913 = vmatprep.mubr.bf16.mxu1 %v21119_v19 }
 0x92a   : > { %v14543_v55 = vpop.f32.mrb[52].mxu1  ;;  %v14685_v37 = vpop.f32.mrb[248].mxu0 }
 0x92b   : > { %v14544_v40 = vpop.f32.mrb[53].mxu1  ;;  %v14686_v59 = vpop.f32.mrb[249].mxu0 }
 0x92c   : > { %v14545_v7 = vadd.f32 %v14544_v40, %v14543_v55  ;;  %v14687_v31 = vadd.f32 %v14686_v59, %v14685_v37  ;;  %v14546_v32 = vpop.f32.mrb[54].mxu1  ;;  %v14688_v13 = vpop.f32.mrb[250].mxu0 }
 0x92d   : > { %v14547_v25 = vpop.f32.mrb[55].mxu1  ;;  %v14689_v16 = vpop.f32.mrb[251].mxu0 }
 0x92e   : > { %v21318_v4 = vadd.f32 %v14681_v33, %v14545_v7  ;;  %v14548_v17 = vadd.f32 %v14547_v25, %v14546_v32  ;;  %v14690_v12 = vadd.f32 %v14689_v16, %v14688_v13 }
 0x92f   : > { %11914 = vmatmul.mubr.bf16.gmra.mrb[160].mxu1 %v20974_v23 }
 0x930   : > { %v21321_v52 = vadd.f32 %v14684_v20, %v14548_v17  ;;  %11921 = vmatprep.mubr.bf16.mxu1 %v21132_v43 }
 0x932   : > { %v14549_v19 = vpop.f32.mrb[56].mxu1  ;;  %v14691_v48 = vpop.f32.mrb[252].mxu0 }
 0x933   : > { %v14550_v53 = vpop.f32.mrb[57].mxu1  ;;  %v14692_v30 = vpop.f32.mrb[253].mxu0 }
 0x934   : > { %v14551_v6 = vadd.f32 %v14550_v53, %v14549_v19  ;;  %v14693_v51 = vadd.f32 %v14692_v30, %v14691_v48  ;;  %v14552_v55 = vpop.f32.mrb[58].mxu1  ;;  %v14694_v37 = vpop.f32.mrb[254].mxu0 }
 0x935   : > { %v14553_v40 = vpop.f32.mrb[59].mxu1  ;;  %v14695_v59 = vpop.f32.mrb[255].mxu0 }
 0x936   : > { %v21324_v33 = vadd.f32 %v14687_v31, %v14551_v6  ;;  %v14554_v7 = vadd.f32 %v14553_v40, %v14552_v55  ;;  %v14696_v16 = vadd.f32 %v14695_v59, %v14694_v37  ;;  %v21903_v55 = vld [vmem:[#allocation23_spill] sm:$0xff] }
 0x937   : > { %11922 = vmatmul.mubr.bf16.gmra.mrb[164].mxu1 %v21003_v58  ;;  %v10034_v58 = vld [vmem:[#allocation2 + $0xcc] sm:$0xf] }
 0x938   : > { %v21327_v23 = vadd.f32 %v14690_v12, %v14554_v7  ;;  %11929 = vmatprep.mubr.bf16.mxu1 %v21147_v14  ;;  %v12980_v14 = vcombine.low %v10034_v58, %v21294_v36 }
 0x93a   : > { %v14555_v43 = vpop.f32.mrb[60].mxu1  ;;  %v10441_v12 = vshll.u32 %v12980_v14, 16  ;;  %v10439_v48 = vshrl.u32 %v12980_v14, 16 }
 0x93b   : > { %v14556_v20 = vpop.f32.mrb[61].mxu1 }
 0x93c   : > { %v14557_v32 = vadd.f32 %v14556_v20, %v14555_v43  ;;  %v14558_v13 = vpop.f32.mrb[62].mxu1  ;;  %v10443_v53 = vrot.slane %v10441_v12, 1 }
 0x93d   : > { %v14559_v25 = vpop.f32.mrb[63].mxu1 }
 0x93e   : > { %v21330_v17 = vadd.f32 %v14693_v51, %v14557_v32  ;;  %v14560_v19 = vadd.f32 %v14559_v25, %v14558_v13  ;;  %v21902_v51 = vld [vmem:[#allocation22_spill] sm:$0xff]  ;;  %v21905_v25 = vld [vmem:[#allocation20_spill] sm:$0xff] }
 0x93f   : > { %11930 = vmatmul.mubr.bf16.gmra.mrb[168].mxu1 %v21122_v42  ;;  %v10446_v42 = vshll.u32 %v21300_v21, 16  ;;  %v21904_v32 = vld [vmem:[#allocation34_spill] sm:$0xff] }
 0x940   : > { %v21333_v31 = vadd.f32 %v14696_v16, %v14560_v19  ;;  %11937 = vmatprep.mubr.bf16.mxu1 %v21162_v49  ;;  %v10444_v49 = vor.u32 %v10443_v53, %v10439_v48 }
 0x947   : > { %11938 = vmatmul.mubr.bf16.gmra.mrb[172].mxu1 %v21135_v29  ;;  %v10448_v29 = vrot.slane %v10446_v42, 1 }
 0x948   : > { %11945 = vmatprep.mubr.bf16.mxu1 %v21175_v44 }
 0x949   : > { %v10449_v44 = vsel %vm1323_vm3, %v10444_v49, %v10448_v29  ;;  %v21906_v49 = vld [vmem:[#allocation28_spill] sm:$0xff] }
 0x94f   : > { %11946 = vmatmul.mubr.bf16.gmra.mrb[176].mxu1 %v21150_v10  ;;  %v21896_v10 = vld [vmem:[#allocation29_spill] sm:$0xff] }
 0x950   : > { %11953 = vmatprep.mubr.bf16.mxu1 %v21188_v24  ;;  %v21898_v24 = vld [vmem:[#allocation30_spill] sm:$0xff] }
 0x957   : > { %11954 = vmatmul.mubr.bf16.gmra.mrb[180].mxu1 %v21165_v34  ;;  %v21897_v34 = vld [vmem:[#allocation24_spill] sm:$0xff] }
 0x958   : > { %11961 = vmatprep.mubr.bf16.mxu1 %v21197_v57  ;;  %v21900_v57 = vld [vmem:[#allocation37_spill] sm:$0xff] }
 0x95f   : > { %11962 = vmatmul.mubr.bf16.gmra.mrb[184].mxu1 %v21178_v11 }
 0x960   : > { %11969 = vmatprep.mubr.bf16.mxu1 %v10449_v44  ;;  %v21907_v44 = vld [vmem:[#allocation21_spill] sm:$0xff] }
 0x967   : > { %11970 = vmatmul.mubr.bf16.gmra.mrb[188].mxu1 %v12980_v14 }
 0x968   : > { %15401 = vmatprep.mubr.bf16.mxu1 %v20819_v46  ;;  %v21899_v46 = vld [vmem:[#allocation31_spill] sm:$0xff] }
 0x96f   : > { %15402 = vmatmul.mubr.bf16.vlgmr.msra.gmra.mrb[64].mxu1 %v21026_v60 }
 0x970   : > { %15405 = vmatprep.mubr.bf16.mxu1 %v21034_v62 }
 0x977   : > { %15406 = vmatmul.mubr.bf16.gmra.mrb[68].mxu1 %v21037_v28 }
 0x978   : > { %15409 = vmatprep.mubr.bf16.mxu1 %v21896_v10 }
 0x97f   : > { %15410 = vmatmul.mubr.bf16.gmra.mrb[72].mxu1 %v21897_v34 }
 0x980   : > { %15413 = vmatprep.mubr.bf16.mxu1 %v21898_v24 }
 0x987   : > { %15414 = vmatmul.mubr.bf16.gmra.mrb[76].mxu1 %v21074_v9 }
 0x988   : > { %15417 = vmatprep.mubr.bf16.mxu1 %v21085_v45 }
 0x98f   : > { %15418 = vmatmul.mubr.bf16.gmra.mrb[80].mxu1 %v21088_v54 }
 0x990   : > { %15421 = vmatprep.mubr.bf16.mxu1 %v21093_v61  ;;  %v21901_v61 = vld [vmem:[#allocation33_spill] sm:$0xff] }
 0x997   : > { %15422 = vmatmul.mubr.bf16.gmra.mrb[84].mxu1 %v21101_v15 }
 0x998   : > { %15425 = vmatprep.mubr.bf16.mxu1 %v21107_v35 }
 0x99f   : > { %15426 = vmatmul.mubr.bf16.gmra.mrb[88].mxu1 %v21111_v50 }
 0x9a0   : > { %15429 = vmatprep.mubr.bf16.mxu1 %v21899_v46 }
 0x9a7   : > { %15430 = vmatmul.mubr.bf16.gmra.mrb[92].mxu1 %v21310_v1 }
 0x9c2   : > { %v14737_v60 = vpop.f32.mrb[128].mxu1 }
 0x9c3   : > { %v14738_v62 = vpop.f32.mrb[129].mxu1 }
 0x9c4   : > { %v14739_v28 = vadd.f32 %v14738_v62, %v14737_v60  ;;  %v14740_v9 = vpop.f32.mrb[130].mxu1 }
 0x9c5   : > { %v14741_v11 = vpop.f32.mrb[131].mxu1 }
 0x9c6   : > { %v14742_v45 = vadd.f32 %v14741_v11, %v14740_v9  ;;  %v21363_v54 = vadd.f32 %v21900_v57, %v14739_v28 }
 0x9c8   : > { %v21366_v36 = vadd.f32 %v21901_v61, %v14742_v45 }
 0x9ca   : > { %v14743_v15 = vpop.f32.mrb[132].mxu1 }
 0x9cb   : > { %v14744_v35 = vpop.f32.mrb[133].mxu1 }
 0x9cc   : > { %v14745_v21 = vadd.f32 %v14744_v35, %v14743_v15  ;;  %v14746_v50 = vpop.f32.mrb[134].mxu1 }
 0x9cd   : > { %v14747_v30 = vpop.f32.mrb[135].mxu1 }
 0x9ce   : > { %v14748_v6 = vadd.f32 %v14747_v30, %v14746_v50  ;;  %v21369_v1 = vadd.f32 %v21902_v51, %v14745_v21 }
 0x9d0   : > { %v21372_v37 = vadd.f32 %v21903_v55, %v14748_v6 }
 0x9d2   : > { %v14749_v40 = vpop.f32.mrb[136].mxu1 }
 0x9d3   : > { %v14750_v59 = vpop.f32.mrb[137].mxu1 }
 0x9d4   : > { %v14751_v7 = vadd.f32 %v14750_v59, %v14749_v40  ;;  %v14752_v16 = vpop.f32.mrb[138].mxu1 }
 0x9d5   : > { %v14753_v43 = vpop.f32.mrb[139].mxu1 }
 0x9d6   : > { %v14754_v20 = vadd.f32 %v14753_v43, %v14752_v16  ;;  %v21375_v13 = vadd.f32 %v21904_v32, %v14751_v7 }
 0x9d8   : > { %v21378_v19 = vadd.f32 %v21905_v25, %v14754_v20 }
 0x9da   : > { %v14755_v58 = vpop.f32.mrb[140].mxu1 }
 0x9db   : > { %v14756_v14 = vpop.f32.mrb[141].mxu1 }
 0x9dc   : > { %v14757_v12 = vadd.f32 %v14756_v14, %v14755_v58  ;;  %v14758_v48 = vpop.f32.mrb[142].mxu1 }
 0x9dd   : > { %v14759_v53 = vpop.f32.mrb[143].mxu1 }
 0x9de   : > { %v14760_v42 = vadd.f32 %v14759_v53, %v14758_v48  ;;  %v21381_v29 = vadd.f32 %v21906_v49, %v14757_v12 }
 0x9e0   : > { %v21384_v10 = vadd.f32 %v21907_v44, %v14760_v42 }
 0x9e2   : > { %v14761_v34 = vpop.f32.mrb[144].mxu1 }
 0x9e3   : > { %v14762_v24 = vpop.f32.mrb[145].mxu1 }
 0x9e4   : > { %v14763_v46 = vadd.f32 %v14762_v24, %v14761_v34  ;;  %v14764_v60 = vpop.f32.mrb[146].mxu1 }
 0x9e5   : > { %v14765_v62 = vpop.f32.mrb[147].mxu1 }
 0x9e6   : > { %v14766_v28 = vadd.f32 %v14765_v62, %v14764_v60  ;;  %v21387_v9 = vadd.f32 %v21254_v8, %v14763_v46 }
 0x9e8   : > { %v21390_v11 = vadd.f32 %v21257_v18, %v14766_v28 }
 0x9ea   : > { %v14767_v45 = vpop.f32.mrb[148].mxu1 }
 0x9eb   : > { %v14768_v57 = vpop.f32.mrb[149].mxu1 }
 0x9ec   : > { %v14769_v61 = vadd.f32 %v14768_v57, %v14767_v45  ;;  %v14770_v15 = vpop.f32.mrb[150].mxu1 }
 0x9ed   : > { %v14771_v35 = vpop.f32.mrb[151].mxu1 }
 0x9ee   : > { %v14772_v21 = vadd.f32 %v14771_v35, %v14770_v15  ;;  %v21393_v50 = vadd.f32 %v21260_v63, %v14769_v61 }
 0x9f0   : > { %v21396_v30 = vadd.f32 %v21263_v22, %v14772_v21  ;;  %v21909_v21 = vld [vmem:[#allocation25_spill] sm:$0xff] }
 0x9f2   : > { %v14773_v6 = vpop.f32.mrb[152].mxu1 }
 0x9f3   : > { %v14774_v51 = vpop.f32.mrb[153].mxu1 }
 0x9f4   : > { %v14775_v55 = vadd.f32 %v14774_v51, %v14773_v6  ;;  %v14776_v8 = vpop.f32.mrb[154].mxu1 }
 0x9f5   : > { %v14777_v40 = vpop.f32.mrb[155].mxu1 }
 0x9f6   : > { %v14778_v59 = vadd.f32 %v14777_v40, %v14776_v8  ;;  %v21399_v18 = vadd.f32 %v21267_v39, %v14775_v55 }
 0x9f8   : > { %v21402_v7 = vadd.f32 %v21270_v56, %v14778_v59 }
 0x9fa   : > { %v14779_v16 = vpop.f32.mrb[156].mxu1 }
 0x9fb   : > { %v14780_v43 = vpop.f32.mrb[157].mxu1 }
 0x9fc   : > { %v14781_v20 = vadd.f32 %v14780_v43, %v14779_v16  ;;  %v14782_v63 = vpop.f32.mrb[158].mxu1  ;;  %v21910_v16 = vld [vmem:[#allocation27_spill] sm:$0xff] }
 0x9fd   : > { %v14783_v32 = vpop.f32.mrb[159].mxu1 }
 0x9fe   : > { %v14784_v25 = vadd.f32 %v14783_v32, %v14782_v63  ;;  %v21405_v22 = vadd.f32 %v21273_v41, %v14781_v20 }
 0xa00   : > { %v21408_v58 = vadd.f32 %v21276_v27, %v14784_v25 }
 0xa02   : > { %v14785_v14 = vpop.f32.mrb[160].mxu1 }
 0xa03   : > { %v14786_v12 = vpop.f32.mrb[161].mxu1 }
 0xa04   : > { %v14787_v48 = vadd.f32 %v14786_v12, %v14785_v14  ;;  %v14788_v39 = vpop.f32.mrb[162].mxu1 }
 0xa05   : > { %v14789_v53 = vpop.f32.mrb[163].mxu1 }
 0xa06   : > { %v14790_v42 = vadd.f32 %v14789_v53, %v14788_v39  ;;  %v21411_v56 = vadd.f32 %v21279_v3, %v14787_v48 }
 0xa08   : > { %v21414_v49 = vadd.f32 %v21282_v0, %v14790_v42  ;;  %v21908_v0 = vld [vmem:[#allocation32_spill] sm:$0xff] }
 0xa0a   : > { %v14791_v44 = vpop.f32.mrb[164].mxu1 }
 0xa0b   : > { %v14792_v34 = vpop.f32.mrb[165].mxu1 }
 0xa0c   : > { %v14793_v24 = vadd.f32 %v14792_v34, %v14791_v44  ;;  %v14794_v41 = vpop.f32.mrb[166].mxu1 }
 0xa0d   : > { %v14795_v46 = vpop.f32.mrb[167].mxu1 }
 0xa0e   : > { %v14796_v60 = vadd.f32 %v14795_v46, %v14794_v41  ;;  %v21417_v27 = vadd.f32 %v21285_v2, %v14793_v24 }
 0xa10   : > { %v21420_v62 = vadd.f32 %v21288_v5, %v14796_v60 }
 0xa12   : > { %v14797_v28 = vpop.f32.mrb[168].mxu1 }
 0xa13   : > { %v14798_v45 = vpop.f32.mrb[169].mxu1 }
 0xa14   : > { %v14799_v57 = vadd.f32 %v14798_v45, %v14797_v28  ;;  %v14800_v3 = vpop.f32.mrb[170].mxu1 }
 0xa15   : > { %v14801_v61 = vpop.f32.mrb[171].mxu1 }
 0xa16   : > { %v14802_v15 = vadd.f32 %v14801_v61, %v14800_v3  ;;  %v21423_v35 = vadd.f32 %v21908_v0, %v14799_v57 }
 0xa18   : > { %v21426_v6 = vadd.f32 %v21909_v21, %v14802_v15 }
 0xa1a   : > { %v14803_v51 = vpop.f32.mrb[172].mxu1 }
 0xa1b   : > { %v14804_v55 = vpop.f32.mrb[173].mxu1 }
 0xa1c   : > { %v14805_v8 = vadd.f32 %v14804_v55, %v14803_v51  ;;  %v14806_v2 = vpop.f32.mrb[174].mxu1 }
 0xa1d   : > { %v14807_v40 = vpop.f32.mrb[175].mxu1 }
 0xa1e   : > { %v14808_v59 = vadd.f32 %v14807_v40, %v14806_v2  ;;  %v21429_v5 = vadd.f32 %v21303_v26, %v14805_v8 }
 0xa20   : > { %v21432_v43 = vadd.f32 %v21910_v16, %v14808_v59 }
 0xa22   : > { %v14809_v20 = vpop.f32.mrb[176].mxu1 }
 0xa23   : > { %v14810_v63 = vpop.f32.mrb[177].mxu1 }
 0xa24   : > { %v14811_v32 = vadd.f32 %v14810_v63, %v14809_v20  ;;  %v14812_v25 = vpop.f32.mrb[178].mxu1 }
 0xa25   : > { %v14813_v14 = vpop.f32.mrb[179].mxu1 }
 0xa26   : > { %v14814_v12 = vadd.f32 %v14813_v14, %v14812_v25  ;;  %v21435_v48 = vadd.f32 %v21312_v38, %v14811_v32  ;;  %v12208_v14 = vld [vmem:[%s17190_s24] sm:$0xff] }
 0xa28   : > { %v21438_v39 = vadd.f32 %v21315_v47, %v14814_v12 }
 0xa2a   : > { %v14815_v53 = vpop.f32.mrb[180].mxu1 }
 0xa2b   : > { %v14816_v42 = vpop.f32.mrb[181].mxu1 }
 0xa2c   : > { %v14817_v44 = vadd.f32 %v14816_v42, %v14815_v53  ;;  %v14818_v26 = vpop.f32.mrb[182].mxu1  ;;  %v12211_v53 = vld [vmem:[%s17190_s24 + $0x18] sm:$0xff] }
 0xa2d   : > { %v14819_v34 = vpop.f32.mrb[183].mxu1 }
 0xa2e   : > { %v14820_v24 = vadd.f32 %v14819_v34, %v14818_v26  ;;  %v21441_v41 = vadd.f32 %v21318_v4, %v14817_v44 }
 0xa30   : > { %v21444_v46 = vadd.f32 %v21321_v52, %v14820_v24 }
 0xa32   : > { %v14821_v60 = vpop.f32.mrb[184].mxu1 }
 0xa33   : > { %v14822_v28 = vpop.f32.mrb[185].mxu1 }
 0xa34   : > { %v14823_v45 = vadd.f32 %v14822_v28, %v14821_v60  ;;  %v14824_v38 = vpop.f32.mrb[186].mxu1 }
 0xa35   : > { %v14825_v57 = vpop.f32.mrb[187].mxu1 }
 0xa36   : > { %v14826_v3 = vadd.f32 %v14825_v57, %v14824_v38  ;;  %v21447_v47 = vadd.f32 %v21324_v33, %v14823_v45  ;;  %v21458_v33 = vld [vmem:[#allocation11 + $0x3] ss:$0 sm:$0xff] }
 0xa38   : > { %v21450_v61 = vadd.f32 %v21327_v23, %v14826_v3  ;;  %v12214_v3 = vld [vmem:[%s17190_s24 + $0x30] sm:$0xff] }
 0xa3a   : > { %v14827_v15 = vpop.f32.mrb[188].mxu1 }
 0xa3b   : > { %v14828_v0 = vpop.f32.mrb[189].mxu1 }
 0xa3c   : > { %v14829_v4 = vadd.f32 %v14828_v0, %v14827_v15  ;;  %v14830_v21 = vpop.f32.mrb[190].mxu1 }
 0xa3d   : > { %v14831_v51 = vpop.f32.mrb[191].mxu1 }
 0xa3e   : > { %v14832_v52 = vadd.f32 %v14831_v51, %v14830_v21  ;;  %v21453_v55 = vadd.f32 %v21330_v17, %v14829_v4  ;;  %v12212_v4 = vld [vmem:[%s17190_s24 + $0x20] sm:$0xff]  ;;  %v12215_v51 = vld [vmem:[%s17190_s24 + $0x38] sm:$0xff] }
 0xa40   : > { %v21456_v8 = vadd.f32 %v21333_v31, %v14832_v52  ;;  %v12210_v31 = vld [vmem:[%s17190_s24 + $0x10] sm:$0xff] }
 0xa42   : > { %v15403_v2 = vpop.f32.mrb[64].mxu1 }
 0xa43   : > { %v15755_v23 = vadd.f32 %v21369_v1, %v15403_v2  ;;  %v12012_v40 = vpop.f32.mrb[65].mxu1 }
 0xa44   : > { %v15758_v59 = vadd.f32 %v21363_v54, %v12012_v40  ;;  %v15404_v16 = vpop.f32.mrb[66].mxu1 }
 0xa45   : > { %v12178_v20 = vadd.f32 %v15755_v23, %v21458_v33  ;;  %v15761_v17 = vadd.f32 %v21372_v37, %v15404_v16  ;;  %v12015_v63 = vpop.f32.mrb[67].mxu1  ;;  %v12209_v37 = vld [vmem:[%s17190_s24 + $0x8] sm:$0xff] }
 0xa46   : > { %v12176_v32 = vadd.f32 %v15758_v59, %v21458_v33  ;;  %v15764_v25 = vadd.f32 %v21366_v36, %v12015_v63 }
 0xa47   : > { %v12242_v1 = vadd.f32 %v12210_v31, %v12178_v20  ;;  %v12179_v12 = vadd.f32 %v15761_v17, %v21458_v33 }
 0xa48   : > { %v12240_v54 = vadd.f32 %v12208_v14, %v12176_v32  ;;  %v12177_v42 = vadd.f32 %v15764_v25, %v21458_v33  ;;  %v12218_v32 = vld [vmem:[%s17190_s24 + $0x50] sm:$0xff]  ;;  %v12216_v14 = vld [vmem:[%s17190_s24 + $0x40] sm:$0xff] }
 0xa49   : > { %12274 = vst [vmem:[%s17190_s24 + $0x10] sm:$0xff] %v12242_v1  ;;  %v12243_v44 = vadd.f32 %v12211_v53, %v12179_v12 }
 0xa4a   : > { %12272 = vst [vmem:[%s17190_s24] sm:$0xff] %v12240_v54  ;;  %v12241_v26 = vadd.f32 %v12209_v37, %v12177_v42  ;;  %v15407_v34 = vpop.f32.mrb[68].mxu1  ;;  %v12219_v54 = vld [vmem:[%s17190_s24 + $0x58] sm:$0xff] }
 0xa4b   : > { %12275 = vst [vmem:[%s17190_s24 + $0x18] sm:$0xff] %v12243_v44  ;;  %v15767_v36 = vadd.f32 %v21381_v29, %v15407_v34  ;;  %v12028_v24 = vpop.f32.mrb[69].mxu1 }
 0xa4c   : > { %12273 = vst [vmem:[%s17190_s24 + $0x8] sm:$0xff] %v12241_v26  ;;  %v15770_v60 = vadd.f32 %v21375_v13, %v12028_v24  ;;  %v15408_v28 = vpop.f32.mrb[70].mxu1 }
 0xa4d   : > { %v12182_v45 = vadd.f32 %v15767_v36, %v21458_v33  ;;  %v15773_v38 = vadd.f32 %v21384_v10, %v15408_v28  ;;  %v12031_v57 = vpop.f32.mrb[71].mxu1  ;;  %v12213_v10 = vld [vmem:[%s17190_s24 + $0x28] sm:$0xff] }
 0xa4e   : > { %v12180_v15 = vadd.f32 %v15770_v60, %v21458_v33  ;;  %v15776_v0 = vadd.f32 %v21378_v19, %v12031_v57 }
 0xa4f   : > { %v12246_v29 = vadd.f32 %v12214_v3, %v12182_v45  ;;  %v12183_v21 = vadd.f32 %v15773_v38, %v21458_v33  ;;  %v12222_v45 = vld [vmem:[%s17190_s24 + $0x70] sm:$0xff]  ;;  %v12220_v3 = vld [vmem:[%s17190_s24 + $0x60] sm:$0xff] }
 0xa50   : > { %v12244_v13 = vadd.f32 %v12212_v4, %v12180_v15  ;;  %v12181_v52 = vadd.f32 %v15776_v0, %v21458_v33  ;;  %v12223_v0 = vld [vmem:[%s17190_s24 + $0x78] sm:$0xff] }
 0xa51   : > { %12278 = vst [vmem:[%s17190_s24 + $0x30] sm:$0xff] %v12246_v29  ;;  %v12247_v2 = vadd.f32 %v12215_v51, %v12183_v21 }
 0xa52   : > { %12276 = vst [vmem:[%s17190_s24 + $0x20] sm:$0xff] %v12244_v13  ;;  %v12245_v23 = vadd.f32 %v12213_v10, %v12181_v52  ;;  %v15411_v40 = vpop.f32.mrb[72].mxu1 }
 0xa53   : > { %12279 = vst [vmem:[%s17190_s24 + $0x38] sm:$0xff] %v12247_v2  ;;  %v15779_v19 = vadd.f32 %v21393_v50, %v15411_v40  ;;  %v12044_v59 = vpop.f32.mrb[73].mxu1 }
 0xa54   : > { %12277 = vst [vmem:[%s17190_s24 + $0x28] sm:$0xff] %v12245_v23  ;;  %v15782_v16 = vadd.f32 %v21387_v9, %v12044_v59  ;;  %v15412_v20 = vpop.f32.mrb[74].mxu1 }
 0xa55   : > { %v12186_v17 = vadd.f32 %v15779_v19, %v21458_v33  ;;  %v15785_v63 = vadd.f32 %v21396_v30, %v15412_v20  ;;  %v12047_v31 = vpop.f32.mrb[75].mxu1  ;;  %v12217_v30 = vld [vmem:[%s17190_s24 + $0x48] sm:$0xff]  ;;  %v12226_v19 = vld [vmem:[%s17190_s24 + $0x90] sm:$0xff]  ;;  %v12224_v20 = vld [vmem:[%s17190_s24 + $0x80] sm:$0xff] }
 0xa56   : > { %v12184_v25 = vadd.f32 %v15782_v16, %v21458_v33  ;;  %v15788_v1 = vadd.f32 %v21390_v11, %v12047_v31 }
 0xa57   : > { %v12250_v50 = vadd.f32 %v12218_v32, %v12186_v17  ;;  %v12187_v12 = vadd.f32 %v15785_v63, %v21458_v33  ;;  %v12227_v63 = vld [vmem:[%s17190_s24 + $0x98] sm:$0xff] }
 0xa58   : > { %v12248_v9 = vadd.f32 %v12216_v14, %v12184_v25  ;;  %v12185_v53 = vadd.f32 %v15788_v1, %v21458_v33 }
 0xa59   : > { %12282 = vst [vmem:[%s17190_s24 + $0x50] sm:$0xff] %v12250_v50  ;;  %v12251_v42 = vadd.f32 %v12219_v54, %v12187_v12 }
 0xa5a   : > { %12280 = vst [vmem:[%s17190_s24 + $0x40] sm:$0xff] %v12248_v9  ;;  %v12249_v44 = vadd.f32 %v12217_v30, %v12185_v53  ;;  %v15415_v37 = vpop.f32.mrb[76].mxu1 }
 0xa5b   : > { %12283 = vst [vmem:[%s17190_s24 + $0x58] sm:$0xff] %v12251_v42  ;;  %v15791_v11 = vadd.f32 %v21405_v22, %v15415_v37  ;;  %v12060_v26 = vpop.f32.mrb[77].mxu1  ;;  %v12230_v42 = vld [vmem:[%s17190_s24 + $0xb0] sm:$0xff]  ;;  %v12228_v37 = vld [vmem:[%s17190_s24 + $0xa0] sm:$0xff] }
 0xa5c   : > { %12281 = vst [vmem:[%s17190_s24 + $0x48] sm:$0xff] %v12249_v44  ;;  %v15794_v34 = vadd.f32 %v21399_v18, %v12060_v26  ;;  %v15416_v36 = vpop.f32.mrb[78].mxu1  ;;  %v12231_v26 = vld [vmem:[%s17190_s24 + $0xb8] sm:$0xff] }
 0xa5d   : > { %v12190_v24 = vadd.f32 %v15791_v11, %v21458_v33  ;;  %v15797_v60 = vadd.f32 %v21408_v58, %v15416_v36  ;;  %v12063_v28 = vpop.f32.mrb[79].mxu1  ;;  %v12221_v58 = vld [vmem:[%s17190_s24 + $0x68] sm:$0xff] }
 0xa5e   : > { %v12188_v38 = vadd.f32 %v15794_v34, %v21458_v33  ;;  %v15800_v57 = vadd.f32 %v21402_v7, %v12063_v28 }
 0xa5f   : > { %v12254_v22 = vadd.f32 %v12222_v45, %v12190_v24  ;;  %v12191_v15 = vadd.f32 %v15797_v60, %v21458_v33 }
 0xa60   : > { %v12252_v18 = vadd.f32 %v12220_v3, %v12188_v38  ;;  %v12189_v29 = vadd.f32 %v15800_v57, %v21458_v33 }
 0xa61   : > { %12286 = vst [vmem:[%s17190_s24 + $0x70] sm:$0xff] %v12254_v22  ;;  %v12255_v4 = vadd.f32 %v12223_v0, %v12191_v15  ;;  %v12234_v15 = vld [vmem:[%s17190_s24 + $0xd0] sm:$0xff] }
 0xa62   : > { %12284 = vst [vmem:[%s17190_s24 + $0x60] sm:$0xff] %v12252_v18  ;;  %v12253_v21 = vadd.f32 %v12221_v58, %v12189_v29  ;;  %v15419_v13 = vpop.f32.mrb[80].mxu1  ;;  %v12232_v29 = vld [vmem:[%s17190_s24 + $0xc0] sm:$0xff]  ;;  %v12235_v58 = vld [vmem:[%s17190_s24 + $0xd8] sm:$0xff] }
 0xa63   : > { %12287 = vst [vmem:[%s17190_s24 + $0x78] sm:$0xff] %v12255_v4  ;;  %v15803_v7 = vadd.f32 %v21417_v27, %v15419_v13  ;;  %v12076_v51 = vpop.f32.mrb[81].mxu1 }
 0xa64   : > { %12285 = vst [vmem:[%s17190_s24 + $0x68] sm:$0xff] %v12253_v21  ;;  %v15806_v52 = vadd.f32 %v21411_v56, %v12076_v51  ;;  %v15420_v2 = vpop.f32.mrb[82].mxu1 }
 0xa65   : > { %v12194_v10 = vadd.f32 %v15803_v7, %v21458_v33  ;;  %v15809_v23 = vadd.f32 %v21420_v62, %v15420_v2  ;;  %v12079_v40 = vpop.f32.mrb[83].mxu1  ;;  %v12225_v62 = vld [vmem:[%s17190_s24 + $0x88] sm:$0xff] }
 0xa66   : > { %v12192_v59 = vadd.f32 %v15806_v52, %v21458_v33  ;;  %v15812_v16 = vadd.f32 %v21414_v49, %v12079_v40 }
 0xa67   : > { %v12258_v27 = vadd.f32 %v12226_v19, %v12194_v10  ;;  %v12195_v17 = vadd.f32 %v15809_v23, %v21458_v33 }
 0xa68   : > { %v12256_v56 = vadd.f32 %v12224_v20, %v12192_v59  ;;  %v12193_v31 = vadd.f32 %v15812_v16, %v21458_v33  ;;  %v12238_v59 = vld [vmem:[%s17190_s24 + $0xf0] sm:$0xff] }
 0xa69   : > { %12290 = vst [vmem:[%s17190_s24 + $0x90] sm:$0xff] %v12258_v27  ;;  %v12259_v32 = vadd.f32 %v12227_v63, %v12195_v17 }
 0xa6a   : > { %12288 = vst [vmem:[%s17190_s24 + $0x80] sm:$0xff] %v12256_v56  ;;  %v12257_v25 = vadd.f32 %v12225_v62, %v12193_v31  ;;  %v15423_v1 = vpop.f32.mrb[84].mxu1  ;;  %v12239_v56 = vld [vmem:[%s17190_s24 + $0xf8] sm:$0xff]  ;;  %v12237_v31 = vld [vmem:[%s17190_s24 + $0xe8] sm:$0xff] }
 0xa6b   : > { %12291 = vst [vmem:[%s17190_s24 + $0x98] sm:$0xff] %v12259_v32  ;;  %v15815_v49 = vadd.f32 %v21429_v5, %v15423_v1  ;;  %v12092_v50 = vpop.f32.mrb[85].mxu1 }
 0xa6c   : > { %12289 = vst [vmem:[%s17190_s24 + $0x88] sm:$0xff] %v12257_v25  ;;  %v15818_v14 = vadd.f32 %v21423_v35, %v12092_v50  ;;  %v15424_v12 = vpop.f32.mrb[86].mxu1 }
 0xa6d   : > { %v12198_v9 = vadd.f32 %v15815_v49, %v21458_v33  ;;  %v15821_v54 = vadd.f32 %v21432_v43, %v15424_v12  ;;  %v12095_v53 = vpop.f32.mrb[87].mxu1  ;;  %v12229_v43 = vld [vmem:[%s17190_s24 + $0xa8] sm:$0xff] }
 0xa6e   : > { %v12196_v30 = vadd.f32 %v15818_v14, %v21458_v33  ;;  %v15824_v44 = vadd.f32 %v21426_v6, %v12095_v53 }
 0xa6f   : > { %v12262_v5 = vadd.f32 %v12230_v42, %v12198_v9  ;;  %v12199_v11 = vadd.f32 %v15821_v54, %v21458_v33 }
 0xa70   : > { %v12260_v35 = vadd.f32 %v12228_v37, %v12196_v30  ;;  %v12197_v34 = vadd.f32 %v15824_v44, %v21458_v33 }
 0xa71   : > { %12294 = vst [vmem:[%s17190_s24 + $0xb0] sm:$0xff] %v12262_v5  ;;  %v12263_v36 = vadd.f32 %v12231_v26, %v12199_v11 }
 0xa72   : > { %12292 = vst [vmem:[%s17190_s24 + $0xa0] sm:$0xff] %v12260_v35  ;;  %v12261_v24 = vadd.f32 %v12229_v43, %v12197_v34  ;;  %v15427_v60 = vpop.f32.mrb[88].mxu1 }
 0xa73   : > { %12295 = vst [vmem:[%s17190_s24 + $0xb8] sm:$0xff] %v12263_v36  ;;  %v15827_v6 = vadd.f32 %v21441_v41, %v15427_v60  ;;  %v12108_v28 = vpop.f32.mrb[89].mxu1 }
 0xa74   : > { %12293 = vst [vmem:[%s17190_s24 + $0xa8] sm:$0xff] %v12261_v24  ;;  %v15830_v45 = vadd.f32 %v21435_v48, %v12108_v28  ;;  %v15428_v38 = vpop.f32.mrb[90].mxu1 }
 0xa75   : > { %v12202_v57 = vadd.f32 %v15827_v6, %v21458_v33  ;;  %v15833_v22 = vadd.f32 %v21444_v46, %v15428_v38  ;;  %v12111_v3 = vpop.f32.mrb[91].mxu1  ;;  %v12233_v46 = vld [vmem:[%s17190_s24 + $0xc8] sm:$0xff] }
 0xa76   : > { %v12200_v18 = vadd.f32 %v15830_v45, %v21458_v33  ;;  %v15836_v0 = vadd.f32 %v21438_v39, %v12111_v3 }
 0xa77   : > { %v12266_v41 = vadd.f32 %v12234_v15, %v12202_v57  ;;  %v12203_v4 = vadd.f32 %v15833_v22, %v21458_v33 }
 0xa78   : > { %v12264_v48 = vadd.f32 %v12232_v29, %v12200_v18  ;;  %v12201_v21 = vadd.f32 %v15836_v0, %v21458_v33 }
 0xa79   : > { %12298 = vst [vmem:[%s17190_s24 + $0xd0] sm:$0xff] %v12266_v41  ;;  %v12267_v13 = vadd.f32 %v12235_v58, %v12203_v4 }
 0xa7a   : > { %12296 = vst [vmem:[%s17190_s24 + $0xc0] sm:$0xff] %v12264_v48  ;;  %v12265_v7 = vadd.f32 %v12233_v46, %v12201_v21  ;;  %v15431_v51 = vpop.f32.mrb[92].mxu1 }
 0xa7b   : > { %12299 = vst [vmem:[%s17190_s24 + $0xd8] sm:$0xff] %v12267_v13  ;;  %v15839_v39 = vadd.f32 %v21453_v55, %v15431_v51  ;;  %v12124_v52 = vpop.f32.mrb[93].mxu1  ;;  %v12236_v55 = vld [vmem:[%s17190_s24 + $0xe0] sm:$0xff] }
 0xa7c   : > { %12297 = vst [vmem:[%s17190_s24 + $0xc8] sm:$0xff] %v12265_v7  ;;  %v15842_v2 = vadd.f32 %v21447_v47, %v12124_v52  ;;  %v15432_v10 = vpop.f32.mrb[94].mxu1 }
 0xa7d   : > { %v12206_v23 = vadd.f32 %v15839_v39, %v21458_v33  ;;  %v15845_v40 = vadd.f32 %v21456_v8, %v15432_v10  ;;  %v12127_v19 = vpop.f32.mrb[95].mxu1 }
 0xa7e   : > { %v12204_v16 = vadd.f32 %v15842_v2, %v21458_v33  ;;  %v15848_v27 = vadd.f32 %v21450_v61, %v12127_v19 }
 0xa7f   : > { %v12270_v47 = vadd.f32 %v12238_v59, %v12206_v23  ;;  %v12207_v20 = vadd.f32 %v15845_v40, %v21458_v33 }
 0xa80   : > { %v12268_v17 = vadd.f32 %v12236_v55, %v12204_v16  ;;  %v12205_v8 = vadd.f32 %v15848_v27, %v21458_v33 }
 0xa81   : > { %12302 = vst [vmem:[%s17190_s24 + $0xf0] sm:$0xff] %v12270_v47  ;;  %v12271_v63 = vadd.f32 %v12239_v56, %v12207_v20 }
 0xa82   : > { %12300 = vst [vmem:[%s17190_s24 + $0xe0] sm:$0xff] %v12268_v17  ;;  %v12269_v61 = vadd.f32 %v12237_v31, %v12205_v8 }
 0xa83   : > { %12303 = vst [vmem:[%s17190_s24 + $0xf8] sm:$0xff] %v12271_v63 }
 0xa84   : > { %12301 = vst [vmem:[%s17190_s24 + $0xe8] sm:$0xff] %v12269_v61 }
 0xa85   : > { %16854 = shalt.err (!%p16851_p13)
}
 0xa86   : > { %s16855_s11 = scalar_lea.hbm %s21590_s8, 4096  ;;  %s16859_s17 = scalar_lea.hbm %s21644_s5, 8192 }
 0xa87   : > { %p16856_p0 = scmp.ne.s32.totalorder %s21590_s8, %s16855_s11  ;;  %p16860_p9 = scmp.lt.u32.totalorder %s21590_s8, %s21644_s5 }
 0xa88   : > { %p16861_p12 = scmp.lt.u32.totalorder %s16859_s17, %s16855_s11  ;;  %p16863_p4 = scmp.lt.u32.totalorder %s16855_s11, %s21590_s8 }
 0xa89   : > { %p16857_p5 = pnand %p16856_p0, %p17112_p1 }
 0xa8a   : > { %p16862_p2 = por %p16861_p12, %p16860_p9 }
 0xa8b   : > { %p16858_p11 = pneg %p16857_p5 }
 0xa8c   : > { %p16864_p6 = por %p16863_p4, %p16862_p2 }
 0xa8e   : > { %p16865_p8 = pnand %p16864_p6, %p16858_p11 }
 0xa90   : > { %16868 = shalt.err (!%p16865_p8)
}
 0xa91   : > { %s16928_s26 = smov 128   ;;  %s16929_s9 = smov 8  }
 0xa92   : > { %16091 = dma.vmem_to_hbm [thread:$0]  (%p17112_p1), %s21592_s29, 4096, %s21590_s8, %s12305_s22, %s16928_s26, %s16928_s26, %s16929_s9  }
 0xa93 PF: > { %s12333_s10 = sand.u32 1, %s16903_s18   ;;  %p21911_p3 = scmp.ne.s32.totalorder %s21702_s25, 0 }
 0xa94   : > { %p21912_p7 = scmp.ge.s32.totalorder %s16915_s21, 2  ;;  %s12334_s15 = scalar_lea.sflag [#allocation5], %s12333_s10 }
 0xa96   : > { %p16111_p10 = pnand %p21912_p7, %p21911_p3 }
 0xa98   : > { %16898 = dma.done.wait (!%p16111_p10), %s12334_s15, 4096  }
 0xa99   : > { %16900 = vsyncadd (!%p16111_p10), %s12334_s15, 4294963200  ;;  %p20_p13 = scmp.ge.s32.totalorder %s17102_s14, 4   ;;  %s21913_s18 = smov %s16907_s19 }
 0xa9a   : > { %s21914_s19 = smov %s16911_s20  ;;  %s21915_s20 = smov %s17118_s28 }
 0xa9b   : > { %s21916_s21 = smov %s17102_s14  ;;  %22 = sbr.rel (!%p20_p13) target bundleno = 7 (0x7), region = 113 }
 0xaa2   :  { %12339 = vsyncpa [#allocation4], 1 }
 0xaa3   :  { %12341 = vsyncpa [#allocation4 + $0x1], 1 }
 0xaa4   :  { %12342 = vsyncpa [#allocation7], 1 }
 0xaa5   :  { %12343 = vsyncpa [#allocation10], 1 }
 0xaa6   :  { %12344 = vsyncpa [#allocation5], 1 }
 0xaa7   :  { %12346 = vsyncpa [#allocation5 + $0x1], 1 }

</bundles_post_ra>
